<compile_context>
chip_gen: v7x
topology: tpu7x:2x2x1
jax: 0.10.0
libtpu: 0.0.40
codegen_flags: <defaults>
</compile_context>

<pallas_src>
import jax
import jax.numpy as jnp
from jax.experimental import pallas as pl
from jax.experimental.pallas import tpu as pltpu

H_IN, W_IN = 28, 28
KH, KW = 3, 3
C_OUT = 32                                       # strength='normal' -> Conv2d(1, 32, 3)
H_CONV, W_CONV = H_IN - KH + 1, W_IN - KW + 1    # 26, 26
H_POOL, W_POOL = H_CONV // 2, W_CONV // 2        # 13, 13
N_FLAT = C_OUT * H_POOL * W_POOL                 # 5408
B_TILE = 128                                     # batch tile = lane width


def _default_compute_dtype():
    """bf16 conv/pool only where the VPU has native bf16 (v6e / v7x); else f32."""
    try:
        kind = jax.devices()[0].device_kind.lower()
    except Exception:
        return jnp.float32
    if any(tag in kind for tag in ("v6", "v7", "7x")):
        return jnp.bfloat16
    return jnp.float32


def _cnn_adversary_kernel(x_ref, ylin_ref, cwb_ref, fwb_ref, out_ref):
    """Per batch tile (B = B_TILE lanes, batch on lanes, channels on sublanes):
         x_ref   : [28, 28, 1, B]      image (compute dtype)
         ylin_ref: [1, B]       f32    y*w_y + fc_bias + sum(fw*conv_bias)
         cwb_ref : [9, 32, B]   cdt    conv taps, pre-splatted across lanes
         fwb_ref : [13, 13, 32, B] f32 fc weights (h, w, c), pre-splatted across lanes
         out_ref : [1, B]       f32    sigmoid(fc(features))  (pre-normalization)
    """
    bt = out_ref.shape[-1]

    def row_body(r, acc):                         # r = pooled output row, acc: [32, B] f32
        # Hoisted broadcasts: the 4 input rows feeding pooled row r, splatted
        # across the 32 channel sublanes exactly once per iteration.
        xb = [jnp.broadcast_to(x_ref[2 * r + j], (W_IN, C_OUT, bt))
              for j in range(KH + 1)]             # 4 x [28, 32, B]

        row_acc = jnp.zeros((C_OUT, bt), jnp.float32)
        for q in range(W_POOL):                   # pooled column (static unroll)
            cw = [cwb_ref[k] for k in range(KH * KW)]          # 9 x [32, B] (lane-dense)
            # De-duplicated x column slices for this 2x2 pooling window
            # (static leading-dim indexing of xb -> plain vreg selects/loads).
            xw = [[xb[j][2 * q + c] for c in range(KW + 1)]    # [32, B] each
                  for j in range(KH + 1)]

            m = None                              # 2x2 max over the window, [32, B]
            for dr in range(2):
                for dc in range(2):
                    conv = None                   # 9-tap chain stays on [32, B] values
                    for ki in range(KH):
                        for kj in range(KW):
                            t = xw[dr + ki][dc + kj] * cw[ki * KW + kj]
                            conv = t if conv is None else conv + t
                    m = conv if m is None else jnp.maximum(m, conv)

            # fc accumulation in f32 (accuracy), fw already lane-dense -> no splats.
            row_acc = row_acc + m.astype(jnp.float32) * fwb_ref[r, q]
        return acc + row_acc

    acc = jax.lax.fori_loop(0, H_POOL, row_body,
                            jnp.zeros((C_OUT, bt), jnp.float32))
    # Single cross-sublane reduction over the 32 channels, then sigmoid (f32).
    z = jnp.sum(acc, axis=0, keepdims=True) + ylin_ref[...]    # [1, B]
    out_ref[...] = 1.0 / (1.0 + jnp.exp(-z))


def cnn_adversary_forward(x, y, s, params, compute_dtype=None):
    """x: [B,1,28,28] (NCHW), y: [B], s: [B] (unused).  Returns logits [B]."""
    del s  # unused by the PyTorch module as well
    if compute_dtype is None:
        compute_dtype = _default_compute_dtype()
    b = x.shape[0]
    conv_w, conv_b, fc_w, fc_b = params

    nb = -(-b // B_TILE)
    if nb > 1 and nb % 2 == 1:
        nb += 1                                   # even grid -> both v7x TensorCores busy
    b_pad = nb * B_TILE

    # --- glue: re-layout inputs / parameters for the kernel ---
    # x -> per-tile contiguous [nb, 28, 28, 1, B_TILE] (batch on lanes), one transpose.
    xp = jnp.pad(x.astype(compute_dtype), ((0, b_pad - b), (0, 0), (0, 0), (0, 0)))
    x_tiled = jnp.transpose(xp.reshape(nb, B_TILE, 1, H_IN, W_IN), (0, 3, 4, 2, 1))

    # Conv taps, lane-dense: [9, 32, B_TILE], cw[ki*3+kj, c, :].
    cw = jnp.transpose(conv_w.reshape(C_OUT, KH * KW), (1, 0)).astype(compute_dtype)
    cwb = jnp.broadcast_to(cw[:, :, None], (KH * KW, C_OUT, B_TILE))

    # PyTorch flatten of [B,C,13,13] is (c,h,w)-ordered; permute fc weight to (h,w,c),
    # keep f32 and pre-splat across lanes: [13, 13, 32, B_TILE].
    fw_hwc = jnp.transpose(fc_w[0, :N_FLAT].reshape(C_OUT, H_POOL, W_POOL),
                           (1, 2, 0)).astype(jnp.float32)
    fwb = jnp.broadcast_to(fw_hwc[..., None], (H_POOL, W_POOL, C_OUT, B_TILE))

    # Fold conv bias through max-pool into the fc bias (exact), plus label weight.
    bias_total = fc_b[0] + jnp.sum(fw_hwc * conv_b[None, None, :])
    w_y = fc_w[0, N_FLAT]
    ylin = y.astype(jnp.float32) * w_y + bias_total                         # [B]
    ylin = jnp.pad(ylin, (0, b_pad - b)).reshape(1, b_pad)

    adv_row = pl.pallas_call(
        _cnn_adversary_kernel,
        out_shape=jax.ShapeDtypeStruct((1, b_pad), jnp.float32),
        grid_spec=pltpu.PrefetchScalarGridSpec(
            num_scalar_prefetch=0,
            grid=(nb,),
            in_specs=[
                pl.BlockSpec((None, H_IN, W_IN, 1, B_TILE),
                             lambda i: (i, 0, 0, 0, 0)),                     # x (contiguous tile)
                pl.BlockSpec((1, B_TILE), lambda i: (0, i)),                 # ylin
                pl.BlockSpec((KH * KW, C_OUT, B_TILE), lambda i: (0, 0, 0)), # conv taps
                pl.BlockSpec((H_POOL, W_POOL, C_OUT, B_TILE),
                             lambda i: (0, 0, 0, 0)),                        # fc img weights
            ],
            out_specs=pl.BlockSpec((1, B_TILE), lambda i: (0, i)),
        ),
        compiler_params=pltpu.CompilerParams(
            dimension_semantics=("parallel",),            # megacore sharding on v7x
            vmem_limit_bytes=32 * 1024 * 1024),           # ~13 MiB used; fits all gens
    )(x_tiled, ylin, cwb, fwb)

    # Batch-coupled normalization must see the whole real batch -> done in the wrapper
    # (padded lanes produce sigmoid(0)=0.5 and are sliced off before the sum).
    adv = adv_row[0, :b]
    return b * adv / jnp.sum(adv) + 1.0


def init_params(key):
    """Deterministic synthetic parameters with the module's __init__ shapes."""
    k1, k2, k3, k4 = jax.random.split(key, 4)
    conv_w = 0.1 * jax.random.normal(k1, (C_OUT, 1, KH, KW), jnp.float32)   # Conv2d weight
    conv_b = 0.1 * jax.random.normal(k2, (C_OUT,), jnp.float32)             # Conv2d bias
    fc_w = 0.02 * jax.random.normal(k3, (1, N_FLAT + 1), jnp.float32)       # Linear(5409, 1) weight
    fc_b = 0.02 * jax.random.normal(k4, (1,), jnp.float32)                  # Linear bias
    return conv_w, conv_b, fc_w, fc_b


def reference_forward(x, y, s, params):
    """Pure-JAX reference with identical semantics (for correctness check)."""
    del s
    conv_w, conv_b, fc_w, fc_b = params
    xf = x.astype(jnp.float32)
    conv = jax.lax.conv_general_dilated(
        xf, conv_w, window_strides=(1, 1), padding="VALID",
        dimension_numbers=("NCHW", "OIHW", "NCHW")) + conv_b[None, :, None, None]
    pooled = jax.lax.reduce_window(conv, -jnp.inf, jax.lax.max,
                                   (1, 1, 2, 2), (1, 1, 2, 2), "VALID")
    flat = pooled.reshape(x.shape[0], -1)
    feat = jnp.concatenate([flat, y.astype(jnp.float32)[:, None]], axis=1)
    adv = jax.nn.sigmoid(feat @ fc_w.T + fc_b)          # [B,1]
    adv_norm = adv / jnp.sum(adv)
    return jnp.squeeze(x.shape[0] * adv_norm + jnp.ones_like(adv_norm))


if __name__ == "__main__":
    key = jax.random.PRNGKey(0)
    kp, kx, ky = jax.random.split(key, 3)
    params = init_params(kp)

    B = 2
    x = jax.random.normal(kx, (B, 1, H_IN, W_IN), jnp.float32)   # data inputs
    y = jax.random.randint(ky, (B,), 0, 2).astype(jnp.int32)     # labels
    s = jnp.zeros((B,), jnp.int32)                               # protected attr (unused)

    out = jax.block_until_ready(cnn_adversary_forward(x, y, s, params))
    ref = jax.block_until_ready(reference_forward(x, y, s, params))

    assert out.shape == (B,)
    tol = 2e-3 if _default_compute_dtype() == jnp.float32 else 5e-3  # bf16 conv path on v6e/v7x
    assert bool(jnp.allclose(out, ref, rtol=tol, atol=tol)), (out, ref)
    print("KERNEL_OK")
</pallas_src>

<mosaic_0001>
module attributes {stable_mosaic.version = 11 : i64} {
  func.func @_cnn_adversary_kernel(%arg0: i32, %arg1: memref<1x28x28x1x128xf32, #tpu.memory_space<vmem>>, %arg2: memref<1x128xf32, #tpu.memory_space<vmem>>, %arg3: memref<9x32x128xf32, #tpu.memory_space<vmem>>, %arg4: memref<13x13x32x128xf32, #tpu.memory_space<vmem>>, %arg5: memref<1x128xf32, #tpu.memory_space<vmem>>) attributes {dimension_semantics = [#tpu.dimension_semantics<parallel>], iteration_bounds = array<i64: 1>, scalar_prefetch = 0 : i64, scratch_operands = 0 : i64, tpu.core_type = #tpu.core_type<tc>, window_params = [{transform_indices = @transform_0, window_bounds = array<i64: 1, 28, 28, 1, 128>}, {transform_indices = @transform_1, window_bounds = array<i64: 1, 128>}, {pipeline_mode = #tpu.pipeline_mode<synchronous>, transform_indices = @transform_2, window_bounds = array<i64: 9, 32, 128>}, {pipeline_mode = #tpu.pipeline_mode<synchronous>, transform_indices = @transform_3, window_bounds = array<i64: 13, 13, 32, 128>}, {transform_indices = @transform_4, window_bounds = array<i64: 1, 128>}]} {
    %cst = arith.constant 0.000000e+00 : f32
    %0 = vector.broadcast %cst : f32 to vector<32x128xf32>
    %c0_i32 = arith.constant 0 : i32
    %c13_i32 = arith.constant 13 : i32
    %1 = arith.addi %c0_i32, %c13_i32 : i32
    %c1_i32 = arith.constant 1 : i32
    %2 = scf.for %arg6 = %c0_i32 to %1 step %c1_i32 iter_args(%arg7 = %0) -> (vector<32x128xf32>)  : i32 {
      %c2_i32 = arith.constant 2 : i32
      %15 = arith.muli %c2_i32, %arg6 : i32
      %c0_i32_8 = arith.constant 0 : i32
      %16 = arith.addi %15, %c0_i32_8 : i32
      %c0_9 = arith.constant 0 : index
      %17 = arith.index_cast %16 : i32 to index
      %c0_10 = arith.constant 0 : index
      %c0_11 = arith.constant 0 : index
      %c0_12 = arith.constant 0 : index
      %18 = vector.load %arg1[%c0_9, %17, %c0_10, %c0_11, %c0_12] : memref<1x28x28x1x128xf32, #tpu.memory_space<vmem>>, vector<1x1x28x1x128xf32>
      %19 = vector.shape_cast %18 : vector<1x1x28x1x128xf32> to vector<28x1x128xf32>
      %20 = vector.shape_cast %19 : vector<28x1x128xf32> to vector<28x1x128xf32>
      %21 = vector.broadcast %20 : vector<28x1x128xf32> to vector<28x32x128xf32>
      %c2_i32_13 = arith.constant 2 : i32
      %22 = arith.muli %c2_i32_13, %arg6 : i32
      %c1_i32_14 = arith.constant 1 : i32
      %23 = arith.addi %22, %c1_i32_14 : i32
      %c0_15 = arith.constant 0 : index
      %24 = arith.index_cast %23 : i32 to index
      %c0_16 = arith.constant 0 : index
      %c0_17 = arith.constant 0 : index
      %c0_18 = arith.constant 0 : index
      %25 = vector.load %arg1[%c0_15, %24, %c0_16, %c0_17, %c0_18] : memref<1x28x28x1x128xf32, #tpu.memory_space<vmem>>, vector<1x1x28x1x128xf32>
      %26 = vector.shape_cast %25 : vector<1x1x28x1x128xf32> to vector<28x1x128xf32>
      %27 = vector.shape_cast %26 : vector<28x1x128xf32> to vector<28x1x128xf32>
      %28 = vector.broadcast %27 : vector<28x1x128xf32> to vector<28x32x128xf32>
      %c2_i32_19 = arith.constant 2 : i32
      %29 = arith.muli %c2_i32_19, %arg6 : i32
      %c2_i32_20 = arith.constant 2 : i32
      %30 = arith.addi %29, %c2_i32_20 : i32
      %c0_21 = arith.constant 0 : index
      %31 = arith.index_cast %30 : i32 to index
      %c0_22 = arith.constant 0 : index
      %c0_23 = arith.constant 0 : index
      %c0_24 = arith.constant 0 : index
      %32 = vector.load %arg1[%c0_21, %31, %c0_22, %c0_23, %c0_24] : memref<1x28x28x1x128xf32, #tpu.memory_space<vmem>>, vector<1x1x28x1x128xf32>
      %33 = vector.shape_cast %32 : vector<1x1x28x1x128xf32> to vector<28x1x128xf32>
      %34 = vector.shape_cast %33 : vector<28x1x128xf32> to vector<28x1x128xf32>
      %35 = vector.broadcast %34 : vector<28x1x128xf32> to vector<28x32x128xf32>
      %c2_i32_25 = arith.constant 2 : i32
      %36 = arith.muli %c2_i32_25, %arg6 : i32
      %c3_i32 = arith.constant 3 : i32
      %37 = arith.addi %36, %c3_i32 : i32
      %c0_26 = arith.constant 0 : index
      %38 = arith.index_cast %37 : i32 to index
      %c0_27 = arith.constant 0 : index
      %c0_28 = arith.constant 0 : index
      %c0_29 = arith.constant 0 : index
      %39 = vector.load %arg1[%c0_26, %38, %c0_27, %c0_28, %c0_29] : memref<1x28x28x1x128xf32, #tpu.memory_space<vmem>>, vector<1x1x28x1x128xf32>
      %40 = vector.shape_cast %39 : vector<1x1x28x1x128xf32> to vector<28x1x128xf32>
      %41 = vector.shape_cast %40 : vector<28x1x128xf32> to vector<28x1x128xf32>
      %42 = vector.broadcast %41 : vector<28x1x128xf32> to vector<28x32x128xf32>
      %cst_30 = arith.constant 0.000000e+00 : f32
      %43 = vector.broadcast %cst_30 : f32 to vector<32x128xf32>
      %c0_31 = arith.constant 0 : index
      %c0_32 = arith.constant 0 : index
      %c0_33 = arith.constant 0 : index
      %44 = vector.load %arg3[%c0_31, %c0_32, %c0_33] : memref<9x32x128xf32, #tpu.memory_space<vmem>>, vector<1x32x128xf32>
      %45 = vector.shape_cast %44 : vector<1x32x128xf32> to vector<32x128xf32>
      %c1 = arith.constant 1 : index
      %c0_34 = arith.constant 0 : index
      %c0_35 = arith.constant 0 : index
      %46 = vector.load %arg3[%c1, %c0_34, %c0_35] : memref<9x32x128xf32, #tpu.memory_space<vmem>>, vector<1x32x128xf32>
      %47 = vector.shape_cast %46 : vector<1x32x128xf32> to vector<32x128xf32>
      %c2 = arith.constant 2 : index
      %c0_36 = arith.constant 0 : index
      %c0_37 = arith.constant 0 : index
      %48 = vector.load %arg3[%c2, %c0_36, %c0_37] : memref<9x32x128xf32, #tpu.memory_space<vmem>>, vector<1x32x128xf32>
      %49 = vector.shape_cast %48 : vector<1x32x128xf32> to vector<32x128xf32>
      %c3 = arith.constant 3 : index
      %c0_38 = arith.constant 0 : index
      %c0_39 = arith.constant 0 : index
      %50 = vector.load %arg3[%c3, %c0_38, %c0_39] : memref<9x32x128xf32, #tpu.memory_space<vmem>>, vector<1x32x128xf32>
      %51 = vector.shape_cast %50 : vector<1x32x128xf32> to vector<32x128xf32>
      %c4 = arith.constant 4 : index
      %c0_40 = arith.constant 0 : index
      %c0_41 = arith.constant 0 : index
      %52 = vector.load %arg3[%c4, %c0_40, %c0_41] : memref<9x32x128xf32, #tpu.memory_space<vmem>>, vector<1x32x128xf32>
      %53 = vector.shape_cast %52 : vector<1x32x128xf32> to vector<32x128xf32>
      %c5 = arith.constant 5 : index
      %c0_42 = arith.constant 0 : index
      %c0_43 = arith.constant 0 : index
      %54 = vector.load %arg3[%c5, %c0_42, %c0_43] : memref<9x32x128xf32, #tpu.memory_space<vmem>>, vector<1x32x128xf32>
      %55 = vector.shape_cast %54 : vector<1x32x128xf32> to vector<32x128xf32>
      %c6 = arith.constant 6 : index
      %c0_44 = arith.constant 0 : index
      %c0_45 = arith.constant 0 : index
      %56 = vector.load %arg3[%c6, %c0_44, %c0_45] : memref<9x32x128xf32, #tpu.memory_space<vmem>>, vector<1x32x128xf32>
      %57 = vector.shape_cast %56 : vector<1x32x128xf32> to vector<32x128xf32>
      %c7 = arith.constant 7 : index
      %c0_46 = arith.constant 0 : index
      %c0_47 = arith.constant 0 : index
      %58 = vector.load %arg3[%c7, %c0_46, %c0_47] : memref<9x32x128xf32, #tpu.memory_space<vmem>>, vector<1x32x128xf32>
      %59 = vector.shape_cast %58 : vector<1x32x128xf32> to vector<32x128xf32>
      %c8 = arith.constant 8 : index
      %c0_48 = arith.constant 0 : index
      %c0_49 = arith.constant 0 : index
      %60 = vector.load %arg3[%c8, %c0_48, %c0_49] : memref<9x32x128xf32, #tpu.memory_space<vmem>>, vector<1x32x128xf32>
      %61 = vector.shape_cast %60 : vector<1x32x128xf32> to vector<32x128xf32>
      %62 = vector.extract_strided_slice %21 {offsets = [0, 0, 0], sizes = [1, 32, 128], strides = [1, 1, 1]} : vector<28x32x128xf32> to vector<1x32x128xf32>
      %63 = vector.shape_cast %62 : vector<1x32x128xf32> to vector<32x128xf32>
      %64 = vector.extract_strided_slice %21 {offsets = [1, 0, 0], sizes = [1, 32, 128], strides = [1, 1, 1]} : vector<28x32x128xf32> to vector<1x32x128xf32>
      %65 = vector.shape_cast %64 : vector<1x32x128xf32> to vector<32x128xf32>
      %66 = vector.extract_strided_slice %21 {offsets = [2, 0, 0], sizes = [1, 32, 128], strides = [1, 1, 1]} : vector<28x32x128xf32> to vector<1x32x128xf32>
      %67 = vector.shape_cast %66 : vector<1x32x128xf32> to vector<32x128xf32>
      %68 = vector.extract_strided_slice %21 {offsets = [3, 0, 0], sizes = [1, 32, 128], strides = [1, 1, 1]} : vector<28x32x128xf32> to vector<1x32x128xf32>
      %69 = vector.shape_cast %68 : vector<1x32x128xf32> to vector<32x128xf32>
      %70 = vector.extract_strided_slice %28 {offsets = [0, 0, 0], sizes = [1, 32, 128], strides = [1, 1, 1]} : vector<28x32x128xf32> to vector<1x32x128xf32>
      %71 = vector.shape_cast %70 : vector<1x32x128xf32> to vector<32x128xf32>
      %72 = vector.extract_strided_slice %28 {offsets = [1, 0, 0], sizes = [1, 32, 128], strides = [1, 1, 1]} : vector<28x32x128xf32> to vector<1x32x128xf32>
      %73 = vector.shape_cast %72 : vector<1x32x128xf32> to vector<32x128xf32>
      %74 = vector.extract_strided_slice %28 {offsets = [2, 0, 0], sizes = [1, 32, 128], strides = [1, 1, 1]} : vector<28x32x128xf32> to vector<1x32x128xf32>
      %75 = vector.shape_cast %74 : vector<1x32x128xf32> to vector<32x128xf32>
      %76 = vector.extract_strided_slice %28 {offsets = [3, 0, 0], sizes = [1, 32, 128], strides = [1, 1, 1]} : vector<28x32x128xf32> to vector<1x32x128xf32>
      %77 = vector.shape_cast %76 : vector<1x32x128xf32> to vector<32x128xf32>
      %78 = vector.extract_strided_slice %35 {offsets = [0, 0, 0], sizes = [1, 32, 128], strides = [1, 1, 1]} : vector<28x32x128xf32> to vector<1x32x128xf32>
      %79 = vector.shape_cast %78 : vector<1x32x128xf32> to vector<32x128xf32>
      %80 = vector.extract_strided_slice %35 {offsets = [1, 0, 0], sizes = [1, 32, 128], strides = [1, 1, 1]} : vector<28x32x128xf32> to vector<1x32x128xf32>
      %81 = vector.shape_cast %80 : vector<1x32x128xf32> to vector<32x128xf32>
      %82 = vector.extract_strided_slice %35 {offsets = [2, 0, 0], sizes = [1, 32, 128], strides = [1, 1, 1]} : vector<28x32x128xf32> to vector<1x32x128xf32>
      %83 = vector.shape_cast %82 : vector<1x32x128xf32> to vector<32x128xf32>
      %84 = vector.extract_strided_slice %35 {offsets = [3, 0, 0], sizes = [1, 32, 128], strides = [1, 1, 1]} : vector<28x32x128xf32> to vector<1x32x128xf32>
      %85 = vector.shape_cast %84 : vector<1x32x128xf32> to vector<32x128xf32>
      %86 = vector.extract_strided_slice %42 {offsets = [0, 0, 0], sizes = [1, 32, 128], strides = [1, 1, 1]} : vector<28x32x128xf32> to vector<1x32x128xf32>
      %87 = vector.shape_cast %86 : vector<1x32x128xf32> to vector<32x128xf32>
      %88 = vector.extract_strided_slice %42 {offsets = [1, 0, 0], sizes = [1, 32, 128], strides = [1, 1, 1]} : vector<28x32x128xf32> to vector<1x32x128xf32>
      %89 = vector.shape_cast %88 : vector<1x32x128xf32> to vector<32x128xf32>
      %90 = vector.extract_strided_slice %42 {offsets = [2, 0, 0], sizes = [1, 32, 128], strides = [1, 1, 1]} : vector<28x32x128xf32> to vector<1x32x128xf32>
      %91 = vector.shape_cast %90 : vector<1x32x128xf32> to vector<32x128xf32>
      %92 = vector.extract_strided_slice %42 {offsets = [3, 0, 0], sizes = [1, 32, 128], strides = [1, 1, 1]} : vector<28x32x128xf32> to vector<1x32x128xf32>
      %93 = vector.shape_cast %92 : vector<1x32x128xf32> to vector<32x128xf32>
      %94 = arith.mulf %63, %45 : vector<32x128xf32>
      %95 = arith.mulf %65, %47 : vector<32x128xf32>
      %96 = arith.addf %94, %95 : vector<32x128xf32>
      %97 = arith.mulf %67, %49 : vector<32x128xf32>
      %98 = arith.addf %96, %97 : vector<32x128xf32>
      %99 = arith.mulf %71, %51 : vector<32x128xf32>
      %100 = arith.addf %98, %99 : vector<32x128xf32>
      %101 = arith.mulf %73, %53 : vector<32x128xf32>
      %102 = arith.addf %100, %101 : vector<32x128xf32>
      %103 = arith.mulf %75, %55 : vector<32x128xf32>
      %104 = arith.addf %102, %103 : vector<32x128xf32>
      %105 = arith.mulf %79, %57 : vector<32x128xf32>
      %106 = arith.addf %104, %105 : vector<32x128xf32>
      %107 = arith.mulf %81, %59 : vector<32x128xf32>
      %108 = arith.addf %106, %107 : vector<32x128xf32>
      %109 = arith.mulf %83, %61 : vector<32x128xf32>
      %110 = arith.addf %108, %109 : vector<32x128xf32>
      %111 = arith.mulf %65, %45 : vector<32x128xf32>
      %112 = arith.mulf %67, %47 : vector<32x128xf32>
      %113 = arith.addf %111, %112 : vector<32x128xf32>
      %114 = arith.mulf %69, %49 : vector<32x128xf32>
      %115 = arith.addf %113, %114 : vector<32x128xf32>
      %116 = arith.mulf %73, %51 : vector<32x128xf32>
      %117 = arith.addf %115, %116 : vector<32x128xf32>
      %118 = arith.mulf %75, %53 : vector<32x128xf32>
      %119 = arith.addf %117, %118 : vector<32x128xf32>
      %120 = arith.mulf %77, %55 : vector<32x128xf32>
      %121 = arith.addf %119, %120 : vector<32x128xf32>
      %122 = arith.mulf %81, %57 : vector<32x128xf32>
      %123 = arith.addf %121, %122 : vector<32x128xf32>
      %124 = arith.mulf %83, %59 : vector<32x128xf32>
      %125 = arith.addf %123, %124 : vector<32x128xf32>
      %126 = arith.mulf %85, %61 : vector<32x128xf32>
      %127 = arith.addf %125, %126 : vector<32x128xf32>
      %128 = arith.maximumf %110, %127 : vector<32x128xf32>
      %129 = arith.mulf %71, %45 : vector<32x128xf32>
      %130 = arith.mulf %73, %47 : vector<32x128xf32>
      %131 = arith.addf %129, %130 : vector<32x128xf32>
      %132 = arith.mulf %75, %49 : vector<32x128xf32>
      %133 = arith.addf %131, %132 : vector<32x128xf32>
      %134 = arith.mulf %79, %51 : vector<32x128xf32>
      %135 = arith.addf %133, %134 : vector<32x128xf32>
      %136 = arith.mulf %81, %53 : vector<32x128xf32>
      %137 = arith.addf %135, %136 : vector<32x128xf32>
      %138 = arith.mulf %83, %55 : vector<32x128xf32>
      %139 = arith.addf %137, %138 : vector<32x128xf32>
      %140 = arith.mulf %87, %57 : vector<32x128xf32>
      %141 = arith.addf %139, %140 : vector<32x128xf32>
      %142 = arith.mulf %89, %59 : vector<32x128xf32>
      %143 = arith.addf %141, %142 : vector<32x128xf32>
      %144 = arith.mulf %91, %61 : vector<32x128xf32>
      %145 = arith.addf %143, %144 : vector<32x128xf32>
      %146 = arith.maximumf %128, %145 : vector<32x128xf32>
      %147 = arith.mulf %73, %45 : vector<32x128xf32>
      %148 = arith.mulf %75, %47 : vector<32x128xf32>
      %149 = arith.addf %147, %148 : vector<32x128xf32>
      %150 = arith.mulf %77, %49 : vector<32x128xf32>
      %151 = arith.addf %149, %150 : vector<32x128xf32>
      %152 = arith.mulf %81, %51 : vector<32x128xf32>
      %153 = arith.addf %151, %152 : vector<32x128xf32>
      %154 = arith.mulf %83, %53 : vector<32x128xf32>
      %155 = arith.addf %153, %154 : vector<32x128xf32>
      %156 = arith.mulf %85, %55 : vector<32x128xf32>
      %157 = arith.addf %155, %156 : vector<32x128xf32>
      %158 = arith.mulf %89, %57 : vector<32x128xf32>
      %159 = arith.addf %157, %158 : vector<32x128xf32>
      %160 = arith.mulf %91, %59 : vector<32x128xf32>
      %161 = arith.addf %159, %160 : vector<32x128xf32>
      %162 = arith.mulf %93, %61 : vector<32x128xf32>
      %163 = arith.addf %161, %162 : vector<32x128xf32>
      %164 = arith.maximumf %146, %163 : vector<32x128xf32>
      %165 = arith.index_cast %arg6 : i32 to index
      %c0_50 = arith.constant 0 : index
      %c0_51 = arith.constant 0 : index
      %c0_52 = arith.constant 0 : index
      %166 = vector.load %arg4[%165, %c0_50, %c0_51, %c0_52] : memref<13x13x32x128xf32, #tpu.memory_space<vmem>>, vector<1x1x32x128xf32>
      %167 = vector.shape_cast %166 : vector<1x1x32x128xf32> to vector<32x128xf32>
      %168 = arith.mulf %164, %167 : vector<32x128xf32>
      %169 = arith.addf %43, %168 : vector<32x128xf32>
      %c0_53 = arith.constant 0 : index
      %c0_54 = arith.constant 0 : index
      %c0_55 = arith.constant 0 : index
      %170 = vector.load %arg3[%c0_53, %c0_54, %c0_55] : memref<9x32x128xf32, #tpu.memory_space<vmem>>, vector<1x32x128xf32>
      %171 = vector.shape_cast %170 : vector<1x32x128xf32> to vector<32x128xf32>
      %c1_56 = arith.constant 1 : index
      %c0_57 = arith.constant 0 : index
      %c0_58 = arith.constant 0 : index
      %172 = vector.load %arg3[%c1_56, %c0_57, %c0_58] : memref<9x32x128xf32, #tpu.memory_space<vmem>>, vector<1x32x128xf32>
      %173 = vector.shape_cast %172 : vector<1x32x128xf32> to vector<32x128xf32>
      %c2_59 = arith.constant 2 : index
      %c0_60 = arith.constant 0 : index
      %c0_61 = arith.constant 0 : index
      %174 = vector.load %arg3[%c2_59, %c0_60, %c0_61] : memref<9x32x128xf32, #tpu.memory_space<vmem>>, vector<1x32x128xf32>
      %175 = vector.shape_cast %174 : vector<1x32x128xf32> to vector<32x128xf32>
      %c3_62 = arith.constant 3 : index
      %c0_63 = arith.constant 0 : index
      %c0_64 = arith.constant 0 : index
      %176 = vector.load %arg3[%c3_62, %c0_63, %c0_64] : memref<9x32x128xf32, #tpu.memory_space<vmem>>, vector<1x32x128xf32>
      %177 = vector.shape_cast %176 : vector<1x32x128xf32> to vector<32x128xf32>
      %c4_65 = arith.constant 4 : index
      %c0_66 = arith.constant 0 : index
      %c0_67 = arith.constant 0 : index
      %178 = vector.load %arg3[%c4_65, %c0_66, %c0_67] : memref<9x32x128xf32, #tpu.memory_space<vmem>>, vector<1x32x128xf32>
      %179 = vector.shape_cast %178 : vector<1x32x128xf32> to vector<32x128xf32>
      %c5_68 = arith.constant 5 : index
      %c0_69 = arith.constant 0 : index
      %c0_70 = arith.constant 0 : index
      %180 = vector.load %arg3[%c5_68, %c0_69, %c0_70] : memref<9x32x128xf32, #tpu.memory_space<vmem>>, vector<1x32x128xf32>
      %181 = vector.shape_cast %180 : vector<1x32x128xf32> to vector<32x128xf32>
      %c6_71 = arith.constant 6 : index
      %c0_72 = arith.constant 0 : index
      %c0_73 = arith.constant 0 : index
      %182 = vector.load %arg3[%c6_71, %c0_72, %c0_73] : memref<9x32x128xf32, #tpu.memory_space<vmem>>, vector<1x32x128xf32>
      %183 = vector.shape_cast %182 : vector<1x32x128xf32> to vector<32x128xf32>
      %c7_74 = arith.constant 7 : index
      %c0_75 = arith.constant 0 : index
      %c0_76 = arith.constant 0 : index
      %184 = vector.load %arg3[%c7_74, %c0_75, %c0_76] : memref<9x32x128xf32, #tpu.memory_space<vmem>>, vector<1x32x128xf32>
      %185 = vector.shape_cast %184 : vector<1x32x128xf32> to vector<32x128xf32>
      %c8_77 = arith.constant 8 : index
      %c0_78 = arith.constant 0 : index
      %c0_79 = arith.constant 0 : index
      %186 = vector.load %arg3[%c8_77, %c0_78, %c0_79] : memref<9x32x128xf32, #tpu.memory_space<vmem>>, vector<1x32x128xf32>
      %187 = vector.shape_cast %186 : vector<1x32x128xf32> to vector<32x128xf32>
      %188 = vector.extract_strided_slice %21 {offsets = [2, 0, 0], sizes = [1, 32, 128], strides = [1, 1, 1]} : vector<28x32x128xf32> to vector<1x32x128xf32>
      %189 = vector.shape_cast %188 : vector<1x32x128xf32> to vector<32x128xf32>
      %190 = vector.extract_strided_slice %21 {offsets = [3, 0, 0], sizes = [1, 32, 128], strides = [1, 1, 1]} : vector<28x32x128xf32> to vector<1x32x128xf32>
      %191 = vector.shape_cast %190 : vector<1x32x128xf32> to vector<32x128xf32>
      %192 = vector.extract_strided_slice %21 {offsets = [4, 0, 0], sizes = [1, 32, 128], strides = [1, 1, 1]} : vector<28x32x128xf32> to vector<1x32x128xf32>
      %193 = vector.shape_cast %192 : vector<1x32x128xf32> to vector<32x128xf32>
      %194 = vector.extract_strided_slice %21 {offsets = [5, 0, 0], sizes = [1, 32, 128], strides = [1, 1, 1]} : vector<28x32x128xf32> to vector<1x32x128xf32>
      %195 = vector.shape_cast %194 : vector<1x32x128xf32> to vector<32x128xf32>
      %196 = vector.extract_strided_slice %28 {offsets = [2, 0, 0], sizes = [1, 32, 128], strides = [1, 1, 1]} : vector<28x32x128xf32> to vector<1x32x128xf32>
      %197 = vector.shape_cast %196 : vector<1x32x128xf32> to vector<32x128xf32>
      %198 = vector.extract_strided_slice %28 {offsets = [3, 0, 0], sizes = [1, 32, 128], strides = [1, 1, 1]} : vector<28x32x128xf32> to vector<1x32x128xf32>
      %199 = vector.shape_cast %198 : vector<1x32x128xf32> to vector<32x128xf32>
      %200 = vector.extract_strided_slice %28 {offsets = [4, 0, 0], sizes = [1, 32, 128], strides = [1, 1, 1]} : vector<28x32x128xf32> to vector<1x32x128xf32>
      %201 = vector.shape_cast %200 : vector<1x32x128xf32> to vector<32x128xf32>
      %202 = vector.extract_strided_slice %28 {offsets = [5, 0, 0], sizes = [1, 32, 128], strides = [1, 1, 1]} : vector<28x32x128xf32> to vector<1x32x128xf32>
      %203 = vector.shape_cast %202 : vector<1x32x128xf32> to vector<32x128xf32>
      %204 = vector.extract_strided_slice %35 {offsets = [2, 0, 0], sizes = [1, 32, 128], strides = [1, 1, 1]} : vector<28x32x128xf32> to vector<1x32x128xf32>
      %205 = vector.shape_cast %204 : vector<1x32x128xf32> to vector<32x128xf32>
      %206 = vector.extract_strided_slice %35 {offsets = [3, 0, 0], sizes = [1, 32, 128], strides = [1, 1, 1]} : vector<28x32x128xf32> to vector<1x32x128xf32>
      %207 = vector.shape_cast %206 : vector<1x32x128xf32> to vector<32x128xf32>
      %208 = vector.extract_strided_slice %35 {offsets = [4, 0, 0], sizes = [1, 32, 128], strides = [1, 1, 1]} : vector<28x32x128xf32> to vector<1x32x128xf32>
      %209 = vector.shape_cast %208 : vector<1x32x128xf32> to vector<32x128xf32>
      %210 = vector.extract_strided_slice %35 {offsets = [5, 0, 0], sizes = [1, 32, 128], strides = [1, 1, 1]} : vector<28x32x128xf32> to vector<1x32x128xf32>
      %211 = vector.shape_cast %210 : vector<1x32x128xf32> to vector<32x128xf32>
      %212 = vector.extract_strided_slice %42 {offsets = [2, 0, 0], sizes = [1, 32, 128], strides = [1, 1, 1]} : vector<28x32x128xf32> to vector<1x32x128xf32>
      %213 = vector.shape_cast %212 : vector<1x32x128xf32> to vector<32x128xf32>
      %214 = vector.extract_strided_slice %42 {offsets = [3, 0, 0], sizes = [1, 32, 128], strides = [1, 1, 1]} : vector<28x32x128xf32> to vector<1x32x128xf32>
      %215 = vector.shape_cast %214 : vector<1x32x128xf32> to vector<32x128xf32>
      %216 = vector.extract_strided_slice %42 {offsets = [4, 0, 0], sizes = [1, 32, 128], strides = [1, 1, 1]} : vector<28x32x128xf32> to vector<1x32x128xf32>
      %217 = vector.shape_cast %216 : vector<1x32x128xf32> to vector<32x128xf32>
      %218 = vector.extract_strided_slice %42 {offsets = [5, 0, 0], sizes = [1, 32, 128], strides = [1, 1, 1]} : vector<28x32x128xf32> to vector<1x32x128xf32>
      %219 = vector.shape_cast %218 : vector<1x32x128xf32> to vector<32x128xf32>
      %220 = arith.mulf %189, %171 : vector<32x128xf32>
      %221 = arith.mulf %191, %173 : vector<32x128xf32>
      %222 = arith.addf %220, %221 : vector<32x128xf32>
      %223 = arith.mulf %193, %175 : vector<32x128xf32>
      %224 = arith.addf %222, %223 : vector<32x128xf32>
      %225 = arith.mulf %197, %177 : vector<32x128xf32>
      %226 = arith.addf %224, %225 : vector<32x128xf32>
      %227 = arith.mulf %199, %179 : vector<32x128xf32>
      %228 = arith.addf %226, %227 : vector<32x128xf32>
      %229 = arith.mulf %201, %181 : vector<32x128xf32>
      %230 = arith.addf %228, %229 : vector<32x128xf32>
      %231 = arith.mulf %205, %183 : vector<32x128xf32>
      %232 = arith.addf %230, %231 : vector<32x128xf32>
      %233 = arith.mulf %207, %185 : vector<32x128xf32>
      %234 = arith.addf %232, %233 : vector<32x128xf32>
      %235 = arith.mulf %209, %187 : vector<32x128xf32>
      %236 = arith.addf %234, %235 : vector<32x128xf32>
      %237 = arith.mulf %191, %171 : vector<32x128xf32>
      %238 = arith.mulf %193, %173 : vector<32x128xf32>
      %239 = arith.addf %237, %238 : vector<32x128xf32>
      %240 = arith.mulf %195, %175 : vector<32x128xf32>
      %241 = arith.addf %239, %240 : vector<32x128xf32>
      %242 = arith.mulf %199, %177 : vector<32x128xf32>
      %243 = arith.addf %241, %242 : vector<32x128xf32>
      %244 = arith.mulf %201, %179 : vector<32x128xf32>
      %245 = arith.addf %243, %244 : vector<32x128xf32>
      %246 = arith.mulf %203, %181 : vector<32x128xf32>
      %247 = arith.addf %245, %246 : vector<32x128xf32>
      %248 = arith.mulf %207, %183 : vector<32x128xf32>
      %249 = arith.addf %247, %248 : vector<32x128xf32>
      %250 = arith.mulf %209, %185 : vector<32x128xf32>
      %251 = arith.addf %249, %250 : vector<32x128xf32>
      %252 = arith.mulf %211, %187 : vector<32x128xf32>
      %253 = arith.addf %251, %252 : vector<32x128xf32>
      %254 = arith.maximumf %236, %253 : vector<32x128xf32>
      %255 = arith.mulf %197, %171 : vector<32x128xf32>
      %256 = arith.mulf %199, %173 : vector<32x128xf32>
      %257 = arith.addf %255, %256 : vector<32x128xf32>
      %258 = arith.mulf %201, %175 : vector<32x128xf32>
      %259 = arith.addf %257, %258 : vector<32x128xf32>
      %260 = arith.mulf %205, %177 : vector<32x128xf32>
      %261 = arith.addf %259, %260 : vector<32x128xf32>
      %262 = arith.mulf %207, %179 : vector<32x128xf32>
      %263 = arith.addf %261, %262 : vector<32x128xf32>
      %264 = arith.mulf %209, %181 : vector<32x128xf32>
      %265 = arith.addf %263, %264 : vector<32x128xf32>
      %266 = arith.mulf %213, %183 : vector<32x128xf32>
      %267 = arith.addf %265, %266 : vector<32x128xf32>
      %268 = arith.mulf %215, %185 : vector<32x128xf32>
      %269 = arith.addf %267, %268 : vector<32x128xf32>
      %270 = arith.mulf %217, %187 : vector<32x128xf32>
      %271 = arith.addf %269, %270 : vector<32x128xf32>
      %272 = arith.maximumf %254, %271 : vector<32x128xf32>
      %273 = arith.mulf %199, %171 : vector<32x128xf32>
      %274 = arith.mulf %201, %173 : vector<32x128xf32>
      %275 = arith.addf %273, %274 : vector<32x128xf32>
      %276 = arith.mulf %203, %175 : vector<32x128xf32>
      %277 = arith.addf %275, %276 : vector<32x128xf32>
      %278 = arith.mulf %207, %177 : vector<32x128xf32>
      %279 = arith.addf %277, %278 : vector<32x128xf32>
      %280 = arith.mulf %209, %179 : vector<32x128xf32>
      %281 = arith.addf %279, %280 : vector<32x128xf32>
      %282 = arith.mulf %211, %181 : vector<32x128xf32>
      %283 = arith.addf %281, %282 : vector<32x128xf32>
      %284 = arith.mulf %215, %183 : vector<32x128xf32>
      %285 = arith.addf %283, %284 : vector<32x128xf32>
      %286 = arith.mulf %217, %185 : vector<32x128xf32>
      %287 = arith.addf %285, %286 : vector<32x128xf32>
      %288 = arith.mulf %219, %187 : vector<32x128xf32>
      %289 = arith.addf %287, %288 : vector<32x128xf32>
      %290 = arith.maximumf %272, %289 : vector<32x128xf32>
      %291 = arith.index_cast %arg6 : i32 to index
      %c1_80 = arith.constant 1 : index
      %c0_81 = arith.constant 0 : index
      %c0_82 = arith.constant 0 : index
      %292 = vector.load %arg4[%291, %c1_80, %c0_81, %c0_82] : memref<13x13x32x128xf32, #tpu.memory_space<vmem>>, vector<1x1x32x128xf32>
      %293 = vector.shape_cast %292 : vector<1x1x32x128xf32> to vector<32x128xf32>
      %294 = arith.mulf %290, %293 : vector<32x128xf32>
      %295 = arith.addf %169, %294 : vector<32x128xf32>
      %c0_83 = arith.constant 0 : index
      %c0_84 = arith.constant 0 : index
      %c0_85 = arith.constant 0 : index
      %296 = vector.load %arg3[%c0_83, %c0_84, %c0_85] : memref<9x32x128xf32, #tpu.memory_space<vmem>>, vector<1x32x128xf32>
      %297 = vector.shape_cast %296 : vector<1x32x128xf32> to vector<32x128xf32>
      %c1_86 = arith.constant 1 : index
      %c0_87 = arith.constant 0 : index
      %c0_88 = arith.constant 0 : index
      %298 = vector.load %arg3[%c1_86, %c0_87, %c0_88] : memref<9x32x128xf32, #tpu.memory_space<vmem>>, vector<1x32x128xf32>
      %299 = vector.shape_cast %298 : vector<1x32x128xf32> to vector<32x128xf32>
      %c2_89 = arith.constant 2 : index
      %c0_90 = arith.constant 0 : index
      %c0_91 = arith.constant 0 : index
      %300 = vector.load %arg3[%c2_89, %c0_90, %c0_91] : memref<9x32x128xf32, #tpu.memory_space<vmem>>, vector<1x32x128xf32>
      %301 = vector.shape_cast %300 : vector<1x32x128xf32> to vector<32x128xf32>
      %c3_92 = arith.constant 3 : index
      %c0_93 = arith.constant 0 : index
      %c0_94 = arith.constant 0 : index
      %302 = vector.load %arg3[%c3_92, %c0_93, %c0_94] : memref<9x32x128xf32, #tpu.memory_space<vmem>>, vector<1x32x128xf32>
      %303 = vector.shape_cast %302 : vector<1x32x128xf32> to vector<32x128xf32>
      %c4_95 = arith.constant 4 : index
      %c0_96 = arith.constant 0 : index
      %c0_97 = arith.constant 0 : index
      %304 = vector.load %arg3[%c4_95, %c0_96, %c0_97] : memref<9x32x128xf32, #tpu.memory_space<vmem>>, vector<1x32x128xf32>
      %305 = vector.shape_cast %304 : vector<1x32x128xf32> to vector<32x128xf32>
      %c5_98 = arith.constant 5 : index
      %c0_99 = arith.constant 0 : index
      %c0_100 = arith.constant 0 : index
      %306 = vector.load %arg3[%c5_98, %c0_99, %c0_100] : memref<9x32x128xf32, #tpu.memory_space<vmem>>, vector<1x32x128xf32>
      %307 = vector.shape_cast %306 : vector<1x32x128xf32> to vector<32x128xf32>
      %c6_101 = arith.constant 6 : index
      %c0_102 = arith.constant 0 : index
      %c0_103 = arith.constant 0 : index
      %308 = vector.load %arg3[%c6_101, %c0_102, %c0_103] : memref<9x32x128xf32, #tpu.memory_space<vmem>>, vector<1x32x128xf32>
      %309 = vector.shape_cast %308 : vector<1x32x128xf32> to vector<32x128xf32>
      %c7_104 = arith.constant 7 : index
      %c0_105 = arith.constant 0 : index
      %c0_106 = arith.constant 0 : index
      %310 = vector.load %arg3[%c7_104, %c0_105, %c0_106] : memref<9x32x128xf32, #tpu.memory_space<vmem>>, vector<1x32x128xf32>
      %311 = vector.shape_cast %310 : vector<1x32x128xf32> to vector<32x128xf32>
      %c8_107 = arith.constant 8 : index
      %c0_108 = arith.constant 0 : index
      %c0_109 = arith.constant 0 : index
      %312 = vector.load %arg3[%c8_107, %c0_108, %c0_109] : memref<9x32x128xf32, #tpu.memory_space<vmem>>, vector<1x32x128xf32>
      %313 = vector.shape_cast %312 : vector<1x32x128xf32> to vector<32x128xf32>
      %314 = vector.extract_strided_slice %21 {offsets = [4, 0, 0], sizes = [1, 32, 128], strides = [1, 1, 1]} : vector<28x32x128xf32> to vector<1x32x128xf32>
      %315 = vector.shape_cast %314 : vector<1x32x128xf32> to vector<32x128xf32>
      %316 = vector.extract_strided_slice %21 {offsets = [5, 0, 0], sizes = [1, 32, 128], strides = [1, 1, 1]} : vector<28x32x128xf32> to vector<1x32x128xf32>
      %317 = vector.shape_cast %316 : vector<1x32x128xf32> to vector<32x128xf32>
      %318 = vector.extract_strided_slice %21 {offsets = [6, 0, 0], sizes = [1, 32, 128], strides = [1, 1, 1]} : vector<28x32x128xf32> to vector<1x32x128xf32>
      %319 = vector.shape_cast %318 : vector<1x32x128xf32> to vector<32x128xf32>
      %320 = vector.extract_strided_slice %21 {offsets = [7, 0, 0], sizes = [1, 32, 128], strides = [1, 1, 1]} : vector<28x32x128xf32> to vector<1x32x128xf32>
      %321 = vector.shape_cast %320 : vector<1x32x128xf32> to vector<32x128xf32>
      %322 = vector.extract_strided_slice %28 {offsets = [4, 0, 0], sizes = [1, 32, 128], strides = [1, 1, 1]} : vector<28x32x128xf32> to vector<1x32x128xf32>
      %323 = vector.shape_cast %322 : vector<1x32x128xf32> to vector<32x128xf32>
      %324 = vector.extract_strided_slice %28 {offsets = [5, 0, 0], sizes = [1, 32, 128], strides = [1, 1, 1]} : vector<28x32x128xf32> to vector<1x32x128xf32>
      %325 = vector.shape_cast %324 : vector<1x32x128xf32> to vector<32x128xf32>
      %326 = vector.extract_strided_slice %28 {offsets = [6, 0, 0], sizes = [1, 32, 128], strides = [1, 1, 1]} : vector<28x32x128xf32> to vector<1x32x128xf32>
      %327 = vector.shape_cast %326 : vector<1x32x128xf32> to vector<32x128xf32>
      %328 = vector.extract_strided_slice %28 {offsets = [7, 0, 0], sizes = [1, 32, 128], strides = [1, 1, 1]} : vector<28x32x128xf32> to vector<1x32x128xf32>
      %329 = vector.shape_cast %328 : vector<1x32x128xf32> to vector<32x128xf32>
      %330 = vector.extract_strided_slice %35 {offsets = [4, 0, 0], sizes = [1, 32, 128], strides = [1, 1, 1]} : vector<28x32x128xf32> to vector<1x32x128xf32>
      %331 = vector.shape_cast %330 : vector<1x32x128xf32> to vector<32x128xf32>
      %332 = vector.extract_strided_slice %35 {offsets = [5, 0, 0], sizes = [1, 32, 128], strides = [1, 1, 1]} : vector<28x32x128xf32> to vector<1x32x128xf32>
      %333 = vector.shape_cast %332 : vector<1x32x128xf32> to vector<32x128xf32>
      %334 = vector.extract_strided_slice %35 {offsets = [6, 0, 0], sizes = [1, 32, 128], strides = [1, 1, 1]} : vector<28x32x128xf32> to vector<1x32x128xf32>
      %335 = vector.shape_cast %334 : vector<1x32x128xf32> to vector<32x128xf32>
      %336 = vector.extract_strided_slice %35 {offsets = [7, 0, 0], sizes = [1, 32, 128], strides = [1, 1, 1]} : vector<28x32x128xf32> to vector<1x32x128xf32>
      %337 = vector.shape_cast %336 : vector<1x32x128xf32> to vector<32x128xf32>
      %338 = vector.extract_strided_slice %42 {offsets = [4, 0, 0], sizes = [1, 32, 128], strides = [1, 1, 1]} : vector<28x32x128xf32> to vector<1x32x128xf32>
      %339 = vector.shape_cast %338 : vector<1x32x128xf32> to vector<32x128xf32>
      %340 = vector.extract_strided_slice %42 {offsets = [5, 0, 0], sizes = [1, 32, 128], strides = [1, 1, 1]} : vector<28x32x128xf32> to vector<1x32x128xf32>
      %341 = vector.shape_cast %340 : vector<1x32x128xf32> to vector<32x128xf32>
      %342 = vector.extract_strided_slice %42 {offsets = [6, 0, 0], sizes = [1, 32, 128], strides = [1, 1, 1]} : vector<28x32x128xf32> to vector<1x32x128xf32>
      %343 = vector.shape_cast %342 : vector<1x32x128xf32> to vector<32x128xf32>
      %344 = vector.extract_strided_slice %42 {offsets = [7, 0, 0], sizes = [1, 32, 128], strides = [1, 1, 1]} : vector<28x32x128xf32> to vector<1x32x128xf32>
      %345 = vector.shape_cast %344 : vector<1x32x128xf32> to vector<32x128xf32>
      %346 = arith.mulf %315, %297 : vector<32x128xf32>
      %347 = arith.mulf %317, %299 : vector<32x128xf32>
      %348 = arith.addf %346, %347 : vector<32x128xf32>
      %349 = arith.mulf %319, %301 : vector<32x128xf32>
      %350 = arith.addf %348, %349 : vector<32x128xf32>
      %351 = arith.mulf %323, %303 : vector<32x128xf32>
      %352 = arith.addf %350, %351 : vector<32x128xf32>
      %353 = arith.mulf %325, %305 : vector<32x128xf32>
      %354 = arith.addf %352, %353 : vector<32x128xf32>
      %355 = arith.mulf %327, %307 : vector<32x128xf32>
      %356 = arith.addf %354, %355 : vector<32x128xf32>
      %357 = arith.mulf %331, %309 : vector<32x128xf32>
      %358 = arith.addf %356, %357 : vector<32x128xf32>
      %359 = arith.mulf %333, %311 : vector<32x128xf32>
      %360 = arith.addf %358, %359 : vector<32x128xf32>
      %361 = arith.mulf %335, %313 : vector<32x128xf32>
      %362 = arith.addf %360, %361 : vector<32x128xf32>
      %363 = arith.mulf %317, %297 : vector<32x128xf32>
      %364 = arith.mulf %319, %299 : vector<32x128xf32>
      %365 = arith.addf %363, %364 : vector<32x128xf32>
      %366 = arith.mulf %321, %301 : vector<32x128xf32>
      %367 = arith.addf %365, %366 : vector<32x128xf32>
      %368 = arith.mulf %325, %303 : vector<32x128xf32>
      %369 = arith.addf %367, %368 : vector<32x128xf32>
      %370 = arith.mulf %327, %305 : vector<32x128xf32>
      %371 = arith.addf %369, %370 : vector<32x128xf32>
      %372 = arith.mulf %329, %307 : vector<32x128xf32>
      %373 = arith.addf %371, %372 : vector<32x128xf32>
      %374 = arith.mulf %333, %309 : vector<32x128xf32>
      %375 = arith.addf %373, %374 : vector<32x128xf32>
      %376 = arith.mulf %335, %311 : vector<32x128xf32>
      %377 = arith.addf %375, %376 : vector<32x128xf32>
      %378 = arith.mulf %337, %313 : vector<32x128xf32>
      %379 = arith.addf %377, %378 : vector<32x128xf32>
      %380 = arith.maximumf %362, %379 : vector<32x128xf32>
      %381 = arith.mulf %323, %297 : vector<32x128xf32>
      %382 = arith.mulf %325, %299 : vector<32x128xf32>
      %383 = arith.addf %381, %382 : vector<32x128xf32>
      %384 = arith.mulf %327, %301 : vector<32x128xf32>
      %385 = arith.addf %383, %384 : vector<32x128xf32>
      %386 = arith.mulf %331, %303 : vector<32x128xf32>
      %387 = arith.addf %385, %386 : vector<32x128xf32>
      %388 = arith.mulf %333, %305 : vector<32x128xf32>
      %389 = arith.addf %387, %388 : vector<32x128xf32>
      %390 = arith.mulf %335, %307 : vector<32x128xf32>
      %391 = arith.addf %389, %390 : vector<32x128xf32>
      %392 = arith.mulf %339, %309 : vector<32x128xf32>
      %393 = arith.addf %391, %392 : vector<32x128xf32>
      %394 = arith.mulf %341, %311 : vector<32x128xf32>
      %395 = arith.addf %393, %394 : vector<32x128xf32>
      %396 = arith.mulf %343, %313 : vector<32x128xf32>
      %397 = arith.addf %395, %396 : vector<32x128xf32>
      %398 = arith.maximumf %380, %397 : vector<32x128xf32>
      %399 = arith.mulf %325, %297 : vector<32x128xf32>
      %400 = arith.mulf %327, %299 : vector<32x128xf32>
      %401 = arith.addf %399, %400 : vector<32x128xf32>
      %402 = arith.mulf %329, %301 : vector<32x128xf32>
      %403 = arith.addf %401, %402 : vector<32x128xf32>
      %404 = arith.mulf %333, %303 : vector<32x128xf32>
      %405 = arith.addf %403, %404 : vector<32x128xf32>
      %406 = arith.mulf %335, %305 : vector<32x128xf32>
      %407 = arith.addf %405, %406 : vector<32x128xf32>
      %408 = arith.mulf %337, %307 : vector<32x128xf32>
      %409 = arith.addf %407, %408 : vector<32x128xf32>
      %410 = arith.mulf %341, %309 : vector<32x128xf32>
      %411 = arith.addf %409, %410 : vector<32x128xf32>
      %412 = arith.mulf %343, %311 : vector<32x128xf32>
      %413 = arith.addf %411, %412 : vector<32x128xf32>
      %414 = arith.mulf %345, %313 : vector<32x128xf32>
      %415 = arith.addf %413, %414 : vector<32x128xf32>
      %416 = arith.maximumf %398, %415 : vector<32x128xf32>
      %417 = arith.index_cast %arg6 : i32 to index
      %c2_110 = arith.constant 2 : index
      %c0_111 = arith.constant 0 : index
      %c0_112 = arith.constant 0 : index
      %418 = vector.load %arg4[%417, %c2_110, %c0_111, %c0_112] : memref<13x13x32x128xf32, #tpu.memory_space<vmem>>, vector<1x1x32x128xf32>
      %419 = vector.shape_cast %418 : vector<1x1x32x128xf32> to vector<32x128xf32>
      %420 = arith.mulf %416, %419 : vector<32x128xf32>
      %421 = arith.addf %295, %420 : vector<32x128xf32>
      %c0_113 = arith.constant 0 : index
      %c0_114 = arith.constant 0 : index
      %c0_115 = arith.constant 0 : index
      %422 = vector.load %arg3[%c0_113, %c0_114, %c0_115] : memref<9x32x128xf32, #tpu.memory_space<vmem>>, vector<1x32x128xf32>
      %423 = vector.shape_cast %422 : vector<1x32x128xf32> to vector<32x128xf32>
      %c1_116 = arith.constant 1 : index
      %c0_117 = arith.constant 0 : index
      %c0_118 = arith.constant 0 : index
      %424 = vector.load %arg3[%c1_116, %c0_117, %c0_118] : memref<9x32x128xf32, #tpu.memory_space<vmem>>, vector<1x32x128xf32>
      %425 = vector.shape_cast %424 : vector<1x32x128xf32> to vector<32x128xf32>
      %c2_119 = arith.constant 2 : index
      %c0_120 = arith.constant 0 : index
      %c0_121 = arith.constant 0 : index
      %426 = vector.load %arg3[%c2_119, %c0_120, %c0_121] : memref<9x32x128xf32, #tpu.memory_space<vmem>>, vector<1x32x128xf32>
      %427 = vector.shape_cast %426 : vector<1x32x128xf32> to vector<32x128xf32>
      %c3_122 = arith.constant 3 : index
      %c0_123 = arith.constant 0 : index
      %c0_124 = arith.constant 0 : index
      %428 = vector.load %arg3[%c3_122, %c0_123, %c0_124] : memref<9x32x128xf32, #tpu.memory_space<vmem>>, vector<1x32x128xf32>
      %429 = vector.shape_cast %428 : vector<1x32x128xf32> to vector<32x128xf32>
      %c4_125 = arith.constant 4 : index
      %c0_126 = arith.constant 0 : index
      %c0_127 = arith.constant 0 : index
      %430 = vector.load %arg3[%c4_125, %c0_126, %c0_127] : memref<9x32x128xf32, #tpu.memory_space<vmem>>, vector<1x32x128xf32>
      %431 = vector.shape_cast %430 : vector<1x32x128xf32> to vector<32x128xf32>
      %c5_128 = arith.constant 5 : index
      %c0_129 = arith.constant 0 : index
      %c0_130 = arith.constant 0 : index
      %432 = vector.load %arg3[%c5_128, %c0_129, %c0_130] : memref<9x32x128xf32, #tpu.memory_space<vmem>>, vector<1x32x128xf32>
      %433 = vector.shape_cast %432 : vector<1x32x128xf32> to vector<32x128xf32>
      %c6_131 = arith.constant 6 : index
      %c0_132 = arith.constant 0 : index
      %c0_133 = arith.constant 0 : index
      %434 = vector.load %arg3[%c6_131, %c0_132, %c0_133] : memref<9x32x128xf32, #tpu.memory_space<vmem>>, vector<1x32x128xf32>
      %435 = vector.shape_cast %434 : vector<1x32x128xf32> to vector<32x128xf32>
      %c7_134 = arith.constant 7 : index
      %c0_135 = arith.constant 0 : index
      %c0_136 = arith.constant 0 : index
      %436 = vector.load %arg3[%c7_134, %c0_135, %c0_136] : memref<9x32x128xf32, #tpu.memory_space<vmem>>, vector<1x32x128xf32>
      %437 = vector.shape_cast %436 : vector<1x32x128xf32> to vector<32x128xf32>
      %c8_137 = arith.constant 8 : index
      %c0_138 = arith.constant 0 : index
      %c0_139 = arith.constant 0 : index
      %438 = vector.load %arg3[%c8_137, %c0_138, %c0_139] : memref<9x32x128xf32, #tpu.memory_space<vmem>>, vector<1x32x128xf32>
      %439 = vector.shape_cast %438 : vector<1x32x128xf32> to vector<32x128xf32>
      %440 = vector.extract_strided_slice %21 {offsets = [6, 0, 0], sizes = [1, 32, 128], strides = [1, 1, 1]} : vector<28x32x128xf32> to vector<1x32x128xf32>
      %441 = vector.shape_cast %440 : vector<1x32x128xf32> to vector<32x128xf32>
      %442 = vector.extract_strided_slice %21 {offsets = [7, 0, 0], sizes = [1, 32, 128], strides = [1, 1, 1]} : vector<28x32x128xf32> to vector<1x32x128xf32>
      %443 = vector.shape_cast %442 : vector<1x32x128xf32> to vector<32x128xf32>
      %444 = vector.extract_strided_slice %21 {offsets = [8, 0, 0], sizes = [1, 32, 128], strides = [1, 1, 1]} : vector<28x32x128xf32> to vector<1x32x128xf32>
      %445 = vector.shape_cast %444 : vector<1x32x128xf32> to vector<32x128xf32>
      %446 = vector.extract_strided_slice %21 {offsets = [9, 0, 0], sizes = [1, 32, 128], strides = [1, 1, 1]} : vector<28x32x128xf32> to vector<1x32x128xf32>
      %447 = vector.shape_cast %446 : vector<1x32x128xf32> to vector<32x128xf32>
      %448 = vector.extract_strided_slice %28 {offsets = [6, 0, 0], sizes = [1, 32, 128], strides = [1, 1, 1]} : vector<28x32x128xf32> to vector<1x32x128xf32>
      %449 = vector.shape_cast %448 : vector<1x32x128xf32> to vector<32x128xf32>
      %450 = vector.extract_strided_slice %28 {offsets = [7, 0, 0], sizes = [1, 32, 128], strides = [1, 1, 1]} : vector<28x32x128xf32> to vector<1x32x128xf32>
      %451 = vector.shape_cast %450 : vector<1x32x128xf32> to vector<32x128xf32>
      %452 = vector.extract_strided_slice %28 {offsets = [8, 0, 0], sizes = [1, 32, 128], strides = [1, 1, 1]} : vector<28x32x128xf32> to vector<1x32x128xf32>
      %453 = vector.shape_cast %452 : vector<1x32x128xf32> to vector<32x128xf32>
      %454 = vector.extract_strided_slice %28 {offsets = [9, 0, 0], sizes = [1, 32, 128], strides = [1, 1, 1]} : vector<28x32x128xf32> to vector<1x32x128xf32>
      %455 = vector.shape_cast %454 : vector<1x32x128xf32> to vector<32x128xf32>
      %456 = vector.extract_strided_slice %35 {offsets = [6, 0, 0], sizes = [1, 32, 128], strides = [1, 1, 1]} : vector<28x32x128xf32> to vector<1x32x128xf32>
      %457 = vector.shape_cast %456 : vector<1x32x128xf32> to vector<32x128xf32>
      %458 = vector.extract_strided_slice %35 {offsets = [7, 0, 0], sizes = [1, 32, 128], strides = [1, 1, 1]} : vector<28x32x128xf32> to vector<1x32x128xf32>
      %459 = vector.shape_cast %458 : vector<1x32x128xf32> to vector<32x128xf32>
      %460 = vector.extract_strided_slice %35 {offsets = [8, 0, 0], sizes = [1, 32, 128], strides = [1, 1, 1]} : vector<28x32x128xf32> to vector<1x32x128xf32>
      %461 = vector.shape_cast %460 : vector<1x32x128xf32> to vector<32x128xf32>
      %462 = vector.extract_strided_slice %35 {offsets = [9, 0, 0], sizes = [1, 32, 128], strides = [1, 1, 1]} : vector<28x32x128xf32> to vector<1x32x128xf32>
      %463 = vector.shape_cast %462 : vector<1x32x128xf32> to vector<32x128xf32>
      %464 = vector.extract_strided_slice %42 {offsets = [6, 0, 0], sizes = [1, 32, 128], strides = [1, 1, 1]} : vector<28x32x128xf32> to vector<1x32x128xf32>
      %465 = vector.shape_cast %464 : vector<1x32x128xf32> to vector<32x128xf32>
      %466 = vector.extract_strided_slice %42 {offsets = [7, 0, 0], sizes = [1, 32, 128], strides = [1, 1, 1]} : vector<28x32x128xf32> to vector<1x32x128xf32>
      %467 = vector.shape_cast %466 : vector<1x32x128xf32> to vector<32x128xf32>
      %468 = vector.extract_strided_slice %42 {offsets = [8, 0, 0], sizes = [1, 32, 128], strides = [1, 1, 1]} : vector<28x32x128xf32> to vector<1x32x128xf32>
      %469 = vector.shape_cast %468 : vector<1x32x128xf32> to vector<32x128xf32>
      %470 = vector.extract_strided_slice %42 {offsets = [9, 0, 0], sizes = [1, 32, 128], strides = [1, 1, 1]} : vector<28x32x128xf32> to vector<1x32x128xf32>
      %471 = vector.shape_cast %470 : vector<1x32x128xf32> to vector<32x128xf32>
      %472 = arith.mulf %441, %423 : vector<32x128xf32>
      %473 = arith.mulf %443, %425 : vector<32x128xf32>
      %474 = arith.addf %472, %473 : vector<32x128xf32>
      %475 = arith.mulf %445, %427 : vector<32x128xf32>
      %476 = arith.addf %474, %475 : vector<32x128xf32>
      %477 = arith.mulf %449, %429 : vector<32x128xf32>
      %478 = arith.addf %476, %477 : vector<32x128xf32>
      %479 = arith.mulf %451, %431 : vector<32x128xf32>
      %480 = arith.addf %478, %479 : vector<32x128xf32>
      %481 = arith.mulf %453, %433 : vector<32x128xf32>
      %482 = arith.addf %480, %481 : vector<32x128xf32>
      %483 = arith.mulf %457, %435 : vector<32x128xf32>
      %484 = arith.addf %482, %483 : vector<32x128xf32>
      %485 = arith.mulf %459, %437 : vector<32x128xf32>
      %486 = arith.addf %484, %485 : vector<32x128xf32>
      %487 = arith.mulf %461, %439 : vector<32x128xf32>
      %488 = arith.addf %486, %487 : vector<32x128xf32>
      %489 = arith.mulf %443, %423 : vector<32x128xf32>
      %490 = arith.mulf %445, %425 : vector<32x128xf32>
      %491 = arith.addf %489, %490 : vector<32x128xf32>
      %492 = arith.mulf %447, %427 : vector<32x128xf32>
      %493 = arith.addf %491, %492 : vector<32x128xf32>
      %494 = arith.mulf %451, %429 : vector<32x128xf32>
      %495 = arith.addf %493, %494 : vector<32x128xf32>
      %496 = arith.mulf %453, %431 : vector<32x128xf32>
      %497 = arith.addf %495, %496 : vector<32x128xf32>
      %498 = arith.mulf %455, %433 : vector<32x128xf32>
      %499 = arith.addf %497, %498 : vector<32x128xf32>
      %500 = arith.mulf %459, %435 : vector<32x128xf32>
      %501 = arith.addf %499, %500 : vector<32x128xf32>
      %502 = arith.mulf %461, %437 : vector<32x128xf32>
      %503 = arith.addf %501, %502 : vector<32x128xf32>
      %504 = arith.mulf %463, %439 : vector<32x128xf32>
      %505 = arith.addf %503, %504 : vector<32x128xf32>
      %506 = arith.maximumf %488, %505 : vector<32x128xf32>
      %507 = arith.mulf %449, %423 : vector<32x128xf32>
      %508 = arith.mulf %451, %425 : vector<32x128xf32>
      %509 = arith.addf %507, %508 : vector<32x128xf32>
      %510 = arith.mulf %453, %427 : vector<32x128xf32>
      %511 = arith.addf %509, %510 : vector<32x128xf32>
      %512 = arith.mulf %457, %429 : vector<32x128xf32>
      %513 = arith.addf %511, %512 : vector<32x128xf32>
      %514 = arith.mulf %459, %431 : vector<32x128xf32>
      %515 = arith.addf %513, %514 : vector<32x128xf32>
      %516 = arith.mulf %461, %433 : vector<32x128xf32>
      %517 = arith.addf %515, %516 : vector<32x128xf32>
      %518 = arith.mulf %465, %435 : vector<32x128xf32>
      %519 = arith.addf %517, %518 : vector<32x128xf32>
      %520 = arith.mulf %467, %437 : vector<32x128xf32>
      %521 = arith.addf %519, %520 : vector<32x128xf32>
      %522 = arith.mulf %469, %439 : vector<32x128xf32>
      %523 = arith.addf %521, %522 : vector<32x128xf32>
      %524 = arith.maximumf %506, %523 : vector<32x128xf32>
      %525 = arith.mulf %451, %423 : vector<32x128xf32>
      %526 = arith.mulf %453, %425 : vector<32x128xf32>
      %527 = arith.addf %525, %526 : vector<32x128xf32>
      %528 = arith.mulf %455, %427 : vector<32x128xf32>
      %529 = arith.addf %527, %528 : vector<32x128xf32>
      %530 = arith.mulf %459, %429 : vector<32x128xf32>
      %531 = arith.addf %529, %530 : vector<32x128xf32>
      %532 = arith.mulf %461, %431 : vector<32x128xf32>
      %533 = arith.addf %531, %532 : vector<32x128xf32>
      %534 = arith.mulf %463, %433 : vector<32x128xf32>
      %535 = arith.addf %533, %534 : vector<32x128xf32>
      %536 = arith.mulf %467, %435 : vector<32x128xf32>
      %537 = arith.addf %535, %536 : vector<32x128xf32>
      %538 = arith.mulf %469, %437 : vector<32x128xf32>
      %539 = arith.addf %537, %538 : vector<32x128xf32>
      %540 = arith.mulf %471, %439 : vector<32x128xf32>
      %541 = arith.addf %539, %540 : vector<32x128xf32>
      %542 = arith.maximumf %524, %541 : vector<32x128xf32>
      %543 = arith.index_cast %arg6 : i32 to index
      %c3_140 = arith.constant 3 : index
      %c0_141 = arith.constant 0 : index
      %c0_142 = arith.constant 0 : index
      %544 = vector.load %arg4[%543, %c3_140, %c0_141, %c0_142] : memref<13x13x32x128xf32, #tpu.memory_space<vmem>>, vector<1x1x32x128xf32>
      %545 = vector.shape_cast %544 : vector<1x1x32x128xf32> to vector<32x128xf32>
      %546 = arith.mulf %542, %545 : vector<32x128xf32>
      %547 = arith.addf %421, %546 : vector<32x128xf32>
      %c0_143 = arith.constant 0 : index
      %c0_144 = arith.constant 0 : index
      %c0_145 = arith.constant 0 : index
      %548 = vector.load %arg3[%c0_143, %c0_144, %c0_145] : memref<9x32x128xf32, #tpu.memory_space<vmem>>, vector<1x32x128xf32>
      %549 = vector.shape_cast %548 : vector<1x32x128xf32> to vector<32x128xf32>
      %c1_146 = arith.constant 1 : index
      %c0_147 = arith.constant 0 : index
      %c0_148 = arith.constant 0 : index
      %550 = vector.load %arg3[%c1_146, %c0_147, %c0_148] : memref<9x32x128xf32, #tpu.memory_space<vmem>>, vector<1x32x128xf32>
      %551 = vector.shape_cast %550 : vector<1x32x128xf32> to vector<32x128xf32>
      %c2_149 = arith.constant 2 : index
      %c0_150 = arith.constant 0 : index
      %c0_151 = arith.constant 0 : index
      %552 = vector.load %arg3[%c2_149, %c0_150, %c0_151] : memref<9x32x128xf32, #tpu.memory_space<vmem>>, vector<1x32x128xf32>
      %553 = vector.shape_cast %552 : vector<1x32x128xf32> to vector<32x128xf32>
      %c3_152 = arith.constant 3 : index
      %c0_153 = arith.constant 0 : index
      %c0_154 = arith.constant 0 : index
      %554 = vector.load %arg3[%c3_152, %c0_153, %c0_154] : memref<9x32x128xf32, #tpu.memory_space<vmem>>, vector<1x32x128xf32>
      %555 = vector.shape_cast %554 : vector<1x32x128xf32> to vector<32x128xf32>
      %c4_155 = arith.constant 4 : index
      %c0_156 = arith.constant 0 : index
      %c0_157 = arith.constant 0 : index
      %556 = vector.load %arg3[%c4_155, %c0_156, %c0_157] : memref<9x32x128xf32, #tpu.memory_space<vmem>>, vector<1x32x128xf32>
      %557 = vector.shape_cast %556 : vector<1x32x128xf32> to vector<32x128xf32>
      %c5_158 = arith.constant 5 : index
      %c0_159 = arith.constant 0 : index
      %c0_160 = arith.constant 0 : index
      %558 = vector.load %arg3[%c5_158, %c0_159, %c0_160] : memref<9x32x128xf32, #tpu.memory_space<vmem>>, vector<1x32x128xf32>
      %559 = vector.shape_cast %558 : vector<1x32x128xf32> to vector<32x128xf32>
      %c6_161 = arith.constant 6 : index
      %c0_162 = arith.constant 0 : index
      %c0_163 = arith.constant 0 : index
      %560 = vector.load %arg3[%c6_161, %c0_162, %c0_163] : memref<9x32x128xf32, #tpu.memory_space<vmem>>, vector<1x32x128xf32>
      %561 = vector.shape_cast %560 : vector<1x32x128xf32> to vector<32x128xf32>
      %c7_164 = arith.constant 7 : index
      %c0_165 = arith.constant 0 : index
      %c0_166 = arith.constant 0 : index
      %562 = vector.load %arg3[%c7_164, %c0_165, %c0_166] : memref<9x32x128xf32, #tpu.memory_space<vmem>>, vector<1x32x128xf32>
      %563 = vector.shape_cast %562 : vector<1x32x128xf32> to vector<32x128xf32>
      %c8_167 = arith.constant 8 : index
      %c0_168 = arith.constant 0 : index
      %c0_169 = arith.constant 0 : index
      %564 = vector.load %arg3[%c8_167, %c0_168, %c0_169] : memref<9x32x128xf32, #tpu.memory_space<vmem>>, vector<1x32x128xf32>
      %565 = vector.shape_cast %564 : vector<1x32x128xf32> to vector<32x128xf32>
      %566 = vector.extract_strided_slice %21 {offsets = [8, 0, 0], sizes = [1, 32, 128], strides = [1, 1, 1]} : vector<28x32x128xf32> to vector<1x32x128xf32>
      %567 = vector.shape_cast %566 : vector<1x32x128xf32> to vector<32x128xf32>
      %568 = vector.extract_strided_slice %21 {offsets = [9, 0, 0], sizes = [1, 32, 128], strides = [1, 1, 1]} : vector<28x32x128xf32> to vector<1x32x128xf32>
      %569 = vector.shape_cast %568 : vector<1x32x128xf32> to vector<32x128xf32>
      %570 = vector.extract_strided_slice %21 {offsets = [10, 0, 0], sizes = [1, 32, 128], strides = [1, 1, 1]} : vector<28x32x128xf32> to vector<1x32x128xf32>
      %571 = vector.shape_cast %570 : vector<1x32x128xf32> to vector<32x128xf32>
      %572 = vector.extract_strided_slice %21 {offsets = [11, 0, 0], sizes = [1, 32, 128], strides = [1, 1, 1]} : vector<28x32x128xf32> to vector<1x32x128xf32>
      %573 = vector.shape_cast %572 : vector<1x32x128xf32> to vector<32x128xf32>
      %574 = vector.extract_strided_slice %28 {offsets = [8, 0, 0], sizes = [1, 32, 128], strides = [1, 1, 1]} : vector<28x32x128xf32> to vector<1x32x128xf32>
      %575 = vector.shape_cast %574 : vector<1x32x128xf32> to vector<32x128xf32>
      %576 = vector.extract_strided_slice %28 {offsets = [9, 0, 0], sizes = [1, 32, 128], strides = [1, 1, 1]} : vector<28x32x128xf32> to vector<1x32x128xf32>
      %577 = vector.shape_cast %576 : vector<1x32x128xf32> to vector<32x128xf32>
      %578 = vector.extract_strided_slice %28 {offsets = [10, 0, 0], sizes = [1, 32, 128], strides = [1, 1, 1]} : vector<28x32x128xf32> to vector<1x32x128xf32>
      %579 = vector.shape_cast %578 : vector<1x32x128xf32> to vector<32x128xf32>
      %580 = vector.extract_strided_slice %28 {offsets = [11, 0, 0], sizes = [1, 32, 128], strides = [1, 1, 1]} : vector<28x32x128xf32> to vector<1x32x128xf32>
      %581 = vector.shape_cast %580 : vector<1x32x128xf32> to vector<32x128xf32>
      %582 = vector.extract_strided_slice %35 {offsets = [8, 0, 0], sizes = [1, 32, 128], strides = [1, 1, 1]} : vector<28x32x128xf32> to vector<1x32x128xf32>
      %583 = vector.shape_cast %582 : vector<1x32x128xf32> to vector<32x128xf32>
      %584 = vector.extract_strided_slice %35 {offsets = [9, 0, 0], sizes = [1, 32, 128], strides = [1, 1, 1]} : vector<28x32x128xf32> to vector<1x32x128xf32>
      %585 = vector.shape_cast %584 : vector<1x32x128xf32> to vector<32x128xf32>
      %586 = vector.extract_strided_slice %35 {offsets = [10, 0, 0], sizes = [1, 32, 128], strides = [1, 1, 1]} : vector<28x32x128xf32> to vector<1x32x128xf32>
      %587 = vector.shape_cast %586 : vector<1x32x128xf32> to vector<32x128xf32>
      %588 = vector.extract_strided_slice %35 {offsets = [11, 0, 0], sizes = [1, 32, 128], strides = [1, 1, 1]} : vector<28x32x128xf32> to vector<1x32x128xf32>
      %589 = vector.shape_cast %588 : vector<1x32x128xf32> to vector<32x128xf32>
      %590 = vector.extract_strided_slice %42 {offsets = [8, 0, 0], sizes = [1, 32, 128], strides = [1, 1, 1]} : vector<28x32x128xf32> to vector<1x32x128xf32>
      %591 = vector.shape_cast %590 : vector<1x32x128xf32> to vector<32x128xf32>
      %592 = vector.extract_strided_slice %42 {offsets = [9, 0, 0], sizes = [1, 32, 128], strides = [1, 1, 1]} : vector<28x32x128xf32> to vector<1x32x128xf32>
      %593 = vector.shape_cast %592 : vector<1x32x128xf32> to vector<32x128xf32>
      %594 = vector.extract_strided_slice %42 {offsets = [10, 0, 0], sizes = [1, 32, 128], strides = [1, 1, 1]} : vector<28x32x128xf32> to vector<1x32x128xf32>
      %595 = vector.shape_cast %594 : vector<1x32x128xf32> to vector<32x128xf32>
      %596 = vector.extract_strided_slice %42 {offsets = [11, 0, 0], sizes = [1, 32, 128], strides = [1, 1, 1]} : vector<28x32x128xf32> to vector<1x32x128xf32>
      %597 = vector.shape_cast %596 : vector<1x32x128xf32> to vector<32x128xf32>
      %598 = arith.mulf %567, %549 : vector<32x128xf32>
      %599 = arith.mulf %569, %551 : vector<32x128xf32>
      %600 = arith.addf %598, %599 : vector<32x128xf32>
      %601 = arith.mulf %571, %553 : vector<32x128xf32>
      %602 = arith.addf %600, %601 : vector<32x128xf32>
      %603 = arith.mulf %575, %555 : vector<32x128xf32>
      %604 = arith.addf %602, %603 : vector<32x128xf32>
      %605 = arith.mulf %577, %557 : vector<32x128xf32>
      %606 = arith.addf %604, %605 : vector<32x128xf32>
      %607 = arith.mulf %579, %559 : vector<32x128xf32>
      %608 = arith.addf %606, %607 : vector<32x128xf32>
      %609 = arith.mulf %583, %561 : vector<32x128xf32>
      %610 = arith.addf %608, %609 : vector<32x128xf32>
      %611 = arith.mulf %585, %563 : vector<32x128xf32>
      %612 = arith.addf %610, %611 : vector<32x128xf32>
      %613 = arith.mulf %587, %565 : vector<32x128xf32>
      %614 = arith.addf %612, %613 : vector<32x128xf32>
      %615 = arith.mulf %569, %549 : vector<32x128xf32>
      %616 = arith.mulf %571, %551 : vector<32x128xf32>
      %617 = arith.addf %615, %616 : vector<32x128xf32>
      %618 = arith.mulf %573, %553 : vector<32x128xf32>
      %619 = arith.addf %617, %618 : vector<32x128xf32>
      %620 = arith.mulf %577, %555 : vector<32x128xf32>
      %621 = arith.addf %619, %620 : vector<32x128xf32>
      %622 = arith.mulf %579, %557 : vector<32x128xf32>
      %623 = arith.addf %621, %622 : vector<32x128xf32>
      %624 = arith.mulf %581, %559 : vector<32x128xf32>
      %625 = arith.addf %623, %624 : vector<32x128xf32>
      %626 = arith.mulf %585, %561 : vector<32x128xf32>
      %627 = arith.addf %625, %626 : vector<32x128xf32>
      %628 = arith.mulf %587, %563 : vector<32x128xf32>
      %629 = arith.addf %627, %628 : vector<32x128xf32>
      %630 = arith.mulf %589, %565 : vector<32x128xf32>
      %631 = arith.addf %629, %630 : vector<32x128xf32>
      %632 = arith.maximumf %614, %631 : vector<32x128xf32>
      %633 = arith.mulf %575, %549 : vector<32x128xf32>
      %634 = arith.mulf %577, %551 : vector<32x128xf32>
      %635 = arith.addf %633, %634 : vector<32x128xf32>
      %636 = arith.mulf %579, %553 : vector<32x128xf32>
      %637 = arith.addf %635, %636 : vector<32x128xf32>
      %638 = arith.mulf %583, %555 : vector<32x128xf32>
      %639 = arith.addf %637, %638 : vector<32x128xf32>
      %640 = arith.mulf %585, %557 : vector<32x128xf32>
      %641 = arith.addf %639, %640 : vector<32x128xf32>
      %642 = arith.mulf %587, %559 : vector<32x128xf32>
      %643 = arith.addf %641, %642 : vector<32x128xf32>
      %644 = arith.mulf %591, %561 : vector<32x128xf32>
      %645 = arith.addf %643, %644 : vector<32x128xf32>
      %646 = arith.mulf %593, %563 : vector<32x128xf32>
      %647 = arith.addf %645, %646 : vector<32x128xf32>
      %648 = arith.mulf %595, %565 : vector<32x128xf32>
      %649 = arith.addf %647, %648 : vector<32x128xf32>
      %650 = arith.maximumf %632, %649 : vector<32x128xf32>
      %651 = arith.mulf %577, %549 : vector<32x128xf32>
      %652 = arith.mulf %579, %551 : vector<32x128xf32>
      %653 = arith.addf %651, %652 : vector<32x128xf32>
      %654 = arith.mulf %581, %553 : vector<32x128xf32>
      %655 = arith.addf %653, %654 : vector<32x128xf32>
      %656 = arith.mulf %585, %555 : vector<32x128xf32>
      %657 = arith.addf %655, %656 : vector<32x128xf32>
      %658 = arith.mulf %587, %557 : vector<32x128xf32>
      %659 = arith.addf %657, %658 : vector<32x128xf32>
      %660 = arith.mulf %589, %559 : vector<32x128xf32>
      %661 = arith.addf %659, %660 : vector<32x128xf32>
      %662 = arith.mulf %593, %561 : vector<32x128xf32>
      %663 = arith.addf %661, %662 : vector<32x128xf32>
      %664 = arith.mulf %595, %563 : vector<32x128xf32>
      %665 = arith.addf %663, %664 : vector<32x128xf32>
      %666 = arith.mulf %597, %565 : vector<32x128xf32>
      %667 = arith.addf %665, %666 : vector<32x128xf32>
      %668 = arith.maximumf %650, %667 : vector<32x128xf32>
      %669 = arith.index_cast %arg6 : i32 to index
      %c4_170 = arith.constant 4 : index
      %c0_171 = arith.constant 0 : index
      %c0_172 = arith.constant 0 : index
      %670 = vector.load %arg4[%669, %c4_170, %c0_171, %c0_172] : memref<13x13x32x128xf32, #tpu.memory_space<vmem>>, vector<1x1x32x128xf32>
      %671 = vector.shape_cast %670 : vector<1x1x32x128xf32> to vector<32x128xf32>
      %672 = arith.mulf %668, %671 : vector<32x128xf32>
      %673 = arith.addf %547, %672 : vector<32x128xf32>
      %c0_173 = arith.constant 0 : index
      %c0_174 = arith.constant 0 : index
      %c0_175 = arith.constant 0 : index
      %674 = vector.load %arg3[%c0_173, %c0_174, %c0_175] : memref<9x32x128xf32, #tpu.memory_space<vmem>>, vector<1x32x128xf32>
      %675 = vector.shape_cast %674 : vector<1x32x128xf32> to vector<32x128xf32>
      %c1_176 = arith.constant 1 : index
      %c0_177 = arith.constant 0 : index
      %c0_178 = arith.constant 0 : index
      %676 = vector.load %arg3[%c1_176, %c0_177, %c0_178] : memref<9x32x128xf32, #tpu.memory_space<vmem>>, vector<1x32x128xf32>
      %677 = vector.shape_cast %676 : vector<1x32x128xf32> to vector<32x128xf32>
      %c2_179 = arith.constant 2 : index
      %c0_180 = arith.constant 0 : index
      %c0_181 = arith.constant 0 : index
      %678 = vector.load %arg3[%c2_179, %c0_180, %c0_181] : memref<9x32x128xf32, #tpu.memory_space<vmem>>, vector<1x32x128xf32>
      %679 = vector.shape_cast %678 : vector<1x32x128xf32> to vector<32x128xf32>
      %c3_182 = arith.constant 3 : index
      %c0_183 = arith.constant 0 : index
      %c0_184 = arith.constant 0 : index
      %680 = vector.load %arg3[%c3_182, %c0_183, %c0_184] : memref<9x32x128xf32, #tpu.memory_space<vmem>>, vector<1x32x128xf32>
      %681 = vector.shape_cast %680 : vector<1x32x128xf32> to vector<32x128xf32>
      %c4_185 = arith.constant 4 : index
      %c0_186 = arith.constant 0 : index
      %c0_187 = arith.constant 0 : index
      %682 = vector.load %arg3[%c4_185, %c0_186, %c0_187] : memref<9x32x128xf32, #tpu.memory_space<vmem>>, vector<1x32x128xf32>
      %683 = vector.shape_cast %682 : vector<1x32x128xf32> to vector<32x128xf32>
      %c5_188 = arith.constant 5 : index
      %c0_189 = arith.constant 0 : index
      %c0_190 = arith.constant 0 : index
      %684 = vector.load %arg3[%c5_188, %c0_189, %c0_190] : memref<9x32x128xf32, #tpu.memory_space<vmem>>, vector<1x32x128xf32>
      %685 = vector.shape_cast %684 : vector<1x32x128xf32> to vector<32x128xf32>
      %c6_191 = arith.constant 6 : index
      %c0_192 = arith.constant 0 : index
      %c0_193 = arith.constant 0 : index
      %686 = vector.load %arg3[%c6_191, %c0_192, %c0_193] : memref<9x32x128xf32, #tpu.memory_space<vmem>>, vector<1x32x128xf32>
      %687 = vector.shape_cast %686 : vector<1x32x128xf32> to vector<32x128xf32>
      %c7_194 = arith.constant 7 : index
      %c0_195 = arith.constant 0 : index
      %c0_196 = arith.constant 0 : index
      %688 = vector.load %arg3[%c7_194, %c0_195, %c0_196] : memref<9x32x128xf32, #tpu.memory_space<vmem>>, vector<1x32x128xf32>
      %689 = vector.shape_cast %688 : vector<1x32x128xf32> to vector<32x128xf32>
      %c8_197 = arith.constant 8 : index
      %c0_198 = arith.constant 0 : index
      %c0_199 = arith.constant 0 : index
      %690 = vector.load %arg3[%c8_197, %c0_198, %c0_199] : memref<9x32x128xf32, #tpu.memory_space<vmem>>, vector<1x32x128xf32>
      %691 = vector.shape_cast %690 : vector<1x32x128xf32> to vector<32x128xf32>
      %692 = vector.extract_strided_slice %21 {offsets = [10, 0, 0], sizes = [1, 32, 128], strides = [1, 1, 1]} : vector<28x32x128xf32> to vector<1x32x128xf32>
      %693 = vector.shape_cast %692 : vector<1x32x128xf32> to vector<32x128xf32>
      %694 = vector.extract_strided_slice %21 {offsets = [11, 0, 0], sizes = [1, 32, 128], strides = [1, 1, 1]} : vector<28x32x128xf32> to vector<1x32x128xf32>
      %695 = vector.shape_cast %694 : vector<1x32x128xf32> to vector<32x128xf32>
      %696 = vector.extract_strided_slice %21 {offsets = [12, 0, 0], sizes = [1, 32, 128], strides = [1, 1, 1]} : vector<28x32x128xf32> to vector<1x32x128xf32>
      %697 = vector.shape_cast %696 : vector<1x32x128xf32> to vector<32x128xf32>
      %698 = vector.extract_strided_slice %21 {offsets = [13, 0, 0], sizes = [1, 32, 128], strides = [1, 1, 1]} : vector<28x32x128xf32> to vector<1x32x128xf32>
      %699 = vector.shape_cast %698 : vector<1x32x128xf32> to vector<32x128xf32>
      %700 = vector.extract_strided_slice %28 {offsets = [10, 0, 0], sizes = [1, 32, 128], strides = [1, 1, 1]} : vector<28x32x128xf32> to vector<1x32x128xf32>
      %701 = vector.shape_cast %700 : vector<1x32x128xf32> to vector<32x128xf32>
      %702 = vector.extract_strided_slice %28 {offsets = [11, 0, 0], sizes = [1, 32, 128], strides = [1, 1, 1]} : vector<28x32x128xf32> to vector<1x32x128xf32>
      %703 = vector.shape_cast %702 : vector<1x32x128xf32> to vector<32x128xf32>
      %704 = vector.extract_strided_slice %28 {offsets = [12, 0, 0], sizes = [1, 32, 128], strides = [1, 1, 1]} : vector<28x32x128xf32> to vector<1x32x128xf32>
      %705 = vector.shape_cast %704 : vector<1x32x128xf32> to vector<32x128xf32>
      %706 = vector.extract_strided_slice %28 {offsets = [13, 0, 0], sizes = [1, 32, 128], strides = [1, 1, 1]} : vector<28x32x128xf32> to vector<1x32x128xf32>
      %707 = vector.shape_cast %706 : vector<1x32x128xf32> to vector<32x128xf32>
      %708 = vector.extract_strided_slice %35 {offsets = [10, 0, 0], sizes = [1, 32, 128], strides = [1, 1, 1]} : vector<28x32x128xf32> to vector<1x32x128xf32>
      %709 = vector.shape_cast %708 : vector<1x32x128xf32> to vector<32x128xf32>
      %710 = vector.extract_strided_slice %35 {offsets = [11, 0, 0], sizes = [1, 32, 128], strides = [1, 1, 1]} : vector<28x32x128xf32> to vector<1x32x128xf32>
      %711 = vector.shape_cast %710 : vector<1x32x128xf32> to vector<32x128xf32>
      %712 = vector.extract_strided_slice %35 {offsets = [12, 0, 0], sizes = [1, 32, 128], strides = [1, 1, 1]} : vector<28x32x128xf32> to vector<1x32x128xf32>
      %713 = vector.shape_cast %712 : vector<1x32x128xf32> to vector<32x128xf32>
      %714 = vector.extract_strided_slice %35 {offsets = [13, 0, 0], sizes = [1, 32, 128], strides = [1, 1, 1]} : vector<28x32x128xf32> to vector<1x32x128xf32>
      %715 = vector.shape_cast %714 : vector<1x32x128xf32> to vector<32x128xf32>
      %716 = vector.extract_strided_slice %42 {offsets = [10, 0, 0], sizes = [1, 32, 128], strides = [1, 1, 1]} : vector<28x32x128xf32> to vector<1x32x128xf32>
      %717 = vector.shape_cast %716 : vector<1x32x128xf32> to vector<32x128xf32>
      %718 = vector.extract_strided_slice %42 {offsets = [11, 0, 0], sizes = [1, 32, 128], strides = [1, 1, 1]} : vector<28x32x128xf32> to vector<1x32x128xf32>
      %719 = vector.shape_cast %718 : vector<1x32x128xf32> to vector<32x128xf32>
      %720 = vector.extract_strided_slice %42 {offsets = [12, 0, 0], sizes = [1, 32, 128], strides = [1, 1, 1]} : vector<28x32x128xf32> to vector<1x32x128xf32>
      %721 = vector.shape_cast %720 : vector<1x32x128xf32> to vector<32x128xf32>
      %722 = vector.extract_strided_slice %42 {offsets = [13, 0, 0], sizes = [1, 32, 128], strides = [1, 1, 1]} : vector<28x32x128xf32> to vector<1x32x128xf32>
      %723 = vector.shape_cast %722 : vector<1x32x128xf32> to vector<32x128xf32>
      %724 = arith.mulf %693, %675 : vector<32x128xf32>
      %725 = arith.mulf %695, %677 : vector<32x128xf32>
      %726 = arith.addf %724, %725 : vector<32x128xf32>
      %727 = arith.mulf %697, %679 : vector<32x128xf32>
      %728 = arith.addf %726, %727 : vector<32x128xf32>
      %729 = arith.mulf %701, %681 : vector<32x128xf32>
      %730 = arith.addf %728, %729 : vector<32x128xf32>
      %731 = arith.mulf %703, %683 : vector<32x128xf32>
      %732 = arith.addf %730, %731 : vector<32x128xf32>
      %733 = arith.mulf %705, %685 : vector<32x128xf32>
      %734 = arith.addf %732, %733 : vector<32x128xf32>
      %735 = arith.mulf %709, %687 : vector<32x128xf32>
      %736 = arith.addf %734, %735 : vector<32x128xf32>
      %737 = arith.mulf %711, %689 : vector<32x128xf32>
      %738 = arith.addf %736, %737 : vector<32x128xf32>
      %739 = arith.mulf %713, %691 : vector<32x128xf32>
      %740 = arith.addf %738, %739 : vector<32x128xf32>
      %741 = arith.mulf %695, %675 : vector<32x128xf32>
      %742 = arith.mulf %697, %677 : vector<32x128xf32>
      %743 = arith.addf %741, %742 : vector<32x128xf32>
      %744 = arith.mulf %699, %679 : vector<32x128xf32>
      %745 = arith.addf %743, %744 : vector<32x128xf32>
      %746 = arith.mulf %703, %681 : vector<32x128xf32>
      %747 = arith.addf %745, %746 : vector<32x128xf32>
      %748 = arith.mulf %705, %683 : vector<32x128xf32>
      %749 = arith.addf %747, %748 : vector<32x128xf32>
      %750 = arith.mulf %707, %685 : vector<32x128xf32>
      %751 = arith.addf %749, %750 : vector<32x128xf32>
      %752 = arith.mulf %711, %687 : vector<32x128xf32>
      %753 = arith.addf %751, %752 : vector<32x128xf32>
      %754 = arith.mulf %713, %689 : vector<32x128xf32>
      %755 = arith.addf %753, %754 : vector<32x128xf32>
      %756 = arith.mulf %715, %691 : vector<32x128xf32>
      %757 = arith.addf %755, %756 : vector<32x128xf32>
      %758 = arith.maximumf %740, %757 : vector<32x128xf32>
      %759 = arith.mulf %701, %675 : vector<32x128xf32>
      %760 = arith.mulf %703, %677 : vector<32x128xf32>
      %761 = arith.addf %759, %760 : vector<32x128xf32>
      %762 = arith.mulf %705, %679 : vector<32x128xf32>
      %763 = arith.addf %761, %762 : vector<32x128xf32>
      %764 = arith.mulf %709, %681 : vector<32x128xf32>
      %765 = arith.addf %763, %764 : vector<32x128xf32>
      %766 = arith.mulf %711, %683 : vector<32x128xf32>
      %767 = arith.addf %765, %766 : vector<32x128xf32>
      %768 = arith.mulf %713, %685 : vector<32x128xf32>
      %769 = arith.addf %767, %768 : vector<32x128xf32>
      %770 = arith.mulf %717, %687 : vector<32x128xf32>
      %771 = arith.addf %769, %770 : vector<32x128xf32>
      %772 = arith.mulf %719, %689 : vector<32x128xf32>
      %773 = arith.addf %771, %772 : vector<32x128xf32>
      %774 = arith.mulf %721, %691 : vector<32x128xf32>
      %775 = arith.addf %773, %774 : vector<32x128xf32>
      %776 = arith.maximumf %758, %775 : vector<32x128xf32>
      %777 = arith.mulf %703, %675 : vector<32x128xf32>
      %778 = arith.mulf %705, %677 : vector<32x128xf32>
      %779 = arith.addf %777, %778 : vector<32x128xf32>
      %780 = arith.mulf %707, %679 : vector<32x128xf32>
      %781 = arith.addf %779, %780 : vector<32x128xf32>
      %782 = arith.mulf %711, %681 : vector<32x128xf32>
      %783 = arith.addf %781, %782 : vector<32x128xf32>
      %784 = arith.mulf %713, %683 : vector<32x128xf32>
      %785 = arith.addf %783, %784 : vector<32x128xf32>
      %786 = arith.mulf %715, %685 : vector<32x128xf32>
      %787 = arith.addf %785, %786 : vector<32x128xf32>
      %788 = arith.mulf %719, %687 : vector<32x128xf32>
      %789 = arith.addf %787, %788 : vector<32x128xf32>
      %790 = arith.mulf %721, %689 : vector<32x128xf32>
      %791 = arith.addf %789, %790 : vector<32x128xf32>
      %792 = arith.mulf %723, %691 : vector<32x128xf32>
      %793 = arith.addf %791, %792 : vector<32x128xf32>
      %794 = arith.maximumf %776, %793 : vector<32x128xf32>
      %795 = arith.index_cast %arg6 : i32 to index
      %c5_200 = arith.constant 5 : index
      %c0_201 = arith.constant 0 : index
      %c0_202 = arith.constant 0 : index
      %796 = vector.load %arg4[%795, %c5_200, %c0_201, %c0_202] : memref<13x13x32x128xf32, #tpu.memory_space<vmem>>, vector<1x1x32x128xf32>
      %797 = vector.shape_cast %796 : vector<1x1x32x128xf32> to vector<32x128xf32>
      %798 = arith.mulf %794, %797 : vector<32x128xf32>
      %799 = arith.addf %673, %798 : vector<32x128xf32>
      %c0_203 = arith.constant 0 : index
      %c0_204 = arith.constant 0 : index
      %c0_205 = arith.constant 0 : index
      %800 = vector.load %arg3[%c0_203, %c0_204, %c0_205] : memref<9x32x128xf32, #tpu.memory_space<vmem>>, vector<1x32x128xf32>
      %801 = vector.shape_cast %800 : vector<1x32x128xf32> to vector<32x128xf32>
      %c1_206 = arith.constant 1 : index
      %c0_207 = arith.constant 0 : index
      %c0_208 = arith.constant 0 : index
      %802 = vector.load %arg3[%c1_206, %c0_207, %c0_208] : memref<9x32x128xf32, #tpu.memory_space<vmem>>, vector<1x32x128xf32>
      %803 = vector.shape_cast %802 : vector<1x32x128xf32> to vector<32x128xf32>
      %c2_209 = arith.constant 2 : index
      %c0_210 = arith.constant 0 : index
      %c0_211 = arith.constant 0 : index
      %804 = vector.load %arg3[%c2_209, %c0_210, %c0_211] : memref<9x32x128xf32, #tpu.memory_space<vmem>>, vector<1x32x128xf32>
      %805 = vector.shape_cast %804 : vector<1x32x128xf32> to vector<32x128xf32>
      %c3_212 = arith.constant 3 : index
      %c0_213 = arith.constant 0 : index
      %c0_214 = arith.constant 0 : index
      %806 = vector.load %arg3[%c3_212, %c0_213, %c0_214] : memref<9x32x128xf32, #tpu.memory_space<vmem>>, vector<1x32x128xf32>
      %807 = vector.shape_cast %806 : vector<1x32x128xf32> to vector<32x128xf32>
      %c4_215 = arith.constant 4 : index
      %c0_216 = arith.constant 0 : index
      %c0_217 = arith.constant 0 : index
      %808 = vector.load %arg3[%c4_215, %c0_216, %c0_217] : memref<9x32x128xf32, #tpu.memory_space<vmem>>, vector<1x32x128xf32>
      %809 = vector.shape_cast %808 : vector<1x32x128xf32> to vector<32x128xf32>
      %c5_218 = arith.constant 5 : index
      %c0_219 = arith.constant 0 : index
      %c0_220 = arith.constant 0 : index
      %810 = vector.load %arg3[%c5_218, %c0_219, %c0_220] : memref<9x32x128xf32, #tpu.memory_space<vmem>>, vector<1x32x128xf32>
      %811 = vector.shape_cast %810 : vector<1x32x128xf32> to vector<32x128xf32>
      %c6_221 = arith.constant 6 : index
      %c0_222 = arith.constant 0 : index
      %c0_223 = arith.constant 0 : index
      %812 = vector.load %arg3[%c6_221, %c0_222, %c0_223] : memref<9x32x128xf32, #tpu.memory_space<vmem>>, vector<1x32x128xf32>
      %813 = vector.shape_cast %812 : vector<1x32x128xf32> to vector<32x128xf32>
      %c7_224 = arith.constant 7 : index
      %c0_225 = arith.constant 0 : index
      %c0_226 = arith.constant 0 : index
      %814 = vector.load %arg3[%c7_224, %c0_225, %c0_226] : memref<9x32x128xf32, #tpu.memory_space<vmem>>, vector<1x32x128xf32>
      %815 = vector.shape_cast %814 : vector<1x32x128xf32> to vector<32x128xf32>
      %c8_227 = arith.constant 8 : index
      %c0_228 = arith.constant 0 : index
      %c0_229 = arith.constant 0 : index
      %816 = vector.load %arg3[%c8_227, %c0_228, %c0_229] : memref<9x32x128xf32, #tpu.memory_space<vmem>>, vector<1x32x128xf32>
      %817 = vector.shape_cast %816 : vector<1x32x128xf32> to vector<32x128xf32>
      %818 = vector.extract_strided_slice %21 {offsets = [12, 0, 0], sizes = [1, 32, 128], strides = [1, 1, 1]} : vector<28x32x128xf32> to vector<1x32x128xf32>
      %819 = vector.shape_cast %818 : vector<1x32x128xf32> to vector<32x128xf32>
      %820 = vector.extract_strided_slice %21 {offsets = [13, 0, 0], sizes = [1, 32, 128], strides = [1, 1, 1]} : vector<28x32x128xf32> to vector<1x32x128xf32>
      %821 = vector.shape_cast %820 : vector<1x32x128xf32> to vector<32x128xf32>
      %822 = vector.extract_strided_slice %21 {offsets = [14, 0, 0], sizes = [1, 32, 128], strides = [1, 1, 1]} : vector<28x32x128xf32> to vector<1x32x128xf32>
      %823 = vector.shape_cast %822 : vector<1x32x128xf32> to vector<32x128xf32>
      %824 = vector.extract_strided_slice %21 {offsets = [15, 0, 0], sizes = [1, 32, 128], strides = [1, 1, 1]} : vector<28x32x128xf32> to vector<1x32x128xf32>
      %825 = vector.shape_cast %824 : vector<1x32x128xf32> to vector<32x128xf32>
      %826 = vector.extract_strided_slice %28 {offsets = [12, 0, 0], sizes = [1, 32, 128], strides = [1, 1, 1]} : vector<28x32x128xf32> to vector<1x32x128xf32>
      %827 = vector.shape_cast %826 : vector<1x32x128xf32> to vector<32x128xf32>
      %828 = vector.extract_strided_slice %28 {offsets = [13, 0, 0], sizes = [1, 32, 128], strides = [1, 1, 1]} : vector<28x32x128xf32> to vector<1x32x128xf32>
      %829 = vector.shape_cast %828 : vector<1x32x128xf32> to vector<32x128xf32>
      %830 = vector.extract_strided_slice %28 {offsets = [14, 0, 0], sizes = [1, 32, 128], strides = [1, 1, 1]} : vector<28x32x128xf32> to vector<1x32x128xf32>
      %831 = vector.shape_cast %830 : vector<1x32x128xf32> to vector<32x128xf32>
      %832 = vector.extract_strided_slice %28 {offsets = [15, 0, 0], sizes = [1, 32, 128], strides = [1, 1, 1]} : vector<28x32x128xf32> to vector<1x32x128xf32>
      %833 = vector.shape_cast %832 : vector<1x32x128xf32> to vector<32x128xf32>
      %834 = vector.extract_strided_slice %35 {offsets = [12, 0, 0], sizes = [1, 32, 128], strides = [1, 1, 1]} : vector<28x32x128xf32> to vector<1x32x128xf32>
      %835 = vector.shape_cast %834 : vector<1x32x128xf32> to vector<32x128xf32>
      %836 = vector.extract_strided_slice %35 {offsets = [13, 0, 0], sizes = [1, 32, 128], strides = [1, 1, 1]} : vector<28x32x128xf32> to vector<1x32x128xf32>
      %837 = vector.shape_cast %836 : vector<1x32x128xf32> to vector<32x128xf32>
      %838 = vector.extract_strided_slice %35 {offsets = [14, 0, 0], sizes = [1, 32, 128], strides = [1, 1, 1]} : vector<28x32x128xf32> to vector<1x32x128xf32>
      %839 = vector.shape_cast %838 : vector<1x32x128xf32> to vector<32x128xf32>
      %840 = vector.extract_strided_slice %35 {offsets = [15, 0, 0], sizes = [1, 32, 128], strides = [1, 1, 1]} : vector<28x32x128xf32> to vector<1x32x128xf32>
      %841 = vector.shape_cast %840 : vector<1x32x128xf32> to vector<32x128xf32>
      %842 = vector.extract_strided_slice %42 {offsets = [12, 0, 0], sizes = [1, 32, 128], strides = [1, 1, 1]} : vector<28x32x128xf32> to vector<1x32x128xf32>
      %843 = vector.shape_cast %842 : vector<1x32x128xf32> to vector<32x128xf32>
      %844 = vector.extract_strided_slice %42 {offsets = [13, 0, 0], sizes = [1, 32, 128], strides = [1, 1, 1]} : vector<28x32x128xf32> to vector<1x32x128xf32>
      %845 = vector.shape_cast %844 : vector<1x32x128xf32> to vector<32x128xf32>
      %846 = vector.extract_strided_slice %42 {offsets = [14, 0, 0], sizes = [1, 32, 128], strides = [1, 1, 1]} : vector<28x32x128xf32> to vector<1x32x128xf32>
      %847 = vector.shape_cast %846 : vector<1x32x128xf32> to vector<32x128xf32>
      %848 = vector.extract_strided_slice %42 {offsets = [15, 0, 0], sizes = [1, 32, 128], strides = [1, 1, 1]} : vector<28x32x128xf32> to vector<1x32x128xf32>
      %849 = vector.shape_cast %848 : vector<1x32x128xf32> to vector<32x128xf32>
      %850 = arith.mulf %819, %801 : vector<32x128xf32>
      %851 = arith.mulf %821, %803 : vector<32x128xf32>
      %852 = arith.addf %850, %851 : vector<32x128xf32>
      %853 = arith.mulf %823, %805 : vector<32x128xf32>
      %854 = arith.addf %852, %853 : vector<32x128xf32>
      %855 = arith.mulf %827, %807 : vector<32x128xf32>
      %856 = arith.addf %854, %855 : vector<32x128xf32>
      %857 = arith.mulf %829, %809 : vector<32x128xf32>
      %858 = arith.addf %856, %857 : vector<32x128xf32>
      %859 = arith.mulf %831, %811 : vector<32x128xf32>
      %860 = arith.addf %858, %859 : vector<32x128xf32>
      %861 = arith.mulf %835, %813 : vector<32x128xf32>
      %862 = arith.addf %860, %861 : vector<32x128xf32>
      %863 = arith.mulf %837, %815 : vector<32x128xf32>
      %864 = arith.addf %862, %863 : vector<32x128xf32>
      %865 = arith.mulf %839, %817 : vector<32x128xf32>
      %866 = arith.addf %864, %865 : vector<32x128xf32>
      %867 = arith.mulf %821, %801 : vector<32x128xf32>
      %868 = arith.mulf %823, %803 : vector<32x128xf32>
      %869 = arith.addf %867, %868 : vector<32x128xf32>
      %870 = arith.mulf %825, %805 : vector<32x128xf32>
      %871 = arith.addf %869, %870 : vector<32x128xf32>
      %872 = arith.mulf %829, %807 : vector<32x128xf32>
      %873 = arith.addf %871, %872 : vector<32x128xf32>
      %874 = arith.mulf %831, %809 : vector<32x128xf32>
      %875 = arith.addf %873, %874 : vector<32x128xf32>
      %876 = arith.mulf %833, %811 : vector<32x128xf32>
      %877 = arith.addf %875, %876 : vector<32x128xf32>
      %878 = arith.mulf %837, %813 : vector<32x128xf32>
      %879 = arith.addf %877, %878 : vector<32x128xf32>
      %880 = arith.mulf %839, %815 : vector<32x128xf32>
      %881 = arith.addf %879, %880 : vector<32x128xf32>
      %882 = arith.mulf %841, %817 : vector<32x128xf32>
      %883 = arith.addf %881, %882 : vector<32x128xf32>
      %884 = arith.maximumf %866, %883 : vector<32x128xf32>
      %885 = arith.mulf %827, %801 : vector<32x128xf32>
      %886 = arith.mulf %829, %803 : vector<32x128xf32>
      %887 = arith.addf %885, %886 : vector<32x128xf32>
      %888 = arith.mulf %831, %805 : vector<32x128xf32>
      %889 = arith.addf %887, %888 : vector<32x128xf32>
      %890 = arith.mulf %835, %807 : vector<32x128xf32>
      %891 = arith.addf %889, %890 : vector<32x128xf32>
      %892 = arith.mulf %837, %809 : vector<32x128xf32>
      %893 = arith.addf %891, %892 : vector<32x128xf32>
      %894 = arith.mulf %839, %811 : vector<32x128xf32>
      %895 = arith.addf %893, %894 : vector<32x128xf32>
      %896 = arith.mulf %843, %813 : vector<32x128xf32>
      %897 = arith.addf %895, %896 : vector<32x128xf32>
      %898 = arith.mulf %845, %815 : vector<32x128xf32>
      %899 = arith.addf %897, %898 : vector<32x128xf32>
      %900 = arith.mulf %847, %817 : vector<32x128xf32>
      %901 = arith.addf %899, %900 : vector<32x128xf32>
      %902 = arith.maximumf %884, %901 : vector<32x128xf32>
      %903 = arith.mulf %829, %801 : vector<32x128xf32>
      %904 = arith.mulf %831, %803 : vector<32x128xf32>
      %905 = arith.addf %903, %904 : vector<32x128xf32>
      %906 = arith.mulf %833, %805 : vector<32x128xf32>
      %907 = arith.addf %905, %906 : vector<32x128xf32>
      %908 = arith.mulf %837, %807 : vector<32x128xf32>
      %909 = arith.addf %907, %908 : vector<32x128xf32>
      %910 = arith.mulf %839, %809 : vector<32x128xf32>
      %911 = arith.addf %909, %910 : vector<32x128xf32>
      %912 = arith.mulf %841, %811 : vector<32x128xf32>
      %913 = arith.addf %911, %912 : vector<32x128xf32>
      %914 = arith.mulf %845, %813 : vector<32x128xf32>
      %915 = arith.addf %913, %914 : vector<32x128xf32>
      %916 = arith.mulf %847, %815 : vector<32x128xf32>
      %917 = arith.addf %915, %916 : vector<32x128xf32>
      %918 = arith.mulf %849, %817 : vector<32x128xf32>
      %919 = arith.addf %917, %918 : vector<32x128xf32>
      %920 = arith.maximumf %902, %919 : vector<32x128xf32>
      %921 = arith.index_cast %arg6 : i32 to index
      %c6_230 = arith.constant 6 : index
      %c0_231 = arith.constant 0 : index
      %c0_232 = arith.constant 0 : index
      %922 = vector.load %arg4[%921, %c6_230, %c0_231, %c0_232] : memref<13x13x32x128xf32, #tpu.memory_space<vmem>>, vector<1x1x32x128xf32>
      %923 = vector.shape_cast %922 : vector<1x1x32x128xf32> to vector<32x128xf32>
      %924 = arith.mulf %920, %923 : vector<32x128xf32>
      %925 = arith.addf %799, %924 : vector<32x128xf32>
      %c0_233 = arith.constant 0 : index
      %c0_234 = arith.constant 0 : index
      %c0_235 = arith.constant 0 : index
      %926 = vector.load %arg3[%c0_233, %c0_234, %c0_235] : memref<9x32x128xf32, #tpu.memory_space<vmem>>, vector<1x32x128xf32>
      %927 = vector.shape_cast %926 : vector<1x32x128xf32> to vector<32x128xf32>
      %c1_236 = arith.constant 1 : index
      %c0_237 = arith.constant 0 : index
      %c0_238 = arith.constant 0 : index
      %928 = vector.load %arg3[%c1_236, %c0_237, %c0_238] : memref<9x32x128xf32, #tpu.memory_space<vmem>>, vector<1x32x128xf32>
      %929 = vector.shape_cast %928 : vector<1x32x128xf32> to vector<32x128xf32>
      %c2_239 = arith.constant 2 : index
      %c0_240 = arith.constant 0 : index
      %c0_241 = arith.constant 0 : index
      %930 = vector.load %arg3[%c2_239, %c0_240, %c0_241] : memref<9x32x128xf32, #tpu.memory_space<vmem>>, vector<1x32x128xf32>
      %931 = vector.shape_cast %930 : vector<1x32x128xf32> to vector<32x128xf32>
      %c3_242 = arith.constant 3 : index
      %c0_243 = arith.constant 0 : index
      %c0_244 = arith.constant 0 : index
      %932 = vector.load %arg3[%c3_242, %c0_243, %c0_244] : memref<9x32x128xf32, #tpu.memory_space<vmem>>, vector<1x32x128xf32>
      %933 = vector.shape_cast %932 : vector<1x32x128xf32> to vector<32x128xf32>
      %c4_245 = arith.constant 4 : index
      %c0_246 = arith.constant 0 : index
      %c0_247 = arith.constant 0 : index
      %934 = vector.load %arg3[%c4_245, %c0_246, %c0_247] : memref<9x32x128xf32, #tpu.memory_space<vmem>>, vector<1x32x128xf32>
      %935 = vector.shape_cast %934 : vector<1x32x128xf32> to vector<32x128xf32>
      %c5_248 = arith.constant 5 : index
      %c0_249 = arith.constant 0 : index
      %c0_250 = arith.constant 0 : index
      %936 = vector.load %arg3[%c5_248, %c0_249, %c0_250] : memref<9x32x128xf32, #tpu.memory_space<vmem>>, vector<1x32x128xf32>
      %937 = vector.shape_cast %936 : vector<1x32x128xf32> to vector<32x128xf32>
      %c6_251 = arith.constant 6 : index
      %c0_252 = arith.constant 0 : index
      %c0_253 = arith.constant 0 : index
      %938 = vector.load %arg3[%c6_251, %c0_252, %c0_253] : memref<9x32x128xf32, #tpu.memory_space<vmem>>, vector<1x32x128xf32>
      %939 = vector.shape_cast %938 : vector<1x32x128xf32> to vector<32x128xf32>
      %c7_254 = arith.constant 7 : index
      %c0_255 = arith.constant 0 : index
      %c0_256 = arith.constant 0 : index
      %940 = vector.load %arg3[%c7_254, %c0_255, %c0_256] : memref<9x32x128xf32, #tpu.memory_space<vmem>>, vector<1x32x128xf32>
      %941 = vector.shape_cast %940 : vector<1x32x128xf32> to vector<32x128xf32>
      %c8_257 = arith.constant 8 : index
      %c0_258 = arith.constant 0 : index
      %c0_259 = arith.constant 0 : index
      %942 = vector.load %arg3[%c8_257, %c0_258, %c0_259] : memref<9x32x128xf32, #tpu.memory_space<vmem>>, vector<1x32x128xf32>
      %943 = vector.shape_cast %942 : vector<1x32x128xf32> to vector<32x128xf32>
      %944 = vector.extract_strided_slice %21 {offsets = [14, 0, 0], sizes = [1, 32, 128], strides = [1, 1, 1]} : vector<28x32x128xf32> to vector<1x32x128xf32>
      %945 = vector.shape_cast %944 : vector<1x32x128xf32> to vector<32x128xf32>
      %946 = vector.extract_strided_slice %21 {offsets = [15, 0, 0], sizes = [1, 32, 128], strides = [1, 1, 1]} : vector<28x32x128xf32> to vector<1x32x128xf32>
      %947 = vector.shape_cast %946 : vector<1x32x128xf32> to vector<32x128xf32>
      %948 = vector.extract_strided_slice %21 {offsets = [16, 0, 0], sizes = [1, 32, 128], strides = [1, 1, 1]} : vector<28x32x128xf32> to vector<1x32x128xf32>
      %949 = vector.shape_cast %948 : vector<1x32x128xf32> to vector<32x128xf32>
      %950 = vector.extract_strided_slice %21 {offsets = [17, 0, 0], sizes = [1, 32, 128], strides = [1, 1, 1]} : vector<28x32x128xf32> to vector<1x32x128xf32>
      %951 = vector.shape_cast %950 : vector<1x32x128xf32> to vector<32x128xf32>
      %952 = vector.extract_strided_slice %28 {offsets = [14, 0, 0], sizes = [1, 32, 128], strides = [1, 1, 1]} : vector<28x32x128xf32> to vector<1x32x128xf32>
      %953 = vector.shape_cast %952 : vector<1x32x128xf32> to vector<32x128xf32>
      %954 = vector.extract_strided_slice %28 {offsets = [15, 0, 0], sizes = [1, 32, 128], strides = [1, 1, 1]} : vector<28x32x128xf32> to vector<1x32x128xf32>
      %955 = vector.shape_cast %954 : vector<1x32x128xf32> to vector<32x128xf32>
      %956 = vector.extract_strided_slice %28 {offsets = [16, 0, 0], sizes = [1, 32, 128], strides = [1, 1, 1]} : vector<28x32x128xf32> to vector<1x32x128xf32>
      %957 = vector.shape_cast %956 : vector<1x32x128xf32> to vector<32x128xf32>
      %958 = vector.extract_strided_slice %28 {offsets = [17, 0, 0], sizes = [1, 32, 128], strides = [1, 1, 1]} : vector<28x32x128xf32> to vector<1x32x128xf32>
      %959 = vector.shape_cast %958 : vector<1x32x128xf32> to vector<32x128xf32>
      %960 = vector.extract_strided_slice %35 {offsets = [14, 0, 0], sizes = [1, 32, 128], strides = [1, 1, 1]} : vector<28x32x128xf32> to vector<1x32x128xf32>
      %961 = vector.shape_cast %960 : vector<1x32x128xf32> to vector<32x128xf32>
      %962 = vector.extract_strided_slice %35 {offsets = [15, 0, 0], sizes = [1, 32, 128], strides = [1, 1, 1]} : vector<28x32x128xf32> to vector<1x32x128xf32>
      %963 = vector.shape_cast %962 : vector<1x32x128xf32> to vector<32x128xf32>
      %964 = vector.extract_strided_slice %35 {offsets = [16, 0, 0], sizes = [1, 32, 128], strides = [1, 1, 1]} : vector<28x32x128xf32> to vector<1x32x128xf32>
      %965 = vector.shape_cast %964 : vector<1x32x128xf32> to vector<32x128xf32>
      %966 = vector.extract_strided_slice %35 {offsets = [17, 0, 0], sizes = [1, 32, 128], strides = [1, 1, 1]} : vector<28x32x128xf32> to vector<1x32x128xf32>
      %967 = vector.shape_cast %966 : vector<1x32x128xf32> to vector<32x128xf32>
      %968 = vector.extract_strided_slice %42 {offsets = [14, 0, 0], sizes = [1, 32, 128], strides = [1, 1, 1]} : vector<28x32x128xf32> to vector<1x32x128xf32>
      %969 = vector.shape_cast %968 : vector<1x32x128xf32> to vector<32x128xf32>
      %970 = vector.extract_strided_slice %42 {offsets = [15, 0, 0], sizes = [1, 32, 128], strides = [1, 1, 1]} : vector<28x32x128xf32> to vector<1x32x128xf32>
      %971 = vector.shape_cast %970 : vector<1x32x128xf32> to vector<32x128xf32>
      %972 = vector.extract_strided_slice %42 {offsets = [16, 0, 0], sizes = [1, 32, 128], strides = [1, 1, 1]} : vector<28x32x128xf32> to vector<1x32x128xf32>
      %973 = vector.shape_cast %972 : vector<1x32x128xf32> to vector<32x128xf32>
      %974 = vector.extract_strided_slice %42 {offsets = [17, 0, 0], sizes = [1, 32, 128], strides = [1, 1, 1]} : vector<28x32x128xf32> to vector<1x32x128xf32>
      %975 = vector.shape_cast %974 : vector<1x32x128xf32> to vector<32x128xf32>
      %976 = arith.mulf %945, %927 : vector<32x128xf32>
      %977 = arith.mulf %947, %929 : vector<32x128xf32>
      %978 = arith.addf %976, %977 : vector<32x128xf32>
      %979 = arith.mulf %949, %931 : vector<32x128xf32>
      %980 = arith.addf %978, %979 : vector<32x128xf32>
      %981 = arith.mulf %953, %933 : vector<32x128xf32>
      %982 = arith.addf %980, %981 : vector<32x128xf32>
      %983 = arith.mulf %955, %935 : vector<32x128xf32>
      %984 = arith.addf %982, %983 : vector<32x128xf32>
      %985 = arith.mulf %957, %937 : vector<32x128xf32>
      %986 = arith.addf %984, %985 : vector<32x128xf32>
      %987 = arith.mulf %961, %939 : vector<32x128xf32>
      %988 = arith.addf %986, %987 : vector<32x128xf32>
      %989 = arith.mulf %963, %941 : vector<32x128xf32>
      %990 = arith.addf %988, %989 : vector<32x128xf32>
      %991 = arith.mulf %965, %943 : vector<32x128xf32>
      %992 = arith.addf %990, %991 : vector<32x128xf32>
      %993 = arith.mulf %947, %927 : vector<32x128xf32>
      %994 = arith.mulf %949, %929 : vector<32x128xf32>
      %995 = arith.addf %993, %994 : vector<32x128xf32>
      %996 = arith.mulf %951, %931 : vector<32x128xf32>
      %997 = arith.addf %995, %996 : vector<32x128xf32>
      %998 = arith.mulf %955, %933 : vector<32x128xf32>
      %999 = arith.addf %997, %998 : vector<32x128xf32>
      %1000 = arith.mulf %957, %935 : vector<32x128xf32>
      %1001 = arith.addf %999, %1000 : vector<32x128xf32>
      %1002 = arith.mulf %959, %937 : vector<32x128xf32>
      %1003 = arith.addf %1001, %1002 : vector<32x128xf32>
      %1004 = arith.mulf %963, %939 : vector<32x128xf32>
      %1005 = arith.addf %1003, %1004 : vector<32x128xf32>
      %1006 = arith.mulf %965, %941 : vector<32x128xf32>
      %1007 = arith.addf %1005, %1006 : vector<32x128xf32>
      %1008 = arith.mulf %967, %943 : vector<32x128xf32>
      %1009 = arith.addf %1007, %1008 : vector<32x128xf32>
      %1010 = arith.maximumf %992, %1009 : vector<32x128xf32>
      %1011 = arith.mulf %953, %927 : vector<32x128xf32>
      %1012 = arith.mulf %955, %929 : vector<32x128xf32>
      %1013 = arith.addf %1011, %1012 : vector<32x128xf32>
      %1014 = arith.mulf %957, %931 : vector<32x128xf32>
      %1015 = arith.addf %1013, %1014 : vector<32x128xf32>
      %1016 = arith.mulf %961, %933 : vector<32x128xf32>
      %1017 = arith.addf %1015, %1016 : vector<32x128xf32>
      %1018 = arith.mulf %963, %935 : vector<32x128xf32>
      %1019 = arith.addf %1017, %1018 : vector<32x128xf32>
      %1020 = arith.mulf %965, %937 : vector<32x128xf32>
      %1021 = arith.addf %1019, %1020 : vector<32x128xf32>
      %1022 = arith.mulf %969, %939 : vector<32x128xf32>
      %1023 = arith.addf %1021, %1022 : vector<32x128xf32>
      %1024 = arith.mulf %971, %941 : vector<32x128xf32>
      %1025 = arith.addf %1023, %1024 : vector<32x128xf32>
      %1026 = arith.mulf %973, %943 : vector<32x128xf32>
      %1027 = arith.addf %1025, %1026 : vector<32x128xf32>
      %1028 = arith.maximumf %1010, %1027 : vector<32x128xf32>
      %1029 = arith.mulf %955, %927 : vector<32x128xf32>
      %1030 = arith.mulf %957, %929 : vector<32x128xf32>
      %1031 = arith.addf %1029, %1030 : vector<32x128xf32>
      %1032 = arith.mulf %959, %931 : vector<32x128xf32>
      %1033 = arith.addf %1031, %1032 : vector<32x128xf32>
      %1034 = arith.mulf %963, %933 : vector<32x128xf32>
      %1035 = arith.addf %1033, %1034 : vector<32x128xf32>
      %1036 = arith.mulf %965, %935 : vector<32x128xf32>
      %1037 = arith.addf %1035, %1036 : vector<32x128xf32>
      %1038 = arith.mulf %967, %937 : vector<32x128xf32>
      %1039 = arith.addf %1037, %1038 : vector<32x128xf32>
      %1040 = arith.mulf %971, %939 : vector<32x128xf32>
      %1041 = arith.addf %1039, %1040 : vector<32x128xf32>
      %1042 = arith.mulf %973, %941 : vector<32x128xf32>
      %1043 = arith.addf %1041, %1042 : vector<32x128xf32>
      %1044 = arith.mulf %975, %943 : vector<32x128xf32>
      %1045 = arith.addf %1043, %1044 : vector<32x128xf32>
      %1046 = arith.maximumf %1028, %1045 : vector<32x128xf32>
      %1047 = arith.index_cast %arg6 : i32 to index
      %c7_260 = arith.constant 7 : index
      %c0_261 = arith.constant 0 : index
      %c0_262 = arith.constant 0 : index
      %1048 = vector.load %arg4[%1047, %c7_260, %c0_261, %c0_262] : memref<13x13x32x128xf32, #tpu.memory_space<vmem>>, vector<1x1x32x128xf32>
      %1049 = vector.shape_cast %1048 : vector<1x1x32x128xf32> to vector<32x128xf32>
      %1050 = arith.mulf %1046, %1049 : vector<32x128xf32>
      %1051 = arith.addf %925, %1050 : vector<32x128xf32>
      %c0_263 = arith.constant 0 : index
      %c0_264 = arith.constant 0 : index
      %c0_265 = arith.constant 0 : index
      %1052 = vector.load %arg3[%c0_263, %c0_264, %c0_265] : memref<9x32x128xf32, #tpu.memory_space<vmem>>, vector<1x32x128xf32>
      %1053 = vector.shape_cast %1052 : vector<1x32x128xf32> to vector<32x128xf32>
      %c1_266 = arith.constant 1 : index
      %c0_267 = arith.constant 0 : index
      %c0_268 = arith.constant 0 : index
      %1054 = vector.load %arg3[%c1_266, %c0_267, %c0_268] : memref<9x32x128xf32, #tpu.memory_space<vmem>>, vector<1x32x128xf32>
      %1055 = vector.shape_cast %1054 : vector<1x32x128xf32> to vector<32x128xf32>
      %c2_269 = arith.constant 2 : index
      %c0_270 = arith.constant 0 : index
      %c0_271 = arith.constant 0 : index
      %1056 = vector.load %arg3[%c2_269, %c0_270, %c0_271] : memref<9x32x128xf32, #tpu.memory_space<vmem>>, vector<1x32x128xf32>
      %1057 = vector.shape_cast %1056 : vector<1x32x128xf32> to vector<32x128xf32>
      %c3_272 = arith.constant 3 : index
      %c0_273 = arith.constant 0 : index
      %c0_274 = arith.constant 0 : index
      %1058 = vector.load %arg3[%c3_272, %c0_273, %c0_274] : memref<9x32x128xf32, #tpu.memory_space<vmem>>, vector<1x32x128xf32>
      %1059 = vector.shape_cast %1058 : vector<1x32x128xf32> to vector<32x128xf32>
      %c4_275 = arith.constant 4 : index
      %c0_276 = arith.constant 0 : index
      %c0_277 = arith.constant 0 : index
      %1060 = vector.load %arg3[%c4_275, %c0_276, %c0_277] : memref<9x32x128xf32, #tpu.memory_space<vmem>>, vector<1x32x128xf32>
      %1061 = vector.shape_cast %1060 : vector<1x32x128xf32> to vector<32x128xf32>
      %c5_278 = arith.constant 5 : index
      %c0_279 = arith.constant 0 : index
      %c0_280 = arith.constant 0 : index
      %1062 = vector.load %arg3[%c5_278, %c0_279, %c0_280] : memref<9x32x128xf32, #tpu.memory_space<vmem>>, vector<1x32x128xf32>
      %1063 = vector.shape_cast %1062 : vector<1x32x128xf32> to vector<32x128xf32>
      %c6_281 = arith.constant 6 : index
      %c0_282 = arith.constant 0 : index
      %c0_283 = arith.constant 0 : index
      %1064 = vector.load %arg3[%c6_281, %c0_282, %c0_283] : memref<9x32x128xf32, #tpu.memory_space<vmem>>, vector<1x32x128xf32>
      %1065 = vector.shape_cast %1064 : vector<1x32x128xf32> to vector<32x128xf32>
      %c7_284 = arith.constant 7 : index
      %c0_285 = arith.constant 0 : index
      %c0_286 = arith.constant 0 : index
      %1066 = vector.load %arg3[%c7_284, %c0_285, %c0_286] : memref<9x32x128xf32, #tpu.memory_space<vmem>>, vector<1x32x128xf32>
      %1067 = vector.shape_cast %1066 : vector<1x32x128xf32> to vector<32x128xf32>
      %c8_287 = arith.constant 8 : index
      %c0_288 = arith.constant 0 : index
      %c0_289 = arith.constant 0 : index
      %1068 = vector.load %arg3[%c8_287, %c0_288, %c0_289] : memref<9x32x128xf32, #tpu.memory_space<vmem>>, vector<1x32x128xf32>
      %1069 = vector.shape_cast %1068 : vector<1x32x128xf32> to vector<32x128xf32>
      %1070 = vector.extract_strided_slice %21 {offsets = [16, 0, 0], sizes = [1, 32, 128], strides = [1, 1, 1]} : vector<28x32x128xf32> to vector<1x32x128xf32>
      %1071 = vector.shape_cast %1070 : vector<1x32x128xf32> to vector<32x128xf32>
      %1072 = vector.extract_strided_slice %21 {offsets = [17, 0, 0], sizes = [1, 32, 128], strides = [1, 1, 1]} : vector<28x32x128xf32> to vector<1x32x128xf32>
      %1073 = vector.shape_cast %1072 : vector<1x32x128xf32> to vector<32x128xf32>
      %1074 = vector.extract_strided_slice %21 {offsets = [18, 0, 0], sizes = [1, 32, 128], strides = [1, 1, 1]} : vector<28x32x128xf32> to vector<1x32x128xf32>
      %1075 = vector.shape_cast %1074 : vector<1x32x128xf32> to vector<32x128xf32>
      %1076 = vector.extract_strided_slice %21 {offsets = [19, 0, 0], sizes = [1, 32, 128], strides = [1, 1, 1]} : vector<28x32x128xf32> to vector<1x32x128xf32>
      %1077 = vector.shape_cast %1076 : vector<1x32x128xf32> to vector<32x128xf32>
      %1078 = vector.extract_strided_slice %28 {offsets = [16, 0, 0], sizes = [1, 32, 128], strides = [1, 1, 1]} : vector<28x32x128xf32> to vector<1x32x128xf32>
      %1079 = vector.shape_cast %1078 : vector<1x32x128xf32> to vector<32x128xf32>
      %1080 = vector.extract_strided_slice %28 {offsets = [17, 0, 0], sizes = [1, 32, 128], strides = [1, 1, 1]} : vector<28x32x128xf32> to vector<1x32x128xf32>
      %1081 = vector.shape_cast %1080 : vector<1x32x128xf32> to vector<32x128xf32>
      %1082 = vector.extract_strided_slice %28 {offsets = [18, 0, 0], sizes = [1, 32, 128], strides = [1, 1, 1]} : vector<28x32x128xf32> to vector<1x32x128xf32>
      %1083 = vector.shape_cast %1082 : vector<1x32x128xf32> to vector<32x128xf32>
      %1084 = vector.extract_strided_slice %28 {offsets = [19, 0, 0], sizes = [1, 32, 128], strides = [1, 1, 1]} : vector<28x32x128xf32> to vector<1x32x128xf32>
      %1085 = vector.shape_cast %1084 : vector<1x32x128xf32> to vector<32x128xf32>
      %1086 = vector.extract_strided_slice %35 {offsets = [16, 0, 0], sizes = [1, 32, 128], strides = [1, 1, 1]} : vector<28x32x128xf32> to vector<1x32x128xf32>
      %1087 = vector.shape_cast %1086 : vector<1x32x128xf32> to vector<32x128xf32>
      %1088 = vector.extract_strided_slice %35 {offsets = [17, 0, 0], sizes = [1, 32, 128], strides = [1, 1, 1]} : vector<28x32x128xf32> to vector<1x32x128xf32>
      %1089 = vector.shape_cast %1088 : vector<1x32x128xf32> to vector<32x128xf32>
      %1090 = vector.extract_strided_slice %35 {offsets = [18, 0, 0], sizes = [1, 32, 128], strides = [1, 1, 1]} : vector<28x32x128xf32> to vector<1x32x128xf32>
      %1091 = vector.shape_cast %1090 : vector<1x32x128xf32> to vector<32x128xf32>
      %1092 = vector.extract_strided_slice %35 {offsets = [19, 0, 0], sizes = [1, 32, 128], strides = [1, 1, 1]} : vector<28x32x128xf32> to vector<1x32x128xf32>
      %1093 = vector.shape_cast %1092 : vector<1x32x128xf32> to vector<32x128xf32>
      %1094 = vector.extract_strided_slice %42 {offsets = [16, 0, 0], sizes = [1, 32, 128], strides = [1, 1, 1]} : vector<28x32x128xf32> to vector<1x32x128xf32>
      %1095 = vector.shape_cast %1094 : vector<1x32x128xf32> to vector<32x128xf32>
      %1096 = vector.extract_strided_slice %42 {offsets = [17, 0, 0], sizes = [1, 32, 128], strides = [1, 1, 1]} : vector<28x32x128xf32> to vector<1x32x128xf32>
      %1097 = vector.shape_cast %1096 : vector<1x32x128xf32> to vector<32x128xf32>
      %1098 = vector.extract_strided_slice %42 {offsets = [18, 0, 0], sizes = [1, 32, 128], strides = [1, 1, 1]} : vector<28x32x128xf32> to vector<1x32x128xf32>
      %1099 = vector.shape_cast %1098 : vector<1x32x128xf32> to vector<32x128xf32>
      %1100 = vector.extract_strided_slice %42 {offsets = [19, 0, 0], sizes = [1, 32, 128], strides = [1, 1, 1]} : vector<28x32x128xf32> to vector<1x32x128xf32>
      %1101 = vector.shape_cast %1100 : vector<1x32x128xf32> to vector<32x128xf32>
      %1102 = arith.mulf %1071, %1053 : vector<32x128xf32>
      %1103 = arith.mulf %1073, %1055 : vector<32x128xf32>
      %1104 = arith.addf %1102, %1103 : vector<32x128xf32>
      %1105 = arith.mulf %1075, %1057 : vector<32x128xf32>
      %1106 = arith.addf %1104, %1105 : vector<32x128xf32>
      %1107 = arith.mulf %1079, %1059 : vector<32x128xf32>
      %1108 = arith.addf %1106, %1107 : vector<32x128xf32>
      %1109 = arith.mulf %1081, %1061 : vector<32x128xf32>
      %1110 = arith.addf %1108, %1109 : vector<32x128xf32>
      %1111 = arith.mulf %1083, %1063 : vector<32x128xf32>
      %1112 = arith.addf %1110, %1111 : vector<32x128xf32>
      %1113 = arith.mulf %1087, %1065 : vector<32x128xf32>
      %1114 = arith.addf %1112, %1113 : vector<32x128xf32>
      %1115 = arith.mulf %1089, %1067 : vector<32x128xf32>
      %1116 = arith.addf %1114, %1115 : vector<32x128xf32>
      %1117 = arith.mulf %1091, %1069 : vector<32x128xf32>
      %1118 = arith.addf %1116, %1117 : vector<32x128xf32>
      %1119 = arith.mulf %1073, %1053 : vector<32x128xf32>
      %1120 = arith.mulf %1075, %1055 : vector<32x128xf32>
      %1121 = arith.addf %1119, %1120 : vector<32x128xf32>
      %1122 = arith.mulf %1077, %1057 : vector<32x128xf32>
      %1123 = arith.addf %1121, %1122 : vector<32x128xf32>
      %1124 = arith.mulf %1081, %1059 : vector<32x128xf32>
      %1125 = arith.addf %1123, %1124 : vector<32x128xf32>
      %1126 = arith.mulf %1083, %1061 : vector<32x128xf32>
      %1127 = arith.addf %1125, %1126 : vector<32x128xf32>
      %1128 = arith.mulf %1085, %1063 : vector<32x128xf32>
      %1129 = arith.addf %1127, %1128 : vector<32x128xf32>
      %1130 = arith.mulf %1089, %1065 : vector<32x128xf32>
      %1131 = arith.addf %1129, %1130 : vector<32x128xf32>
      %1132 = arith.mulf %1091, %1067 : vector<32x128xf32>
      %1133 = arith.addf %1131, %1132 : vector<32x128xf32>
      %1134 = arith.mulf %1093, %1069 : vector<32x128xf32>
      %1135 = arith.addf %1133, %1134 : vector<32x128xf32>
      %1136 = arith.maximumf %1118, %1135 : vector<32x128xf32>
      %1137 = arith.mulf %1079, %1053 : vector<32x128xf32>
      %1138 = arith.mulf %1081, %1055 : vector<32x128xf32>
      %1139 = arith.addf %1137, %1138 : vector<32x128xf32>
      %1140 = arith.mulf %1083, %1057 : vector<32x128xf32>
      %1141 = arith.addf %1139, %1140 : vector<32x128xf32>
      %1142 = arith.mulf %1087, %1059 : vector<32x128xf32>
      %1143 = arith.addf %1141, %1142 : vector<32x128xf32>
      %1144 = arith.mulf %1089, %1061 : vector<32x128xf32>
      %1145 = arith.addf %1143, %1144 : vector<32x128xf32>
      %1146 = arith.mulf %1091, %1063 : vector<32x128xf32>
      %1147 = arith.addf %1145, %1146 : vector<32x128xf32>
      %1148 = arith.mulf %1095, %1065 : vector<32x128xf32>
      %1149 = arith.addf %1147, %1148 : vector<32x128xf32>
      %1150 = arith.mulf %1097, %1067 : vector<32x128xf32>
      %1151 = arith.addf %1149, %1150 : vector<32x128xf32>
      %1152 = arith.mulf %1099, %1069 : vector<32x128xf32>
      %1153 = arith.addf %1151, %1152 : vector<32x128xf32>
      %1154 = arith.maximumf %1136, %1153 : vector<32x128xf32>
      %1155 = arith.mulf %1081, %1053 : vector<32x128xf32>
      %1156 = arith.mulf %1083, %1055 : vector<32x128xf32>
      %1157 = arith.addf %1155, %1156 : vector<32x128xf32>
      %1158 = arith.mulf %1085, %1057 : vector<32x128xf32>
      %1159 = arith.addf %1157, %1158 : vector<32x128xf32>
      %1160 = arith.mulf %1089, %1059 : vector<32x128xf32>
      %1161 = arith.addf %1159, %1160 : vector<32x128xf32>
      %1162 = arith.mulf %1091, %1061 : vector<32x128xf32>
      %1163 = arith.addf %1161, %1162 : vector<32x128xf32>
      %1164 = arith.mulf %1093, %1063 : vector<32x128xf32>
      %1165 = arith.addf %1163, %1164 : vector<32x128xf32>
      %1166 = arith.mulf %1097, %1065 : vector<32x128xf32>
      %1167 = arith.addf %1165, %1166 : vector<32x128xf32>
      %1168 = arith.mulf %1099, %1067 : vector<32x128xf32>
      %1169 = arith.addf %1167, %1168 : vector<32x128xf32>
      %1170 = arith.mulf %1101, %1069 : vector<32x128xf32>
      %1171 = arith.addf %1169, %1170 : vector<32x128xf32>
      %1172 = arith.maximumf %1154, %1171 : vector<32x128xf32>
      %1173 = arith.index_cast %arg6 : i32 to index
      %c8_290 = arith.constant 8 : index
      %c0_291 = arith.constant 0 : index
      %c0_292 = arith.constant 0 : index
      %1174 = vector.load %arg4[%1173, %c8_290, %c0_291, %c0_292] : memref<13x13x32x128xf32, #tpu.memory_space<vmem>>, vector<1x1x32x128xf32>
      %1175 = vector.shape_cast %1174 : vector<1x1x32x128xf32> to vector<32x128xf32>
      %1176 = arith.mulf %1172, %1175 : vector<32x128xf32>
      %1177 = arith.addf %1051, %1176 : vector<32x128xf32>
      %c0_293 = arith.constant 0 : index
      %c0_294 = arith.constant 0 : index
      %c0_295 = arith.constant 0 : index
      %1178 = vector.load %arg3[%c0_293, %c0_294, %c0_295] : memref<9x32x128xf32, #tpu.memory_space<vmem>>, vector<1x32x128xf32>
      %1179 = vector.shape_cast %1178 : vector<1x32x128xf32> to vector<32x128xf32>
      %c1_296 = arith.constant 1 : index
      %c0_297 = arith.constant 0 : index
      %c0_298 = arith.constant 0 : index
      %1180 = vector.load %arg3[%c1_296, %c0_297, %c0_298] : memref<9x32x128xf32, #tpu.memory_space<vmem>>, vector<1x32x128xf32>
      %1181 = vector.shape_cast %1180 : vector<1x32x128xf32> to vector<32x128xf32>
      %c2_299 = arith.constant 2 : index
      %c0_300 = arith.constant 0 : index
      %c0_301 = arith.constant 0 : index
      %1182 = vector.load %arg3[%c2_299, %c0_300, %c0_301] : memref<9x32x128xf32, #tpu.memory_space<vmem>>, vector<1x32x128xf32>
      %1183 = vector.shape_cast %1182 : vector<1x32x128xf32> to vector<32x128xf32>
      %c3_302 = arith.constant 3 : index
      %c0_303 = arith.constant 0 : index
      %c0_304 = arith.constant 0 : index
      %1184 = vector.load %arg3[%c3_302, %c0_303, %c0_304] : memref<9x32x128xf32, #tpu.memory_space<vmem>>, vector<1x32x128xf32>
      %1185 = vector.shape_cast %1184 : vector<1x32x128xf32> to vector<32x128xf32>
      %c4_305 = arith.constant 4 : index
      %c0_306 = arith.constant 0 : index
      %c0_307 = arith.constant 0 : index
      %1186 = vector.load %arg3[%c4_305, %c0_306, %c0_307] : memref<9x32x128xf32, #tpu.memory_space<vmem>>, vector<1x32x128xf32>
      %1187 = vector.shape_cast %1186 : vector<1x32x128xf32> to vector<32x128xf32>
      %c5_308 = arith.constant 5 : index
      %c0_309 = arith.constant 0 : index
      %c0_310 = arith.constant 0 : index
      %1188 = vector.load %arg3[%c5_308, %c0_309, %c0_310] : memref<9x32x128xf32, #tpu.memory_space<vmem>>, vector<1x32x128xf32>
      %1189 = vector.shape_cast %1188 : vector<1x32x128xf32> to vector<32x128xf32>
      %c6_311 = arith.constant 6 : index
      %c0_312 = arith.constant 0 : index
      %c0_313 = arith.constant 0 : index
      %1190 = vector.load %arg3[%c6_311, %c0_312, %c0_313] : memref<9x32x128xf32, #tpu.memory_space<vmem>>, vector<1x32x128xf32>
      %1191 = vector.shape_cast %1190 : vector<1x32x128xf32> to vector<32x128xf32>
      %c7_314 = arith.constant 7 : index
      %c0_315 = arith.constant 0 : index
      %c0_316 = arith.constant 0 : index
      %1192 = vector.load %arg3[%c7_314, %c0_315, %c0_316] : memref<9x32x128xf32, #tpu.memory_space<vmem>>, vector<1x32x128xf32>
      %1193 = vector.shape_cast %1192 : vector<1x32x128xf32> to vector<32x128xf32>
      %c8_317 = arith.constant 8 : index
      %c0_318 = arith.constant 0 : index
      %c0_319 = arith.constant 0 : index
      %1194 = vector.load %arg3[%c8_317, %c0_318, %c0_319] : memref<9x32x128xf32, #tpu.memory_space<vmem>>, vector<1x32x128xf32>
      %1195 = vector.shape_cast %1194 : vector<1x32x128xf32> to vector<32x128xf32>
      %1196 = vector.extract_strided_slice %21 {offsets = [18, 0, 0], sizes = [1, 32, 128], strides = [1, 1, 1]} : vector<28x32x128xf32> to vector<1x32x128xf32>
      %1197 = vector.shape_cast %1196 : vector<1x32x128xf32> to vector<32x128xf32>
      %1198 = vector.extract_strided_slice %21 {offsets = [19, 0, 0], sizes = [1, 32, 128], strides = [1, 1, 1]} : vector<28x32x128xf32> to vector<1x32x128xf32>
      %1199 = vector.shape_cast %1198 : vector<1x32x128xf32> to vector<32x128xf32>
      %1200 = vector.extract_strided_slice %21 {offsets = [20, 0, 0], sizes = [1, 32, 128], strides = [1, 1, 1]} : vector<28x32x128xf32> to vector<1x32x128xf32>
      %1201 = vector.shape_cast %1200 : vector<1x32x128xf32> to vector<32x128xf32>
      %1202 = vector.extract_strided_slice %21 {offsets = [21, 0, 0], sizes = [1, 32, 128], strides = [1, 1, 1]} : vector<28x32x128xf32> to vector<1x32x128xf32>
      %1203 = vector.shape_cast %1202 : vector<1x32x128xf32> to vector<32x128xf32>
      %1204 = vector.extract_strided_slice %28 {offsets = [18, 0, 0], sizes = [1, 32, 128], strides = [1, 1, 1]} : vector<28x32x128xf32> to vector<1x32x128xf32>
      %1205 = vector.shape_cast %1204 : vector<1x32x128xf32> to vector<32x128xf32>
      %1206 = vector.extract_strided_slice %28 {offsets = [19, 0, 0], sizes = [1, 32, 128], strides = [1, 1, 1]} : vector<28x32x128xf32> to vector<1x32x128xf32>
      %1207 = vector.shape_cast %1206 : vector<1x32x128xf32> to vector<32x128xf32>
      %1208 = vector.extract_strided_slice %28 {offsets = [20, 0, 0], sizes = [1, 32, 128], strides = [1, 1, 1]} : vector<28x32x128xf32> to vector<1x32x128xf32>
      %1209 = vector.shape_cast %1208 : vector<1x32x128xf32> to vector<32x128xf32>
      %1210 = vector.extract_strided_slice %28 {offsets = [21, 0, 0], sizes = [1, 32, 128], strides = [1, 1, 1]} : vector<28x32x128xf32> to vector<1x32x128xf32>
      %1211 = vector.shape_cast %1210 : vector<1x32x128xf32> to vector<32x128xf32>
      %1212 = vector.extract_strided_slice %35 {offsets = [18, 0, 0], sizes = [1, 32, 128], strides = [1, 1, 1]} : vector<28x32x128xf32> to vector<1x32x128xf32>
      %1213 = vector.shape_cast %1212 : vector<1x32x128xf32> to vector<32x128xf32>
      %1214 = vector.extract_strided_slice %35 {offsets = [19, 0, 0], sizes = [1, 32, 128], strides = [1, 1, 1]} : vector<28x32x128xf32> to vector<1x32x128xf32>
      %1215 = vector.shape_cast %1214 : vector<1x32x128xf32> to vector<32x128xf32>
      %1216 = vector.extract_strided_slice %35 {offsets = [20, 0, 0], sizes = [1, 32, 128], strides = [1, 1, 1]} : vector<28x32x128xf32> to vector<1x32x128xf32>
      %1217 = vector.shape_cast %1216 : vector<1x32x128xf32> to vector<32x128xf32>
      %1218 = vector.extract_strided_slice %35 {offsets = [21, 0, 0], sizes = [1, 32, 128], strides = [1, 1, 1]} : vector<28x32x128xf32> to vector<1x32x128xf32>
      %1219 = vector.shape_cast %1218 : vector<1x32x128xf32> to vector<32x128xf32>
      %1220 = vector.extract_strided_slice %42 {offsets = [18, 0, 0], sizes = [1, 32, 128], strides = [1, 1, 1]} : vector<28x32x128xf32> to vector<1x32x128xf32>
      %1221 = vector.shape_cast %1220 : vector<1x32x128xf32> to vector<32x128xf32>
      %1222 = vector.extract_strided_slice %42 {offsets = [19, 0, 0], sizes = [1, 32, 128], strides = [1, 1, 1]} : vector<28x32x128xf32> to vector<1x32x128xf32>
      %1223 = vector.shape_cast %1222 : vector<1x32x128xf32> to vector<32x128xf32>
      %1224 = vector.extract_strided_slice %42 {offsets = [20, 0, 0], sizes = [1, 32, 128], strides = [1, 1, 1]} : vector<28x32x128xf32> to vector<1x32x128xf32>
      %1225 = vector.shape_cast %1224 : vector<1x32x128xf32> to vector<32x128xf32>
      %1226 = vector.extract_strided_slice %42 {offsets = [21, 0, 0], sizes = [1, 32, 128], strides = [1, 1, 1]} : vector<28x32x128xf32> to vector<1x32x128xf32>
      %1227 = vector.shape_cast %1226 : vector<1x32x128xf32> to vector<32x128xf32>
      %1228 = arith.mulf %1197, %1179 : vector<32x128xf32>
      %1229 = arith.mulf %1199, %1181 : vector<32x128xf32>
      %1230 = arith.addf %1228, %1229 : vector<32x128xf32>
      %1231 = arith.mulf %1201, %1183 : vector<32x128xf32>
      %1232 = arith.addf %1230, %1231 : vector<32x128xf32>
      %1233 = arith.mulf %1205, %1185 : vector<32x128xf32>
      %1234 = arith.addf %1232, %1233 : vector<32x128xf32>
      %1235 = arith.mulf %1207, %1187 : vector<32x128xf32>
      %1236 = arith.addf %1234, %1235 : vector<32x128xf32>
      %1237 = arith.mulf %1209, %1189 : vector<32x128xf32>
      %1238 = arith.addf %1236, %1237 : vector<32x128xf32>
      %1239 = arith.mulf %1213, %1191 : vector<32x128xf32>
      %1240 = arith.addf %1238, %1239 : vector<32x128xf32>
      %1241 = arith.mulf %1215, %1193 : vector<32x128xf32>
      %1242 = arith.addf %1240, %1241 : vector<32x128xf32>
      %1243 = arith.mulf %1217, %1195 : vector<32x128xf32>
      %1244 = arith.addf %1242, %1243 : vector<32x128xf32>
      %1245 = arith.mulf %1199, %1179 : vector<32x128xf32>
      %1246 = arith.mulf %1201, %1181 : vector<32x128xf32>
      %1247 = arith.addf %1245, %1246 : vector<32x128xf32>
      %1248 = arith.mulf %1203, %1183 : vector<32x128xf32>
      %1249 = arith.addf %1247, %1248 : vector<32x128xf32>
      %1250 = arith.mulf %1207, %1185 : vector<32x128xf32>
      %1251 = arith.addf %1249, %1250 : vector<32x128xf32>
      %1252 = arith.mulf %1209, %1187 : vector<32x128xf32>
      %1253 = arith.addf %1251, %1252 : vector<32x128xf32>
      %1254 = arith.mulf %1211, %1189 : vector<32x128xf32>
      %1255 = arith.addf %1253, %1254 : vector<32x128xf32>
      %1256 = arith.mulf %1215, %1191 : vector<32x128xf32>
      %1257 = arith.addf %1255, %1256 : vector<32x128xf32>
      %1258 = arith.mulf %1217, %1193 : vector<32x128xf32>
      %1259 = arith.addf %1257, %1258 : vector<32x128xf32>
      %1260 = arith.mulf %1219, %1195 : vector<32x128xf32>
      %1261 = arith.addf %1259, %1260 : vector<32x128xf32>
      %1262 = arith.maximumf %1244, %1261 : vector<32x128xf32>
      %1263 = arith.mulf %1205, %1179 : vector<32x128xf32>
      %1264 = arith.mulf %1207, %1181 : vector<32x128xf32>
      %1265 = arith.addf %1263, %1264 : vector<32x128xf32>
      %1266 = arith.mulf %1209, %1183 : vector<32x128xf32>
      %1267 = arith.addf %1265, %1266 : vector<32x128xf32>
      %1268 = arith.mulf %1213, %1185 : vector<32x128xf32>
      %1269 = arith.addf %1267, %1268 : vector<32x128xf32>
      %1270 = arith.mulf %1215, %1187 : vector<32x128xf32>
      %1271 = arith.addf %1269, %1270 : vector<32x128xf32>
      %1272 = arith.mulf %1217, %1189 : vector<32x128xf32>
      %1273 = arith.addf %1271, %1272 : vector<32x128xf32>
      %1274 = arith.mulf %1221, %1191 : vector<32x128xf32>
      %1275 = arith.addf %1273, %1274 : vector<32x128xf32>
      %1276 = arith.mulf %1223, %1193 : vector<32x128xf32>
      %1277 = arith.addf %1275, %1276 : vector<32x128xf32>
      %1278 = arith.mulf %1225, %1195 : vector<32x128xf32>
      %1279 = arith.addf %1277, %1278 : vector<32x128xf32>
      %1280 = arith.maximumf %1262, %1279 : vector<32x128xf32>
      %1281 = arith.mulf %1207, %1179 : vector<32x128xf32>
      %1282 = arith.mulf %1209, %1181 : vector<32x128xf32>
      %1283 = arith.addf %1281, %1282 : vector<32x128xf32>
      %1284 = arith.mulf %1211, %1183 : vector<32x128xf32>
      %1285 = arith.addf %1283, %1284 : vector<32x128xf32>
      %1286 = arith.mulf %1215, %1185 : vector<32x128xf32>
      %1287 = arith.addf %1285, %1286 : vector<32x128xf32>
      %1288 = arith.mulf %1217, %1187 : vector<32x128xf32>
      %1289 = arith.addf %1287, %1288 : vector<32x128xf32>
      %1290 = arith.mulf %1219, %1189 : vector<32x128xf32>
      %1291 = arith.addf %1289, %1290 : vector<32x128xf32>
      %1292 = arith.mulf %1223, %1191 : vector<32x128xf32>
      %1293 = arith.addf %1291, %1292 : vector<32x128xf32>
      %1294 = arith.mulf %1225, %1193 : vector<32x128xf32>
      %1295 = arith.addf %1293, %1294 : vector<32x128xf32>
      %1296 = arith.mulf %1227, %1195 : vector<32x128xf32>
      %1297 = arith.addf %1295, %1296 : vector<32x128xf32>
      %1298 = arith.maximumf %1280, %1297 : vector<32x128xf32>
      %1299 = arith.index_cast %arg6 : i32 to index
      %c9 = arith.constant 9 : index
      %c0_320 = arith.constant 0 : index
      %c0_321 = arith.constant 0 : index
      %1300 = vector.load %arg4[%1299, %c9, %c0_320, %c0_321] : memref<13x13x32x128xf32, #tpu.memory_space<vmem>>, vector<1x1x32x128xf32>
      %1301 = vector.shape_cast %1300 : vector<1x1x32x128xf32> to vector<32x128xf32>
      %1302 = arith.mulf %1298, %1301 : vector<32x128xf32>
      %1303 = arith.addf %1177, %1302 : vector<32x128xf32>
      %c0_322 = arith.constant 0 : index
      %c0_323 = arith.constant 0 : index
      %c0_324 = arith.constant 0 : index
      %1304 = vector.load %arg3[%c0_322, %c0_323, %c0_324] : memref<9x32x128xf32, #tpu.memory_space<vmem>>, vector<1x32x128xf32>
      %1305 = vector.shape_cast %1304 : vector<1x32x128xf32> to vector<32x128xf32>
      %c1_325 = arith.constant 1 : index
      %c0_326 = arith.constant 0 : index
      %c0_327 = arith.constant 0 : index
      %1306 = vector.load %arg3[%c1_325, %c0_326, %c0_327] : memref<9x32x128xf32, #tpu.memory_space<vmem>>, vector<1x32x128xf32>
      %1307 = vector.shape_cast %1306 : vector<1x32x128xf32> to vector<32x128xf32>
      %c2_328 = arith.constant 2 : index
      %c0_329 = arith.constant 0 : index
      %c0_330 = arith.constant 0 : index
      %1308 = vector.load %arg3[%c2_328, %c0_329, %c0_330] : memref<9x32x128xf32, #tpu.memory_space<vmem>>, vector<1x32x128xf32>
      %1309 = vector.shape_cast %1308 : vector<1x32x128xf32> to vector<32x128xf32>
      %c3_331 = arith.constant 3 : index
      %c0_332 = arith.constant 0 : index
      %c0_333 = arith.constant 0 : index
      %1310 = vector.load %arg3[%c3_331, %c0_332, %c0_333] : memref<9x32x128xf32, #tpu.memory_space<vmem>>, vector<1x32x128xf32>
      %1311 = vector.shape_cast %1310 : vector<1x32x128xf32> to vector<32x128xf32>
      %c4_334 = arith.constant 4 : index
      %c0_335 = arith.constant 0 : index
      %c0_336 = arith.constant 0 : index
      %1312 = vector.load %arg3[%c4_334, %c0_335, %c0_336] : memref<9x32x128xf32, #tpu.memory_space<vmem>>, vector<1x32x128xf32>
      %1313 = vector.shape_cast %1312 : vector<1x32x128xf32> to vector<32x128xf32>
      %c5_337 = arith.constant 5 : index
      %c0_338 = arith.constant 0 : index
      %c0_339 = arith.constant 0 : index
      %1314 = vector.load %arg3[%c5_337, %c0_338, %c0_339] : memref<9x32x128xf32, #tpu.memory_space<vmem>>, vector<1x32x128xf32>
      %1315 = vector.shape_cast %1314 : vector<1x32x128xf32> to vector<32x128xf32>
      %c6_340 = arith.constant 6 : index
      %c0_341 = arith.constant 0 : index
      %c0_342 = arith.constant 0 : index
      %1316 = vector.load %arg3[%c6_340, %c0_341, %c0_342] : memref<9x32x128xf32, #tpu.memory_space<vmem>>, vector<1x32x128xf32>
      %1317 = vector.shape_cast %1316 : vector<1x32x128xf32> to vector<32x128xf32>
      %c7_343 = arith.constant 7 : index
      %c0_344 = arith.constant 0 : index
      %c0_345 = arith.constant 0 : index
      %1318 = vector.load %arg3[%c7_343, %c0_344, %c0_345] : memref<9x32x128xf32, #tpu.memory_space<vmem>>, vector<1x32x128xf32>
      %1319 = vector.shape_cast %1318 : vector<1x32x128xf32> to vector<32x128xf32>
      %c8_346 = arith.constant 8 : index
      %c0_347 = arith.constant 0 : index
      %c0_348 = arith.constant 0 : index
      %1320 = vector.load %arg3[%c8_346, %c0_347, %c0_348] : memref<9x32x128xf32, #tpu.memory_space<vmem>>, vector<1x32x128xf32>
      %1321 = vector.shape_cast %1320 : vector<1x32x128xf32> to vector<32x128xf32>
      %1322 = vector.extract_strided_slice %21 {offsets = [20, 0, 0], sizes = [1, 32, 128], strides = [1, 1, 1]} : vector<28x32x128xf32> to vector<1x32x128xf32>
      %1323 = vector.shape_cast %1322 : vector<1x32x128xf32> to vector<32x128xf32>
      %1324 = vector.extract_strided_slice %21 {offsets = [21, 0, 0], sizes = [1, 32, 128], strides = [1, 1, 1]} : vector<28x32x128xf32> to vector<1x32x128xf32>
      %1325 = vector.shape_cast %1324 : vector<1x32x128xf32> to vector<32x128xf32>
      %1326 = vector.extract_strided_slice %21 {offsets = [22, 0, 0], sizes = [1, 32, 128], strides = [1, 1, 1]} : vector<28x32x128xf32> to vector<1x32x128xf32>
      %1327 = vector.shape_cast %1326 : vector<1x32x128xf32> to vector<32x128xf32>
      %1328 = vector.extract_strided_slice %21 {offsets = [23, 0, 0], sizes = [1, 32, 128], strides = [1, 1, 1]} : vector<28x32x128xf32> to vector<1x32x128xf32>
      %1329 = vector.shape_cast %1328 : vector<1x32x128xf32> to vector<32x128xf32>
      %1330 = vector.extract_strided_slice %28 {offsets = [20, 0, 0], sizes = [1, 32, 128], strides = [1, 1, 1]} : vector<28x32x128xf32> to vector<1x32x128xf32>
      %1331 = vector.shape_cast %1330 : vector<1x32x128xf32> to vector<32x128xf32>
      %1332 = vector.extract_strided_slice %28 {offsets = [21, 0, 0], sizes = [1, 32, 128], strides = [1, 1, 1]} : vector<28x32x128xf32> to vector<1x32x128xf32>
      %1333 = vector.shape_cast %1332 : vector<1x32x128xf32> to vector<32x128xf32>
      %1334 = vector.extract_strided_slice %28 {offsets = [22, 0, 0], sizes = [1, 32, 128], strides = [1, 1, 1]} : vector<28x32x128xf32> to vector<1x32x128xf32>
      %1335 = vector.shape_cast %1334 : vector<1x32x128xf32> to vector<32x128xf32>
      %1336 = vector.extract_strided_slice %28 {offsets = [23, 0, 0], sizes = [1, 32, 128], strides = [1, 1, 1]} : vector<28x32x128xf32> to vector<1x32x128xf32>
      %1337 = vector.shape_cast %1336 : vector<1x32x128xf32> to vector<32x128xf32>
      %1338 = vector.extract_strided_slice %35 {offsets = [20, 0, 0], sizes = [1, 32, 128], strides = [1, 1, 1]} : vector<28x32x128xf32> to vector<1x32x128xf32>
      %1339 = vector.shape_cast %1338 : vector<1x32x128xf32> to vector<32x128xf32>
      %1340 = vector.extract_strided_slice %35 {offsets = [21, 0, 0], sizes = [1, 32, 128], strides = [1, 1, 1]} : vector<28x32x128xf32> to vector<1x32x128xf32>
      %1341 = vector.shape_cast %1340 : vector<1x32x128xf32> to vector<32x128xf32>
      %1342 = vector.extract_strided_slice %35 {offsets = [22, 0, 0], sizes = [1, 32, 128], strides = [1, 1, 1]} : vector<28x32x128xf32> to vector<1x32x128xf32>
      %1343 = vector.shape_cast %1342 : vector<1x32x128xf32> to vector<32x128xf32>
      %1344 = vector.extract_strided_slice %35 {offsets = [23, 0, 0], sizes = [1, 32, 128], strides = [1, 1, 1]} : vector<28x32x128xf32> to vector<1x32x128xf32>
      %1345 = vector.shape_cast %1344 : vector<1x32x128xf32> to vector<32x128xf32>
      %1346 = vector.extract_strided_slice %42 {offsets = [20, 0, 0], sizes = [1, 32, 128], strides = [1, 1, 1]} : vector<28x32x128xf32> to vector<1x32x128xf32>
      %1347 = vector.shape_cast %1346 : vector<1x32x128xf32> to vector<32x128xf32>
      %1348 = vector.extract_strided_slice %42 {offsets = [21, 0, 0], sizes = [1, 32, 128], strides = [1, 1, 1]} : vector<28x32x128xf32> to vector<1x32x128xf32>
      %1349 = vector.shape_cast %1348 : vector<1x32x128xf32> to vector<32x128xf32>
      %1350 = vector.extract_strided_slice %42 {offsets = [22, 0, 0], sizes = [1, 32, 128], strides = [1, 1, 1]} : vector<28x32x128xf32> to vector<1x32x128xf32>
      %1351 = vector.shape_cast %1350 : vector<1x32x128xf32> to vector<32x128xf32>
      %1352 = vector.extract_strided_slice %42 {offsets = [23, 0, 0], sizes = [1, 32, 128], strides = [1, 1, 1]} : vector<28x32x128xf32> to vector<1x32x128xf32>
      %1353 = vector.shape_cast %1352 : vector<1x32x128xf32> to vector<32x128xf32>
      %1354 = arith.mulf %1323, %1305 : vector<32x128xf32>
      %1355 = arith.mulf %1325, %1307 : vector<32x128xf32>
      %1356 = arith.addf %1354, %1355 : vector<32x128xf32>
      %1357 = arith.mulf %1327, %1309 : vector<32x128xf32>
      %1358 = arith.addf %1356, %1357 : vector<32x128xf32>
      %1359 = arith.mulf %1331, %1311 : vector<32x128xf32>
      %1360 = arith.addf %1358, %1359 : vector<32x128xf32>
      %1361 = arith.mulf %1333, %1313 : vector<32x128xf32>
      %1362 = arith.addf %1360, %1361 : vector<32x128xf32>
      %1363 = arith.mulf %1335, %1315 : vector<32x128xf32>
      %1364 = arith.addf %1362, %1363 : vector<32x128xf32>
      %1365 = arith.mulf %1339, %1317 : vector<32x128xf32>
      %1366 = arith.addf %1364, %1365 : vector<32x128xf32>
      %1367 = arith.mulf %1341, %1319 : vector<32x128xf32>
      %1368 = arith.addf %1366, %1367 : vector<32x128xf32>
      %1369 = arith.mulf %1343, %1321 : vector<32x128xf32>
      %1370 = arith.addf %1368, %1369 : vector<32x128xf32>
      %1371 = arith.mulf %1325, %1305 : vector<32x128xf32>
      %1372 = arith.mulf %1327, %1307 : vector<32x128xf32>
      %1373 = arith.addf %1371, %1372 : vector<32x128xf32>
      %1374 = arith.mulf %1329, %1309 : vector<32x128xf32>
      %1375 = arith.addf %1373, %1374 : vector<32x128xf32>
      %1376 = arith.mulf %1333, %1311 : vector<32x128xf32>
      %1377 = arith.addf %1375, %1376 : vector<32x128xf32>
      %1378 = arith.mulf %1335, %1313 : vector<32x128xf32>
      %1379 = arith.addf %1377, %1378 : vector<32x128xf32>
      %1380 = arith.mulf %1337, %1315 : vector<32x128xf32>
      %1381 = arith.addf %1379, %1380 : vector<32x128xf32>
      %1382 = arith.mulf %1341, %1317 : vector<32x128xf32>
      %1383 = arith.addf %1381, %1382 : vector<32x128xf32>
      %1384 = arith.mulf %1343, %1319 : vector<32x128xf32>
      %1385 = arith.addf %1383, %1384 : vector<32x128xf32>
      %1386 = arith.mulf %1345, %1321 : vector<32x128xf32>
      %1387 = arith.addf %1385, %1386 : vector<32x128xf32>
      %1388 = arith.maximumf %1370, %1387 : vector<32x128xf32>
      %1389 = arith.mulf %1331, %1305 : vector<32x128xf32>
      %1390 = arith.mulf %1333, %1307 : vector<32x128xf32>
      %1391 = arith.addf %1389, %1390 : vector<32x128xf32>
      %1392 = arith.mulf %1335, %1309 : vector<32x128xf32>
      %1393 = arith.addf %1391, %1392 : vector<32x128xf32>
      %1394 = arith.mulf %1339, %1311 : vector<32x128xf32>
      %1395 = arith.addf %1393, %1394 : vector<32x128xf32>
      %1396 = arith.mulf %1341, %1313 : vector<32x128xf32>
      %1397 = arith.addf %1395, %1396 : vector<32x128xf32>
      %1398 = arith.mulf %1343, %1315 : vector<32x128xf32>
      %1399 = arith.addf %1397, %1398 : vector<32x128xf32>
      %1400 = arith.mulf %1347, %1317 : vector<32x128xf32>
      %1401 = arith.addf %1399, %1400 : vector<32x128xf32>
      %1402 = arith.mulf %1349, %1319 : vector<32x128xf32>
      %1403 = arith.addf %1401, %1402 : vector<32x128xf32>
      %1404 = arith.mulf %1351, %1321 : vector<32x128xf32>
      %1405 = arith.addf %1403, %1404 : vector<32x128xf32>
      %1406 = arith.maximumf %1388, %1405 : vector<32x128xf32>
      %1407 = arith.mulf %1333, %1305 : vector<32x128xf32>
      %1408 = arith.mulf %1335, %1307 : vector<32x128xf32>
      %1409 = arith.addf %1407, %1408 : vector<32x128xf32>
      %1410 = arith.mulf %1337, %1309 : vector<32x128xf32>
      %1411 = arith.addf %1409, %1410 : vector<32x128xf32>
      %1412 = arith.mulf %1341, %1311 : vector<32x128xf32>
      %1413 = arith.addf %1411, %1412 : vector<32x128xf32>
      %1414 = arith.mulf %1343, %1313 : vector<32x128xf32>
      %1415 = arith.addf %1413, %1414 : vector<32x128xf32>
      %1416 = arith.mulf %1345, %1315 : vector<32x128xf32>
      %1417 = arith.addf %1415, %1416 : vector<32x128xf32>
      %1418 = arith.mulf %1349, %1317 : vector<32x128xf32>
      %1419 = arith.addf %1417, %1418 : vector<32x128xf32>
      %1420 = arith.mulf %1351, %1319 : vector<32x128xf32>
      %1421 = arith.addf %1419, %1420 : vector<32x128xf32>
      %1422 = arith.mulf %1353, %1321 : vector<32x128xf32>
      %1423 = arith.addf %1421, %1422 : vector<32x128xf32>
      %1424 = arith.maximumf %1406, %1423 : vector<32x128xf32>
      %1425 = arith.index_cast %arg6 : i32 to index
      %c10 = arith.constant 10 : index
      %c0_349 = arith.constant 0 : index
      %c0_350 = arith.constant 0 : index
      %1426 = vector.load %arg4[%1425, %c10, %c0_349, %c0_350] : memref<13x13x32x128xf32, #tpu.memory_space<vmem>>, vector<1x1x32x128xf32>
      %1427 = vector.shape_cast %1426 : vector<1x1x32x128xf32> to vector<32x128xf32>
      %1428 = arith.mulf %1424, %1427 : vector<32x128xf32>
      %1429 = arith.addf %1303, %1428 : vector<32x128xf32>
      %c0_351 = arith.constant 0 : index
      %c0_352 = arith.constant 0 : index
      %c0_353 = arith.constant 0 : index
      %1430 = vector.load %arg3[%c0_351, %c0_352, %c0_353] : memref<9x32x128xf32, #tpu.memory_space<vmem>>, vector<1x32x128xf32>
      %1431 = vector.shape_cast %1430 : vector<1x32x128xf32> to vector<32x128xf32>
      %c1_354 = arith.constant 1 : index
      %c0_355 = arith.constant 0 : index
      %c0_356 = arith.constant 0 : index
      %1432 = vector.load %arg3[%c1_354, %c0_355, %c0_356] : memref<9x32x128xf32, #tpu.memory_space<vmem>>, vector<1x32x128xf32>
      %1433 = vector.shape_cast %1432 : vector<1x32x128xf32> to vector<32x128xf32>
      %c2_357 = arith.constant 2 : index
      %c0_358 = arith.constant 0 : index
      %c0_359 = arith.constant 0 : index
      %1434 = vector.load %arg3[%c2_357, %c0_358, %c0_359] : memref<9x32x128xf32, #tpu.memory_space<vmem>>, vector<1x32x128xf32>
      %1435 = vector.shape_cast %1434 : vector<1x32x128xf32> to vector<32x128xf32>
      %c3_360 = arith.constant 3 : index
      %c0_361 = arith.constant 0 : index
      %c0_362 = arith.constant 0 : index
      %1436 = vector.load %arg3[%c3_360, %c0_361, %c0_362] : memref<9x32x128xf32, #tpu.memory_space<vmem>>, vector<1x32x128xf32>
      %1437 = vector.shape_cast %1436 : vector<1x32x128xf32> to vector<32x128xf32>
      %c4_363 = arith.constant 4 : index
      %c0_364 = arith.constant 0 : index
      %c0_365 = arith.constant 0 : index
      %1438 = vector.load %arg3[%c4_363, %c0_364, %c0_365] : memref<9x32x128xf32, #tpu.memory_space<vmem>>, vector<1x32x128xf32>
      %1439 = vector.shape_cast %1438 : vector<1x32x128xf32> to vector<32x128xf32>
      %c5_366 = arith.constant 5 : index
      %c0_367 = arith.constant 0 : index
      %c0_368 = arith.constant 0 : index
      %1440 = vector.load %arg3[%c5_366, %c0_367, %c0_368] : memref<9x32x128xf32, #tpu.memory_space<vmem>>, vector<1x32x128xf32>
      %1441 = vector.shape_cast %1440 : vector<1x32x128xf32> to vector<32x128xf32>
      %c6_369 = arith.constant 6 : index
      %c0_370 = arith.constant 0 : index
      %c0_371 = arith.constant 0 : index
      %1442 = vector.load %arg3[%c6_369, %c0_370, %c0_371] : memref<9x32x128xf32, #tpu.memory_space<vmem>>, vector<1x32x128xf32>
      %1443 = vector.shape_cast %1442 : vector<1x32x128xf32> to vector<32x128xf32>
      %c7_372 = arith.constant 7 : index
      %c0_373 = arith.constant 0 : index
      %c0_374 = arith.constant 0 : index
      %1444 = vector.load %arg3[%c7_372, %c0_373, %c0_374] : memref<9x32x128xf32, #tpu.memory_space<vmem>>, vector<1x32x128xf32>
      %1445 = vector.shape_cast %1444 : vector<1x32x128xf32> to vector<32x128xf32>
      %c8_375 = arith.constant 8 : index
      %c0_376 = arith.constant 0 : index
      %c0_377 = arith.constant 0 : index
      %1446 = vector.load %arg3[%c8_375, %c0_376, %c0_377] : memref<9x32x128xf32, #tpu.memory_space<vmem>>, vector<1x32x128xf32>
      %1447 = vector.shape_cast %1446 : vector<1x32x128xf32> to vector<32x128xf32>
      %1448 = vector.extract_strided_slice %21 {offsets = [22, 0, 0], sizes = [1, 32, 128], strides = [1, 1, 1]} : vector<28x32x128xf32> to vector<1x32x128xf32>
      %1449 = vector.shape_cast %1448 : vector<1x32x128xf32> to vector<32x128xf32>
      %1450 = vector.extract_strided_slice %21 {offsets = [23, 0, 0], sizes = [1, 32, 128], strides = [1, 1, 1]} : vector<28x32x128xf32> to vector<1x32x128xf32>
      %1451 = vector.shape_cast %1450 : vector<1x32x128xf32> to vector<32x128xf32>
      %1452 = vector.extract_strided_slice %21 {offsets = [24, 0, 0], sizes = [1, 32, 128], strides = [1, 1, 1]} : vector<28x32x128xf32> to vector<1x32x128xf32>
      %1453 = vector.shape_cast %1452 : vector<1x32x128xf32> to vector<32x128xf32>
      %1454 = vector.extract_strided_slice %21 {offsets = [25, 0, 0], sizes = [1, 32, 128], strides = [1, 1, 1]} : vector<28x32x128xf32> to vector<1x32x128xf32>
      %1455 = vector.shape_cast %1454 : vector<1x32x128xf32> to vector<32x128xf32>
      %1456 = vector.extract_strided_slice %28 {offsets = [22, 0, 0], sizes = [1, 32, 128], strides = [1, 1, 1]} : vector<28x32x128xf32> to vector<1x32x128xf32>
      %1457 = vector.shape_cast %1456 : vector<1x32x128xf32> to vector<32x128xf32>
      %1458 = vector.extract_strided_slice %28 {offsets = [23, 0, 0], sizes = [1, 32, 128], strides = [1, 1, 1]} : vector<28x32x128xf32> to vector<1x32x128xf32>
      %1459 = vector.shape_cast %1458 : vector<1x32x128xf32> to vector<32x128xf32>
      %1460 = vector.extract_strided_slice %28 {offsets = [24, 0, 0], sizes = [1, 32, 128], strides = [1, 1, 1]} : vector<28x32x128xf32> to vector<1x32x128xf32>
      %1461 = vector.shape_cast %1460 : vector<1x32x128xf32> to vector<32x128xf32>
      %1462 = vector.extract_strided_slice %28 {offsets = [25, 0, 0], sizes = [1, 32, 128], strides = [1, 1, 1]} : vector<28x32x128xf32> to vector<1x32x128xf32>
      %1463 = vector.shape_cast %1462 : vector<1x32x128xf32> to vector<32x128xf32>
      %1464 = vector.extract_strided_slice %35 {offsets = [22, 0, 0], sizes = [1, 32, 128], strides = [1, 1, 1]} : vector<28x32x128xf32> to vector<1x32x128xf32>
      %1465 = vector.shape_cast %1464 : vector<1x32x128xf32> to vector<32x128xf32>
      %1466 = vector.extract_strided_slice %35 {offsets = [23, 0, 0], sizes = [1, 32, 128], strides = [1, 1, 1]} : vector<28x32x128xf32> to vector<1x32x128xf32>
      %1467 = vector.shape_cast %1466 : vector<1x32x128xf32> to vector<32x128xf32>
      %1468 = vector.extract_strided_slice %35 {offsets = [24, 0, 0], sizes = [1, 32, 128], strides = [1, 1, 1]} : vector<28x32x128xf32> to vector<1x32x128xf32>
      %1469 = vector.shape_cast %1468 : vector<1x32x128xf32> to vector<32x128xf32>
      %1470 = vector.extract_strided_slice %35 {offsets = [25, 0, 0], sizes = [1, 32, 128], strides = [1, 1, 1]} : vector<28x32x128xf32> to vector<1x32x128xf32>
      %1471 = vector.shape_cast %1470 : vector<1x32x128xf32> to vector<32x128xf32>
      %1472 = vector.extract_strided_slice %42 {offsets = [22, 0, 0], sizes = [1, 32, 128], strides = [1, 1, 1]} : vector<28x32x128xf32> to vector<1x32x128xf32>
      %1473 = vector.shape_cast %1472 : vector<1x32x128xf32> to vector<32x128xf32>
      %1474 = vector.extract_strided_slice %42 {offsets = [23, 0, 0], sizes = [1, 32, 128], strides = [1, 1, 1]} : vector<28x32x128xf32> to vector<1x32x128xf32>
      %1475 = vector.shape_cast %1474 : vector<1x32x128xf32> to vector<32x128xf32>
      %1476 = vector.extract_strided_slice %42 {offsets = [24, 0, 0], sizes = [1, 32, 128], strides = [1, 1, 1]} : vector<28x32x128xf32> to vector<1x32x128xf32>
      %1477 = vector.shape_cast %1476 : vector<1x32x128xf32> to vector<32x128xf32>
      %1478 = vector.extract_strided_slice %42 {offsets = [25, 0, 0], sizes = [1, 32, 128], strides = [1, 1, 1]} : vector<28x32x128xf32> to vector<1x32x128xf32>
      %1479 = vector.shape_cast %1478 : vector<1x32x128xf32> to vector<32x128xf32>
      %1480 = arith.mulf %1449, %1431 : vector<32x128xf32>
      %1481 = arith.mulf %1451, %1433 : vector<32x128xf32>
      %1482 = arith.addf %1480, %1481 : vector<32x128xf32>
      %1483 = arith.mulf %1453, %1435 : vector<32x128xf32>
      %1484 = arith.addf %1482, %1483 : vector<32x128xf32>
      %1485 = arith.mulf %1457, %1437 : vector<32x128xf32>
      %1486 = arith.addf %1484, %1485 : vector<32x128xf32>
      %1487 = arith.mulf %1459, %1439 : vector<32x128xf32>
      %1488 = arith.addf %1486, %1487 : vector<32x128xf32>
      %1489 = arith.mulf %1461, %1441 : vector<32x128xf32>
      %1490 = arith.addf %1488, %1489 : vector<32x128xf32>
      %1491 = arith.mulf %1465, %1443 : vector<32x128xf32>
      %1492 = arith.addf %1490, %1491 : vector<32x128xf32>
      %1493 = arith.mulf %1467, %1445 : vector<32x128xf32>
      %1494 = arith.addf %1492, %1493 : vector<32x128xf32>
      %1495 = arith.mulf %1469, %1447 : vector<32x128xf32>
      %1496 = arith.addf %1494, %1495 : vector<32x128xf32>
      %1497 = arith.mulf %1451, %1431 : vector<32x128xf32>
      %1498 = arith.mulf %1453, %1433 : vector<32x128xf32>
      %1499 = arith.addf %1497, %1498 : vector<32x128xf32>
      %1500 = arith.mulf %1455, %1435 : vector<32x128xf32>
      %1501 = arith.addf %1499, %1500 : vector<32x128xf32>
      %1502 = arith.mulf %1459, %1437 : vector<32x128xf32>
      %1503 = arith.addf %1501, %1502 : vector<32x128xf32>
      %1504 = arith.mulf %1461, %1439 : vector<32x128xf32>
      %1505 = arith.addf %1503, %1504 : vector<32x128xf32>
      %1506 = arith.mulf %1463, %1441 : vector<32x128xf32>
      %1507 = arith.addf %1505, %1506 : vector<32x128xf32>
      %1508 = arith.mulf %1467, %1443 : vector<32x128xf32>
      %1509 = arith.addf %1507, %1508 : vector<32x128xf32>
      %1510 = arith.mulf %1469, %1445 : vector<32x128xf32>
      %1511 = arith.addf %1509, %1510 : vector<32x128xf32>
      %1512 = arith.mulf %1471, %1447 : vector<32x128xf32>
      %1513 = arith.addf %1511, %1512 : vector<32x128xf32>
      %1514 = arith.maximumf %1496, %1513 : vector<32x128xf32>
      %1515 = arith.mulf %1457, %1431 : vector<32x128xf32>
      %1516 = arith.mulf %1459, %1433 : vector<32x128xf32>
      %1517 = arith.addf %1515, %1516 : vector<32x128xf32>
      %1518 = arith.mulf %1461, %1435 : vector<32x128xf32>
      %1519 = arith.addf %1517, %1518 : vector<32x128xf32>
      %1520 = arith.mulf %1465, %1437 : vector<32x128xf32>
      %1521 = arith.addf %1519, %1520 : vector<32x128xf32>
      %1522 = arith.mulf %1467, %1439 : vector<32x128xf32>
      %1523 = arith.addf %1521, %1522 : vector<32x128xf32>
      %1524 = arith.mulf %1469, %1441 : vector<32x128xf32>
      %1525 = arith.addf %1523, %1524 : vector<32x128xf32>
      %1526 = arith.mulf %1473, %1443 : vector<32x128xf32>
      %1527 = arith.addf %1525, %1526 : vector<32x128xf32>
      %1528 = arith.mulf %1475, %1445 : vector<32x128xf32>
      %1529 = arith.addf %1527, %1528 : vector<32x128xf32>
      %1530 = arith.mulf %1477, %1447 : vector<32x128xf32>
      %1531 = arith.addf %1529, %1530 : vector<32x128xf32>
      %1532 = arith.maximumf %1514, %1531 : vector<32x128xf32>
      %1533 = arith.mulf %1459, %1431 : vector<32x128xf32>
      %1534 = arith.mulf %1461, %1433 : vector<32x128xf32>
      %1535 = arith.addf %1533, %1534 : vector<32x128xf32>
      %1536 = arith.mulf %1463, %1435 : vector<32x128xf32>
      %1537 = arith.addf %1535, %1536 : vector<32x128xf32>
      %1538 = arith.mulf %1467, %1437 : vector<32x128xf32>
      %1539 = arith.addf %1537, %1538 : vector<32x128xf32>
      %1540 = arith.mulf %1469, %1439 : vector<32x128xf32>
      %1541 = arith.addf %1539, %1540 : vector<32x128xf32>
      %1542 = arith.mulf %1471, %1441 : vector<32x128xf32>
      %1543 = arith.addf %1541, %1542 : vector<32x128xf32>
      %1544 = arith.mulf %1475, %1443 : vector<32x128xf32>
      %1545 = arith.addf %1543, %1544 : vector<32x128xf32>
      %1546 = arith.mulf %1477, %1445 : vector<32x128xf32>
      %1547 = arith.addf %1545, %1546 : vector<32x128xf32>
      %1548 = arith.mulf %1479, %1447 : vector<32x128xf32>
      %1549 = arith.addf %1547, %1548 : vector<32x128xf32>
      %1550 = arith.maximumf %1532, %1549 : vector<32x128xf32>
      %1551 = arith.index_cast %arg6 : i32 to index
      %c11 = arith.constant 11 : index
      %c0_378 = arith.constant 0 : index
      %c0_379 = arith.constant 0 : index
      %1552 = vector.load %arg4[%1551, %c11, %c0_378, %c0_379] : memref<13x13x32x128xf32, #tpu.memory_space<vmem>>, vector<1x1x32x128xf32>
      %1553 = vector.shape_cast %1552 : vector<1x1x32x128xf32> to vector<32x128xf32>
      %1554 = arith.mulf %1550, %1553 : vector<32x128xf32>
      %1555 = arith.addf %1429, %1554 : vector<32x128xf32>
      %c0_380 = arith.constant 0 : index
      %c0_381 = arith.constant 0 : index
      %c0_382 = arith.constant 0 : index
      %1556 = vector.load %arg3[%c0_380, %c0_381, %c0_382] : memref<9x32x128xf32, #tpu.memory_space<vmem>>, vector<1x32x128xf32>
      %1557 = vector.shape_cast %1556 : vector<1x32x128xf32> to vector<32x128xf32>
      %c1_383 = arith.constant 1 : index
      %c0_384 = arith.constant 0 : index
      %c0_385 = arith.constant 0 : index
      %1558 = vector.load %arg3[%c1_383, %c0_384, %c0_385] : memref<9x32x128xf32, #tpu.memory_space<vmem>>, vector<1x32x128xf32>
      %1559 = vector.shape_cast %1558 : vector<1x32x128xf32> to vector<32x128xf32>
      %c2_386 = arith.constant 2 : index
      %c0_387 = arith.constant 0 : index
      %c0_388 = arith.constant 0 : index
      %1560 = vector.load %arg3[%c2_386, %c0_387, %c0_388] : memref<9x32x128xf32, #tpu.memory_space<vmem>>, vector<1x32x128xf32>
      %1561 = vector.shape_cast %1560 : vector<1x32x128xf32> to vector<32x128xf32>
      %c3_389 = arith.constant 3 : index
      %c0_390 = arith.constant 0 : index
      %c0_391 = arith.constant 0 : index
      %1562 = vector.load %arg3[%c3_389, %c0_390, %c0_391] : memref<9x32x128xf32, #tpu.memory_space<vmem>>, vector<1x32x128xf32>
      %1563 = vector.shape_cast %1562 : vector<1x32x128xf32> to vector<32x128xf32>
      %c4_392 = arith.constant 4 : index
      %c0_393 = arith.constant 0 : index
      %c0_394 = arith.constant 0 : index
      %1564 = vector.load %arg3[%c4_392, %c0_393, %c0_394] : memref<9x32x128xf32, #tpu.memory_space<vmem>>, vector<1x32x128xf32>
      %1565 = vector.shape_cast %1564 : vector<1x32x128xf32> to vector<32x128xf32>
      %c5_395 = arith.constant 5 : index
      %c0_396 = arith.constant 0 : index
      %c0_397 = arith.constant 0 : index
      %1566 = vector.load %arg3[%c5_395, %c0_396, %c0_397] : memref<9x32x128xf32, #tpu.memory_space<vmem>>, vector<1x32x128xf32>
      %1567 = vector.shape_cast %1566 : vector<1x32x128xf32> to vector<32x128xf32>
      %c6_398 = arith.constant 6 : index
      %c0_399 = arith.constant 0 : index
      %c0_400 = arith.constant 0 : index
      %1568 = vector.load %arg3[%c6_398, %c0_399, %c0_400] : memref<9x32x128xf32, #tpu.memory_space<vmem>>, vector<1x32x128xf32>
      %1569 = vector.shape_cast %1568 : vector<1x32x128xf32> to vector<32x128xf32>
      %c7_401 = arith.constant 7 : index
      %c0_402 = arith.constant 0 : index
      %c0_403 = arith.constant 0 : index
      %1570 = vector.load %arg3[%c7_401, %c0_402, %c0_403] : memref<9x32x128xf32, #tpu.memory_space<vmem>>, vector<1x32x128xf32>
      %1571 = vector.shape_cast %1570 : vector<1x32x128xf32> to vector<32x128xf32>
      %c8_404 = arith.constant 8 : index
      %c0_405 = arith.constant 0 : index
      %c0_406 = arith.constant 0 : index
      %1572 = vector.load %arg3[%c8_404, %c0_405, %c0_406] : memref<9x32x128xf32, #tpu.memory_space<vmem>>, vector<1x32x128xf32>
      %1573 = vector.shape_cast %1572 : vector<1x32x128xf32> to vector<32x128xf32>
      %1574 = vector.extract_strided_slice %21 {offsets = [24, 0, 0], sizes = [1, 32, 128], strides = [1, 1, 1]} : vector<28x32x128xf32> to vector<1x32x128xf32>
      %1575 = vector.shape_cast %1574 : vector<1x32x128xf32> to vector<32x128xf32>
      %1576 = vector.extract_strided_slice %21 {offsets = [25, 0, 0], sizes = [1, 32, 128], strides = [1, 1, 1]} : vector<28x32x128xf32> to vector<1x32x128xf32>
      %1577 = vector.shape_cast %1576 : vector<1x32x128xf32> to vector<32x128xf32>
      %1578 = vector.extract_strided_slice %21 {offsets = [26, 0, 0], sizes = [1, 32, 128], strides = [1, 1, 1]} : vector<28x32x128xf32> to vector<1x32x128xf32>
      %1579 = vector.shape_cast %1578 : vector<1x32x128xf32> to vector<32x128xf32>
      %1580 = vector.extract_strided_slice %21 {offsets = [27, 0, 0], sizes = [1, 32, 128], strides = [1, 1, 1]} : vector<28x32x128xf32> to vector<1x32x128xf32>
      %1581 = vector.shape_cast %1580 : vector<1x32x128xf32> to vector<32x128xf32>
      %1582 = vector.extract_strided_slice %28 {offsets = [24, 0, 0], sizes = [1, 32, 128], strides = [1, 1, 1]} : vector<28x32x128xf32> to vector<1x32x128xf32>
      %1583 = vector.shape_cast %1582 : vector<1x32x128xf32> to vector<32x128xf32>
      %1584 = vector.extract_strided_slice %28 {offsets = [25, 0, 0], sizes = [1, 32, 128], strides = [1, 1, 1]} : vector<28x32x128xf32> to vector<1x32x128xf32>
      %1585 = vector.shape_cast %1584 : vector<1x32x128xf32> to vector<32x128xf32>
      %1586 = vector.extract_strided_slice %28 {offsets = [26, 0, 0], sizes = [1, 32, 128], strides = [1, 1, 1]} : vector<28x32x128xf32> to vector<1x32x128xf32>
      %1587 = vector.shape_cast %1586 : vector<1x32x128xf32> to vector<32x128xf32>
      %1588 = vector.extract_strided_slice %28 {offsets = [27, 0, 0], sizes = [1, 32, 128], strides = [1, 1, 1]} : vector<28x32x128xf32> to vector<1x32x128xf32>
      %1589 = vector.shape_cast %1588 : vector<1x32x128xf32> to vector<32x128xf32>
      %1590 = vector.extract_strided_slice %35 {offsets = [24, 0, 0], sizes = [1, 32, 128], strides = [1, 1, 1]} : vector<28x32x128xf32> to vector<1x32x128xf32>
      %1591 = vector.shape_cast %1590 : vector<1x32x128xf32> to vector<32x128xf32>
      %1592 = vector.extract_strided_slice %35 {offsets = [25, 0, 0], sizes = [1, 32, 128], strides = [1, 1, 1]} : vector<28x32x128xf32> to vector<1x32x128xf32>
      %1593 = vector.shape_cast %1592 : vector<1x32x128xf32> to vector<32x128xf32>
      %1594 = vector.extract_strided_slice %35 {offsets = [26, 0, 0], sizes = [1, 32, 128], strides = [1, 1, 1]} : vector<28x32x128xf32> to vector<1x32x128xf32>
      %1595 = vector.shape_cast %1594 : vector<1x32x128xf32> to vector<32x128xf32>
      %1596 = vector.extract_strided_slice %35 {offsets = [27, 0, 0], sizes = [1, 32, 128], strides = [1, 1, 1]} : vector<28x32x128xf32> to vector<1x32x128xf32>
      %1597 = vector.shape_cast %1596 : vector<1x32x128xf32> to vector<32x128xf32>
      %1598 = vector.extract_strided_slice %42 {offsets = [24, 0, 0], sizes = [1, 32, 128], strides = [1, 1, 1]} : vector<28x32x128xf32> to vector<1x32x128xf32>
      %1599 = vector.shape_cast %1598 : vector<1x32x128xf32> to vector<32x128xf32>
      %1600 = vector.extract_strided_slice %42 {offsets = [25, 0, 0], sizes = [1, 32, 128], strides = [1, 1, 1]} : vector<28x32x128xf32> to vector<1x32x128xf32>
      %1601 = vector.shape_cast %1600 : vector<1x32x128xf32> to vector<32x128xf32>
      %1602 = vector.extract_strided_slice %42 {offsets = [26, 0, 0], sizes = [1, 32, 128], strides = [1, 1, 1]} : vector<28x32x128xf32> to vector<1x32x128xf32>
      %1603 = vector.shape_cast %1602 : vector<1x32x128xf32> to vector<32x128xf32>
      %1604 = vector.extract_strided_slice %42 {offsets = [27, 0, 0], sizes = [1, 32, 128], strides = [1, 1, 1]} : vector<28x32x128xf32> to vector<1x32x128xf32>
      %1605 = vector.shape_cast %1604 : vector<1x32x128xf32> to vector<32x128xf32>
      %1606 = arith.mulf %1575, %1557 : vector<32x128xf32>
      %1607 = arith.mulf %1577, %1559 : vector<32x128xf32>
      %1608 = arith.addf %1606, %1607 : vector<32x128xf32>
      %1609 = arith.mulf %1579, %1561 : vector<32x128xf32>
      %1610 = arith.addf %1608, %1609 : vector<32x128xf32>
      %1611 = arith.mulf %1583, %1563 : vector<32x128xf32>
      %1612 = arith.addf %1610, %1611 : vector<32x128xf32>
      %1613 = arith.mulf %1585, %1565 : vector<32x128xf32>
      %1614 = arith.addf %1612, %1613 : vector<32x128xf32>
      %1615 = arith.mulf %1587, %1567 : vector<32x128xf32>
      %1616 = arith.addf %1614, %1615 : vector<32x128xf32>
      %1617 = arith.mulf %1591, %1569 : vector<32x128xf32>
      %1618 = arith.addf %1616, %1617 : vector<32x128xf32>
      %1619 = arith.mulf %1593, %1571 : vector<32x128xf32>
      %1620 = arith.addf %1618, %1619 : vector<32x128xf32>
      %1621 = arith.mulf %1595, %1573 : vector<32x128xf32>
      %1622 = arith.addf %1620, %1621 : vector<32x128xf32>
      %1623 = arith.mulf %1577, %1557 : vector<32x128xf32>
      %1624 = arith.mulf %1579, %1559 : vector<32x128xf32>
      %1625 = arith.addf %1623, %1624 : vector<32x128xf32>
      %1626 = arith.mulf %1581, %1561 : vector<32x128xf32>
      %1627 = arith.addf %1625, %1626 : vector<32x128xf32>
      %1628 = arith.mulf %1585, %1563 : vector<32x128xf32>
      %1629 = arith.addf %1627, %1628 : vector<32x128xf32>
      %1630 = arith.mulf %1587, %1565 : vector<32x128xf32>
      %1631 = arith.addf %1629, %1630 : vector<32x128xf32>
      %1632 = arith.mulf %1589, %1567 : vector<32x128xf32>
      %1633 = arith.addf %1631, %1632 : vector<32x128xf32>
      %1634 = arith.mulf %1593, %1569 : vector<32x128xf32>
      %1635 = arith.addf %1633, %1634 : vector<32x128xf32>
      %1636 = arith.mulf %1595, %1571 : vector<32x128xf32>
      %1637 = arith.addf %1635, %1636 : vector<32x128xf32>
      %1638 = arith.mulf %1597, %1573 : vector<32x128xf32>
      %1639 = arith.addf %1637, %1638 : vector<32x128xf32>
      %1640 = arith.maximumf %1622, %1639 : vector<32x128xf32>
      %1641 = arith.mulf %1583, %1557 : vector<32x128xf32>
      %1642 = arith.mulf %1585, %1559 : vector<32x128xf32>
      %1643 = arith.addf %1641, %1642 : vector<32x128xf32>
      %1644 = arith.mulf %1587, %1561 : vector<32x128xf32>
      %1645 = arith.addf %1643, %1644 : vector<32x128xf32>
      %1646 = arith.mulf %1591, %1563 : vector<32x128xf32>
      %1647 = arith.addf %1645, %1646 : vector<32x128xf32>
      %1648 = arith.mulf %1593, %1565 : vector<32x128xf32>
      %1649 = arith.addf %1647, %1648 : vector<32x128xf32>
      %1650 = arith.mulf %1595, %1567 : vector<32x128xf32>
      %1651 = arith.addf %1649, %1650 : vector<32x128xf32>
      %1652 = arith.mulf %1599, %1569 : vector<32x128xf32>
      %1653 = arith.addf %1651, %1652 : vector<32x128xf32>
      %1654 = arith.mulf %1601, %1571 : vector<32x128xf32>
      %1655 = arith.addf %1653, %1654 : vector<32x128xf32>
      %1656 = arith.mulf %1603, %1573 : vector<32x128xf32>
      %1657 = arith.addf %1655, %1656 : vector<32x128xf32>
      %1658 = arith.maximumf %1640, %1657 : vector<32x128xf32>
      %1659 = arith.mulf %1585, %1557 : vector<32x128xf32>
      %1660 = arith.mulf %1587, %1559 : vector<32x128xf32>
      %1661 = arith.addf %1659, %1660 : vector<32x128xf32>
      %1662 = arith.mulf %1589, %1561 : vector<32x128xf32>
      %1663 = arith.addf %1661, %1662 : vector<32x128xf32>
      %1664 = arith.mulf %1593, %1563 : vector<32x128xf32>
      %1665 = arith.addf %1663, %1664 : vector<32x128xf32>
      %1666 = arith.mulf %1595, %1565 : vector<32x128xf32>
      %1667 = arith.addf %1665, %1666 : vector<32x128xf32>
      %1668 = arith.mulf %1597, %1567 : vector<32x128xf32>
      %1669 = arith.addf %1667, %1668 : vector<32x128xf32>
      %1670 = arith.mulf %1601, %1569 : vector<32x128xf32>
      %1671 = arith.addf %1669, %1670 : vector<32x128xf32>
      %1672 = arith.mulf %1603, %1571 : vector<32x128xf32>
      %1673 = arith.addf %1671, %1672 : vector<32x128xf32>
      %1674 = arith.mulf %1605, %1573 : vector<32x128xf32>
      %1675 = arith.addf %1673, %1674 : vector<32x128xf32>
      %1676 = arith.maximumf %1658, %1675 : vector<32x128xf32>
      %1677 = arith.index_cast %arg6 : i32 to index
      %c12 = arith.constant 12 : index
      %c0_407 = arith.constant 0 : index
      %c0_408 = arith.constant 0 : index
      %1678 = vector.load %arg4[%1677, %c12, %c0_407, %c0_408] : memref<13x13x32x128xf32, #tpu.memory_space<vmem>>, vector<1x1x32x128xf32>
      %1679 = vector.shape_cast %1678 : vector<1x1x32x128xf32> to vector<32x128xf32>
      %1680 = arith.mulf %1676, %1679 : vector<32x128xf32>
      %1681 = arith.addf %1555, %1680 : vector<32x128xf32>
      %1682 = arith.addf %arg7, %1681 : vector<32x128xf32>
      scf.yield %1682 : vector<32x128xf32>
    }
    %c13_i32_0 = arith.constant 13 : i32
    %cst_1 = arith.constant dense<0.000000e+00> : vector<128xf32>
    %3 = vector.multi_reduction <add>, %2, %cst_1 [0] : vector<32x128xf32> to vector<128xf32>
    %4 = vector.shape_cast %3 : vector<128xf32> to vector<1x128xf32>
    %c0 = arith.constant 0 : index
    %c0_2 = arith.constant 0 : index
    %5 = vector.load %arg2[%c0, %c0_2] : memref<1x128xf32, #tpu.memory_space<vmem>>, vector<1x128xf32>
    %6 = arith.addf %4, %5 : vector<1x128xf32>
    %cst_3 = arith.constant 0.000000e+00 : f32
    %7 = vector.broadcast %cst_3 : f32 to vector<1x128xf32>
    %8 = arith.subf %7, %6 : vector<1x128xf32>
    %9 = math.exp %8 : vector<1x128xf32>
    %cst_4 = arith.constant 1.000000e+00 : f32
    %10 = vector.broadcast %cst_4 : f32 to vector<1x128xf32>
    %11 = arith.addf %10, %9 : vector<1x128xf32>
    %cst_5 = arith.constant 1.000000e+00 : f32
    %12 = vector.broadcast %cst_5 : f32 to vector<1x128xf32>
    %13 = arith.divf %12, %11 : vector<1x128xf32>
    %c0_6 = arith.constant 0 : index
    %c0_7 = arith.constant 0 : index
    %14 = vector.load %arg5[%c0_6, %c0_7] : memref<1x128xf32, #tpu.memory_space<vmem>>, vector<1x128xf32>
    tpu.vector_store %arg5[%c0_6, %c0_7], %13 {strides = array<i32>} : memref<1x128xf32, #tpu.memory_space<vmem>>, vector<1x128xf32>,
    return
  }
  func.func @transform_0(%arg0: i32) -> (i32, i32, i32, i32, i32) {
    %c0_i32 = arith.constant 0 : i32
    %c0_i32_0 = arith.constant 0 : i32
    %c0_i32_1 = arith.constant 0 : i32
    %c0_i32_2 = arith.constant 0 : i32
    %c0_i32_3 = arith.constant 0 : i32
    return %arg0, %c0_i32, %c0_i32_0, %c0_i32_1, %c0_i32_2 : i32, i32, i32, i32, i32
  }
  func.func @transform_1(%arg0: i32) -> (i32, i32) {
    %c0_i32 = arith.constant 0 : i32
    %c0_i32_0 = arith.constant 0 : i32
    return %c0_i32, %arg0 : i32, i32
  }
  func.func @transform_2(%arg0: i32) -> (i32, i32, i32) {
    %c0_i32 = arith.constant 0 : i32
    %c0_i32_0 = arith.constant 0 : i32
    %c0_i32_1 = arith.constant 0 : i32
    %c0_i32_2 = arith.constant 0 : i32
    return %c0_i32, %c0_i32_0, %c0_i32_1 : i32, i32, i32
  }
  func.func @transform_3(%arg0: i32) -> (i32, i32, i32, i32) {
    %c0_i32 = arith.constant 0 : i32
    %c0_i32_0 = arith.constant 0 : i32
    %c0_i32_1 = arith.constant 0 : i32
    %c0_i32_2 = arith.constant 0 : i32
    %c0_i32_3 = arith.constant 0 : i32
    return %c0_i32, %c0_i32_0, %c0_i32_1, %c0_i32_2 : i32, i32, i32, i32
  }
  func.func @transform_4(%arg0: i32) -> (i32, i32) {
    %c0_i32 = arith.constant 0 : i32
    %c0_i32_0 = arith.constant 0 : i32
    return %c0_i32, %arg0 : i32, i32
  }
}

</mosaic_0001>

<bundles_post_ra>
// kernel: tpu_custom_call.1
= control target key start
LH: loop header
LB: loop body
LE: loop exit
PB: predicated region body
PF: predicated region fallthrough
CT: control target
= control target key end

     0   :  { %9 = vsyncpa [#allocation3], 0  ;;  %s11342_s0 = inlined_call_operand.hbm [shape: f32[1,28,28,1,128], index: 0, kind: input, shape index: {}]   ;;  %s11343_s1 = inlined_call_operand.hbm [shape: f32[1,128], index: 1, kind: input, shape index: {}]   ;;  %s11344_s2 = inlined_call_operand.hbm [shape: f32[9,32,128], index: 2, kind: input, shape index: {}]   ;;  %s11345_s3 = inlined_call_operand.hbm [shape: f32[13,13,32,128], index: 3, kind: input, shape index: {}]   ;;  %s11346_s4 = inlined_call_operand.hbm [shape: f32[1,128], index: 4, kind: output, shape index: {}]  }
   0x1   :  { %10 = vsyncpa [#allocation6], 0 }
   0x2   :  { %11 = vsyncpa [#allocation9], 0 }
   0x3   :  { %12 = vsyncpa [#allocation4], 0  ;;  %s5619_s15 = smov [#allocation5]   ;;  %s5620_s17 = smov [#allocation2]  }
   0x4   :  { %s31_s16 = sshll.u32 %s5619_s15, 4  ;;  %s18_s18 = sshll.u32 %s5620_s17, 4  ;;  %s32_s16 = int_to_ptr.vmem [resolvable:$true] %s31_s16  ;;  %s5653_s18 = int_to_ptr.vmem [resolvable:$true] %s18_s18 }
   0x5   :  { %s5461_s21 = scalar_lea.hbm %s11343_s1, 16 }
   0x6   :  { %p5462_p0 = scmp.ne.s32.totalorder %s11343_s1, %s5461_s21  ;;  %p5465_p1 = scmp.lt.u32.totalorder %s5461_s21, %s11343_s1 }
   0x8   :  { %p5467_p2 = pnand %p5465_p1, %p5462_p0 }
   0xa   :  { %5470 = shalt.err (!%p5467_p2)
}
   0xb   :  { %s5471_s26 = scalar_lea.vmem %s32_s16, 16  ;;  %s5475_s27 = scalar_lea.vmem %s32_s16, 32 }
   0xc   :  { %p5472_p3 = scmp.ne.s32.totalorder %s32_s16, %s5471_s26  ;;  %p5476_p4 = scmp.lt.s32.totalorder %s32_s16, %s32_s16 }
   0xd   :  { %p5477_p5 = scmp.lt.s32.totalorder %s5475_s27, %s5471_s26 }
   0xf   :  { %p5478_p6 = por %p5477_p5, %p5476_p4 }
  0x11   :  { %p5479_p7 = pnand %p5478_p6, %p5472_p3 }
  0x13   :  { %5482 = shalt.err (!%p5479_p7)
}
  0x14   :  { %34 = dma.hbm_to_vmem [thread:$0]  %s11343_s1, 16, %s32_s16, [#allocation6]  }
  0x15   :  { %s5483_s6 = scalar_lea.hbm %s11342_s0, 12544 }
  0x16   :  { %p5484_p8 = scmp.ne.s32.totalorder %s11342_s0, %s5483_s6  ;;  %p5487_p9 = scmp.lt.u32.totalorder %s5483_s6, %s11342_s0 }
  0x18   :  { %p5489_p10 = pnand %p5487_p9, %p5484_p8 }
  0x1a   :  { %5492 = shalt.err (!%p5489_p10)
}
  0x1b   :  { %s5493_s11 = scalar_lea.vmem %s5653_s18, 12544  ;;  %p5498_p12 = scmp.lt.s32.totalorder %s5653_s18, %s5653_s18 }
  0x1c   :  { %p5494_p11 = scmp.ne.s32.totalorder %s5653_s18, %s5493_s11  ;;  %p5499_p13 = scmp.lt.s32.totalorder %s5493_s11, %s5493_s11 }
  0x1e   :  { %p5500_p0 = por %p5499_p13, %p5498_p12 }
  0x20   :  { %p5501_p1 = pnand %p5500_p0, %p5494_p11 }
  0x22   :  { %5504 = shalt.err (!%p5501_p1)
}
  0x23   :  { %s5621_s1 = smov 16   ;;  %s5622_s12 = smov 1  }
  0x24   :  { %24 = dma.hbm_to_vmem [thread:$0]  %s11342_s0, 12544, %s5653_s18, [#allocation3], %s5621_s1, %s5621_s1, %s5622_s12  }
  0x25   :  { %s5623_s15 = smov [#allocation7]   ;;  %s5505_s20 = scalar_lea.hbm %s11344_s2, 4608 }
  0x26   :  { %s40_s16 = sshll.u32 %s5623_s15, 4  ;;  %p5506_p2 = scmp.ne.s32.totalorder %s11344_s2, %s5505_s20  ;;  %s41_s16 = int_to_ptr.vmem [resolvable:$true] %s40_s16 }
  0x27   :  { %p5509_p3 = scmp.lt.u32.totalorder %s5505_s20, %s11344_s2 }
  0x29   :  { %p5511_p4 = pnand %p5509_p3, %p5506_p2 }
  0x2b   :  { %5514 = shalt.err (!%p5511_p4)
}
  0x2c   :  { %s5515_s25 = scalar_lea.vmem %s41_s16, 4608  ;;  %p5520_p6 = scmp.lt.s32.totalorder %s41_s16, %s41_s16 }
  0x2d   :  { %p5516_p5 = scmp.ne.s32.totalorder %s41_s16, %s5515_s25  ;;  %p5521_p7 = scmp.lt.s32.totalorder %s5515_s25, %s5515_s25 }
  0x2f   :  { %p5522_p8 = por %p5521_p7, %p5520_p6 }
  0x31   :  { %p5523_p9 = pnand %p5522_p8, %p5516_p5 }
  0x33   :  { %5526 = shalt.err (!%p5523_p9)
}
  0x34   :  { %s5624_s0 = smov 128   ;;  %s5625_s18 = smov 8  }
  0x35   :  { %46 = dma.hbm_to_vmem [thread:$0]  %s11344_s2, 4608, %s41_s16, [#allocation6], %s5624_s0, %s5624_s0, %s5625_s18  }
  0x36   :  { %s5626_s28 = smov [#allocation8]   ;;  %s5527_s6 = scalar_lea.hbm %s11345_s3, 86528 }
  0x37   :  { %s52_s29 = sshll.u32 %s5626_s28, 4  ;;  %p5528_p10 = scmp.ne.s32.totalorder %s11345_s3, %s5527_s6  ;;  %s53_s29 = int_to_ptr.vmem [resolvable:$true] %s52_s29 }
  0x38   :  { %p5531_p11 = scmp.lt.u32.totalorder %s5527_s6, %s11345_s3 }
  0x3a   :  { %p5533_p12 = pnand %p5531_p11, %p5528_p10 }
  0x3c   :  { %5536 = shalt.err (!%p5533_p12)
}
  0x3d   :  { %s5537_s11 = scalar_lea.vmem %s53_s29, 86528  ;;  %p5542_p0 = scmp.lt.s32.totalorder %s53_s29, %s53_s29 }
  0x3e   :  { %p5538_p13 = scmp.ne.s32.totalorder %s53_s29, %s5537_s11  ;;  %p5543_p1 = scmp.lt.s32.totalorder %s5537_s11, %s5537_s11 }
  0x40   :  { %p5544_p2 = por %p5543_p1, %p5542_p0 }
  0x42   :  { %p5545_p3 = pnand %p5544_p2, %p5538_p13 }
  0x44   :  { %5548 = shalt.err (!%p5545_p3)
}
  0x45   :  { %58 = dma.hbm_to_vmem [thread:$0]  %s11345_s3, 86528, %s53_s29, [#allocation9], %s5624_s0, %s5624_s0, %s5625_s18  }
  0x46   :  { %5591 = dma.done.wait [#allocation3], 12544  }
  0x47   :  { %5592 = vsyncadd [#allocation3], 4294954752 }
  0x48   :  { %5593 = dma.done.wait [#allocation6], 4624  }
  0x49   :  { %5594 = vsyncadd [#allocation6], 4294962672 }
  0x4a   :  { %5595 = dma.done.wait [#allocation9], 86528  }
  0x4b   :  { %5596 = vsyncadd [#allocation9], 4294880768  ;;  %v5708_v0 = vmov 0.0   ;;  %v5710_v1 = vmov 0.0   ;;  %v5712_v2 = vmov 0.0   ;;  %v5714_v3 = vmov 0.0  }
  0x4c   :  { %s5716_s12 = smov 0  }
  0x4d LB: > { %11805 = vst [vmem:[#allocation15_spill] sm:$0xff] %v5601_v0  ;;  %11806 = vst [vmem:[#allocation16_spill] sm:$0xff] %v5605_v1  ;;  %s4904_s3 = smul.u32 56, %s5617_s12  ;;  %v5734_v4 = vld [vmem:[#allocation7] sm:$0xff]  ;;  %v5736_v5 = vld [vmem:[#allocation7 + $0x8] sm:$0xff]  ;;  %s5617_s12 = sphi %s5716_s12, %s76_s12   ;;  %v5613_v3 = vphi %v5714_v3, %v12595_v3   ;;  %v5609_v2 = vphi %v5712_v2, %v12594_v2   ;;  %v5605_v1 = vphi %v5710_v1, %v12593_v1   ;;  %v5601_v0 = vphi %v5708_v0, %v12592_v0  }
  0x4e   : > { %11807 = vst [vmem:[#allocation17_spill] sm:$0xff] %v5609_v2  ;;  %11808 = vst [vmem:[#allocation18_spill] sm:$0xff] %v5613_v3  ;;  %v5738_v6 = vld [vmem:[#allocation7 + $0x10] sm:$0xff]  ;;  %v5740_v7 = vld [vmem:[#allocation7 + $0x18] sm:$0xff]  ;;  %s629_s14 = smul.u32 416, %s5617_s12  ;;  %s76_s12 = sadd.s32 1, %s5617_s12  }
  0x4f   : > { %11809 = vst [vmem:[#allocation19_spill] sm:$0xff] %v5734_v4  ;;  %11810 = vst [vmem:[#allocation20_spill] sm:$0xff] %v5736_v5  ;;  %v5742_v8 = vld [vmem:[#allocation7 + $0x20] sm:$0xff]  ;;  %v5744_v9 = vld [vmem:[#allocation7 + $0x28] sm:$0xff]  ;;  %s5752_s13 = scalar_lea.vmem [#allocation2], %s4904_s3  ;;  %p73_p4 = scmp.ge.s32.totalorder %s76_s12, 13  }
  0x50   : > { %11811 = vst [vmem:[#allocation21_spill] sm:$0xff] %v5738_v6  ;;  %11812 = vst [vmem:[#allocation22_spill] sm:$0xff] %v5740_v7  ;;  %v5746_v10 = vld [vmem:[#allocation7 + $0x30] sm:$0xff]  ;;  %v5748_v11 = vld [vmem:[#allocation7 + $0x38] sm:$0xff]  ;;  %s6629_s15 = scalar_lea.vmem [#allocation8], %s629_s14  ;;  %s5627_s16 = smov (%p73_p4), [#allocation10]  }
  0x51   : > { %11813 = vst [vmem:[#allocation23_spill] sm:$0xff] %v5742_v8  ;;  %11814 = vst [vmem:[#allocation24_spill] sm:$0xff] %v5744_v9  ;;  %v5750_v12 = vld [vmem:[#allocation7 + $0x40] sm:$0xff]  ;;  %v4995_v13 = vld [vmem:[%s5752_s13] ss:$0 sm:$0xff]  ;;  %s4823_s17 = sshll.u32 (%p73_p4), %s5627_s16, 4  ;;  %s4824_s17 = int_to_ptr.vmem [resolvable:$true] %s4823_s17 }
  0x52   : > { %11815 = vst [vmem:[#allocation25_spill] sm:$0xff] %v5746_v10  ;;  %11816 = vst [vmem:[#allocation26_spill] sm:$0xff] %v5748_v11  ;;  %v4996_v14 = vld [vmem:[%s5752_s13 + $0x1] ss:$0 sm:$0xff]  ;;  %v5758_v16 = vld [vmem:[#allocation7 + $0x50] sm:$0xff]  ;;  %v345_v18 = vmul.f32 %v4995_v13, %v5734_v4  ;;  %v346_v19 = vmul.f32 %v4995_v13, %v5736_v5  ;;  %v347_v20 = vmul.f32 %v4995_v13, %v5738_v6  ;;  %s5549_s19 = scalar_lea.vmem (%p73_p4), %s4824_s17, 16  ;;  %p5554_p6 = scmp.lt.s32.totalorder (%p73_p4), %s4824_s17, %s4824_s17 }
  0x53   : > { %11817 = vst [vmem:[#allocation27_spill] sm:$0xff] %v5750_v12  ;;  %v5756_v15 = vld [vmem:[#allocation7 + $0x48] sm:$0xff]  ;;  %11819 = vst [vmem:[#allocation29_spill] sm:$0xff] %v5758_v16  ;;  %v5760_v17 = vld [vmem:[#allocation7 + $0x58] sm:$0xff]  ;;  %v348_v21 = vmul.f32 %v4995_v13, %v5740_v7  ;;  %v349_v23 = vmul.f32 %v4996_v14, %v5742_v8  ;;  %v350_v24 = vmul.f32 %v4996_v14, %v5744_v9  ;;  %p5550_p5 = scmp.ne.s32.totalorder (%p73_p4), %s4824_s17, %s5549_s19  ;;  %s5553_s20 = scalar_lea.vmem (%p73_p4), %s4824_s17, 32 }
  0x54   : > { %11818 = vst [vmem:[#allocation28_spill] sm:$0xff] %v5756_v15  ;;  %11820 = vst [vmem:[#allocation30_spill] sm:$0xff] %v5760_v17  ;;  %v5767_v22 = vld [vmem:[%s5752_s13 + $0x2] ss:$0 sm:$0xff]  ;;  %v351_v25 = vmul.f32 %v4996_v14, %v5746_v10  ;;  %v352_v26 = vmul.f32 %v4996_v14, %v5748_v11  ;;  %v413_v33 = vmul.f32 %v4996_v14, %v5734_v4  ;;  %v5785_v37 = vld [vmem:[#allocation7 + $0x60] sm:$0xff]  ;;  %p5555_p7 = scmp.lt.s32.totalorder (%p73_p4), %s5553_s20, %s5549_s19 }
  0x55   : > { %v357_v27 = vmul.f32 %v5767_v22, %v5750_v12  ;;  %v358_v28 = vmul.f32 %v5767_v22, %v5756_v15  ;;  %v353_v29 = vadd.f32 %v349_v23, %v345_v18  ;;  %v354_v30 = vadd.f32 %v350_v24, %v346_v19  ;;  %11821 = vst [vmem:[#allocation31_spill] sm:$0xff] %v5785_v37  ;;  %v5788_v42 = vld [vmem:[%s5752_s13 + $0x3] ss:$0 sm:$0xff]  ;;  %v5790_v43 = vld [vmem:[#allocation7 + $0x68] sm:$0xff] }
  0x56   : > { %v359_v31 = vmul.f32 %v5767_v22, %v5758_v16  ;;  %v360_v32 = vmul.f32 %v5767_v22, %v5760_v17  ;;  %v414_v34 = vmul.f32 %v4996_v14, %v5736_v5  ;;  %v415_v35 = vmul.f32 %v4996_v14, %v5738_v6  ;;  %11822 = vst [vmem:[#allocation32_spill] sm:$0xff] %v5790_v43  ;;  %v5792_v44 = vld [vmem:[#allocation7 + $0x70] sm:$0xff]  ;;  %v5811_v53 = vld [vmem:[%s5752_s13 + $0x1c] ss:$0 sm:$0xff]  ;;  %v5814_v58 = vld [vmem:[%s5752_s13 + $0x1d] ss:$0 sm:$0xff]  ;;  %p5556_p8 = por (%p73_p4), %p5555_p7, %p5554_p6 }
  0x57   : > { %v416_v36 = vmul.f32 %v4996_v14, %v5740_v7  ;;  %v355_v38 = vadd.f32 %v351_v25, %v347_v20  ;;  %v356_v39 = vadd.f32 %v352_v26, %v348_v21  ;;  %v361_v40 = vadd.f32 %v357_v27, %v353_v29  ;;  %11823 = vst [vmem:[#allocation33_spill] sm:$0xff] %v5792_v44  ;;  %v6040_v3 = vld [vmem:[#allocation7 + $0xa8] sm:$0xff] }
  0x58   : > { %v362_v41 = vadd.f32 %v358_v28, %v354_v30  ;;  %v417_v45 = vmul.f32 %v5767_v22, %v5742_v8  ;;  %v418_v46 = vmul.f32 %v5767_v22, %v5744_v9  ;;  %v419_v47 = vmul.f32 %v5767_v22, %v5746_v10  ;;  %v5845_v30 = vld [vmem:[%s5752_s13 + $0x1e] ss:$0 sm:$0xff]  ;;  %p5557_p9 = pnand (%p73_p4), %p5556_p8, %p5550_p5 }
  0x59   : > { %v420_v48 = vmul.f32 %v5767_v22, %v5748_v11  ;;  %v425_v49 = vmul.f32 %v5788_v42, %v5750_v12  ;;  %v426_v50 = vmul.f32 %v5788_v42, %v5756_v15  ;;  %v427_v51 = vmul.f32 %v5788_v42, %v5758_v16 }
  0x5a   : > { %v428_v52 = vmul.f32 %v5788_v42, %v5760_v17  ;;  %v421_v54 = vadd.f32 %v417_v45, %v413_v33  ;;  %v422_v55 = vadd.f32 %v418_v46, %v414_v34  ;;  %v423_v56 = vadd.f32 %v419_v47, %v415_v35  ;;  %v5866_v47 = vld [vmem:[%s5752_s13 + $0x38] ss:$0 sm:$0xff] }
  0x5b   : > { %v424_v57 = vadd.f32 %v420_v48, %v416_v36  ;;  %v363_v59 = vadd.f32 %v359_v31, %v355_v38  ;;  %v365_v60 = vmul.f32 %v5811_v53, %v5785_v37  ;;  %v366_v61 = vmul.f32 %v5811_v53, %v5790_v43 }
  0x5c   : > { %v367_v62 = vmul.f32 %v5811_v53, %v5792_v44  ;;  %v5822_v63 = vadd.f32 %v360_v32, %v356_v39  ;;  %v433_v13 = vmul.f32 %v5814_v58, %v5785_v37  ;;  %v429_v14 = vadd.f32 %v425_v49, %v421_v54 }
  0x5d   : > { %v430_v18 = vadd.f32 %v426_v50, %v422_v55  ;;  %v431_v19 = vadd.f32 %v427_v51, %v423_v56  ;;  %v5826_v20 = vadd.f32 %v428_v52, %v424_v57  ;;  %v5828_v21 = vadd.f32 %v365_v60, %v361_v40 }
  0x5e   : > { %v5830_v23 = vadd.f32 %v366_v61, %v362_v41  ;;  %v485_v24 = vmul.f32 %v5811_v53, %v5734_v4  ;;  %v486_v25 = vmul.f32 %v5811_v53, %v5736_v5  ;;  %v5836_v26 = vadd.f32 %v367_v62, %v363_v59  ;;  %v5885_v62 = vld [vmem:[%s5752_s13 + $0x1f] ss:$0 sm:$0xff] }
  0x5f   : > { %v487_v27 = vmul.f32 %v5811_v53, %v5738_v6  ;;  %v488_v28 = vmul.f32 %v5811_v53, %v5740_v7  ;;  %v489_v29 = vmul.f32 %v5814_v58, %v5742_v8  ;;  %v434_v31 = vmul.f32 %v5814_v58, %v5790_v43 }
  0x60   : > { %v490_v32 = vmul.f32 %v5814_v58, %v5744_v9  ;;  %v491_v33 = vmul.f32 %v5814_v58, %v5746_v10  ;;  %v492_v34 = vmul.f32 %v5814_v58, %v5748_v11  ;;  %v497_v36 = vmul.f32 %v5845_v30, %v5750_v12 }
  0x61   : > { %v493_v35 = vadd.f32 %v489_v29, %v485_v24  ;;  %v498_v38 = vmul.f32 %v5845_v30, %v5756_v15  ;;  %v499_v39 = vmul.f32 %v5845_v30, %v5758_v16  ;;  %v435_v40 = vmul.f32 %v5814_v58, %v5792_v44 }
  0x62   : > { %v5863_v41 = vadd.f32 %v433_v13, %v429_v14  ;;  %v494_v45 = vadd.f32 %v490_v32, %v486_v25  ;;  %v495_v46 = vadd.f32 %v491_v33, %v487_v27  ;;  %v496_v48 = vadd.f32 %v492_v34, %v488_v28  ;;  %v5902_v33 = vld [vmem:[%s5752_s13 + $0x39] ss:$0 sm:$0xff] }
  0x63   : > { %v500_v49 = vmul.f32 %v5845_v30, %v5760_v17  ;;  %v501_v50 = vadd.f32 %v497_v36, %v493_v35  ;;  %v557_v51 = vmul.f32 %v5814_v58, %v5734_v4  ;;  %v505_v54 = vmul.f32 %v5866_v47, %v5785_v37 }
  0x64   : > { %v502_v52 = vadd.f32 %v498_v38, %v494_v45  ;;  %v558_v55 = vmul.f32 %v5814_v58, %v5736_v5  ;;  %v559_v56 = vmul.f32 %v5814_v58, %v5738_v6  ;;  %v503_v57 = vadd.f32 %v499_v39, %v495_v46 }
  0x65   : > { %v506_v59 = vmul.f32 %v5866_v47, %v5790_v43  ;;  %v507_v60 = vmul.f32 %v5866_v47, %v5792_v44  ;;  %v561_v61 = vmul.f32 %v5845_v30, %v5742_v8  ;;  %v560_v13 = vmul.f32 %v5814_v58, %v5740_v7 }
  0x66   : > { %v562_v14 = vmul.f32 %v5845_v30, %v5744_v9  ;;  %v563_v24 = vmul.f32 %v5845_v30, %v5746_v10  ;;  %v564_v25 = vmul.f32 %v5845_v30, %v5748_v11  ;;  %v5895_v27 = vadd.f32 %v434_v31, %v430_v18 }
  0x67   : > { %v5897_v28 = vadd.f32 %v435_v40, %v431_v19  ;;  %v565_v29 = vadd.f32 %v561_v61, %v557_v51  ;;  %v569_v32 = vmul.f32 %v5885_v62, %v5750_v12  ;;  %v5904_v34 = vadd.f32 %v500_v49, %v496_v48 }
  0x68   : > { %v5906_v35 = vadd.f32 %v505_v54, %v501_v50  ;;  %v566_v36 = vadd.f32 %v562_v14, %v558_v55  ;;  %v570_v38 = vmul.f32 %v5885_v62, %v5756_v15  ;;  %v5910_v39 = vadd.f32 %v506_v59, %v502_v52  ;;  %v5935_v59 = vld [vmem:[%s5752_s13 + $0x4] ss:$0 sm:$0xff] }
  0x69   : > { %v5912_v18 = vadd.f32 %v507_v60, %v503_v57  ;;  %v567_v19 = vadd.f32 %v563_v24, %v559_v56  ;;  %v571_v31 = vmul.f32 %v5885_v62, %v5758_v16  ;;  %v568_v40 = vadd.f32 %v564_v25, %v560_v13  ;;  %11824 = vst [vmem:[#allocation34_spill] sm:$0xff] %v5935_v59 }
  0x6a   : > { %v572_v45 = vmul.f32 %v5885_v62, %v5760_v17  ;;  %v573_v46 = vadd.f32 %v569_v32, %v565_v29  ;;  %v691_v48 = vmul.f32 %v5767_v22, %v5734_v4  ;;  %v574_v49 = vadd.f32 %v570_v38, %v566_v36 }
  0x6b   : > { %v577_v50 = vmul.f32 %v5902_v33, %v5785_v37  ;;  %v578_v51 = vmul.f32 %v5902_v33, %v5790_v43  ;;  %v692_v52 = vmul.f32 %v5767_v22, %v5736_v5  ;;  %v579_v54 = vmul.f32 %v5902_v33, %v5792_v44 }
  0x6c   : > { %v693_v55 = vmul.f32 %v5767_v22, %v5738_v6  ;;  %v694_v56 = vmul.f32 %v5767_v22, %v5740_v7  ;;  %v695_v57 = vmul.f32 %v5788_v42, %v5742_v8  ;;  %v575_v60 = vadd.f32 %v571_v31, %v567_v19 }
  0x6d   : > { %v696_v61 = vmul.f32 %v5788_v42, %v5744_v9  ;;  %v697_v13 = vmul.f32 %v5788_v42, %v5746_v10  ;;  %v698_v14 = vmul.f32 %v5788_v42, %v5748_v11  ;;  %v703_v22 = vmul.f32 %v5935_v59, %v5750_v12 }
  0x6e   : > { %v699_v24 = vadd.f32 %v695_v57, %v691_v48  ;;  %v704_v25 = vmul.f32 %v5935_v59, %v5756_v15  ;;  %v705_v29 = vmul.f32 %v5935_v59, %v5758_v16  ;;  %v706_v19 = vmul.f32 %v5935_v59, %v5760_v17 }
  0x6f   : > { %v700_v32 = vadd.f32 %v696_v61, %v692_v52  ;;  %v701_v36 = vadd.f32 %v697_v13, %v693_v55  ;;  %v702_v38 = vadd.f32 %v698_v14, %v694_v56  ;;  %v711_v48 = vmul.f32 %v5845_v30, %v5785_v37  ;;  %v5962_v56 = vld [vmem:[%s5752_s13 + $0x5] ss:$0 sm:$0xff] }
  0x70   : > { %v707_v31 = vadd.f32 %v703_v22, %v699_v24  ;;  %v712_v57 = vmul.f32 %v5845_v30, %v5790_v43  ;;  %v713_v0 = vmul.f32 %v5845_v30, %v5792_v44  ;;  %v5957_v1 = vadd.f32 %v572_v45, %v568_v40  ;;  %11825 = vst [vmem:[#allocation35_spill] sm:$0xff] %v5962_v56 }
  0x71   : > { %v5959_v2 = vadd.f32 %v577_v50, %v573_v46  ;;  %v708_v52 = vadd.f32 %v704_v25, %v700_v32  ;;  %v709_v55 = vadd.f32 %v705_v29, %v701_v36  ;;  %v5964_v61 = vadd.f32 %v578_v51, %v574_v49  ;;  %v6008_v32 = vld [vmem:[#allocation7 + $0x78] sm:$0xff] }
  0x72   : > { %v5966_v13 = vadd.f32 %v579_v54, %v575_v60  ;;  %v759_v14 = vmul.f32 %v5788_v42, %v5734_v4  ;;  %v760_v24 = vmul.f32 %v5788_v42, %v5736_v5  ;;  %v5972_v22 = vadd.f32 %v706_v19, %v702_v38  ;;  %v6068_v5 = vld [vmem:[#allocation7 + $0xe0] sm:$0xff] }
  0x73   : > { %v5974_v40 = vadd.f32 %v711_v48, %v707_v31  ;;  %v763_v45 = vmul.f32 %v5935_v59, %v5742_v8  ;;  %v764_v46 = vmul.f32 %v5935_v59, %v5744_v9  ;;  %v5980_v49 = vadd.f32 %v712_v57, %v708_v52  ;;  %v6024_v48 = vld [vmem:[#allocation7 + $0x88] sm:$0xff]  ;;  %v6026_v57 = vld [vmem:[#allocation7 + $0x90] sm:$0xff]  ;;  %v6028_v52 = vld [vmem:[#allocation7 + $0x98] sm:$0xff] }
  0x74   : > { %v5982_v50 = vadd.f32 %v713_v0, %v709_v55  ;;  %v5986_v51 = vmul.f32 %v5788_v42, %v5738_v6  ;;  %v5990_v54 = vmul.f32 %v5788_v42, %v5740_v7  ;;  %v5994_v60 = vmul.f32 %v5935_v59, %v5746_v10  ;;  %v6010_v42 = vld [vmem:[#allocation7 + $0x80] sm:$0xff]  ;;  %v6066_v6 = vld [vmem:[#allocation7 + $0xd8] sm:$0xff] }
  0x75   : > { %v5998_v25 = vmul.f32 %v5935_v59, %v5748_v11  ;;  %v6002_v0 = vmul.f32 %v5962_v56, %v5750_v12  ;;  %v6006_v29 = vmul.f32 %v5962_v56, %v5756_v15  ;;  %v6012_v36 = vadd.f32 %v763_v45, %v759_v14  ;;  %v6052_v15 = vld [vmem:[#allocation7 + $0xb8] sm:$0xff]  ;;  %v6054_v12 = vld [vmem:[#allocation7 + $0xc0] sm:$0xff]  ;;  %v6056_v11 = vld [vmem:[#allocation7 + $0xc8] sm:$0xff] }
  0x76   : > { %11826 = vst [vmem:[#allocation36_spill] sm:$0xff] %v5982_v50  ;;  %11827 = vst [vmem:[#allocation37_spill] sm:$0xff] %v5990_v54  ;;  %v6014_v38 = vadd.f32 %v764_v46, %v760_v24  ;;  %v6018_v19 = vmul.f32 %v5962_v56, %v5758_v16  ;;  %v6022_v31 = vmul.f32 %v5962_v56, %v5760_v17  ;;  %v6038_v46 = vld [vmem:[#allocation7 + $0xa0] sm:$0xff]  ;;  %v6042_v56 = vld [vmem:[#allocation7 + $0xb0] sm:$0xff] }
  0x77   : > { %11828 = vst [vmem:[#allocation38_spill] sm:$0xff] %v5994_v60  ;;  %11829 = vst [vmem:[#allocation39_spill] sm:$0xff] %v5998_v25  ;;  %v368_v55 = vmul.f32 %v5811_v53, %v6008_v32  ;;  %v373_v14 = vmul.f32 %v5814_v58, %v6010_v42  ;;  %v436_v24 = vmul.f32 %v5814_v58, %v6008_v32 }
  0x78   : > { %11830 = vst [vmem:[#allocation40_spill] sm:$0xff] %v6002_v0  ;;  %11831 = vst [vmem:[#allocation41_spill] sm:$0xff] %v6006_v29  ;;  %v441_v45 = vmul.f32 %v5845_v30, %v6010_v42  ;;  %v374_v59 = vmul.f32 %v5814_v58, %v6024_v48  ;;  %v375_v53 = vmul.f32 %v5814_v58, %v6026_v57 }
  0x79   : > { %11832 = vst [vmem:[#allocation42_spill] sm:$0xff] %v6012_v36  ;;  %11833 = vst [vmem:[#allocation43_spill] sm:$0xff] %v6014_v38  ;;  %v376_v17 = vmul.f32 %v5814_v58, %v6028_v52  ;;  %v442_v16 = vmul.f32 %v5845_v30, %v6024_v48  ;;  %v372_v10 = vadd.f32 %v368_v55, %v5822_v63  ;;  %v6064_v58 = vld [vmem:[#allocation7 + $0xd0] sm:$0xff]  ;;  %v6076_v55 = vld [vmem:[#allocation7 + $0xe8] sm:$0xff] }
  0x7a   : > { %11834 = vst [vmem:[#allocation44_spill] sm:$0xff] %v6018_v19  ;;  %11835 = vst [vmem:[#allocation45_spill] sm:$0xff] %v6022_v31  ;;  %v377_v9 = vadd.f32 %v373_v14, %v5828_v21  ;;  %v381_v8 = vmul.f32 %v5845_v30, %v6038_v46  ;;  %v382_v7 = vmul.f32 %v5845_v30, %v6040_v3  ;;  %v6078_v14 = vld [vmem:[#allocation7 + $0xf0] sm:$0xff]  ;;  %v6080_v31 = vld [vmem:[#allocation7 + $0xf8] sm:$0xff] }
  0x7b   : > { %v378_v4 = vadd.f32 %v374_v59, %v5830_v23  ;;  %v379_v44 = vadd.f32 %v375_v53, %v5836_v26  ;;  %v383_v63 = vmul.f32 %v5845_v30, %v6042_v56  ;;  %v384_v21 = vmul.f32 %v5845_v30, %v6052_v15  ;;  %v6086_v59 = vld [vmem:[#allocation7 + $0x100] sm:$0xff]  ;;  %v6088_v53 = vld [vmem:[#allocation7 + $0x108] sm:$0xff] }
  0x7c   : > { %v380_v19 = vadd.f32 %v376_v17, %v372_v10  ;;  %v385_v29 = vadd.f32 %v381_v8, %v377_v9  ;;  %v389_v23 = vmul.f32 %v5866_v47, %v6054_v12  ;;  %v390_v26 = vmul.f32 %v5866_v47, %v6056_v11  ;;  %11836 = vst [vmem:[#allocation46_spill] sm:$0xff] %v6088_v53  ;;  %v6094_v17 = vld [vmem:[#allocation7 + $0x110] sm:$0xff]  ;;  %v6096_v8 = vld [vmem:[#allocation7 + $0x118] sm:$0xff] }
  0x7d   : > { %v386_v38 = vadd.f32 %v382_v7, %v378_v4  ;;  %v387_v0 = vadd.f32 %v383_v63, %v379_v44  ;;  %v391_v36 = vmul.f32 %v5866_v47, %v6064_v58  ;;  %v392_v10 = vmul.f32 %v5866_v47, %v6066_v6  ;;  %11837 = vst [vmem:[#allocation47_spill] sm:$0xff] %v6094_v17  ;;  %v6103_v4 = vld [vmem:[%s5752_s13 + $0x3a] ss:$0 sm:$0xff] }
  0x7e   : > { %11838 = vst [vmem:[#allocation48_spill] sm:$0xff] %v6096_v8  ;;  %v388_v9 = vadd.f32 %v384_v21, %v380_v19  ;;  %v393_v50 = vadd.f32 %v389_v23, %v385_v29  ;;  %v397_v43 = vmul.f32 %v5902_v33, %v6068_v5  ;;  %v398_v37 = vmul.f32 %v5902_v33, %v6076_v55 }
  0x7f   : > { %v394_v7 = vadd.f32 %v390_v26, %v386_v38  ;;  %v395_v44 = vadd.f32 %v391_v36, %v387_v0  ;;  %v399_v63 = vmul.f32 %v5902_v33, %v6078_v14  ;;  %v400_v25 = vmul.f32 %v5902_v33, %v6080_v31 }
  0x80   : > { %v396_v54 = vadd.f32 %v392_v10, %v388_v9  ;;  %v401_v60 = vadd.f32 %v397_v43, %v393_v50  ;;  %v405_v29 = vmul.f32 %v6103_v4, %v6086_v59  ;;  %v406_v19 = vmul.f32 %v6103_v4, %v6088_v53 }
  0x81   : > { %v402_v21 = vadd.f32 %v398_v37, %v394_v7  ;;  %v403_v23 = vadd.f32 %v399_v63, %v395_v44  ;;  %v407_v38 = vmul.f32 %v6103_v4, %v6094_v17  ;;  %v408_v0 = vmul.f32 %v6103_v4, %v6096_v8 }
  0x82   : > { %v404_v36 = vadd.f32 %v400_v25, %v396_v54  ;;  %v6117_v26 = vadd.f32 %v405_v29, %v401_v60  ;;  %v440_v10 = vadd.f32 %v436_v24, %v5826_v20  ;;  %v443_v43 = vmul.f32 %v5845_v30, %v6026_v57 }
  0x83   : > { %v6122_v50 = vadd.f32 %v406_v19, %v402_v21  ;;  %v6124_v9 = vadd.f32 %v407_v38, %v403_v23  ;;  %v444_v37 = vmul.f32 %v5845_v30, %v6028_v52  ;;  %v445_v7 = vadd.f32 %v441_v45, %v5863_v41 }
  0x84   : > { %v6129_v44 = vadd.f32 %v408_v0, %v404_v36  ;;  %v446_v54 = vadd.f32 %v442_v16, %v5895_v27  ;;  %v447_v60 = vadd.f32 %v443_v43, %v5897_v28  ;;  %v449_v20 = vmul.f32 %v5885_v62, %v6038_v46  ;;  %v6156_v43 = vld [vmem:[%s5752_s13 + $0x3b] ss:$0 sm:$0xff] }
  0x85   : > { %v448_v25 = vadd.f32 %v444_v37, %v440_v10  ;;  %v450_v24 = vmul.f32 %v5885_v62, %v6040_v3  ;;  %v451_v63 = vmul.f32 %v5885_v62, %v6042_v56  ;;  %v452_v41 = vmul.f32 %v5885_v62, %v6052_v15 }
  0x86   : > { %v453_v45 = vadd.f32 %v449_v20, %v445_v7  ;;  %v457_v16 = vmul.f32 %v5902_v33, %v6054_v12  ;;  %v458_v27 = vmul.f32 %v5902_v33, %v6056_v11  ;;  %v459_v28 = vmul.f32 %v5902_v33, %v6064_v58 }
  0x87   : > { %v454_v29 = vadd.f32 %v450_v24, %v446_v54  ;;  %v455_v19 = vadd.f32 %v451_v63, %v447_v60  ;;  %v456_v21 = vadd.f32 %v452_v41, %v448_v25  ;;  %v460_v23 = vmul.f32 %v5902_v33, %v6066_v6 }
  0x88   : > { %v461_v38 = vadd.f32 %v457_v16, %v453_v45  ;;  %v465_v0 = vmul.f32 %v6103_v4, %v6068_v5  ;;  %v466_v36 = vmul.f32 %v6103_v4, %v6076_v55  ;;  %v467_v10 = vmul.f32 %v6103_v4, %v6078_v14 }
  0x89   : > { %v462_v37 = vadd.f32 %v458_v27, %v454_v29  ;;  %v463_v7 = vadd.f32 %v459_v28, %v455_v19  ;;  %v464_v54 = vadd.f32 %v460_v23, %v456_v21  ;;  %v468_v60 = vmul.f32 %v6103_v4, %v6080_v31 }
  0x8a   : > { %v469_v20 = vadd.f32 %v465_v0, %v461_v38  ;;  %v473_v25 = vmul.f32 %v6156_v43, %v6086_v59  ;;  %v474_v24 = vmul.f32 %v6156_v43, %v6088_v53  ;;  %v475_v63 = vmul.f32 %v6156_v43, %v6094_v17 }
  0x8b   : > { %v470_v41 = vadd.f32 %v466_v36, %v462_v37  ;;  %v471_v45 = vadd.f32 %v467_v10, %v463_v7  ;;  %v472_v16 = vadd.f32 %v468_v60, %v464_v54  ;;  %v476_v27 = vmul.f32 %v6156_v43, %v6096_v8  ;;  %v5007_v10 = vld [vmem:[%s5752_s13 + $0x54] ss:$0 sm:$0xff] }
  0x8c   : > { %v477_v28 = vadd.f32 %v473_v25, %v469_v20  ;;  %v508_v29 = vmul.f32 %v5866_v47, %v6008_v32  ;;  %v513_v19 = vmul.f32 %v5902_v33, %v6010_v42  ;;  %v514_v21 = vmul.f32 %v5902_v33, %v6024_v48 }
  0x8d   : > { %v478_v23 = vadd.f32 %v474_v24, %v470_v41  ;;  %v479_v38 = vadd.f32 %v475_v63, %v471_v45  ;;  %v480_v0 = vadd.f32 %v476_v27, %v472_v16  ;;  %v515_v36 = vmul.f32 %v5902_v33, %v6026_v57  ;;  %v5008_v63 = vld [vmem:[%s5752_s13 + $0x55] ss:$0 sm:$0xff] }
  0x8e   : > { %v481_v37 = vmax.f32 %v6117_v26, %v477_v28  ;;  %v512_v7 = vadd.f32 %v508_v29, %v5904_v34  ;;  %v516_v47 = vmul.f32 %v5902_v33, %v6028_v52  ;;  %v517_v54 = vadd.f32 %v513_v19, %v5906_v35 }
  0x8f   : > { %v482_v60 = vmax.f32 %v6122_v50, %v478_v23  ;;  %v483_v20 = vmax.f32 %v6124_v9, %v479_v38  ;;  %v484_v25 = vmax.f32 %v6129_v44, %v480_v0  ;;  %v518_v24 = vadd.f32 %v514_v21, %v5910_v39  ;;  %v6203_v23 = vld [vmem:[%s5752_s13 + $0x56] ss:$0 sm:$0xff] }
  0x90   : > { %v519_v41 = vadd.f32 %v515_v36, %v5912_v18  ;;  %v520_v26 = vadd.f32 %v516_v47, %v512_v7  ;;  %v521_v34 = vmul.f32 %v6103_v4, %v6038_v46  ;;  %v522_v45 = vmul.f32 %v6103_v4, %v6040_v3 }
  0x91   : > { %v523_v35 = vmul.f32 %v6103_v4, %v6042_v56  ;;  %v524_v50 = vmul.f32 %v6103_v4, %v6052_v15  ;;  %v529_v9 = vmul.f32 %v5007_v10, %v6054_v12  ;;  %v530_v39 = vmul.f32 %v5007_v10, %v6056_v11 }
  0x92   : > { %v525_v44 = vadd.f32 %v521_v34, %v517_v54  ;;  %v526_v18 = vadd.f32 %v522_v45, %v518_v24  ;;  %v531_v16 = vmul.f32 %v5007_v10, %v6064_v58  ;;  %v532_v27 = vmul.f32 %v5007_v10, %v6066_v6 }
  0x93   : > { %v527_v28 = vadd.f32 %v523_v35, %v519_v41  ;;  %v528_v29 = vadd.f32 %v524_v50, %v520_v26  ;;  %v537_v19 = vmul.f32 %v5008_v63, %v6068_v5  ;;  %v538_v21 = vmul.f32 %v5008_v63, %v6076_v55 }
  0x94   : > { %v533_v38 = vadd.f32 %v529_v9, %v525_v44  ;;  %v534_v0 = vadd.f32 %v530_v39, %v526_v18  ;;  %v539_v36 = vmul.f32 %v5008_v63, %v6078_v14  ;;  %v540_v7 = vmul.f32 %v5008_v63, %v6080_v31 }
  0x95   : > { %v535_v47 = vadd.f32 %v531_v16, %v527_v28  ;;  %v536_v54 = vadd.f32 %v532_v27, %v528_v29  ;;  %v545_v24 = vmul.f32 %v6203_v23, %v6086_v59  ;;  %v546_v10 = vmul.f32 %v6203_v23, %v6088_v53 }
  0x96   : > { %v541_v41 = vadd.f32 %v537_v19, %v533_v38  ;;  %v542_v26 = vadd.f32 %v538_v21, %v534_v0  ;;  %v547_v34 = vmul.f32 %v6203_v23, %v6094_v17  ;;  %v548_v45 = vmul.f32 %v6203_v23, %v6096_v8 }
  0x97   : > { %v543_v35 = vadd.f32 %v539_v36, %v535_v47  ;;  %v544_v50 = vadd.f32 %v540_v7, %v536_v54  ;;  %v580_v9 = vmul.f32 %v5902_v33, %v6008_v32  ;;  %v585_v39 = vmul.f32 %v6103_v4, %v6010_v42 }
  0x98   : > { %v549_v44 = vadd.f32 %v545_v24, %v541_v41  ;;  %v550_v18 = vadd.f32 %v546_v10, %v542_v26  ;;  %v586_v16 = vmul.f32 %v6103_v4, %v6024_v48  ;;  %v587_v27 = vmul.f32 %v6103_v4, %v6026_v57 }
  0x99   : > { %v551_v28 = vadd.f32 %v547_v34, %v543_v35  ;;  %v552_v29 = vadd.f32 %v548_v45, %v544_v50  ;;  %v584_v19 = vadd.f32 %v580_v9, %v5957_v1  ;;  %v588_v21 = vmul.f32 %v6103_v4, %v6028_v52 }
  0x9a   : > { %v6226_v38 = vmax.f32 %v481_v37, %v549_v44  ;;  %v6228_v33 = vmax.f32 %v482_v60, %v550_v18  ;;  %v589_v0 = vadd.f32 %v585_v39, %v5959_v2  ;;  %v590_v36 = vadd.f32 %v586_v16, %v5964_v61  ;;  %v6258_v39 = vld [vmem:[%s5752_s13 + $0x57] ss:$0 sm:$0xff] }
  0x9b   : > { %v6232_v7 = vmax.f32 %v483_v20, %v551_v28  ;;  %v6234_v47 = vmax.f32 %v484_v25, %v552_v29  ;;  %v591_v54 = vadd.f32 %v587_v27, %v5966_v13  ;;  %v592_v24 = vadd.f32 %v588_v21, %v584_v19 }
  0x9c   : > { %11839 = vst [vmem:[#allocation49_spill] sm:$0xff] %v6226_v38  ;;  %11840 = vst [vmem:[#allocation50_spill] sm:$0xff] %v6228_v33  ;;  %v593_v1 = vmul.f32 %v6156_v43, %v6038_v46  ;;  %v594_v37 = vmul.f32 %v6156_v43, %v6040_v3  ;;  %v595_v60 = vmul.f32 %v6156_v43, %v6042_v56 }
  0x9d   : > { %11841 = vst [vmem:[#allocation51_spill] sm:$0xff] %v6232_v7  ;;  %11842 = vst [vmem:[#allocation52_spill] sm:$0xff] %v6234_v47  ;;  %v596_v2 = vmul.f32 %v6156_v43, %v6052_v15  ;;  %v601_v61 = vmul.f32 %v5008_v63, %v6054_v12  ;;  %v602_v20 = vmul.f32 %v5008_v63, %v6056_v11 }
  0x9e   : > { %v603_v13 = vmul.f32 %v5008_v63, %v6064_v58  ;;  %v604_v25 = vmul.f32 %v5008_v63, %v6066_v6  ;;  %v597_v10 = vadd.f32 %v593_v1, %v589_v0  ;;  %v598_v41 = vadd.f32 %v594_v37, %v590_v36 }
  0x9f   : > { %v599_v26 = vadd.f32 %v595_v60, %v591_v54  ;;  %v600_v34 = vadd.f32 %v596_v2, %v592_v24  ;;  %v609_v45 = vmul.f32 %v6203_v23, %v6068_v5  ;;  %v610_v35 = vmul.f32 %v6203_v23, %v6076_v55 }
  0xa0   : > { %v611_v50 = vmul.f32 %v6203_v23, %v6078_v14  ;;  %v612_v9 = vmul.f32 %v6203_v23, %v6080_v31  ;;  %v605_v44 = vadd.f32 %v601_v61, %v597_v10  ;;  %v606_v63 = vadd.f32 %v602_v20, %v598_v41 }
  0xa1   : > { %v607_v18 = vadd.f32 %v603_v13, %v599_v26  ;;  %v608_v16 = vadd.f32 %v604_v25, %v600_v34  ;;  %v617_v27 = vmul.f32 %v6258_v39, %v6086_v59  ;;  %v618_v28 = vmul.f32 %v6258_v39, %v6088_v53  ;;  %v6290_v34 = vld [vmem:[%s5752_s13 + $0x20] ss:$0 sm:$0xff] }
  0xa2   : > { %v619_v29 = vmul.f32 %v6258_v39, %v6094_v17  ;;  %v620_v19 = vmul.f32 %v6258_v39, %v6096_v8  ;;  %v613_v21 = vadd.f32 %v609_v45, %v605_v44  ;;  %v614_v0 = vadd.f32 %v610_v35, %v606_v63  ;;  %v11847_v45 = vld [vmem:[#allocation38_spill] sm:$0xff]  ;;  %v11850_v63 = vld [vmem:[#allocation31_spill] sm:$0xff] }
  0xa3   : > { %v615_v36 = vadd.f32 %v611_v50, %v607_v18  ;;  %v616_v54 = vadd.f32 %v612_v9, %v608_v16  ;;  %v714_v24 = vmul.f32 %v5845_v30, %v6008_v32  ;;  %v719_v1 = vmul.f32 %v5885_v62, %v6010_v42  ;;  %v11848_v50 = vld [vmem:[#allocation37_spill] sm:$0xff]  ;;  %v11849_v9 = vld [vmem:[#allocation39_spill] sm:$0xff]  ;;  %v11851_v16 = vld [vmem:[#allocation32_spill] sm:$0xff] }
  0xa4   : > { %v720_v37 = vmul.f32 %v5885_v62, %v6024_v48  ;;  %v721_v60 = vmul.f32 %v5885_v62, %v6026_v57  ;;  %v6276_v2 = vadd.f32 %v617_v27, %v613_v21  ;;  %v6278_v61 = vadd.f32 %v618_v28, %v614_v0  ;;  %v11852_v27 = vld [vmem:[#allocation36_spill] sm:$0xff] }
  0xa5   : > { %v6280_v20 = vadd.f32 %v619_v29, %v615_v36  ;;  %v6282_v13 = vadd.f32 %v620_v19, %v616_v54  ;;  %v718_v25 = vadd.f32 %v714_v24, %v5972_v22  ;;  %v722_v10 = vmul.f32 %v5885_v62, %v6028_v52 }
  0xa6   : > { %11843 = vst [vmem:[#allocation53_spill] sm:$0xff] %v6276_v2  ;;  %11844 = vst [vmem:[#allocation54_spill] sm:$0xff] %v6278_v61  ;;  %v723_v41 = vadd.f32 %v719_v1, %v5974_v40  ;;  %v724_v26 = vadd.f32 %v720_v37, %v5980_v49  ;;  %v769_v35 = vadd.f32 %v11847_v45, %v5986_v51  ;;  %v11853_v51 = vld [vmem:[#allocation42_spill] sm:$0xff] }
  0xa7   : > { %11845 = vst [vmem:[#allocation55_spill] sm:$0xff] %v6280_v20  ;;  %11846 = vst [vmem:[#allocation56_spill] sm:$0xff] %v6282_v13  ;;  %v770_v44 = vadd.f32 %v11849_v9, %v11848_v50  ;;  %v779_v18 = vmul.f32 %v5885_v62, %v11850_v63  ;;  %v780_v22 = vmul.f32 %v5885_v62, %v11851_v16 }
  0xa8   : > { %v725_v28 = vadd.f32 %v721_v60, %v11852_v27  ;;  %v726_v29 = vadd.f32 %v722_v10, %v718_v25  ;;  %v727_v40 = vmul.f32 %v6290_v34, %v6038_v46  ;;  %v728_v49 = vmul.f32 %v6290_v34, %v6040_v3 }
  0xa9   : > { %v729_v36 = vmul.f32 %v6290_v34, %v6042_v56  ;;  %v730_v54 = vmul.f32 %v6290_v34, %v6052_v15  ;;  %v735_v37 = vmul.f32 %v6103_v4, %v6054_v12  ;;  %v736_v60 = vmul.f32 %v6103_v4, %v6056_v11 }
  0xaa   : > { %v731_v24 = vadd.f32 %v727_v40, %v723_v41  ;;  %v732_v1 = vadd.f32 %v728_v49, %v724_v26  ;;  %v737_v25 = vmul.f32 %v6103_v4, %v6064_v58  ;;  %v738_v10 = vmul.f32 %v6103_v4, %v6066_v6  ;;  %v6330_v26 = vld [vmem:[%s5752_s13 + $0x3c] ss:$0 sm:$0xff] }
  0xab   : > { %v733_v45 = vadd.f32 %v729_v36, %v725_v28  ;;  %v734_v50 = vadd.f32 %v730_v54, %v726_v29  ;;  %v743_v9 = vmul.f32 %v6156_v43, %v6068_v5  ;;  %v744_v41 = vmul.f32 %v6156_v43, %v6076_v55 }
  0xac   : > { %v739_v27 = vadd.f32 %v735_v37, %v731_v24  ;;  %v740_v40 = vadd.f32 %v736_v60, %v732_v1  ;;  %v745_v49 = vmul.f32 %v6156_v43, %v6078_v14  ;;  %v746_v0 = vmul.f32 %v6156_v43, %v6080_v31 }
  0xad   : > { %v741_v21 = vadd.f32 %v737_v25, %v733_v45  ;;  %v742_v19 = vadd.f32 %v738_v10, %v734_v50  ;;  %v751_v28 = vmul.f32 %v6330_v26, %v6086_v59  ;;  %v752_v29 = vmul.f32 %v6330_v26, %v6088_v53  ;;  %v11854_v25 = vld [vmem:[#allocation40_spill] sm:$0xff]  ;;  %v11855_v45 = vld [vmem:[#allocation43_spill] sm:$0xff]  ;;  %v11856_v50 = vld [vmem:[#allocation41_spill] sm:$0xff] }
  0xae   : > { %v747_v36 = vadd.f32 %v743_v9, %v739_v27  ;;  %v748_v54 = vadd.f32 %v744_v41, %v740_v40  ;;  %v753_v24 = vmul.f32 %v6330_v26, %v6094_v17  ;;  %v754_v1 = vmul.f32 %v6330_v26, %v6096_v8  ;;  %v11857_v9 = vld [vmem:[#allocation44_spill] sm:$0xff]  ;;  %v11858_v27 = vld [vmem:[#allocation45_spill] sm:$0xff] }
  0xaf   : > { %v749_v37 = vadd.f32 %v745_v49, %v741_v21  ;;  %v750_v60 = vadd.f32 %v746_v0, %v742_v19  ;;  %v775_v10 = vadd.f32 %v11854_v25, %v11853_v51  ;;  %v776_v13 = vadd.f32 %v11856_v50, %v11855_v45  ;;  %v11859_v21 = vld [vmem:[#allocation33_spill] sm:$0xff] }
  0xb0   : > { %v6348_v47 = vadd.f32 %v751_v28, %v747_v36  ;;  %v6350_v20 = vadd.f32 %v752_v29, %v748_v54  ;;  %v777_v41 = vadd.f32 %v11857_v9, %v769_v35  ;;  %v778_v40 = vadd.f32 %v11858_v27, %v770_v44  ;;  %v6367_v29 = vld [vmem:[%s5752_s13 + $0x21] ss:$0 sm:$0xff] }
  0xb1   : > { %v6354_v7 = vadd.f32 %v753_v24, %v749_v37  ;;  %v6356_v61 = vadd.f32 %v754_v1, %v750_v60  ;;  %v781_v19 = vmul.f32 %v5885_v62, %v11859_v21  ;;  %v782_v51 = vmul.f32 %v5885_v62, %v6008_v32  ;;  %11860 = vst [vmem:[#allocation38_spill] sm:$0xff] %v6367_v29 }
  0xb2   : > { %v783_v0 = vadd.f32 %v779_v18, %v775_v10  ;;  %v784_v49 = vadd.f32 %v780_v22, %v776_v13  ;;  %v787_v28 = vmul.f32 %v6290_v34, %v6010_v42  ;;  %v788_v35 = vmul.f32 %v6290_v34, %v6024_v48 }
  0xb3   : > { %v785_v44 = vadd.f32 %v781_v19, %v777_v41  ;;  %v786_v36 = vadd.f32 %v782_v51, %v778_v40  ;;  %v789_v54 = vmul.f32 %v6290_v34, %v6026_v57  ;;  %v790_v24 = vmul.f32 %v6290_v34, %v6028_v52 }
  0xb4   : > { %v791_v1 = vadd.f32 %v787_v28, %v783_v0  ;;  %v792_v37 = vadd.f32 %v788_v35, %v784_v49  ;;  %v795_v13 = vmul.f32 %v6367_v29, %v6038_v46  ;;  %v796_v18 = vmul.f32 %v6367_v29, %v6040_v3 }
  0xb5   : > { %v793_v22 = vadd.f32 %v789_v54, %v785_v44  ;;  %v794_v60 = vadd.f32 %v790_v24, %v786_v36  ;;  %v797_v25 = vmul.f32 %v6367_v29, %v6042_v56  ;;  %v798_v10 = vmul.f32 %v6367_v29, %v6052_v15  ;;  %v6394_v44 = vld [vmem:[%s5752_s13 + $0x3d] ss:$0 sm:$0xff] }
  0xb6   : > { %v799_v45 = vadd.f32 %v795_v13, %v791_v1  ;;  %v800_v50 = vadd.f32 %v796_v18, %v792_v37  ;;  %v803_v9 = vmul.f32 %v6156_v43, %v6054_v12  ;;  %v804_v41 = vmul.f32 %v6156_v43, %v6056_v11 }
  0xb7   : > { %v801_v27 = vadd.f32 %v797_v25, %v793_v22  ;;  %v802_v40 = vadd.f32 %v798_v10, %v794_v60  ;;  %v805_v19 = vmul.f32 %v6156_v43, %v6064_v58  ;;  %v806_v51 = vmul.f32 %v6156_v43, %v6066_v6 }
  0xb8   : > { %v807_v0 = vadd.f32 %v803_v9, %v799_v45  ;;  %v808_v49 = vadd.f32 %v804_v41, %v800_v50  ;;  %v811_v28 = vmul.f32 %v6330_v26, %v6068_v5  ;;  %v812_v35 = vmul.f32 %v6330_v26, %v6076_v55  ;;  %v11861_v41 = vld [vmem:[#allocation19_spill] sm:$0xff] }
  0xb9   : > { %v809_v36 = vadd.f32 %v805_v19, %v801_v27  ;;  %v810_v54 = vadd.f32 %v806_v51, %v802_v40  ;;  %v813_v24 = vmul.f32 %v6330_v26, %v6078_v14  ;;  %v814_v1 = vmul.f32 %v6330_v26, %v6080_v31  ;;  %v11862_v40 = vld [vmem:[#allocation20_spill] sm:$0xff] }
  0xba   : > { %v815_v37 = vadd.f32 %v811_v28, %v807_v0  ;;  %v816_v13 = vadd.f32 %v812_v35, %v808_v49  ;;  %v819_v18 = vmul.f32 %v6394_v44, %v6086_v59  ;;  %v820_v22 = vmul.f32 %v6394_v44, %v6088_v53  ;;  %v11863_v49 = vld [vmem:[#allocation21_spill] sm:$0xff]  ;;  %v11864_v35 = vld [vmem:[#allocation22_spill] sm:$0xff] }
  0xbb   : > { %v817_v60 = vadd.f32 %v813_v24, %v809_v36  ;;  %v818_v25 = vadd.f32 %v814_v1, %v810_v54  ;;  %v821_v10 = vmul.f32 %v6394_v44, %v6094_v17  ;;  %v822_v45 = vmul.f32 %v6394_v44, %v6096_v8  ;;  %v11865_v1 = vld [vmem:[#allocation23_spill] sm:$0xff] }
  0xbc   : > { %v6408_v50 = vadd.f32 %v819_v18, %v815_v37  ;;  %v6410_v9 = vadd.f32 %v820_v22, %v816_v13  ;;  %v831_v27 = vmul.f32 %v5845_v30, %v11861_v41  ;;  %v832_v19 = vmul.f32 %v5845_v30, %v11862_v40  ;;  %v11866_v13 = vld [vmem:[#allocation24_spill] sm:$0xff]  ;;  %v11871_v22 = vld [vmem:[#allocation29_spill] sm:$0xff] }
  0xbd   : > { %v6416_v51 = vadd.f32 %v821_v10, %v817_v60  ;;  %v6418_v0 = vadd.f32 %v822_v45, %v818_v25  ;;  %v833_v28 = vmul.f32 %v5845_v30, %v11863_v49  ;;  %v834_v36 = vmul.f32 %v5845_v30, %v11864_v35  ;;  %v11867_v25 = vld [vmem:[#allocation25_spill] sm:$0xff]  ;;  %v11868_v10 = vld [vmem:[#allocation26_spill] sm:$0xff]  ;;  %v11869_v49 = vld [vmem:[#allocation27_spill] sm:$0xff] }
  0xbe   : > { %v835_v37 = vmul.f32 %v5885_v62, %v11865_v1  ;;  %v836_v18 = vmul.f32 %v5885_v62, %v11866_v13  ;;  %v837_v30 = vmul.f32 %v5885_v62, %v11867_v25  ;;  %v838_v45 = vmul.f32 %v5885_v62, %v11868_v10  ;;  %v11870_v1 = vld [vmem:[#allocation28_spill] sm:$0xff]  ;;  %v11872_v60 = vld [vmem:[#allocation30_spill] sm:$0xff] }
  0xbf   : > { %v843_v35 = vmul.f32 %v6290_v34, %v11869_v49  ;;  %v844_v13 = vmul.f32 %v6290_v34, %v11870_v1  ;;  %v845_v33 = vmul.f32 %v6290_v34, %v11871_v22  ;;  %v846_v2 = vmul.f32 %v6290_v34, %v11872_v60 }
  0xc0   : > { %v839_v41 = vadd.f32 %v835_v37, %v831_v27  ;;  %v840_v40 = vadd.f32 %v836_v18, %v832_v19  ;;  %v841_v24 = vadd.f32 %v837_v30, %v833_v28  ;;  %v842_v54 = vadd.f32 %v838_v45, %v834_v36 }
  0xc1   : > { %v851_v27 = vmul.f32 %v6103_v4, %v11850_v63  ;;  %v852_v19 = vmul.f32 %v6103_v4, %v11851_v16  ;;  %v853_v28 = vmul.f32 %v6103_v4, %v11859_v21  ;;  %v854_v36 = vmul.f32 %v6103_v4, %v6008_v32 }
  0xc2   : > { %v847_v25 = vadd.f32 %v843_v35, %v839_v41  ;;  %v848_v38 = vadd.f32 %v844_v13, %v840_v40  ;;  %v849_v37 = vadd.f32 %v845_v33, %v841_v24  ;;  %v850_v18 = vadd.f32 %v846_v2, %v842_v54 }
  0xc3   : > { %v859_v60 = vmul.f32 %v6156_v43, %v6010_v42  ;;  %v860_v10 = vmul.f32 %v6156_v43, %v6024_v48  ;;  %v861_v33 = vmul.f32 %v6156_v43, %v6026_v57  ;;  %v862_v2 = vmul.f32 %v6156_v43, %v6028_v52 }
  0xc4   : > { %v855_v22 = vadd.f32 %v851_v27, %v847_v25  ;;  %v856_v30 = vadd.f32 %v852_v19, %v848_v38  ;;  %v857_v63 = vadd.f32 %v853_v28, %v849_v37  ;;  %v858_v45 = vadd.f32 %v854_v36, %v850_v18 }
  0xc5   : > { %v867_v4 = vmul.f32 %v6330_v26, %v6038_v46  ;;  %v868_v38 = vmul.f32 %v6330_v26, %v6040_v3  ;;  %v869_v41 = vmul.f32 %v6330_v26, %v6042_v56  ;;  %v870_v40 = vmul.f32 %v6330_v26, %v6052_v15 }
  0xc6   : > { %v863_v16 = vadd.f32 %v859_v60, %v855_v22  ;;  %v864_v21 = vadd.f32 %v860_v10, %v856_v30  ;;  %v865_v54 = vadd.f32 %v861_v33, %v857_v63  ;;  %v866_v24 = vadd.f32 %v862_v2, %v858_v45  ;;  %v6485_v30 = vld [vmem:[%s5752_s13 + $0x58] ss:$0 sm:$0xff] }
  0xc7   : > { %v875_v1 = vmul.f32 %v6203_v23, %v6054_v12  ;;  %v876_v13 = vmul.f32 %v6203_v23, %v6056_v11  ;;  %v877_v19 = vmul.f32 %v6203_v23, %v6064_v58  ;;  %v878_v37 = vmul.f32 %v6203_v23, %v6066_v6  ;;  %11873 = vst [vmem:[#allocation37_spill] sm:$0xff] %v6485_v30 }
  0xc8   : > { %v871_v49 = vadd.f32 %v867_v4, %v863_v16  ;;  %v872_v35 = vadd.f32 %v868_v38, %v864_v21  ;;  %v873_v25 = vadd.f32 %v869_v41, %v865_v54  ;;  %v874_v27 = vadd.f32 %v870_v40, %v866_v24  ;;  %v6499_v40 = vld [vmem:[#allocation7] sm:$0xff] }
  0xc9   : > { %v883_v36 = vmul.f32 %v6258_v39, %v6068_v5  ;;  %v884_v22 = vmul.f32 %v6258_v39, %v6076_v55  ;;  %v885_v63 = vmul.f32 %v6258_v39, %v6078_v14  ;;  %v886_v45 = vmul.f32 %v6258_v39, %v6080_v31  ;;  %11874 = vst [vmem:[#allocation39_spill] sm:$0xff] %v6499_v40 }
  0xca   : > { %v879_v18 = vadd.f32 %v875_v1, %v871_v49  ;;  %v880_v28 = vadd.f32 %v876_v13, %v872_v35  ;;  %v881_v60 = vadd.f32 %v877_v19, %v873_v25  ;;  %v882_v10 = vadd.f32 %v878_v37, %v874_v27  ;;  %v6503_v35 = vld [vmem:[#allocation7 + $0x8] sm:$0xff]  ;;  %v6507_v27 = vld [vmem:[#allocation7 + $0x10] sm:$0xff]  ;;  %v6511_v37 = vld [vmem:[#allocation7 + $0x18] sm:$0xff] }
  0xcb   : > { %v891_v2 = vmul.f32 %v6485_v30, %v6086_v59  ;;  %v892_v16 = vmul.f32 %v6485_v30, %v6088_v53  ;;  %v893_v38 = vmul.f32 %v6485_v30, %v6094_v17  ;;  %v894_v54 = vmul.f32 %v6485_v30, %v6096_v8  ;;  %11875 = vst [vmem:[#allocation31_spill] sm:$0xff] %v6503_v35 }
  0xcc   : > { %v887_v33 = vadd.f32 %v883_v36, %v879_v18  ;;  %v888_v23 = vadd.f32 %v884_v22, %v880_v28  ;;  %v889_v21 = vadd.f32 %v885_v63, %v881_v60  ;;  %v890_v4 = vadd.f32 %v886_v45, %v882_v10  ;;  %11876 = vst [vmem:[#allocation32_spill] sm:$0xff] %v6507_v27  ;;  %v6525_v10 = vld [vmem:[#allocation7 + $0x20] sm:$0xff]  ;;  %v6529_v45 = vld [vmem:[#allocation7 + $0x28] sm:$0xff] }
  0xcd   : > { %v903_v49 = vmul.f32 %v6499_v40, %v5885_v62  ;;  %v904_v1 = vmul.f32 %v6503_v35, %v5885_v62  ;;  %v905_v19 = vmul.f32 %v6507_v27, %v5885_v62  ;;  %11877 = vst [vmem:[#allocation36_spill] sm:$0xff] %v6511_v37  ;;  %v906_v18 = vmul.f32 %v6511_v37, %v5885_v62 }
  0xce   : > { %v895_v24 = vadd.f32 %v891_v2, %v887_v33  ;;  %v896_v41 = vadd.f32 %v892_v16, %v888_v23  ;;  %v897_v13 = vadd.f32 %v893_v38, %v889_v21  ;;  %v898_v25 = vadd.f32 %v894_v54, %v890_v4  ;;  %11880 = vst [vmem:[#allocation42_spill] sm:$0xff] %v6525_v10  ;;  %v6543_v33 = vld [vmem:[#allocation7 + $0x30] sm:$0xff]  ;;  %v6547_v2 = vld [vmem:[#allocation7 + $0x38] sm:$0xff] }
  0xcf   : > { %v11878_v28 = vmax.f32 %v6348_v47, %v6408_v50  ;;  %v11879_v22 = vmax.f32 %v6350_v20, %v6410_v9  ;;  %v907_v63 = vmul.f32 %v6525_v10, %v6290_v34  ;;  %11881 = vst [vmem:[#allocation40_spill] sm:$0xff] %v6529_v45  ;;  %v908_v62 = vmul.f32 %v6529_v45, %v6290_v34 }
  0xd0   : > { %v11882_v47 = vmax.f32 %v6354_v7, %v6416_v51  ;;  %v11883_v20 = vmax.f32 %v6356_v61, %v6418_v0  ;;  %11884 = vst [vmem:[#allocation43_spill] sm:$0xff] %v6543_v33  ;;  %v909_v23 = vmul.f32 %v6543_v33, %v6290_v34  ;;  %11885 = vst [vmem:[#allocation41_spill] sm:$0xff] %v6547_v2  ;;  %v6551_v7 = vld [vmem:[#allocation7 + $0x40] sm:$0xff]  ;;  %v6555_v61 = vld [vmem:[#allocation7 + $0x48] sm:$0xff] }
  0xd1   : > { %v6518_v36 = vmax.f32 %v11878_v28, %v895_v24  ;;  %v6523_v60 = vmax.f32 %v11879_v22, %v896_v41  ;;  %v910_v16 = vmul.f32 %v6547_v2, %v6290_v34  ;;  %v911_v21 = vadd.f32 %v907_v63, %v903_v49  ;;  %v6559_v24 = vld [vmem:[#allocation7 + $0x50] sm:$0xff]  ;;  %v6567_v28 = vld [vmem:[#allocation7 + $0x60] sm:$0xff]  ;;  %v6571_v63 = vld [vmem:[#allocation7 + $0x68] sm:$0xff] }
  0xd2   : > { %v6536_v50 = vmax.f32 %v11882_v47, %v897_v13  ;;  %v6541_v9 = vmax.f32 %v11883_v20, %v898_v25  ;;  %v912_v4 = vadd.f32 %v908_v62, %v904_v1  ;;  %v915_v51 = vmul.f32 %v6551_v7, %v6367_v29  ;;  %v6563_v13 = vld [vmem:[#allocation7 + $0x58] sm:$0xff]  ;;  %11886 = vst [vmem:[#allocation44_spill] sm:$0xff] %v6567_v28  ;;  %v6575_v47 = vld [vmem:[#allocation7 + $0x70] sm:$0xff] }
  0xd3   : > { %v916_v0 = vmul.f32 %v6555_v61, %v6367_v29  ;;  %v913_v38 = vadd.f32 %v909_v23, %v905_v19  ;;  %v914_v54 = vadd.f32 %v910_v16, %v906_v18  ;;  %v917_v41 = vmul.f32 %v6559_v24, %v6367_v29  ;;  %11887 = vst [vmem:[#allocation45_spill] sm:$0xff] %v6571_v63 }
  0xd4   : > { %v918_v49 = vmul.f32 %v6563_v13, %v6367_v29  ;;  %v919_v1 = vadd.f32 %v915_v51, %v911_v21  ;;  %v923_v22 = vmul.f32 %v6567_v28, %v6156_v43  ;;  %v924_v19 = vmul.f32 %v6571_v63, %v6156_v43  ;;  %11888 = vst [vmem:[#allocation33_spill] sm:$0xff] %v6575_v47 }
  0xd5   : > { %v920_v25 = vadd.f32 %v916_v0, %v912_v4  ;;  %v921_v18 = vadd.f32 %v917_v41, %v913_v38  ;;  %v925_v20 = vmul.f32 %v6575_v47, %v6156_v43  ;;  %v926_v23 = vmul.f32 %v6156_v43, %v6008_v32 }
  0xd6   : > { %v922_v62 = vadd.f32 %v918_v49, %v914_v54  ;;  %v927_v16 = vadd.f32 %v923_v22, %v919_v1  ;;  %v931_v4 = vmul.f32 %v6330_v26, %v6010_v42  ;;  %v932_v51 = vmul.f32 %v6330_v26, %v6024_v48 }
  0xd7   : > { %v928_v21 = vadd.f32 %v924_v19, %v920_v25  ;;  %v929_v0 = vadd.f32 %v925_v20, %v921_v18  ;;  %v933_v54 = vmul.f32 %v6330_v26, %v6026_v57  ;;  %v934_v41 = vmul.f32 %v6330_v26, %v6028_v52 }
  0xd8   : > { %v930_v38 = vadd.f32 %v926_v23, %v922_v62  ;;  %v935_v49 = vadd.f32 %v931_v4, %v927_v16  ;;  %v939_v43 = vmul.f32 %v6394_v44, %v6038_v46  ;;  %v940_v1 = vmul.f32 %v6394_v44, %v6040_v3 }
  0xd9   : > { %v936_v29 = vadd.f32 %v932_v51, %v928_v21  ;;  %v937_v25 = vadd.f32 %v933_v54, %v929_v0  ;;  %v941_v19 = vmul.f32 %v6394_v44, %v6042_v56  ;;  %v942_v18 = vmul.f32 %v6394_v44, %v6052_v15 }
  0xda   : > { %v938_v22 = vadd.f32 %v934_v41, %v930_v38  ;;  %v943_v62 = vadd.f32 %v939_v43, %v935_v49  ;;  %v947_v23 = vmul.f32 %v6258_v39, %v6054_v12  ;;  %v948_v16 = vmul.f32 %v6258_v39, %v6056_v11  ;;  %v6611_v49 = vld [vmem:[%s5752_s13 + $0x59] ss:$0 sm:$0xff] }
  0xdb   : > { %v944_v20 = vadd.f32 %v940_v1, %v936_v29  ;;  %v945_v21 = vadd.f32 %v941_v19, %v937_v25  ;;  %v949_v51 = vmul.f32 %v6258_v39, %v6064_v58  ;;  %v950_v0 = vmul.f32 %v6258_v39, %v6066_v6  ;;  %11889 = vst [vmem:[#allocation19_spill] sm:$0xff] %v6611_v49 }
  0xdc   : > { %v946_v4 = vadd.f32 %v942_v18, %v938_v22  ;;  %v951_v38 = vadd.f32 %v947_v23, %v943_v62  ;;  %v955_v41 = vmul.f32 %v6485_v30, %v6068_v5  ;;  %v956_v29 = vmul.f32 %v6485_v30, %v6076_v55 }
  0xdd   : > { %v952_v54 = vadd.f32 %v948_v16, %v944_v20  ;;  %v953_v43 = vadd.f32 %v949_v51, %v945_v21  ;;  %v957_v25 = vmul.f32 %v6485_v30, %v6078_v14  ;;  %v958_v22 = vmul.f32 %v6485_v30, %v6080_v31 }
  0xde   : > { %v954_v1 = vadd.f32 %v950_v0, %v946_v4  ;;  %v959_v19 = vadd.f32 %v955_v41, %v951_v38  ;;  %v963_v18 = vmul.f32 %v6611_v49, %v6086_v59  ;;  %v964_v62 = vmul.f32 %v6611_v49, %v6088_v53  ;;  %v11890_v0 = vld [vmem:[#allocation34_spill] sm:$0xff]  ;;  %v631_v41 = vld [vmem:[%s6629_s15] sm:$0xff] }
  0xdf   : > { %v960_v39 = vadd.f32 %v956_v29, %v952_v54  ;;  %v961_v20 = vadd.f32 %v957_v25, %v953_v43  ;;  %v965_v16 = vmul.f32 %v6611_v49, %v6094_v17  ;;  %v966_v21 = vmul.f32 %v6611_v49, %v6096_v8  ;;  %v632_v29 = vld [vmem:[%s6629_s15 + $0x8] sm:$0xff]  ;;  %v11891_v49 = vld [vmem:[#allocation35_spill] sm:$0xff]  ;;  %v6666_v8 = vld [vmem:[%s5752_s13 + $0x6] ss:$0 sm:$0xff] }
  0xe0   : > { %v962_v23 = vadd.f32 %v958_v22, %v954_v1  ;;  %v967_v4 = vadd.f32 %v963_v18, %v959_v19  ;;  %v1037_v38 = vmul.f32 %v6499_v40, %v11890_v0  ;;  %v1038_v54 = vmul.f32 %v6503_v35, %v11890_v0  ;;  %v633_v19 = vld [vmem:[%s6629_s15 + $0x10] sm:$0xff]  ;;  %11900 = vst [vmem:[#allocation22_spill] sm:$0xff] %v6666_v8 }
  0xe1   : > { %v968_v51 = vadd.f32 %v964_v62, %v960_v39  ;;  %v969_v43 = vadd.f32 %v965_v16, %v961_v20  ;;  %v1039_v25 = vmul.f32 %v6507_v27, %v11890_v0  ;;  %v1040_v22 = vmul.f32 %v6511_v37, %v11890_v0  ;;  %v634_v39 = vld [vmem:[%s6629_s15 + $0x18] sm:$0xff]  ;;  %v5020_v0 = vld [vmem:[%s6629_s15 + $0x28] sm:$0xff] }
  0xe2   : > { %v970_v1 = vadd.f32 %v966_v21, %v962_v23  ;;  %v971_v18 = vmax.f32 %v6518_v36, %v967_v4  ;;  %v1041_v30 = vmul.f32 %v6525_v10, %v11891_v49  ;;  %v1042_v20 = vmul.f32 %v6529_v45, %v11891_v49  ;;  %v5019_v21 = vld [vmem:[%s6629_s15 + $0x20] sm:$0xff]  ;;  %v11896_v10 = vld [vmem:[#allocation50_spill] sm:$0xff]  ;;  %v11902_v17 = vld [vmem:[#allocation55_spill] sm:$0xff] }
  0xe3   : > { %v972_v62 = vmax.f32 %v6523_v60, %v968_v51  ;;  %v973_v23 = vmax.f32 %v6536_v50, %v969_v43  ;;  %v1043_v37 = vmul.f32 %v6543_v33, %v11891_v49  ;;  %v1044_v36 = vmul.f32 %v6547_v2, %v11891_v49  ;;  %v11892_v4 = vld [vmem:[#allocation49_spill] sm:$0xff]  ;;  %v11897_v35 = vld [vmem:[#allocation54_spill] sm:$0xff]  ;;  %v11901_v33 = vld [vmem:[#allocation51_spill] sm:$0xff] }
  0xe4   : > { %v974_v16 = vmax.f32 %v6541_v9, %v970_v1  ;;  %v11893_v60 = vld [vmem:[#allocation53_spill] sm:$0xff]  ;;  %v11898_v45 = vmax.f32 %v11896_v10, %v11897_v35  ;;  %v5021_v50 = vld [vmem:[%s6629_s15 + $0x30] sm:$0xff]  ;;  %v5022_v9 = vld [vmem:[%s6629_s15 + $0x38] sm:$0xff]  ;;  %v1045_v43 = vadd.f32 %v1041_v30, %v1037_v38  ;;  %v1046_v1 = vadd.f32 %v1042_v20, %v1038_v54 }
  0xe5   : > { %v11894_v51 = vmax.f32 %v11892_v4, %v11893_v60  ;;  %v11903_v53 = vmax.f32 %v11901_v33, %v11902_v17  ;;  %v11905_v2 = vld [vmem:[#allocation52_spill] sm:$0xff]  ;;  %v1048_v35 = vadd.f32 %v1044_v36, %v1040_v22  ;;  %v6678_v10 = vmul.f32 %v5019_v21, %v971_v18 }
  0xe6   : > { %v6661_v40 = vmul.f32 %v632_v29, %v11898_v45  ;;  %v11906_v4 = vld [vmem:[#allocation56_spill] sm:$0xff]  ;;  %v6680_v45 = vmul.f32 %v5020_v0, %v972_v62  ;;  %v1049_v30 = vmul.f32 %v6551_v7, %v6666_v8  ;;  %v1050_v38 = vmul.f32 %v6555_v61, %v6666_v8 }
  0xe7   : > { %v6656_v27 = vmul.f32 %v631_v41, %v11894_v51  ;;  %v6671_v49 = vmul.f32 %v633_v19, %v11903_v53  ;;  %v11907_v41 = vmax.f32 %v11905_v2, %v11906_v4  ;;  %v1047_v51 = vadd.f32 %v1043_v37, %v1039_v25  ;;  %11909 = vst [vmem:[#allocation25_spill] sm:$0xff] %v6678_v10  ;;  %v6707_v0 = vld [vmem:[%s5752_s13 + $0x22] ss:$0 sm:$0xff] }
  0xe8   : > { %11899 = vst [vmem:[#allocation21_spill] sm:$0xff] %v6661_v40  ;;  %11910 = vst [vmem:[#allocation26_spill] sm:$0xff] %v6680_v45  ;;  %v6686_v17 = vmul.f32 %v5021_v50, %v973_v23  ;;  %v6688_v53 = vmul.f32 %v5022_v9, %v974_v16  ;;  %v1051_v33 = vmul.f32 %v6559_v24, %v6666_v8  ;;  %v11913_v23 = vld [vmem:[#allocation38_spill] sm:$0xff]  ;;  %v6849_v40 = vld [vmem:[#allocation7 + $0xf0] sm:$0xff] }
  0xe9   : > { %11895 = vst [vmem:[#allocation20_spill] sm:$0xff] %v6656_v27  ;;  %11904 = vst [vmem:[#allocation23_spill] sm:$0xff] %v6671_v49  ;;  %v6676_v60 = vmul.f32 %v634_v39, %v11907_v41  ;;  %v1052_v37 = vmul.f32 %v6563_v13, %v6666_v8  ;;  %v1053_v2 = vadd.f32 %v1049_v30, %v1045_v43  ;;  %v6845_v49 = vld [vmem:[#allocation7 + $0xe8] sm:$0xff]  ;;  %v6853_v27 = vld [vmem:[#allocation7 + $0xf8] sm:$0xff] }
  0xea   : > { %11911 = vst [vmem:[#allocation27_spill] sm:$0xff] %v6686_v17  ;;  %11912 = vst [vmem:[#allocation28_spill] sm:$0xff] %v6688_v53  ;;  %v1054_v54 = vadd.f32 %v1050_v38, %v1046_v1  ;;  %v1057_v29 = vmul.f32 %v6567_v28, %v6290_v34  ;;  %v1058_v25 = vmul.f32 %v6571_v63, %v6290_v34 }
  0xeb   : > { %11908 = vst [vmem:[#allocation24_spill] sm:$0xff] %v6676_v60  ;;  %v1055_v22 = vadd.f32 %v1051_v33, %v1047_v51  ;;  %v1056_v19 = vadd.f32 %v1052_v37, %v1048_v35  ;;  %v1059_v39 = vmul.f32 %v6575_v47, %v6290_v34  ;;  %v1060_v18 = vmul.f32 %v6290_v34, %v6008_v32  ;;  %v6833_v60 = vld [vmem:[#allocation7 + $0xd0] sm:$0xff] }
  0xec   : > { %v1061_v62 = vadd.f32 %v1057_v29, %v1053_v2  ;;  %v1062_v20 = vadd.f32 %v1058_v25, %v1054_v54  ;;  %v1065_v16 = vmul.f32 %v11913_v23, %v6010_v42  ;;  %v1066_v21 = vmul.f32 %v11913_v23, %v6024_v48  ;;  %v6734_v54 = vld [vmem:[%s5752_s13 + $0x3e] ss:$0 sm:$0xff]  ;;  %11929 = vst [vmem:[#allocation49_spill] sm:$0xff] %v6833_v60 }
  0xed   : > { %v1063_v36 = vadd.f32 %v1059_v39, %v1055_v22  ;;  %v1064_v50 = vadd.f32 %v1060_v18, %v1056_v19  ;;  %v1067_v9 = vmul.f32 %v11913_v23, %v6026_v57  ;;  %v1068_v43 = vmul.f32 %v11913_v23, %v6028_v52  ;;  %11932 = vst [vmem:[#allocation54_spill] sm:$0xff] %v6845_v49 }
  0xee   : > { %v1069_v1 = vadd.f32 %v1065_v16, %v1061_v62  ;;  %v1070_v32 = vadd.f32 %v1066_v21, %v1062_v20  ;;  %v1073_v4 = vmul.f32 %v6707_v0, %v6038_v46  ;;  %v1074_v42 = vmul.f32 %v6707_v0, %v6040_v3  ;;  %v11915_v62 = vld [vmem:[#allocation47_spill] sm:$0xff]  ;;  %v11916_v16 = vld [vmem:[#allocation48_spill] sm:$0xff]  ;;  %11933 = vst [vmem:[#allocation51_spill] sm:$0xff] %v6849_v40 }
  0xef   : > { %v1071_v41 = vadd.f32 %v1067_v9, %v1063_v36  ;;  %v1072_v48 = vadd.f32 %v1068_v43, %v1064_v50  ;;  %v1075_v51 = vmul.f32 %v6707_v0, %v6042_v56  ;;  %v1076_v57 = vmul.f32 %v6707_v0, %v6052_v15  ;;  %v5219_v50 = vld [vmem:[%s5752_s13 + $0x5] ss:$0 sm:$0xff]  ;;  %v11918_v9 = vld [vmem:[#allocation39_spill] sm:$0xff]  ;;  %11934 = vst [vmem:[#allocation55_spill] sm:$0xff] %v6853_v27 }
  0xf0   : > { %v1077_v35 = vadd.f32 %v1073_v4, %v1069_v1  ;;  %v1078_v30 = vadd.f32 %v1074_v42, %v1070_v32  ;;  %v1081_v52 = vmul.f32 %v6330_v26, %v6054_v12  ;;  %v1082_v46 = vmul.f32 %v6330_v26, %v6056_v11  ;;  %v11919_v43 = vld [vmem:[#allocation31_spill] sm:$0xff]  ;;  %v11920_v42 = vld [vmem:[#allocation32_spill] sm:$0xff] }
  0xf1   : > { %v1079_v38 = vadd.f32 %v1075_v51, %v1071_v41  ;;  %v1080_v33 = vadd.f32 %v1076_v57, %v1072_v48  ;;  %v1083_v3 = vmul.f32 %v6330_v26, %v6064_v58  ;;  %v1084_v37 = vmul.f32 %v6330_v26, %v6066_v6  ;;  %v11921_v48 = vld [vmem:[#allocation36_spill] sm:$0xff]  ;;  %v11922_v57 = vld [vmem:[#allocation42_spill] sm:$0xff] }
  0xf2   : > { %v1085_v56 = vadd.f32 %v1081_v52, %v1077_v35  ;;  %v1086_v2 = vadd.f32 %v1082_v46, %v1078_v30  ;;  %v1089_v15 = vmul.f32 %v6394_v44, %v6068_v5  ;;  %v1090_v12 = vmul.f32 %v6394_v44, %v6076_v55  ;;  %v11914_v5 = vld [vmem:[#allocation46_spill] sm:$0xff]  ;;  %v11923_v30 = vld [vmem:[#allocation40_spill] sm:$0xff]  ;;  %v11924_v46 = vld [vmem:[#allocation43_spill] sm:$0xff] }
  0xf3   : > { %v1087_v11 = vadd.f32 %v1083_v3, %v1079_v38  ;;  %v1088_v29 = vadd.f32 %v1084_v37, %v1080_v33  ;;  %v1091_v58 = vmul.f32 %v6394_v44, %v6078_v14  ;;  %v1092_v6 = vmul.f32 %v6394_v44, %v6080_v31  ;;  %v6749_v14 = vld [vmem:[%s5752_s13 + $0x7] ss:$0 sm:$0xff] }
  0xf4   : > { %v1093_v25 = vadd.f32 %v1089_v15, %v1085_v56  ;;  %v1094_v22 = vadd.f32 %v1090_v12, %v1086_v2  ;;  %v1097_v19 = vmul.f32 %v6734_v54, %v6086_v59  ;;  %v1098_v39 = vmul.f32 %v6734_v54, %v11914_v5  ;;  %11917 = vst [vmem:[#allocation29_spill] sm:$0xff] %v6749_v14  ;;  %v11925_v33 = vld [vmem:[#allocation41_spill] sm:$0xff] }
  0xf5   : > { %v1095_v55 = vadd.f32 %v1091_v58, %v1087_v11  ;;  %v1096_v18 = vadd.f32 %v1092_v6, %v1088_v29  ;;  %v1099_v20 = vmul.f32 %v6734_v54, %v11915_v62  ;;  %v1100_v21 = vmul.f32 %v6734_v54, %v11916_v16 }
  0xf6   : > { %v6751_v36 = vadd.f32 %v1097_v19, %v1093_v25  ;;  %v6753_v31 = vadd.f32 %v1098_v39, %v1094_v22  ;;  %v1105_v59 = vmul.f32 %v5219_v50, %v11918_v9  ;;  %v1106_v1 = vmul.f32 %v5219_v50, %v11919_v43  ;;  %v6786_v19 = vld [vmem:[#allocation7 + $0x78] sm:$0xff] }
  0xf7   : > { %v6758_v32 = vadd.f32 %v1099_v20, %v1095_v55  ;;  %v6760_v4 = vadd.f32 %v1100_v21, %v1096_v18  ;;  %v1107_v41 = vmul.f32 %v5219_v50, %v11920_v42  ;;  %v1108_v51 = vmul.f32 %v5219_v50, %v11921_v48  ;;  %v6790_v20 = vld [vmem:[#allocation7 + $0x80] sm:$0xff]  ;;  %v6794_v21 = vld [vmem:[#allocation7 + $0x88] sm:$0xff] }
  0xf8   : > { %v1109_v35 = vmul.f32 %v11922_v57, %v6666_v8  ;;  %v1110_v52 = vmul.f32 %v11923_v30, %v6666_v8  ;;  %v1111_v38 = vmul.f32 %v11924_v46, %v6666_v8  ;;  %v1112_v3 = vmul.f32 %v11925_v33, %v6666_v8 }
  0xf9   : > { %v1117_v37 = vmul.f32 %v6551_v7, %v6749_v14  ;;  %v1118_v56 = vmul.f32 %v6555_v61, %v6749_v14  ;;  %v1119_v2 = vmul.f32 %v6559_v24, %v6749_v14  ;;  %v1120_v15 = vmul.f32 %v6563_v13, %v6749_v14  ;;  %v6864_v14 = vld [vmem:[#allocation7 + $0x108] sm:$0xff] }
  0xfa   : > { %v1113_v12 = vadd.f32 %v1109_v35, %v1105_v59  ;;  %v1114_v11 = vadd.f32 %v1110_v52, %v1106_v1  ;;  %v1115_v29 = vadd.f32 %v1111_v38, %v1107_v41  ;;  %v1116_v58 = vadd.f32 %v1112_v3, %v1108_v51  ;;  %v6798_v59 = vld [vmem:[#allocation7 + $0x90] sm:$0xff]  ;;  %v6802_v41 = vld [vmem:[#allocation7 + $0x98] sm:$0xff]  ;;  %11937 = vst [vmem:[#allocation38_spill] sm:$0xff] %v6864_v14 }
  0xfb   : > { %v1125_v6 = vmul.f32 %v6567_v28, %v11913_v23  ;;  %v1126_v25 = vmul.f32 %v6571_v63, %v11913_v23  ;;  %v1127_v22 = vmul.f32 %v6575_v47, %v11913_v23  ;;  %v1128_v5 = vmul.f32 %v6786_v19, %v11913_v23  ;;  %v6807_v35 = vld [vmem:[%s5752_s13 + $0x23] ss:$0 sm:$0xff] }
  0xfc   : > { %v1121_v39 = vadd.f32 %v1117_v37, %v1113_v12  ;;  %v1122_v55 = vadd.f32 %v1118_v56, %v1114_v11  ;;  %v1123_v18 = vadd.f32 %v1119_v2, %v1115_v29  ;;  %v1124_v62 = vadd.f32 %v1120_v15, %v1116_v58  ;;  %11926 = vst [vmem:[#allocation30_spill] sm:$0xff] %v6807_v35  ;;  %v6809_v56 = vld [vmem:[#allocation7 + $0xa0] sm:$0xff]  ;;  %v6813_v15 = vld [vmem:[#allocation7 + $0xa8] sm:$0xff]  ;;  %v6817_v11 = vld [vmem:[#allocation7 + $0xb0] sm:$0xff] }
  0xfd   : > { %v1133_v16 = vmul.f32 %v6790_v20, %v6707_v0  ;;  %v1134_v50 = vmul.f32 %v6794_v21, %v6707_v0  ;;  %v1135_v1 = vmul.f32 %v6798_v59, %v6707_v0  ;;  %v1136_v51 = vmul.f32 %v6802_v41, %v6707_v0  ;;  %v6821_v58 = vld [vmem:[#allocation7 + $0xb8] sm:$0xff] }
  0xfe   : > { %v1129_v52 = vadd.f32 %v1125_v6, %v1121_v39  ;;  %v1130_v38 = vadd.f32 %v1126_v25, %v1122_v55  ;;  %v1131_v3 = vadd.f32 %v1127_v22, %v1123_v18  ;;  %v1132_v37 = vadd.f32 %v1128_v5, %v1124_v62  ;;  %v6825_v55 = vld [vmem:[#allocation7 + $0xc0] sm:$0xff]  ;;  %v6829_v62 = vld [vmem:[#allocation7 + $0xc8] sm:$0xff] }
  0xff   : > { %v1141_v2 = vmul.f32 %v6809_v56, %v6807_v35  ;;  %v1142_v12 = vmul.f32 %v6813_v15, %v6807_v35  ;;  %v1143_v29 = vmul.f32 %v6817_v11, %v6807_v35  ;;  %v1144_v6 = vmul.f32 %v6821_v58, %v6807_v35  ;;  %11927 = vst [vmem:[#allocation34_spill] sm:$0xff] %v6825_v55  ;;  %v6868_v35 = vld [vmem:[#allocation7 + $0x110] sm:$0xff] }
 0x100   : > { %v1137_v25 = vadd.f32 %v1133_v16, %v1129_v52  ;;  %v1138_v22 = vadd.f32 %v1134_v50, %v1130_v38  ;;  %v1139_v5 = vadd.f32 %v1135_v1, %v1131_v3  ;;  %v1140_v39 = vadd.f32 %v1136_v51, %v1132_v37  ;;  %11928 = vst [vmem:[#allocation35_spill] sm:$0xff] %v6829_v62  ;;  %v6837_v16 = vld [vmem:[#allocation7 + $0xd8] sm:$0xff]  ;;  %v6841_v3 = vld [vmem:[#allocation7 + $0xe0] sm:$0xff] }
 0x101   : > { %v1149_v18 = vmul.f32 %v6825_v55, %v6394_v44  ;;  %v1150_v53 = vmul.f32 %v6829_v62, %v6394_v44  ;;  %v1151_v17 = vmul.f32 %v6833_v60, %v6394_v44  ;;  %11930 = vst [vmem:[#allocation53_spill] sm:$0xff] %v6837_v16  ;;  %v1152_v50 = vmul.f32 %v6837_v16, %v6394_v44 }
 0x102   : > { %v1145_v1 = vadd.f32 %v1141_v2, %v1137_v25  ;;  %v1146_v51 = vadd.f32 %v1142_v12, %v1138_v22  ;;  %v1147_v52 = vadd.f32 %v1143_v29, %v1139_v5  ;;  %v1148_v38 = vadd.f32 %v1144_v6, %v1140_v39  ;;  %11931 = vst [vmem:[#allocation50_spill] sm:$0xff] %v6841_v3  ;;  %v6858_v12 = vld [vmem:[%s5752_s13 + $0x3f] ss:$0 sm:$0xff]  ;;  %v6860_v5 = vld [vmem:[#allocation7 + $0x100] sm:$0xff] }
 0x103   : > { %v1157_v37 = vmul.f32 %v6841_v3, %v6734_v54  ;;  %v1158_v45 = vmul.f32 %v6845_v49, %v6734_v54  ;;  %v1159_v10 = vmul.f32 %v6849_v40, %v6734_v54  ;;  %v1160_v2 = vmul.f32 %v6853_v27, %v6734_v54  ;;  %11935 = vst [vmem:[#allocation52_spill] sm:$0xff] %v6858_v12  ;;  %v6872_v40 = vld [vmem:[#allocation7 + $0x118] sm:$0xff] }
 0x104   : > { %v1153_v29 = vadd.f32 %v1149_v18, %v1145_v1  ;;  %v1154_v6 = vadd.f32 %v1150_v53, %v1146_v51  ;;  %v1155_v25 = vadd.f32 %v1151_v17, %v1147_v52  ;;  %v1156_v22 = vadd.f32 %v1152_v50, %v1148_v38  ;;  %11936 = vst [vmem:[#allocation56_spill] sm:$0xff] %v6860_v5 }
 0x105   : > { %v1165_v39 = vmul.f32 %v6860_v5, %v6858_v12  ;;  %v1166_v8 = vmul.f32 %v6864_v14, %v6858_v12  ;;  %11938 = vst [vmem:[#allocation46_spill] sm:$0xff] %v6868_v35  ;;  %v1167_v27 = vmul.f32 %v6868_v35, %v6858_v12  ;;  %v1168_v17 = vmul.f32 %v6872_v40, %v6858_v12 }
 0x106   : > { %v1161_v53 = vadd.f32 %v1157_v37, %v1153_v29  ;;  %v1162_v18 = vadd.f32 %v1158_v45, %v1154_v6  ;;  %v1163_v50 = vadd.f32 %v1159_v10, %v1155_v25  ;;  %v1164_v1 = vadd.f32 %v1160_v2, %v1156_v22 }
 0x107   : > { %v1177_v51 = vmul.f32 %v11918_v9, %v6290_v34  ;;  %v1178_v52 = vmul.f32 %v11919_v43, %v6290_v34  ;;  %v1179_v38 = vmul.f32 %v11920_v42, %v6290_v34  ;;  %v1180_v35 = vmul.f32 %v11921_v48, %v6290_v34 }
 0x108   : > { %v6884_v14 = vadd.f32 %v1165_v39, %v1161_v53  ;;  %v6886_v5 = vadd.f32 %v1166_v8, %v1162_v18  ;;  %v6888_v37 = vadd.f32 %v1167_v27, %v1163_v50  ;;  %v6890_v10 = vadd.f32 %v1168_v17, %v1164_v1 }
 0x109   : > { %v1181_v45 = vmul.f32 %v11922_v57, %v11913_v23  ;;  %v1182_v2 = vmul.f32 %v11923_v30, %v11913_v23  ;;  %v1183_v29 = vmul.f32 %v11924_v46, %v11913_v23  ;;  %v1184_v34 = vmul.f32 %v11925_v33, %v11913_v23 }
 0x10a   : > { %v1189_v18 = vmul.f32 %v6551_v7, %v6707_v0  ;;  %v1190_v50 = vmul.f32 %v6555_v61, %v6707_v0  ;;  %v1191_v1 = vmul.f32 %v6559_v24, %v6707_v0  ;;  %v1192_v27 = vmul.f32 %v6563_v13, %v6707_v0 }
 0x10b   : > { %v1185_v22 = vadd.f32 %v1181_v45, %v1177_v51  ;;  %v1186_v39 = vadd.f32 %v1182_v2, %v1178_v52  ;;  %v1187_v17 = vadd.f32 %v1183_v29, %v1179_v38  ;;  %v1188_v53 = vadd.f32 %v1184_v34, %v1180_v35 }
 0x10c   : > { %v1197_v6 = vmul.f32 %v6567_v28, %v6330_v26  ;;  %v1198_v51 = vmul.f32 %v6571_v63, %v6330_v26  ;;  %v1199_v35 = vmul.f32 %v6575_v47, %v6330_v26  ;;  %v1200_v52 = vmul.f32 %v6786_v19, %v6330_v26 }
 0x10d   : > { %v1193_v38 = vadd.f32 %v1189_v18, %v1185_v22  ;;  %v1194_v45 = vadd.f32 %v1190_v50, %v1186_v39  ;;  %v1195_v2 = vadd.f32 %v1191_v1, %v1187_v17  ;;  %v1196_v29 = vadd.f32 %v1192_v27, %v1188_v53  ;;  %v11939_v1 = vld [vmem:[#allocation37_spill] sm:$0xff] }
 0x10e   : > { %v1205_v34 = vmul.f32 %v6790_v20, %v6394_v44  ;;  %v1206_v25 = vmul.f32 %v6794_v21, %v6394_v44  ;;  %v1207_v8 = vmul.f32 %v6798_v59, %v6394_v44  ;;  %v1208_v12 = vmul.f32 %v6802_v41, %v6394_v44 }
 0x10f   : > { %v1201_v47 = vadd.f32 %v1197_v6, %v1193_v38  ;;  %v1202_v63 = vadd.f32 %v1198_v51, %v1194_v45  ;;  %v1203_v28 = vadd.f32 %v1199_v35, %v1195_v2  ;;  %v1204_v26 = vadd.f32 %v1200_v52, %v1196_v29 }
 0x110   : > { %v1213_v22 = vmul.f32 %v6809_v56, %v6734_v54  ;;  %v1214_v27 = vmul.f32 %v6813_v15, %v6734_v54  ;;  %v1215_v39 = vmul.f32 %v6817_v11, %v6734_v54  ;;  %v1216_v17 = vmul.f32 %v6821_v58, %v6734_v54 }
 0x111   : > { %v1209_v53 = vadd.f32 %v1205_v34, %v1201_v47  ;;  %v1210_v18 = vadd.f32 %v1206_v25, %v1202_v63  ;;  %v1211_v50 = vadd.f32 %v1207_v8, %v1203_v28  ;;  %v1212_v6 = vadd.f32 %v1208_v12, %v1204_v26  ;;  %v11940_v34 = vld [vmem:[#allocation19_spill] sm:$0xff] }
 0x112   : > { %v1221_v51 = vmul.f32 %v6825_v55, %v11939_v1  ;;  %v1222_v35 = vmul.f32 %v6829_v62, %v11939_v1  ;;  %v1223_v52 = vmul.f32 %v6833_v60, %v11939_v1  ;;  %v1224_v38 = vmul.f32 %v6837_v16, %v11939_v1  ;;  %v11941_v12 = vld [vmem:[#allocation51_spill] sm:$0xff] }
 0x113   : > { %v1217_v45 = vadd.f32 %v1213_v22, %v1209_v53  ;;  %v1218_v2 = vadd.f32 %v1214_v27, %v1210_v18  ;;  %v1219_v29 = vadd.f32 %v1215_v39, %v1211_v50  ;;  %v1220_v47 = vadd.f32 %v1216_v17, %v1212_v6  ;;  %v11942_v25 = vld [vmem:[#allocation55_spill] sm:$0xff]  ;;  %v11944_v39 = vld [vmem:[#allocation56_spill] sm:$0xff]  ;;  %v11945_v53 = vld [vmem:[#allocation38_spill] sm:$0xff] }
 0x114   : > { %v1229_v28 = vmul.f32 %v6841_v3, %v11940_v34  ;;  %v1230_v63 = vmul.f32 %v6845_v49, %v11940_v34  ;;  %v1231_v8 = vmul.f32 %v11941_v12, %v11940_v34  ;;  %v1232_v26 = vmul.f32 %v11942_v25, %v11940_v34  ;;  %v6957_v60 = vld [vmem:[%s5752_s13 + $0x5a] ss:$0 sm:$0xff]  ;;  %v11946_v50 = vld [vmem:[#allocation46_spill] sm:$0xff] }
 0x115   : > { %11943 = vst [vmem:[#allocation47_spill] sm:$0xff] %v6957_v60  ;;  %v1225_v62 = vadd.f32 %v1221_v51, %v1217_v45  ;;  %v1226_v1 = vadd.f32 %v1222_v35, %v1218_v2  ;;  %v1227_v22 = vadd.f32 %v1223_v52, %v1219_v29  ;;  %v1228_v27 = vadd.f32 %v1224_v38, %v1220_v47 }
 0x116   : > { %v1237_v17 = vmul.f32 %v11944_v39, %v6957_v60  ;;  %v1238_v18 = vmul.f32 %v11945_v53, %v6957_v60  ;;  %v1239_v6 = vmul.f32 %v11946_v50, %v6957_v60  ;;  %v1240_v12 = vmul.f32 %v6872_v40, %v6957_v60 }
 0x117   : > { %v1233_v49 = vadd.f32 %v1229_v28, %v1225_v62  ;;  %v1234_v25 = vadd.f32 %v1230_v63, %v1226_v1  ;;  %v1235_v3 = vadd.f32 %v1231_v8, %v1227_v22  ;;  %v1236_v16 = vadd.f32 %v1232_v26, %v1228_v27 }
 0x118   : > { %v1249_v51 = vmul.f32 %v11918_v9, %v11913_v23  ;;  %v1250_v35 = vmul.f32 %v11919_v43, %v11913_v23  ;;  %v1251_v52 = vmul.f32 %v11920_v42, %v11913_v23  ;;  %v1252_v38 = vmul.f32 %v11921_v48, %v11913_v23 }
 0x119   : > { %v1241_v45 = vadd.f32 %v1237_v17, %v1233_v49  ;;  %v1242_v2 = vadd.f32 %v1238_v18, %v1234_v25  ;;  %v1243_v29 = vadd.f32 %v1239_v6, %v1235_v3  ;;  %v1244_v47 = vadd.f32 %v1240_v12, %v1236_v16  ;;  %v11951_v17 = vld [vmem:[#allocation30_spill] sm:$0xff] }
 0x11a   : > { %v1253_v62 = vmul.f32 %v11922_v57, %v6707_v0  ;;  %v1254_v28 = vmul.f32 %v11923_v30, %v6707_v0  ;;  %v1255_v63 = vmul.f32 %v11924_v46, %v6707_v0  ;;  %v1256_v8 = vmul.f32 %v11925_v33, %v6707_v0 }
 0x11b   : > { %v11947_v26 = vmax.f32 %v6751_v36, %v6884_v14  ;;  %v11948_v49 = vmax.f32 %v6753_v31, %v6886_v5  ;;  %v11949_v3 = vmax.f32 %v6758_v32, %v6888_v37  ;;  %v11950_v25 = vmax.f32 %v6760_v4, %v6890_v10  ;;  %v11952_v4 = vld [vmem:[#allocation44_spill] sm:$0xff]  ;;  %v11953_v10 = vld [vmem:[#allocation45_spill] sm:$0xff] }
 0x11c   : > { %v1257_v22 = vadd.f32 %v1253_v62, %v1249_v51  ;;  %v1258_v27 = vadd.f32 %v1254_v28, %v1250_v35  ;;  %v1259_v14 = vadd.f32 %v1255_v63, %v1251_v52  ;;  %v1260_v36 = vadd.f32 %v1256_v8, %v1252_v38  ;;  %v11954_v51 = vld [vmem:[#allocation33_spill] sm:$0xff] }
 0x11d   : > { %v6986_v23 = vmax.f32 %v11947_v26, %v1241_v45  ;;  %v6991_v16 = vmax.f32 %v11948_v49, %v1242_v2  ;;  %v6996_v12 = vmax.f32 %v11949_v3, %v1243_v29  ;;  %v7001_v1 = vmax.f32 %v11950_v25, %v1244_v47  ;;  %v11955_v3 = vld [vmem:[#allocation52_spill] sm:$0xff] }
 0x11e   : > { %v1261_v18 = vmul.f32 %v6551_v7, %v11951_v17  ;;  %v1262_v31 = vmul.f32 %v6555_v61, %v11951_v17  ;;  %v1263_v32 = vmul.f32 %v6559_v24, %v11951_v17  ;;  %v1264_v5 = vmul.f32 %v6563_v13, %v11951_v17 }
 0x11f   : > { %v1269_v37 = vmul.f32 %v11952_v4, %v6394_v44  ;;  %v1270_v6 = vmul.f32 %v11953_v10, %v6394_v44  ;;  %v1271_v35 = vmul.f32 %v11954_v51, %v6394_v44  ;;  %v1272_v52 = vmul.f32 %v6786_v19, %v6394_v44 }
 0x120   : > { %v1265_v38 = vadd.f32 %v1261_v18, %v1257_v22  ;;  %v1266_v45 = vadd.f32 %v1262_v31, %v1258_v27  ;;  %v1267_v2 = vadd.f32 %v1263_v32, %v1259_v14  ;;  %v1268_v29 = vadd.f32 %v1264_v5, %v1260_v36 }
 0x121   : > { %v1277_v47 = vmul.f32 %v6790_v20, %v6734_v54  ;;  %v1278_v62 = vmul.f32 %v6794_v21, %v6734_v54  ;;  %v1279_v28 = vmul.f32 %v6798_v59, %v6734_v54  ;;  %v1280_v63 = vmul.f32 %v6802_v41, %v6734_v54 }
 0x122   : > { %v1273_v8 = vadd.f32 %v1269_v37, %v1265_v38  ;;  %v1274_v26 = vadd.f32 %v1270_v6, %v1266_v45  ;;  %v1275_v49 = vadd.f32 %v1271_v35, %v1267_v2  ;;  %v1276_v44 = vadd.f32 %v1272_v52, %v1268_v29  ;;  %v11956_v37 = vld [vmem:[#allocation35_spill] sm:$0xff]  ;;  %v11957_v35 = vld [vmem:[#allocation49_spill] sm:$0xff] }
 0x123   : > { %v1285_v25 = vmul.f32 %v6809_v56, %v11955_v3  ;;  %v1286_v22 = vmul.f32 %v6813_v15, %v11955_v3  ;;  %v1287_v27 = vmul.f32 %v6817_v11, %v11955_v3  ;;  %v1288_v14 = vmul.f32 %v6821_v58, %v11955_v3  ;;  %v11958_v38 = vld [vmem:[#allocation53_spill] sm:$0xff] }
 0x124   : > { %v1281_v36 = vadd.f32 %v1277_v47, %v1273_v8  ;;  %v1282_v18 = vadd.f32 %v1278_v62, %v1274_v26  ;;  %v1283_v31 = vadd.f32 %v1279_v28, %v1275_v49  ;;  %v1284_v32 = vadd.f32 %v1280_v63, %v1276_v44  ;;  %v11959_v62 = vld [vmem:[#allocation50_spill] sm:$0xff]  ;;  %v11961_v26 = vld [vmem:[#allocation51_spill] sm:$0xff] }
 0x125   : > { %v1293_v5 = vmul.f32 %v6825_v55, %v11940_v34  ;;  %v1294_v6 = vmul.f32 %v11956_v37, %v11940_v34  ;;  %v1295_v52 = vmul.f32 %v11957_v35, %v11940_v34  ;;  %v1296_v45 = vmul.f32 %v11958_v38, %v11940_v34  ;;  %v11960_v63 = vld [vmem:[#allocation54_spill] sm:$0xff]  ;;  %v11962_v44 = vld [vmem:[#allocation55_spill] sm:$0xff] }
 0x126   : > { %v1289_v2 = vadd.f32 %v1285_v25, %v1281_v36  ;;  %v1290_v29 = vadd.f32 %v1286_v22, %v1282_v18  ;;  %v1291_v3 = vadd.f32 %v1287_v27, %v1283_v31  ;;  %v1292_v47 = vadd.f32 %v1288_v14, %v1284_v32  ;;  %v7052_v35 = vld [vmem:[%s5752_s13 + $0x5b] ss:$0 sm:$0xff] }
 0x127   : > { %v1301_v28 = vmul.f32 %v11959_v62, %v6957_v60  ;;  %v1302_v8 = vmul.f32 %v11960_v63, %v6957_v60  ;;  %v1303_v49 = vmul.f32 %v11961_v26, %v6957_v60  ;;  %v1304_v37 = vmul.f32 %v11962_v44, %v6957_v60  ;;  %11963 = vst [vmem:[#allocation48_spill] sm:$0xff] %v7052_v35 }
 0x128   : > { %v1297_v55 = vadd.f32 %v1293_v5, %v1289_v2  ;;  %v1298_v34 = vadd.f32 %v1294_v6, %v1290_v29  ;;  %v1299_v25 = vadd.f32 %v1295_v52, %v1291_v3  ;;  %v1300_v22 = vadd.f32 %v1296_v45, %v1292_v47  ;;  %v11964_v5 = vld [vmem:[#allocation22_spill] sm:$0xff]  ;;  %v11965_v47 = vld [vmem:[#allocation29_spill] sm:$0xff] }
 0x129   : > { %v1309_v27 = vmul.f32 %v11944_v39, %v7052_v35  ;;  %v1310_v14 = vmul.f32 %v11945_v53, %v7052_v35  ;;  %v1311_v36 = vmul.f32 %v11946_v50, %v7052_v35  ;;  %v1312_v18 = vmul.f32 %v6872_v40, %v7052_v35 }
 0x12a   : > { %v1305_v31 = vadd.f32 %v1301_v28, %v1297_v55  ;;  %v1306_v32 = vadd.f32 %v1302_v8, %v1298_v34  ;;  %v1307_v60 = vadd.f32 %v1303_v49, %v1299_v25  ;;  %v1308_v44 = vadd.f32 %v1304_v37, %v1300_v22 }
 0x12b   : > { %v1383_v3 = vmul.f32 %v11918_v9, %v11964_v5  ;;  %v1384_v6 = vmul.f32 %v11919_v43, %v11964_v5  ;;  %v1385_v52 = vmul.f32 %v11920_v42, %v11964_v5  ;;  %v1386_v45 = vmul.f32 %v11921_v48, %v11964_v5 }
 0x12c   : > { %v1313_v55 = vadd.f32 %v1309_v27, %v1305_v31  ;;  %v1314_v2 = vadd.f32 %v1310_v14, %v1306_v32  ;;  %v1315_v29 = vadd.f32 %v1311_v36, %v1307_v60  ;;  %v1316_v37 = vadd.f32 %v1312_v18, %v1308_v44  ;;  %v5031_v27 = vld [vmem:[%s6629_s15 + $0x40] sm:$0xff]  ;;  %v5032_v14 = vld [vmem:[%s6629_s15 + $0x48] sm:$0xff]  ;;  %v5033_v36 = vld [vmem:[%s6629_s15 + $0x50] sm:$0xff] }
 0x12d   : > { %v1387_v28 = vmul.f32 %v11922_v57, %v11965_v47  ;;  %v1388_v8 = vmul.f32 %v11923_v30, %v11965_v47  ;;  %v1389_v49 = vmul.f32 %v11924_v46, %v11965_v47  ;;  %v1390_v34 = vmul.f32 %v11925_v33, %v11965_v47  ;;  %v5034_v18 = vld [vmem:[%s6629_s15 + $0x58] sm:$0xff]  ;;  %v7087_v46 = vld [vmem:[%s5752_s13 + $0x8] ss:$0 sm:$0xff] }
 0x12e   : > { %v1317_v25 = vmax.f32 %v6986_v23, %v1313_v55  ;;  %v1318_v22 = vmax.f32 %v6991_v16, %v1314_v2  ;;  %v1319_v60 = vmax.f32 %v6996_v12, %v1315_v29  ;;  %v1320_v44 = vmax.f32 %v7001_v1, %v1316_v37  ;;  %11966 = vst [vmem:[#allocation39_spill] sm:$0xff] %v7087_v46  ;;  %v11967_v30 = vld [vmem:[#allocation20_spill] sm:$0xff]  ;;  %v11968_v33 = vld [vmem:[#allocation25_spill] sm:$0xff]  ;;  %v11971_v16 = vld [vmem:[#allocation26_spill] sm:$0xff] }
 0x12f   : > { %v1391_v31 = vadd.f32 %v1387_v28, %v1383_v3  ;;  %v1392_v32 = vadd.f32 %v1388_v8, %v1384_v6  ;;  %v1393_v5 = vadd.f32 %v1389_v49, %v1385_v52  ;;  %v1394_v35 = vadd.f32 %v1390_v34, %v1386_v45  ;;  %v11970_v23 = vld [vmem:[#allocation21_spill] sm:$0xff]  ;;  %v11973_v12 = vld [vmem:[#allocation23_spill] sm:$0xff]  ;;  %v11976_v29 = vld [vmem:[#allocation24_spill] sm:$0xff] }
 0x130   : > { %v7091_v57 = vadd.f32 %v11968_v33, %v11967_v30  ;;  %v7095_v55 = vadd.f32 %v11971_v16, %v11970_v23  ;;  %v11974_v1 = vld [vmem:[#allocation27_spill] sm:$0xff]  ;;  %v11977_v37 = vld [vmem:[#allocation28_spill] sm:$0xff]  ;;  %v1395_v6 = vmul.f32 %v6551_v7, %v7087_v46  ;;  %v1396_v52 = vmul.f32 %v6555_v61, %v7087_v46 }
 0x131   : > { %v7099_v2 = vadd.f32 %v11974_v1, %v11973_v12  ;;  %v7103_v3 = vadd.f32 %v11977_v37, %v11976_v29  ;;  %v1397_v30 = vmul.f32 %v6559_v24, %v7087_v46  ;;  %v1398_v33 = vmul.f32 %v6563_v13, %v7087_v46 }
 0x132   : > { %11969 = vst [vmem:[#allocation31_spill] sm:$0xff] %v7091_v57  ;;  %11972 = vst [vmem:[#allocation32_spill] sm:$0xff] %v7095_v55  ;;  %v7113_v45 = vmul.f32 %v5031_v27, %v1317_v25  ;;  %v7115_v28 = vmul.f32 %v5032_v14, %v1318_v22  ;;  %v7117_v8 = vmul.f32 %v5033_v36, %v1319_v60  ;;  %v7138_v14 = vld [vmem:[%s5752_s13 + $0x24] ss:$0 sm:$0xff] }
 0x133   : > { %11975 = vst [vmem:[#allocation36_spill] sm:$0xff] %v7099_v2  ;;  %11978 = vst [vmem:[#allocation37_spill] sm:$0xff] %v7103_v3  ;;  %v7119_v49 = vmul.f32 %v5034_v18, %v1320_v44  ;;  %v1399_v34 = vadd.f32 %v1395_v6, %v1391_v31  ;;  %v1400_v23 = vadd.f32 %v1396_v52, %v1392_v32 }
 0x134   : > { %11979 = vst [vmem:[#allocation19_spill] sm:$0xff] %v7113_v45  ;;  %11980 = vst [vmem:[#allocation56_spill] sm:$0xff] %v7115_v28  ;;  %v1401_v16 = vadd.f32 %v1397_v30, %v1393_v5  ;;  %v1402_v12 = vadd.f32 %v1398_v33, %v1394_v35  ;;  %v1403_v1 = vmul.f32 %v11952_v4, %v6707_v0 }
 0x135   : > { %11981 = vst [vmem:[#allocation38_spill] sm:$0xff] %v7117_v8  ;;  %11982 = vst [vmem:[#allocation46_spill] sm:$0xff] %v7119_v49  ;;  %v1404_v29 = vmul.f32 %v11953_v10, %v6707_v0  ;;  %v1405_v25 = vmul.f32 %v11954_v51, %v6707_v0  ;;  %v1406_v22 = vmul.f32 %v6786_v19, %v6707_v0 }
 0x136   : > { %v1411_v60 = vmul.f32 %v6790_v20, %v11951_v17  ;;  %v1412_v44 = vmul.f32 %v6794_v21, %v11951_v17  ;;  %v1413_v35 = vmul.f32 %v6798_v59, %v11951_v17  ;;  %v1414_v27 = vmul.f32 %v6802_v41, %v11951_v17  ;;  %11983 = vst [vmem:[#allocation30_spill] sm:$0xff] %v7138_v14 }
 0x137   : > { %v1407_v36 = vadd.f32 %v1403_v1, %v1399_v34  ;;  %v1408_v18 = vadd.f32 %v1404_v29, %v1400_v23  ;;  %v1409_v31 = vadd.f32 %v1405_v25, %v1401_v16  ;;  %v1410_v32 = vadd.f32 %v1406_v22, %v1402_v12  ;;  %v11984_v23 = vld [vmem:[#allocation34_spill] sm:$0xff]  ;;  %v11985_v12 = vld [vmem:[#allocation35_spill] sm:$0xff]  ;;  %v11986_v29 = vld [vmem:[#allocation49_spill] sm:$0xff] }
 0x138   : > { %v1419_v5 = vmul.f32 %v6809_v56, %v7138_v14  ;;  %v1420_v37 = vmul.f32 %v6813_v15, %v7138_v14  ;;  %v1421_v6 = vmul.f32 %v6817_v11, %v7138_v14  ;;  %v1422_v52 = vmul.f32 %v6821_v58, %v7138_v14 }
 0x139   : > { %v1415_v30 = vadd.f32 %v1411_v60, %v1407_v36  ;;  %v1416_v33 = vadd.f32 %v1412_v44, %v1408_v18  ;;  %v1417_v49 = vadd.f32 %v1413_v35, %v1409_v31  ;;  %v1418_v34 = vadd.f32 %v1414_v27, %v1410_v32  ;;  %v11987_v36 = vld [vmem:[#allocation52_spill] sm:$0xff]  ;;  %v11988_v18 = vld [vmem:[#allocation55_spill] sm:$0xff] }
 0x13a   : > { %v1427_v16 = vmul.f32 %v11984_v23, %v6734_v54  ;;  %v1428_v1 = vmul.f32 %v11985_v12, %v6734_v54  ;;  %v1429_v25 = vmul.f32 %v11986_v29, %v6734_v54  ;;  %v1430_v22 = vmul.f32 %v11958_v38, %v6734_v54  ;;  %v7165_v32 = vld [vmem:[%s5752_s13 + $0x40] ss:$0 sm:$0xff] }
 0x13b   : > { %v1423_v3 = vadd.f32 %v1419_v5, %v1415_v30  ;;  %v1424_v8 = vadd.f32 %v1420_v37, %v1416_v33  ;;  %v1425_v2 = vadd.f32 %v1421_v6, %v1417_v49  ;;  %v1426_v60 = vadd.f32 %v1422_v52, %v1418_v34  ;;  %11989 = vst [vmem:[#allocation44_spill] sm:$0xff] %v7165_v32 }
 0x13c   : > { %v1435_v44 = vmul.f32 %v11959_v62, %v11987_v36  ;;  %v1436_v35 = vmul.f32 %v11960_v63, %v11987_v36  ;;  %v1437_v27 = vmul.f32 %v11961_v26, %v11987_v36  ;;  %v1438_v31 = vmul.f32 %v11988_v18, %v11987_v36 }
 0x13d   : > { %v1431_v28 = vadd.f32 %v1427_v16, %v1423_v3  ;;  %v1432_v5 = vadd.f32 %v1428_v1, %v1424_v8  ;;  %v1433_v37 = vadd.f32 %v1429_v25, %v1425_v2  ;;  %v1434_v49 = vadd.f32 %v1430_v22, %v1426_v60  ;;  %v7176_v3 = vld [vmem:[%s5752_s13 + $0x9] ss:$0 sm:$0xff] }
 0x13e   : > { %v1443_v6 = vmul.f32 %v11944_v39, %v7165_v32  ;;  %v1444_v52 = vmul.f32 %v11945_v53, %v7165_v32  ;;  %v1445_v30 = vmul.f32 %v11946_v50, %v7165_v32  ;;  %v1446_v33 = vmul.f32 %v6872_v40, %v7165_v32  ;;  %11990 = vst [vmem:[#allocation45_spill] sm:$0xff] %v7176_v3 }
 0x13f   : > { %v1439_v34 = vadd.f32 %v1435_v44, %v1431_v28  ;;  %v1440_v55 = vadd.f32 %v1436_v35, %v1432_v5  ;;  %v1441_v45 = vadd.f32 %v1437_v27, %v1433_v37  ;;  %v1442_v57 = vadd.f32 %v1438_v31, %v1434_v49  ;;  %v11991_v44 = vld [vmem:[#allocation42_spill] sm:$0xff]  ;;  %v11992_v35 = vld [vmem:[#allocation40_spill] sm:$0xff]  ;;  %v11993_v27 = vld [vmem:[#allocation43_spill] sm:$0xff] }
 0x140   : > { %v1451_v2 = vmul.f32 %v11918_v9, %v11965_v47  ;;  %v1452_v8 = vmul.f32 %v11919_v43, %v11965_v47  ;;  %v1453_v16 = vmul.f32 %v11920_v42, %v11965_v47  ;;  %v1454_v1 = vmul.f32 %v11921_v48, %v11965_v47  ;;  %v11994_v31 = vld [vmem:[#allocation41_spill] sm:$0xff] }
 0x141   : > { %v7186_v25 = vadd.f32 %v1443_v6, %v1439_v34  ;;  %v7188_v28 = vadd.f32 %v1444_v52, %v1440_v55  ;;  %v7190_v22 = vadd.f32 %v1445_v30, %v1441_v45  ;;  %v7192_v60 = vadd.f32 %v1446_v33, %v1442_v57 }
 0x142   : > { %v1455_v9 = vmul.f32 %v11991_v44, %v7087_v46  ;;  %v1456_v43 = vmul.f32 %v11992_v35, %v7087_v46  ;;  %v1457_v42 = vmul.f32 %v11993_v27, %v7087_v46  ;;  %v1458_v48 = vmul.f32 %v11994_v31, %v7087_v46 }
 0x143   : > { %v1463_v47 = vmul.f32 %v6551_v7, %v7176_v3  ;;  %v1464_v55 = vmul.f32 %v6555_v61, %v7176_v3  ;;  %v1465_v57 = vmul.f32 %v6559_v24, %v7176_v3  ;;  %v1466_v45 = vmul.f32 %v6563_v13, %v7176_v3  ;;  %v7316_v3 = vld [vmem:[#allocation7 + $0x48] sm:$0xff] }
 0x144   : > { %v1459_v5 = vadd.f32 %v1455_v9, %v1451_v2  ;;  %v1460_v37 = vadd.f32 %v1456_v43, %v1452_v8  ;;  %v1461_v49 = vadd.f32 %v1457_v42, %v1453_v16  ;;  %v1462_v6 = vadd.f32 %v1458_v48, %v1454_v1  ;;  %11999 = vst [vmem:[#allocation22_spill] sm:$0xff] %v7316_v3 }
 0x145   : > { %v1471_v52 = vmul.f32 %v11952_v4, %v11951_v17  ;;  %v1472_v7 = vmul.f32 %v11953_v10, %v11951_v17  ;;  %v1473_v61 = vmul.f32 %v11954_v51, %v11951_v17  ;;  %v1474_v24 = vmul.f32 %v6786_v19, %v11951_v17  ;;  %v7227_v51 = vld [vmem:[%s5752_s13 + $0x25] ss:$0 sm:$0xff] }
 0x146   : > { %v1467_v30 = vadd.f32 %v1463_v47, %v1459_v5  ;;  %v1468_v33 = vadd.f32 %v1464_v55, %v1460_v37  ;;  %v1469_v13 = vadd.f32 %v1465_v57, %v1461_v49  ;;  %v1470_v34 = vadd.f32 %v1466_v45, %v1462_v6  ;;  %11995 = vst [vmem:[#allocation33_spill] sm:$0xff] %v7227_v51 }
 0x147   : > { %v1479_v2 = vmul.f32 %v6790_v20, %v7138_v14  ;;  %v1480_v8 = vmul.f32 %v6794_v21, %v7138_v14  ;;  %v1481_v4 = vmul.f32 %v6798_v59, %v7138_v14  ;;  %v1482_v10 = vmul.f32 %v6802_v41, %v7138_v14 }
 0x148   : > { %v1475_v16 = vadd.f32 %v1471_v52, %v1467_v30  ;;  %v1476_v1 = vadd.f32 %v1472_v7, %v1468_v33  ;;  %v1477_v44 = vadd.f32 %v1473_v61, %v1469_v13  ;;  %v1478_v9 = vadd.f32 %v1474_v24, %v1470_v34  ;;  %v7254_v13 = vld [vmem:[%s5752_s13 + $0x41] ss:$0 sm:$0xff] }
 0x149   : > { %v1487_v35 = vmul.f32 %v6809_v56, %v7227_v51  ;;  %v1488_v43 = vmul.f32 %v6813_v15, %v7227_v51  ;;  %v1489_v27 = vmul.f32 %v6817_v11, %v7227_v51  ;;  %v1490_v42 = vmul.f32 %v6821_v58, %v7227_v51  ;;  %11996 = vst [vmem:[#allocation53_spill] sm:$0xff] %v7254_v13 }
 0x14a   : > { %v1483_v31 = vadd.f32 %v1479_v2, %v1475_v16  ;;  %v1484_v48 = vadd.f32 %v1480_v8, %v1476_v1  ;;  %v1485_v47 = vadd.f32 %v1481_v4, %v1477_v44  ;;  %v1486_v55 = vadd.f32 %v1482_v10, %v1478_v9 }
 0x14b   : > { %v1495_v57 = vmul.f32 %v11984_v23, %v11987_v36  ;;  %v1496_v45 = vmul.f32 %v11985_v12, %v11987_v36  ;;  %v1497_v5 = vmul.f32 %v11986_v29, %v11987_v36  ;;  %v1498_v37 = vmul.f32 %v11958_v38, %v11987_v36 }
 0x14c   : > { %v1491_v49 = vadd.f32 %v1487_v35, %v1483_v31  ;;  %v1492_v6 = vadd.f32 %v1488_v43, %v1484_v48  ;;  %v1493_v52 = vadd.f32 %v1489_v27, %v1485_v47  ;;  %v1494_v7 = vadd.f32 %v1490_v42, %v1486_v55  ;;  %v7264_v42 = vld [vmem:[#allocation7] sm:$0xff]  ;;  %v7268_v48 = vld [vmem:[#allocation7 + $0x8] sm:$0xff]  ;;  %v7272_v55 = vld [vmem:[#allocation7 + $0x10] sm:$0xff] }
 0x14d   : > { %v1503_v61 = vmul.f32 %v11959_v62, %v7165_v32  ;;  %v1504_v24 = vmul.f32 %v11960_v63, %v7165_v32  ;;  %v1505_v30 = vmul.f32 %v11961_v26, %v7165_v32  ;;  %v1506_v33 = vmul.f32 %v11988_v18, %v7165_v32 }
 0x14e   : > { %v1499_v34 = vadd.f32 %v1495_v57, %v1491_v49  ;;  %v1500_v2 = vadd.f32 %v1496_v45, %v1492_v6  ;;  %v1501_v8 = vadd.f32 %v1497_v5, %v1493_v52  ;;  %v1502_v4 = vadd.f32 %v1498_v37, %v1494_v7  ;;  %v7276_v45 = vld [vmem:[#allocation7 + $0x18] sm:$0xff]  ;;  %v7288_v7 = vld [vmem:[#allocation7 + $0x20] sm:$0xff] }
 0x14f   : > { %v1511_v10 = vmul.f32 %v11944_v39, %v7254_v13  ;;  %v1512_v16 = vmul.f32 %v11945_v53, %v7254_v13  ;;  %v1513_v1 = vmul.f32 %v11946_v50, %v7254_v13  ;;  %v1514_v44 = vmul.f32 %v6872_v40, %v7254_v13 }
 0x150   : > { %v1507_v9 = vadd.f32 %v1503_v61, %v1499_v34  ;;  %v1508_v35 = vadd.f32 %v1504_v24, %v1500_v2  ;;  %v1509_v43 = vadd.f32 %v1505_v30, %v1501_v8  ;;  %v1510_v27 = vadd.f32 %v1506_v33, %v1502_v4  ;;  %v7292_v24 = vld [vmem:[#allocation7 + $0x28] sm:$0xff]  ;;  %v7296_v33 = vld [vmem:[#allocation7 + $0x30] sm:$0xff]  ;;  %v7300_v34 = vld [vmem:[#allocation7 + $0x38] sm:$0xff] }
 0x151   : > { %v1523_v31 = vmul.f32 %v7264_v42, %v6707_v0  ;;  %v1524_v47 = vmul.f32 %v7268_v48, %v6707_v0  ;;  %v1525_v57 = vmul.f32 %v7272_v55, %v6707_v0  ;;  %v1526_v5 = vmul.f32 %v7276_v45, %v6707_v0  ;;  %v7320_v8 = vld [vmem:[#allocation7 + $0x50] sm:$0xff] }
 0x152   : > { %v7280_v37 = vadd.f32 %v1511_v10, %v1507_v9  ;;  %v7282_v49 = vadd.f32 %v1512_v16, %v1508_v35  ;;  %v7284_v6 = vadd.f32 %v1513_v1, %v1509_v43  ;;  %v7286_v52 = vadd.f32 %v1514_v44, %v1510_v27  ;;  %v7312_v43 = vld [vmem:[#allocation7 + $0x40] sm:$0xff]  ;;  %12000 = vst [vmem:[#allocation29_spill] sm:$0xff] %v7320_v8  ;;  %v7324_v16 = vld [vmem:[#allocation7 + $0x58] sm:$0xff] }
 0x153   : > { %v1527_v61 = vmul.f32 %v7288_v7, %v11951_v17  ;;  %v1528_v30 = vmul.f32 %v7292_v24, %v11951_v17  ;;  %v1529_v0 = vmul.f32 %v7296_v33, %v11951_v17  ;;  %v1530_v2 = vmul.f32 %v7300_v34, %v11951_v17  ;;  %11998 = vst [vmem:[#allocation54_spill] sm:$0xff] %v7312_v43 }
 0x154   : > { %11997 = vst [vmem:[#allocation50_spill] sm:$0xff] %v7286_v52  ;;  %v1535_v27 = vmul.f32 %v7312_v43, %v7138_v14  ;;  %v1536_v4 = vmul.f32 %v7316_v3, %v7138_v14  ;;  %v1537_v10 = vmul.f32 %v7320_v8, %v7138_v14  ;;  %12001 = vst [vmem:[#allocation20_spill] sm:$0xff] %v7324_v16 }
 0x155   : > { %v1531_v1 = vadd.f32 %v1527_v61, %v1523_v31  ;;  %v1532_v44 = vadd.f32 %v1528_v30, %v1524_v47  ;;  %v1533_v9 = vadd.f32 %v1529_v0, %v1525_v57  ;;  %v1534_v35 = vadd.f32 %v1530_v2, %v1526_v5  ;;  %v7328_v47 = vld [vmem:[#allocation7 + $0x60] sm:$0xff]  ;;  %v7332_v5 = vld [vmem:[#allocation7 + $0x68] sm:$0xff]  ;;  %v7336_v30 = vld [vmem:[#allocation7 + $0x70] sm:$0xff] }
 0x156   : > { %v1538_v31 = vmul.f32 %v7324_v16, %v7138_v14  ;;  %12002 = vst [vmem:[#allocation25_spill] sm:$0xff] %v7328_v47  ;;  %v1543_v57 = vmul.f32 %v7328_v47, %v6734_v54  ;;  %12003 = vst [vmem:[#allocation21_spill] sm:$0xff] %v7332_v5  ;;  %v1544_v61 = vmul.f32 %v7332_v5, %v6734_v54 }
 0x157   : > { %12004 = vst [vmem:[#allocation26_spill] sm:$0xff] %v7336_v30  ;;  %v1545_v0 = vmul.f32 %v7336_v30, %v6734_v54  ;;  %v1546_v2 = vmul.f32 %v6786_v19, %v6734_v54  ;;  %v1539_v46 = vadd.f32 %v1535_v27, %v1531_v1  ;;  %v1540_v13 = vadd.f32 %v1536_v4, %v1532_v44 }
 0x158   : > { %v1541_v16 = vadd.f32 %v1537_v10, %v1533_v9  ;;  %v1542_v8 = vadd.f32 %v1538_v31, %v1534_v35  ;;  %v1551_v47 = vmul.f32 %v6790_v20, %v11987_v36  ;;  %v1552_v3 = vmul.f32 %v6794_v21, %v11987_v36 }
 0x159   : > { %v1553_v5 = vmul.f32 %v6798_v59, %v11987_v36  ;;  %v1554_v43 = vmul.f32 %v6802_v41, %v11987_v36  ;;  %v1547_v30 = vadd.f32 %v1543_v57, %v1539_v46  ;;  %v1548_v51 = vadd.f32 %v1544_v61, %v1540_v13  ;;  %v12005_v13 = vld [vmem:[#allocation47_spill] sm:$0xff] }
 0x15a   : > { %v1549_v52 = vadd.f32 %v1545_v0, %v1541_v16  ;;  %v1550_v54 = vadd.f32 %v1546_v2, %v1542_v8  ;;  %v1559_v4 = vmul.f32 %v6809_v56, %v7165_v32  ;;  %v1560_v10 = vmul.f32 %v6813_v15, %v7165_v32 }
 0x15b   : > { %v1561_v1 = vmul.f32 %v6817_v11, %v7165_v32  ;;  %v1562_v44 = vmul.f32 %v6821_v58, %v7165_v32  ;;  %v1555_v9 = vadd.f32 %v1551_v47, %v1547_v30  ;;  %v1556_v35 = vadd.f32 %v1552_v3, %v1548_v51  ;;  %v12006_v30 = vld [vmem:[#allocation48_spill] sm:$0xff] }
 0x15c   : > { %v1557_v27 = vadd.f32 %v1553_v5, %v1549_v52  ;;  %v1558_v46 = vadd.f32 %v1554_v43, %v1550_v54  ;;  %v1567_v8 = vmul.f32 %v11984_v23, %v12005_v13  ;;  %v1568_v16 = vmul.f32 %v11985_v12, %v12005_v13  ;;  %v7375_v5 = vld [vmem:[%s5752_s13 + $0x5c] ss:$0 sm:$0xff] }
 0x15d   : > { %v1569_v31 = vmul.f32 %v11986_v29, %v12005_v13  ;;  %v1570_v57 = vmul.f32 %v11958_v38, %v12005_v13  ;;  %v1563_v61 = vadd.f32 %v1559_v4, %v1555_v9  ;;  %v1564_v0 = vadd.f32 %v1560_v10, %v1556_v35  ;;  %12007 = vst [vmem:[#allocation23_spill] sm:$0xff] %v7375_v5 }
 0x15e   : > { %v1565_v2 = vadd.f32 %v1561_v1, %v1557_v27  ;;  %v1566_v47 = vadd.f32 %v1562_v44, %v1558_v46  ;;  %v1575_v3 = vmul.f32 %v11959_v62, %v12006_v30  ;;  %v1576_v51 = vmul.f32 %v11960_v63, %v12006_v30 }
 0x15f   : > { %v1577_v52 = vmul.f32 %v11961_v26, %v12006_v30  ;;  %v1578_v43 = vmul.f32 %v11988_v18, %v12006_v30  ;;  %v1571_v54 = vadd.f32 %v1567_v8, %v1563_v61  ;;  %v1572_v13 = vadd.f32 %v1568_v16, %v1564_v0 }
 0x160   : > { %v1573_v4 = vadd.f32 %v1569_v31, %v1565_v2  ;;  %v1574_v10 = vadd.f32 %v1570_v57, %v1566_v47  ;;  %v1583_v1 = vmul.f32 %v11944_v39, %v7375_v5  ;;  %v1584_v44 = vmul.f32 %v11945_v53, %v7375_v5 }
 0x161   : > { %v1585_v9 = vmul.f32 %v11946_v50, %v7375_v5  ;;  %v1586_v35 = vmul.f32 %v6872_v40, %v7375_v5  ;;  %v1579_v27 = vadd.f32 %v1575_v3, %v1571_v54  ;;  %v1580_v46 = vadd.f32 %v1576_v51, %v1572_v13 }
 0x162   : > { %v1581_v18 = vadd.f32 %v1577_v52, %v1573_v4  ;;  %v1582_v26 = vadd.f32 %v1578_v43, %v1574_v10  ;;  %v1595_v8 = vmul.f32 %v7264_v42, %v11951_v17  ;;  %v1596_v16 = vmul.f32 %v7268_v48, %v11951_v17  ;;  %v12011_v10 = vld [vmem:[#allocation50_spill] sm:$0xff] }
 0x163   : > { %v1597_v31 = vmul.f32 %v7272_v55, %v11951_v17  ;;  %v1598_v57 = vmul.f32 %v7276_v45, %v11951_v17  ;;  %v1587_v61 = vadd.f32 %v1583_v1, %v1579_v27  ;;  %v1588_v0 = vadd.f32 %v1584_v44, %v1580_v46  ;;  %v12013_v27 = vld [vmem:[#allocation33_spill] sm:$0xff]  ;;  %v12014_v46 = vld [vmem:[#allocation54_spill] sm:$0xff] }
 0x164   : > { %v1589_v2 = vadd.f32 %v1585_v9, %v1581_v18  ;;  %v1590_v47 = vadd.f32 %v1586_v35, %v1582_v26  ;;  %v1599_v3 = vmul.f32 %v7288_v7, %v7138_v14  ;;  %v1600_v51 = vmul.f32 %v7292_v24, %v7138_v14 }
 0x165   : > { %v1601_v52 = vmul.f32 %v7296_v33, %v7138_v14  ;;  %v1602_v43 = vmul.f32 %v7300_v34, %v7138_v14  ;;  %v12008_v54 = vmax.f32 %v7186_v25, %v7280_v37  ;;  %v12009_v26 = vmax.f32 %v7188_v28, %v7282_v49  ;;  %v12015_v28 = vld [vmem:[#allocation22_spill] sm:$0xff] }
 0x166   : > { %v12010_v13 = vmax.f32 %v7190_v22, %v7284_v6  ;;  %v12012_v1 = vmax.f32 %v7192_v60, %v12011_v10  ;;  %v1603_v9 = vadd.f32 %v1599_v3, %v1595_v8  ;;  %v1604_v35 = vadd.f32 %v1600_v51, %v1596_v16  ;;  %v12017_v6 = vld [vmem:[#allocation20_spill] sm:$0xff]  ;;  %v12018_v60 = vld [vmem:[#allocation25_spill] sm:$0xff] }
 0x167   : > { %v7404_v17 = vmax.f32 %v12008_v54, %v1587_v61  ;;  %v7409_v18 = vmax.f32 %v12009_v26, %v1588_v0  ;;  %v1605_v25 = vadd.f32 %v1601_v52, %v1597_v31  ;;  %v1606_v37 = vadd.f32 %v1602_v43, %v1598_v57  ;;  %v12016_v0 = vld [vmem:[#allocation29_spill] sm:$0xff]  ;;  %v12020_v31 = vld [vmem:[#allocation26_spill] sm:$0xff] }
 0x168   : > { %v7414_v4 = vmax.f32 %v12010_v13, %v1589_v2  ;;  %v7419_v44 = vmax.f32 %v12012_v1, %v1590_v47  ;;  %v1607_v61 = vmul.f32 %v12014_v46, %v12013_v27  ;;  %v1608_v49 = vmul.f32 %v12015_v28, %v12013_v27  ;;  %v12019_v8 = vld [vmem:[#allocation21_spill] sm:$0xff] }
 0x169   : > { %v1609_v22 = vmul.f32 %v12016_v0, %v12013_v27  ;;  %v1610_v2 = vmul.f32 %v12017_v6, %v12013_v27  ;;  %v1615_v47 = vmul.f32 %v12018_v60, %v11987_v36  ;;  %v1616_v16 = vmul.f32 %v12019_v8, %v11987_v36 }
 0x16a   : > { %v1617_v57 = vmul.f32 %v12020_v31, %v11987_v36  ;;  %v1618_v3 = vmul.f32 %v6786_v19, %v11987_v36  ;;  %v1611_v51 = vadd.f32 %v1607_v61, %v1603_v9  ;;  %v1612_v52 = vadd.f32 %v1608_v49, %v1604_v35  ;;  %v12021_v36 = vld [vmem:[#allocation53_spill] sm:$0xff] }
 0x16b   : > { %v1613_v43 = vadd.f32 %v1609_v22, %v1605_v25  ;;  %v1614_v54 = vadd.f32 %v1610_v2, %v1606_v37  ;;  %v1623_v26 = vmul.f32 %v6790_v20, %v7165_v32  ;;  %v1624_v13 = vmul.f32 %v6794_v21, %v7165_v32 }
 0x16c   : > { %v1625_v10 = vmul.f32 %v6798_v59, %v7165_v32  ;;  %v1626_v1 = vmul.f32 %v6802_v41, %v7165_v32  ;;  %v1619_v27 = vadd.f32 %v1615_v47, %v1611_v51  ;;  %v1620_v31 = vadd.f32 %v1616_v16, %v1612_v52 }
 0x16d   : > { %v1621_v8 = vadd.f32 %v1617_v57, %v1613_v43  ;;  %v1622_v19 = vadd.f32 %v1618_v3, %v1614_v54  ;;  %v1631_v9 = vmul.f32 %v6809_v56, %v12021_v36  ;;  %v1632_v35 = vmul.f32 %v6813_v15, %v12021_v36 }
 0x16e   : > { %v1633_v20 = vmul.f32 %v6817_v11, %v12021_v36  ;;  %v1634_v21 = vmul.f32 %v6821_v58, %v12021_v36  ;;  %v1627_v59 = vadd.f32 %v1623_v26, %v1619_v27  ;;  %v1628_v25 = vadd.f32 %v1624_v13, %v1620_v31  ;;  %v12025_v13 = vld [vmem:[#allocation39_spill] sm:$0xff] }
 0x16f   : > { %v1629_v41 = vadd.f32 %v1625_v10, %v1621_v8  ;;  %v1630_v37 = vadd.f32 %v1626_v1, %v1622_v19  ;;  %v1639_v61 = vmul.f32 %v11984_v23, %v12006_v30  ;;  %v1640_v56 = vmul.f32 %v11985_v12, %v12006_v30  ;;  %v12022_v23 = vld [vmem:[#allocation51_spill] sm:$0xff] }
 0x170   : > { %v1641_v15 = vmul.f32 %v11986_v29, %v12006_v30  ;;  %v1642_v11 = vmul.f32 %v11958_v38, %v12006_v30  ;;  %v1635_v49 = vadd.f32 %v1631_v9, %v1627_v59  ;;  %v1636_v22 = vadd.f32 %v1632_v35, %v1628_v25  ;;  %v12023_v12 = vld [vmem:[#allocation55_spill] sm:$0xff]  ;;  %v7470_v29 = vld [vmem:[%s5752_s13 + $0x5d] ss:$0 sm:$0xff]  ;;  %v12026_v35 = vld [vmem:[#allocation45_spill] sm:$0xff] }
 0x171   : > { %v1637_v58 = vadd.f32 %v1633_v20, %v1629_v41  ;;  %v1638_v27 = vadd.f32 %v1634_v21, %v1630_v37  ;;  %v1647_v2 = vmul.f32 %v11959_v62, %v7375_v5  ;;  %v1648_v47 = vmul.f32 %v11960_v63, %v7375_v5  ;;  %12024 = vst [vmem:[#allocation27_spill] sm:$0xff] %v7470_v29 }
 0x172   : > { %v1649_v8 = vmul.f32 %v12022_v23, %v7375_v5  ;;  %v1650_v16 = vmul.f32 %v12023_v12, %v7375_v5  ;;  %v1643_v31 = vadd.f32 %v1639_v61, %v1635_v49  ;;  %v1644_v38 = vadd.f32 %v1640_v56, %v1636_v22  ;;  %v5045_v49 = vld [vmem:[%s6629_s15 + $0x70] sm:$0xff]  ;;  %v5046_v22 = vld [vmem:[%s6629_s15 + $0x78] sm:$0xff]  ;;  %v7505_v23 = vld [vmem:[%s5752_s13 + $0xa] ss:$0 sm:$0xff] }
 0x173   : > { %v1645_v30 = vadd.f32 %v1641_v15, %v1637_v58  ;;  %v1646_v57 = vadd.f32 %v1642_v11, %v1638_v27  ;;  %v1655_v3 = vmul.f32 %v11944_v39, %v7470_v29  ;;  %v1656_v62 = vmul.f32 %v11945_v53, %v7470_v29  ;;  %v5043_v15 = vld [vmem:[%s6629_s15 + $0x60] sm:$0xff]  ;;  %v5044_v11 = vld [vmem:[%s6629_s15 + $0x68] sm:$0xff]  ;;  %12027 = vst [vmem:[#allocation24_spill] sm:$0xff] %v7505_v23  ;;  %v12029_v12 = vld [vmem:[#allocation19_spill] sm:$0xff] }
 0x174   : > { %v1657_v63 = vmul.f32 %v11946_v50, %v7470_v29  ;;  %v1658_v51 = vmul.f32 %v6872_v40, %v7470_v29  ;;  %v1651_v52 = vadd.f32 %v1647_v2, %v1643_v31  ;;  %v1652_v43 = vadd.f32 %v1648_v47, %v1644_v38 }
 0x175   : > { %v1653_v54 = vadd.f32 %v1649_v8, %v1645_v30  ;;  %v1654_v26 = vadd.f32 %v1650_v16, %v1646_v57  ;;  %v1729_v10 = vmul.f32 %v7264_v42, %v12025_v13  ;;  %v1730_v39 = vmul.f32 %v7268_v48, %v12025_v13  ;;  %v12028_v8 = vld [vmem:[#allocation31_spill] sm:$0xff]  ;;  %v12037_v30 = vld [vmem:[#allocation37_spill] sm:$0xff]  ;;  %v12038_v57 = vld [vmem:[#allocation46_spill] sm:$0xff] }
 0x176   : > { %v1731_v53 = vmul.f32 %v7272_v55, %v12025_v13  ;;  %v1732_v50 = vmul.f32 %v7276_v45, %v12025_v13  ;;  %v1659_v40 = vadd.f32 %v1655_v3, %v1651_v52  ;;  %v1660_v1 = vadd.f32 %v1656_v62, %v1652_v43 }
 0x177   : > { %v1661_v19 = vadd.f32 %v1657_v63, %v1653_v54  ;;  %v1662_v9 = vadd.f32 %v1658_v51, %v1654_v26  ;;  %v1733_v20 = vmul.f32 %v7288_v7, %v12026_v35  ;;  %v1734_v21 = vmul.f32 %v7292_v24, %v12026_v35 }
 0x178   : > { %v1735_v59 = vmul.f32 %v7296_v33, %v12026_v35  ;;  %v1736_v25 = vmul.f32 %v7300_v34, %v12026_v35  ;;  %v1663_v41 = vmax.f32 %v7404_v17, %v1659_v40  ;;  %v1664_v37 = vmax.f32 %v7409_v18, %v1660_v1  ;;  %v12031_v17 = vld [vmem:[#allocation32_spill] sm:$0xff]  ;;  %v12044_v1 = vld [vmem:[#allocation21_spill] sm:$0xff] }
 0x179   : > { %v1665_v61 = vmax.f32 %v7414_v4, %v1661_v19  ;;  %v1666_v56 = vmax.f32 %v7419_v44, %v1662_v9  ;;  %v1737_v58 = vadd.f32 %v1733_v20, %v1729_v10  ;;  %v1738_v27 = vadd.f32 %v1734_v21, %v1730_v39  ;;  %v12032_v18 = vld [vmem:[#allocation56_spill] sm:$0xff]  ;;  %v12035_v44 = vld [vmem:[#allocation38_spill] sm:$0xff] }
 0x17a   : > { %v1739_v2 = vadd.f32 %v1735_v59, %v1731_v53  ;;  %v1740_v47 = vadd.f32 %v1736_v25, %v1732_v50  ;;  %v7509_v16 = vadd.f32 %v12029_v12, %v12028_v8  ;;  %v7513_v31 = vadd.f32 %v12032_v18, %v12031_v17  ;;  %v12034_v4 = vld [vmem:[#allocation36_spill] sm:$0xff]  ;;  %v12045_v9 = vld [vmem:[#allocation26_spill] sm:$0xff] }
 0x17b   : > { %v7517_v38 = vadd.f32 %v12035_v44, %v12034_v4  ;;  %v7521_v3 = vadd.f32 %v12038_v57, %v12037_v30  ;;  %v1741_v62 = vmul.f32 %v12014_v46, %v7505_v23  ;;  %v1742_v63 = vmul.f32 %v12015_v28, %v7505_v23  ;;  %v7545_v21 = vld [vmem:[#allocation7 + $0x78] sm:$0xff]  ;;  %v7549_v25 = vld [vmem:[#allocation7 + $0x80] sm:$0xff]  ;;  %v7572_v18 = vld [vmem:[#allocation7 + $0xa8] sm:$0xff] }
 0x17c   : > { %12030 = vst [vmem:[#allocation28_spill] sm:$0xff] %v7509_v16  ;;  %12033 = vst [vmem:[#allocation34_spill] sm:$0xff] %v7513_v31  ;;  %v1743_v51 = vmul.f32 %v12016_v0, %v7505_v23  ;;  %v1744_v52 = vmul.f32 %v12017_v6, %v7505_v23  ;;  %v7531_v43 = vmul.f32 %v5043_v15, %v1663_v41  ;;  %v12047_v41 = vld [vmem:[#allocation33_spill] sm:$0xff]  ;;  %v7568_v12 = vld [vmem:[#allocation7 + $0xa0] sm:$0xff] }
 0x17d   : > { %12036 = vst [vmem:[#allocation35_spill] sm:$0xff] %v7517_v38  ;;  %12039 = vst [vmem:[#allocation49_spill] sm:$0xff] %v7521_v3  ;;  %v7533_v54 = vmul.f32 %v5044_v11, %v1664_v37  ;;  %v7535_v26 = vmul.f32 %v5045_v49, %v1665_v61  ;;  %v7537_v13 = vmul.f32 %v5046_v22, %v1666_v56  ;;  %v7553_v61 = vld [vmem:[#allocation7 + $0x88] sm:$0xff]  ;;  %v7557_v15 = vld [vmem:[#allocation7 + $0x90] sm:$0xff] }
 0x17e   : > { %12040 = vst [vmem:[#allocation52_spill] sm:$0xff] %v7531_v43  ;;  %v1745_v10 = vadd.f32 %v1741_v62, %v1737_v58  ;;  %v1746_v39 = vadd.f32 %v1742_v63, %v1738_v27  ;;  %v1747_v53 = vadd.f32 %v1743_v51, %v1739_v2  ;;  %v1748_v50 = vadd.f32 %v1744_v52, %v1740_v47  ;;  %v7561_v49 = vld [vmem:[#allocation7 + $0x98] sm:$0xff]  ;;  %v7566_v58 = vld [vmem:[%s5752_s13 + $0x26] ss:$0 sm:$0xff] }
 0x17f   : > { %12041 = vst [vmem:[#allocation42_spill] sm:$0xff] %v7533_v54  ;;  %12042 = vst [vmem:[#allocation40_spill] sm:$0xff] %v7535_v26  ;;  %v1749_v40 = vmul.f32 %v12018_v60, %v7138_v14  ;;  %v1750_v19 = vmul.f32 %v12044_v1, %v7138_v14  ;;  %v1751_v20 = vmul.f32 %v12045_v9, %v7138_v14  ;;  %v7576_v44 = vld [vmem:[#allocation7 + $0xb0] sm:$0xff]  ;;  %v7580_v57 = vld [vmem:[#allocation7 + $0xb8] sm:$0xff] }
 0x180   : > { %12043 = vst [vmem:[#allocation43_spill] sm:$0xff] %v7537_v13  ;;  %12046 = vst [vmem:[#allocation41_spill] sm:$0xff] %v7545_v21  ;;  %v1752_v59 = vmul.f32 %v7545_v21, %v7138_v14  ;;  %v1757_v37 = vmul.f32 %v7549_v25, %v12047_v41  ;;  %v1758_v56 = vmul.f32 %v7553_v61, %v12047_v41  ;;  %v7608_v3 = vld [vmem:[#allocation7 + $0xf0] sm:$0xff]  ;;  %v7612_v38 = vld [vmem:[#allocation7 + $0xf8] sm:$0xff] }
 0x181   : > { %v1759_v11 = vmul.f32 %v7557_v15, %v12047_v41  ;;  %12048 = vst [vmem:[#allocation47_spill] sm:$0xff] %v7561_v49  ;;  %v1760_v22 = vmul.f32 %v7561_v49, %v12047_v41  ;;  %v1753_v27 = vadd.f32 %v1749_v40, %v1745_v10  ;;  %v1754_v2 = vadd.f32 %v1750_v19, %v1746_v39  ;;  %v7584_v39 = vld [vmem:[#allocation7 + $0xc0] sm:$0xff]  ;;  %v7592_v19 = vld [vmem:[#allocation7 + $0xd0] sm:$0xff]  ;;  %v7623_v54 = vld [vmem:[#allocation7 + $0x108] sm:$0xff] }
 0x182   : > { %v1755_v47 = vadd.f32 %v1751_v20, %v1747_v53  ;;  %v1756_v8 = vadd.f32 %v1752_v59, %v1748_v50  ;;  %v1765_v17 = vmul.f32 %v7568_v12, %v7566_v58  ;;  %v1766_v4 = vmul.f32 %v7572_v18, %v7566_v58  ;;  %v7588_v50 = vld [vmem:[#allocation7 + $0xc8] sm:$0xff]  ;;  %12049 = vst [vmem:[#allocation48_spill] sm:$0xff] %v7592_v19  ;;  %v7596_v59 = vld [vmem:[#allocation7 + $0xd8] sm:$0xff]  ;;  %v7627_v43 = vld [vmem:[#allocation7 + $0x110] sm:$0xff] }
 0x183   : > { %v1767_v30 = vmul.f32 %v7576_v44, %v7566_v58  ;;  %v1768_v62 = vmul.f32 %v7580_v57, %v7566_v58  ;;  %v1761_v63 = vadd.f32 %v1757_v37, %v1753_v27  ;;  %v1762_v51 = vadd.f32 %v1758_v56, %v1754_v2  ;;  %v7600_v2 = vld [vmem:[#allocation7 + $0xe0] sm:$0xff]  ;;  %12050 = vst [vmem:[#allocation50_spill] sm:$0xff] %v7608_v3 }
 0x184   : > { %v1763_v52 = vadd.f32 %v1759_v11, %v1755_v47  ;;  %v1764_v10 = vadd.f32 %v1760_v22, %v1756_v8  ;;  %v1773_v53 = vmul.f32 %v7584_v39, %v7165_v32  ;;  %v1774_v40 = vmul.f32 %v7588_v50, %v7165_v32  ;;  %v7604_v8 = vld [vmem:[#allocation7 + $0xe8] sm:$0xff]  ;;  %12051 = vst [vmem:[#allocation53_spill] sm:$0xff] %v7612_v38 }
 0x185   : > { %v1775_v20 = vmul.f32 %v7592_v19, %v7165_v32  ;;  %v1776_v37 = vmul.f32 %v7596_v59, %v7165_v32  ;;  %v1769_v56 = vadd.f32 %v1765_v17, %v1761_v63  ;;  %v1770_v11 = vadd.f32 %v1766_v4, %v1762_v51  ;;  %v7617_v4 = vld [vmem:[%s5752_s13 + $0x42] ss:$0 sm:$0xff] }
 0x186   : > { %v1771_v22 = vadd.f32 %v1767_v30, %v1763_v52  ;;  %v1772_v27 = vadd.f32 %v1768_v62, %v1764_v10  ;;  %v1781_v47 = vmul.f32 %v7600_v2, %v12021_v36  ;;  %v1782_v13 = vmul.f32 %v7604_v8, %v12021_v36  ;;  %12052 = vst [vmem:[#allocation51_spill] sm:$0xff] %v7617_v4  ;;  %v7619_v52 = vld [vmem:[#allocation7 + $0x100] sm:$0xff] }
 0x187   : > { %v1783_v26 = vmul.f32 %v7608_v3, %v12021_v36  ;;  %v1784_v17 = vmul.f32 %v7612_v38, %v12021_v36  ;;  %v1777_v30 = vadd.f32 %v1773_v53, %v1769_v56  ;;  %v1778_v62 = vadd.f32 %v1774_v40, %v1770_v11  ;;  %v7631_v53 = vld [vmem:[#allocation7 + $0x118] sm:$0xff] }
 0x188   : > { %v1779_v63 = vadd.f32 %v1775_v20, %v1771_v22  ;;  %v1780_v51 = vadd.f32 %v1776_v37, %v1772_v27  ;;  %v1789_v10 = vmul.f32 %v7619_v52, %v7617_v4  ;;  %v1790_v31 = vmul.f32 %v7623_v54, %v7617_v4  ;;  %v7636_v22 = vld [vmem:[%s5752_s13 + $0xb] ss:$0 sm:$0xff] }
 0x189   : > { %v1791_v16 = vmul.f32 %v7627_v43, %v7617_v4  ;;  %v1792_v40 = vmul.f32 %v7631_v53, %v7617_v4  ;;  %v1785_v20 = vadd.f32 %v1781_v47, %v1777_v30  ;;  %v1786_v37 = vadd.f32 %v1782_v13, %v1778_v62  ;;  %12053 = vst [vmem:[#allocation55_spill] sm:$0xff] %v7636_v22 }
 0x18a   : > { %v1787_v56 = vadd.f32 %v1783_v26, %v1779_v63  ;;  %v1788_v11 = vadd.f32 %v1784_v17, %v1780_v51  ;;  %v1797_v27 = vmul.f32 %v7264_v42, %v12026_v35  ;;  %v1798_v29 = vmul.f32 %v7268_v48, %v12026_v35 }
 0x18b   : > { %v1799_v5 = vmul.f32 %v7272_v55, %v12026_v35  ;;  %v1800_v32 = vmul.f32 %v7276_v45, %v12026_v35  ;;  %v7646_v14 = vadd.f32 %v1789_v10, %v1785_v20  ;;  %v7648_v47 = vadd.f32 %v1790_v31, %v1786_v37 }
 0x18c   : > { %v7650_v26 = vadd.f32 %v1791_v16, %v1787_v56  ;;  %v7652_v13 = vadd.f32 %v1792_v40, %v1788_v11  ;;  %v1801_v17 = vmul.f32 %v7288_v7, %v7505_v23  ;;  %v1802_v30 = vmul.f32 %v7292_v24, %v7505_v23 }
 0x18d   : > { %v1803_v62 = vmul.f32 %v7296_v33, %v7505_v23  ;;  %v1804_v35 = vmul.f32 %v7300_v34, %v7505_v23  ;;  %v1809_v31 = vmul.f32 %v12014_v46, %v7636_v22  ;;  %v1810_v16 = vmul.f32 %v12015_v28, %v7636_v22 }
 0x18e   : > { %v1811_v63 = vmul.f32 %v12016_v0, %v7636_v22  ;;  %v1812_v51 = vmul.f32 %v12017_v6, %v7636_v22  ;;  %v1805_v10 = vadd.f32 %v1801_v17, %v1797_v27  ;;  %v1806_v40 = vadd.f32 %v1802_v30, %v1798_v29  ;;  %v7687_v30 = vld [vmem:[%s5752_s13 + $0x27] ss:$0 sm:$0xff] }
 0x18f   : > { %v1807_v20 = vadd.f32 %v1803_v62, %v1799_v5  ;;  %v1808_v37 = vadd.f32 %v1804_v35, %v1800_v32  ;;  %v1817_v56 = vmul.f32 %v12018_v60, %v12047_v41  ;;  %v1818_v11 = vmul.f32 %v12044_v1, %v12047_v41  ;;  %12054 = vst [vmem:[#allocation39_spill] sm:$0xff] %v7687_v30 }
 0x190   : > { %v1819_v23 = vmul.f32 %v12045_v9, %v12047_v41  ;;  %v1820_v0 = vmul.f32 %v7545_v21, %v12047_v41  ;;  %v1813_v28 = vadd.f32 %v1809_v31, %v1805_v10  ;;  %v1814_v46 = vadd.f32 %v1810_v16, %v1806_v40 }
 0x191   : > { %v1815_v22 = vadd.f32 %v1811_v63, %v1807_v20  ;;  %v1816_v27 = vadd.f32 %v1812_v51, %v1808_v37  ;;  %v1825_v5 = vmul.f32 %v7549_v25, %v7566_v58  ;;  %v1826_v32 = vmul.f32 %v7553_v61, %v7566_v58 }
 0x192   : > { %v1827_v29 = vmul.f32 %v7557_v15, %v7566_v58  ;;  %v1828_v17 = vmul.f32 %v7561_v49, %v7566_v58  ;;  %v1821_v62 = vadd.f32 %v1817_v56, %v1813_v28  ;;  %v1822_v35 = vadd.f32 %v1818_v11, %v1814_v46 }
 0x193   : > { %v1823_v31 = vadd.f32 %v1819_v23, %v1815_v22  ;;  %v1824_v16 = vadd.f32 %v1820_v0, %v1816_v27  ;;  %v1833_v63 = vmul.f32 %v7568_v12, %v7687_v30  ;;  %v1834_v51 = vmul.f32 %v7572_v18, %v7687_v30 }
 0x194   : > { %v1835_v10 = vmul.f32 %v7576_v44, %v7687_v30  ;;  %v1836_v40 = vmul.f32 %v7580_v57, %v7687_v30  ;;  %v1829_v20 = vadd.f32 %v1825_v5, %v1821_v62  ;;  %v1830_v37 = vadd.f32 %v1826_v32, %v1822_v35  ;;  %v7714_v35 = vld [vmem:[%s5752_s13 + $0x43] ss:$0 sm:$0xff] }
 0x195   : > { %v1831_v49 = vadd.f32 %v1827_v29, %v1823_v31  ;;  %v1832_v28 = vadd.f32 %v1828_v17, %v1824_v16  ;;  %v1841_v46 = vmul.f32 %v7584_v39, %v12021_v36  ;;  %v1842_v0 = vmul.f32 %v7588_v50, %v12021_v36  ;;  %12055 = vst [vmem:[#allocation45_spill] sm:$0xff] %v7714_v35 }
 0x196   : > { %v1843_v23 = vmul.f32 %v7592_v19, %v12021_v36  ;;  %v1844_v22 = vmul.f32 %v7596_v59, %v12021_v36  ;;  %v1837_v56 = vadd.f32 %v1833_v63, %v1829_v20  ;;  %v1838_v11 = vadd.f32 %v1834_v51, %v1830_v37 }
 0x197   : > { %v1839_v27 = vadd.f32 %v1835_v10, %v1831_v49  ;;  %v1840_v5 = vadd.f32 %v1836_v40, %v1832_v28  ;;  %v1849_v32 = vmul.f32 %v7600_v2, %v7617_v4  ;;  %v1850_v29 = vmul.f32 %v7604_v8, %v7617_v4 }
 0x198   : > { %v1851_v17 = vmul.f32 %v7608_v3, %v7617_v4  ;;  %v1852_v62 = vmul.f32 %v7612_v38, %v7617_v4  ;;  %v1845_v31 = vadd.f32 %v1841_v46, %v1837_v56  ;;  %v1846_v16 = vadd.f32 %v1842_v0, %v1838_v11  ;;  %v12056_v46 = vld [vmem:[#allocation30_spill] sm:$0xff] }
 0x199   : > { %v1847_v63 = vadd.f32 %v1843_v23, %v1839_v27  ;;  %v1848_v51 = vadd.f32 %v1844_v22, %v1840_v5  ;;  %v1857_v49 = vmul.f32 %v7619_v52, %v7714_v35  ;;  %v1858_v10 = vmul.f32 %v7623_v54, %v7714_v35 }
 0x19a   : > { %v1859_v40 = vmul.f32 %v7627_v43, %v7714_v35  ;;  %v1860_v20 = vmul.f32 %v7631_v53, %v7714_v35  ;;  %v1853_v37 = vadd.f32 %v1849_v32, %v1845_v31  ;;  %v1854_v28 = vadd.f32 %v1850_v29, %v1846_v16  ;;  %v12060_v16 = vld [vmem:[#allocation29_spill] sm:$0xff] }
 0x19b   : > { %v1855_v30 = vadd.f32 %v1851_v17, %v1847_v63  ;;  %v1856_v38 = vadd.f32 %v1852_v62, %v1848_v51  ;;  %v1869_v0 = vmul.f32 %v7264_v42, %v12056_v46  ;;  %v1870_v23 = vmul.f32 %v7268_v48, %v12056_v46 }
 0x19c   : > { %v1871_v22 = vmul.f32 %v7272_v55, %v12056_v46  ;;  %v1872_v56 = vmul.f32 %v7276_v45, %v12056_v46  ;;  %v7732_v11 = vadd.f32 %v1857_v49, %v1853_v37  ;;  %v7734_v27 = vadd.f32 %v1858_v10, %v1854_v28  ;;  %v12059_v28 = vld [vmem:[#allocation22_spill] sm:$0xff] }
 0x19d   : > { %v7736_v5 = vadd.f32 %v1859_v40, %v1855_v30  ;;  %v7738_v32 = vadd.f32 %v1860_v20, %v1856_v38  ;;  %v1873_v29 = vmul.f32 %v7288_v7, %v12047_v41  ;;  %v1874_v17 = vmul.f32 %v7292_v24, %v12047_v41  ;;  %v12058_v20 = vld [vmem:[#allocation54_spill] sm:$0xff]  ;;  %v12061_v38 = vld [vmem:[#allocation44_spill] sm:$0xff] }
 0x19e   : > { %v1875_v62 = vmul.f32 %v7296_v33, %v12047_v41  ;;  %v1876_v31 = vmul.f32 %v7300_v34, %v12047_v41  ;;  %v1881_v37 = vmul.f32 %v12058_v20, %v7566_v58  ;;  %v1882_v46 = vmul.f32 %v12059_v28, %v7566_v58 }
 0x19f   : > { %12057 = vst [vmem:[#allocation31_spill] sm:$0xff] %v7736_v5  ;;  %v1877_v51 = vadd.f32 %v1873_v29, %v1869_v0  ;;  %v1878_v49 = vadd.f32 %v1874_v17, %v1870_v23  ;;  %v1883_v35 = vmul.f32 %v12060_v16, %v7566_v58  ;;  %v1884_v30 = vmul.f32 %v12017_v6, %v7566_v58 }
 0x1a0   : > { %v1879_v10 = vadd.f32 %v1875_v62, %v1871_v22  ;;  %v1880_v40 = vadd.f32 %v1876_v31, %v1872_v56  ;;  %v1889_v5 = vmul.f32 %v12018_v60, %v12061_v38  ;;  %v1890_v0 = vmul.f32 %v12044_v1, %v12061_v38  ;;  %v12062_v1 = vld [vmem:[#allocation47_spill] sm:$0xff] }
 0x1a1   : > { %v1891_v23 = vmul.f32 %v12045_v9, %v12061_v38  ;;  %v1892_v22 = vmul.f32 %v7545_v21, %v12061_v38  ;;  %v1885_v56 = vadd.f32 %v1881_v37, %v1877_v51  ;;  %v1886_v29 = vadd.f32 %v1882_v46, %v1878_v49  ;;  %v12063_v46 = vld [vmem:[#allocation23_spill] sm:$0xff] }
 0x1a2   : > { %v1887_v17 = vadd.f32 %v1883_v35, %v1879_v10  ;;  %v1888_v62 = vadd.f32 %v1884_v30, %v1880_v40  ;;  %v1897_v31 = vmul.f32 %v7549_v25, %v12021_v36  ;;  %v1898_v63 = vmul.f32 %v7553_v61, %v12021_v36 }
 0x1a3   : > { %v1899_v60 = vmul.f32 %v7557_v15, %v12021_v36  ;;  %v1900_v6 = vmul.f32 %v12062_v1, %v12021_v36  ;;  %v1893_v9 = vadd.f32 %v1889_v5, %v1885_v56  ;;  %v1894_v16 = vadd.f32 %v1890_v0, %v1886_v29 }
 0x1a4   : > { %v1895_v28 = vadd.f32 %v1891_v23, %v1887_v17  ;;  %v1896_v38 = vadd.f32 %v1892_v22, %v1888_v62  ;;  %v1905_v35 = vmul.f32 %v7568_v12, %v7617_v4  ;;  %v1906_v30 = vmul.f32 %v7572_v18, %v7617_v4 }
 0x1a5   : > { %v1907_v51 = vmul.f32 %v7576_v44, %v7617_v4  ;;  %v1908_v49 = vmul.f32 %v7580_v57, %v7617_v4  ;;  %v1901_v10 = vadd.f32 %v1897_v31, %v1893_v9  ;;  %v1902_v40 = vadd.f32 %v1898_v63, %v1894_v16  ;;  %v12064_v31 = vld [vmem:[#allocation27_spill] sm:$0xff]  ;;  %v12065_v63 = vld [vmem:[#allocation53_spill] sm:$0xff] }
 0x1a6   : > { %v1903_v37 = vadd.f32 %v1899_v60, %v1895_v28  ;;  %v1904_v5 = vadd.f32 %v1900_v6, %v1896_v38  ;;  %v1913_v0 = vmul.f32 %v7584_v39, %v12063_v46  ;;  %v1914_v23 = vmul.f32 %v7588_v50, %v12063_v46  ;;  %v7805_v38 = vld [vmem:[%s5752_s13 + $0x5e] ss:$0 sm:$0xff] }
 0x1a7   : > { %v1915_v22 = vmul.f32 %v7592_v19, %v12063_v46  ;;  %v1916_v56 = vmul.f32 %v7596_v59, %v12063_v46  ;;  %v1909_v29 = vadd.f32 %v1905_v35, %v1901_v10  ;;  %v1910_v17 = vadd.f32 %v1906_v30, %v1902_v40  ;;  %12066 = vst [vmem:[#allocation19_spill] sm:$0xff] %v7805_v38 }
 0x1a8   : > { %v1911_v62 = vadd.f32 %v1907_v51, %v1903_v37  ;;  %v1912_v9 = vadd.f32 %v1908_v49, %v1904_v5  ;;  %v1921_v60 = vmul.f32 %v7600_v2, %v12064_v31  ;;  %v1922_v6 = vmul.f32 %v7604_v8, %v12064_v31 }
 0x1a9   : > { %v1923_v16 = vmul.f32 %v7608_v3, %v12064_v31  ;;  %v1924_v28 = vmul.f32 %v12065_v63, %v12064_v31  ;;  %v1917_v19 = vadd.f32 %v1913_v0, %v1909_v29  ;;  %v1918_v46 = vadd.f32 %v1914_v23, %v1910_v17 }
 0x1aa   : > { %v1919_v35 = vadd.f32 %v1915_v22, %v1911_v62  ;;  %v1920_v30 = vadd.f32 %v1916_v56, %v1912_v9  ;;  %v1929_v51 = vmul.f32 %v7619_v52, %v7805_v38  ;;  %v1930_v49 = vmul.f32 %v7623_v54, %v7805_v38 }
 0x1ab   : > { %v1931_v10 = vmul.f32 %v7627_v43, %v7805_v38  ;;  %v1932_v40 = vmul.f32 %v7631_v53, %v7805_v38  ;;  %v1925_v37 = vadd.f32 %v1921_v60, %v1917_v19  ;;  %v1926_v5 = vadd.f32 %v1922_v6, %v1918_v46  ;;  %v12069_v46 = vld [vmem:[#allocation31_spill] sm:$0xff] }
 0x1ac   : > { %v1927_v63 = vadd.f32 %v1923_v16, %v1919_v35  ;;  %v1928_v3 = vadd.f32 %v1924_v28, %v1920_v30  ;;  %v1941_v0 = vmul.f32 %v7264_v42, %v12047_v41  ;;  %v1942_v23 = vmul.f32 %v7268_v48, %v12047_v41 }
 0x1ad   : > { %v1943_v22 = vmul.f32 %v7272_v55, %v12047_v41  ;;  %v1944_v56 = vmul.f32 %v7276_v45, %v12047_v41  ;;  %v1933_v29 = vadd.f32 %v1929_v51, %v1925_v37  ;;  %v1934_v17 = vadd.f32 %v1930_v49, %v1926_v5  ;;  %v12072_v37 = vld [vmem:[#allocation39_spill] sm:$0xff] }
 0x1ae   : > { %v1935_v62 = vadd.f32 %v1931_v10, %v1927_v63  ;;  %v1936_v9 = vadd.f32 %v1932_v40, %v1928_v3  ;;  %v1945_v19 = vmul.f32 %v7288_v7, %v7566_v58  ;;  %v1946_v60 = vmul.f32 %v7292_v24, %v7566_v58 }
 0x1af   : > { %v1947_v6 = vmul.f32 %v7296_v33, %v7566_v58  ;;  %v1948_v16 = vmul.f32 %v7300_v34, %v7566_v58  ;;  %v12067_v28 = vmax.f32 %v7646_v14, %v7732_v11  ;;  %v12068_v3 = vmax.f32 %v7648_v47, %v7734_v27  ;;  %v12073_v47 = vld [vmem:[#allocation22_spill] sm:$0xff] }
 0x1b0   : > { %v12070_v35 = vmax.f32 %v7650_v26, %v12069_v46  ;;  %v12071_v51 = vmax.f32 %v7652_v13, %v7738_v32  ;;  %v1949_v10 = vadd.f32 %v1945_v19, %v1941_v0  ;;  %v1950_v40 = vadd.f32 %v1946_v60, %v1942_v23  ;;  %v12076_v13 = vld [vmem:[#allocation25_spill] sm:$0xff] }
 0x1b1   : > { %v7834_v41 = vmax.f32 %v12067_v28, %v1933_v29  ;;  %v7839_v63 = vmax.f32 %v12068_v3, %v1934_v17  ;;  %v1951_v14 = vadd.f32 %v1947_v6, %v1943_v22  ;;  %v1952_v11 = vadd.f32 %v1948_v16, %v1944_v56  ;;  %v12074_v29 = vld [vmem:[#allocation29_spill] sm:$0xff]  ;;  %v12075_v17 = vld [vmem:[#allocation20_spill] sm:$0xff]  ;;  %v12078_v22 = vld [vmem:[#allocation26_spill] sm:$0xff] }
 0x1b2   : > { %v7844_v30 = vmax.f32 %v12070_v35, %v1935_v62  ;;  %v7849_v49 = vmax.f32 %v12071_v51, %v1936_v9  ;;  %v1953_v5 = vmul.f32 %v12058_v20, %v12072_v37  ;;  %v1954_v27 = vmul.f32 %v12073_v47, %v12072_v37  ;;  %v12077_v0 = vld [vmem:[#allocation21_spill] sm:$0xff] }
 0x1b3   : > { %v1955_v26 = vmul.f32 %v12074_v29, %v12072_v37  ;;  %v1956_v62 = vmul.f32 %v12075_v17, %v12072_v37  ;;  %v1961_v32 = vmul.f32 %v12076_v13, %v12021_v36  ;;  %v1962_v23 = vmul.f32 %v12077_v0, %v12021_v36 }
 0x1b4   : > { %v1963_v56 = vmul.f32 %v12078_v22, %v12021_v36  ;;  %v1964_v9 = vmul.f32 %v7545_v21, %v12021_v36  ;;  %v1957_v19 = vadd.f32 %v1953_v5, %v1949_v10  ;;  %v1958_v60 = vadd.f32 %v1954_v27, %v1950_v40  ;;  %v12079_v10 = vld [vmem:[#allocation45_spill] sm:$0xff] }
 0x1b5   : > { %v1959_v6 = vadd.f32 %v1955_v26, %v1951_v14  ;;  %v1960_v16 = vadd.f32 %v1956_v62, %v1952_v11  ;;  %v1969_v28 = vmul.f32 %v7549_v25, %v7617_v4  ;;  %v1970_v3 = vmul.f32 %v7553_v61, %v7617_v4 }
 0x1b6   : > { %v1971_v46 = vmul.f32 %v7557_v15, %v7617_v4  ;;  %v1972_v35 = vmul.f32 %v12062_v1, %v7617_v4  ;;  %v1965_v51 = vadd.f32 %v1961_v32, %v1957_v19  ;;  %v1966_v37 = vadd.f32 %v1962_v23, %v1958_v60 }
 0x1b7   : > { %v1967_v22 = vadd.f32 %v1963_v56, %v1959_v6  ;;  %v1968_v36 = vadd.f32 %v1964_v9, %v1960_v16  ;;  %v1977_v40 = vmul.f32 %v7568_v12, %v12079_v10  ;;  %v1978_v14 = vmul.f32 %v7572_v18, %v12079_v10  ;;  %v12080_v9 = vld [vmem:[#allocation48_spill] sm:$0xff] }
 0x1b8   : > { %v1979_v11 = vmul.f32 %v7576_v44, %v12079_v10  ;;  %v1980_v5 = vmul.f32 %v7580_v57, %v12079_v10  ;;  %v1973_v27 = vadd.f32 %v1969_v28, %v1965_v51  ;;  %v1974_v26 = vadd.f32 %v1970_v3, %v1966_v37  ;;  %v12081_v3 = vld [vmem:[#allocation50_spill] sm:$0xff] }
 0x1b9   : > { %v1975_v62 = vadd.f32 %v1971_v46, %v1967_v22  ;;  %v1976_v32 = vadd.f32 %v1972_v35, %v1968_v36  ;;  %v1985_v23 = vmul.f32 %v7584_v39, %v12064_v31  ;;  %v1986_v56 = vmul.f32 %v7588_v50, %v12064_v31  ;;  %v12082_v35 = vld [vmem:[#allocation53_spill] sm:$0xff]  ;;  %v7900_v36 = vld [vmem:[%s5752_s13 + $0x5f] ss:$0 sm:$0xff] }
 0x1ba   : > { %v1987_v19 = vmul.f32 %v12080_v9, %v12064_v31  ;;  %v1988_v60 = vmul.f32 %v7596_v59, %v12064_v31  ;;  %v1981_v6 = vadd.f32 %v1977_v40, %v1973_v27  ;;  %v1982_v16 = vadd.f32 %v1978_v14, %v1974_v26  ;;  %12083 = vst [vmem:[#allocation32_spill] sm:$0xff] %v7900_v36 }
 0x1bb   : > { %v1983_v10 = vadd.f32 %v1979_v11, %v1975_v62  ;;  %v1984_v28 = vadd.f32 %v1980_v5, %v1976_v32  ;;  %v1993_v37 = vmul.f32 %v7600_v2, %v7805_v38  ;;  %v1994_v22 = vmul.f32 %v7604_v8, %v7805_v38 }
 0x1bc   : > { %v1995_v46 = vmul.f32 %v12081_v3, %v7805_v38  ;;  %v1996_v51 = vmul.f32 %v12082_v35, %v7805_v38  ;;  %v1989_v9 = vadd.f32 %v1985_v23, %v1981_v6  ;;  %v1990_v31 = vadd.f32 %v1986_v56, %v1982_v16  ;;  %v12084_v23 = vld [vmem:[#allocation24_spill] sm:$0xff] }
 0x1bd   : > { %v1991_v40 = vadd.f32 %v1987_v19, %v1983_v10  ;;  %v1992_v14 = vadd.f32 %v1988_v60, %v1984_v28  ;;  %v2001_v11 = vmul.f32 %v7619_v52, %v7900_v36  ;;  %v2002_v5 = vmul.f32 %v7623_v54, %v7900_v36 }
 0x1be   : > { %v2003_v27 = vmul.f32 %v7627_v43, %v7900_v36  ;;  %v2004_v26 = vmul.f32 %v7631_v53, %v7900_v36  ;;  %v1997_v62 = vadd.f32 %v1993_v37, %v1989_v9  ;;  %v1998_v32 = vadd.f32 %v1994_v22, %v1990_v31  ;;  %v12085_v37 = vld [vmem:[#allocation55_spill] sm:$0xff] }
 0x1bf   : > { %v1999_v38 = vadd.f32 %v1995_v46, %v1991_v40  ;;  %v2000_v35 = vadd.f32 %v1996_v51, %v1992_v14  ;;  %v2075_v10 = vmul.f32 %v7264_v42, %v12084_v23  ;;  %v2076_v56 = vmul.f32 %v7268_v48, %v12084_v23  ;;  %v5055_v51 = vld [vmem:[%s6629_s15 + $0x80] sm:$0xff]  ;;  %v5057_v31 = vld [vmem:[%s6629_s15 + $0x90] sm:$0xff]  ;;  %v5058_v40 = vld [vmem:[%s6629_s15 + $0x98] sm:$0xff] }
 0x1c0   : > { %v2077_v19 = vmul.f32 %v7272_v55, %v12084_v23  ;;  %v2078_v60 = vmul.f32 %v7276_v45, %v12084_v23  ;;  %v2005_v9 = vadd.f32 %v2001_v11, %v1997_v62  ;;  %v2006_v6 = vadd.f32 %v2002_v5, %v1998_v32  ;;  %v12096_v23 = vld [vmem:[#allocation49_spill] sm:$0xff] }
 0x1c1   : > { %v2007_v16 = vadd.f32 %v2003_v27, %v1999_v38  ;;  %v2008_v28 = vadd.f32 %v2004_v26, %v2000_v35  ;;  %v2079_v42 = vmul.f32 %v7288_v7, %v12085_v37  ;;  %v2080_v48 = vmul.f32 %v7292_v24, %v12085_v37  ;;  %v5056_v7 = vld [vmem:[%s6629_s15 + $0x88] sm:$0xff]  ;;  %v12087_v27 = vld [vmem:[#allocation28_spill] sm:$0xff] }
 0x1c2   : > { %v2081_v22 = vmul.f32 %v7296_v33, %v12085_v37  ;;  %v2082_v55 = vmul.f32 %v7300_v34, %v12085_v37  ;;  %v2009_v45 = vmax.f32 %v7834_v41, %v2005_v9  ;;  %v2010_v46 = vmax.f32 %v7839_v63, %v2006_v6  ;;  %v7935_v33 = vld [vmem:[%s5752_s13 + $0xc] ss:$0 sm:$0xff]  ;;  %v12088_v34 = vld [vmem:[#allocation52_spill] sm:$0xff]  ;;  %v12097_v9 = vld [vmem:[#allocation43_spill] sm:$0xff] }
 0x1c3   : > { %v2011_v38 = vmax.f32 %v7844_v30, %v2007_v16  ;;  %v2012_v35 = vmax.f32 %v7849_v49, %v2008_v28  ;;  %v2083_v14 = vadd.f32 %v2079_v42, %v2075_v10  ;;  %v2084_v24 = vadd.f32 %v2080_v48, %v2076_v56  ;;  %12086 = vst [vmem:[#allocation56_spill] sm:$0xff] %v7935_v33  ;;  %v12090_v41 = vld [vmem:[#allocation34_spill] sm:$0xff]  ;;  %v12093_v30 = vld [vmem:[#allocation35_spill] sm:$0xff]  ;;  %v12094_v49 = vld [vmem:[#allocation40_spill] sm:$0xff] }
 0x1c4   : > { %v2085_v11 = vadd.f32 %v2081_v22, %v2077_v19  ;;  %v2086_v5 = vadd.f32 %v2082_v55, %v2078_v60  ;;  %v7939_v26 = vadd.f32 %v12088_v34, %v12087_v27  ;;  %v12091_v63 = vld [vmem:[#allocation42_spill] sm:$0xff]  ;;  %v7947_v32 = vadd.f32 %v12094_v49, %v12093_v30 }
 0x1c5   : > { %v7943_v62 = vadd.f32 %v12091_v63, %v12090_v41  ;;  %v7951_v10 = vadd.f32 %v12097_v9, %v12096_v23  ;;  %v2087_v56 = vmul.f32 %v12058_v20, %v7935_v33  ;;  %v2088_v19 = vmul.f32 %v12073_v47, %v7935_v33 }
 0x1c6   : > { %12089 = vst [vmem:[#allocation36_spill] sm:$0xff] %v7939_v26  ;;  %12095 = vst [vmem:[#allocation37_spill] sm:$0xff] %v7947_v32  ;;  %v2089_v60 = vmul.f32 %v12074_v29, %v7935_v33  ;;  %v2090_v6 = vmul.f32 %v12075_v17, %v7935_v33  ;;  %v7961_v16 = vmul.f32 %v5055_v51, %v2009_v45  ;;  %v12103_v17 = vld [vmem:[#allocation26_spill] sm:$0xff] }
 0x1c7   : > { %12092 = vst [vmem:[#allocation38_spill] sm:$0xff] %v7943_v62  ;;  %12098 = vst [vmem:[#allocation46_spill] sm:$0xff] %v7951_v10  ;;  %v7963_v28 = vmul.f32 %v5056_v7, %v2010_v46  ;;  %v7965_v42 = vmul.f32 %v5057_v31, %v2011_v38  ;;  %v7967_v48 = vmul.f32 %v5058_v40, %v2012_v35  ;;  %v12104_v38 = vld [vmem:[#allocation39_spill] sm:$0xff]  ;;  %v7986_v31 = vld [vmem:[%s5752_s13 + $0x28] ss:$0 sm:$0xff] }
 0x1c8   : > { %12099 = vst [vmem:[#allocation33_spill] sm:$0xff] %v7961_v16  ;;  %v2091_v22 = vadd.f32 %v2087_v56, %v2083_v14  ;;  %v2092_v20 = vadd.f32 %v2088_v19, %v2084_v24  ;;  %v2093_v55 = vadd.f32 %v2089_v60, %v2085_v11  ;;  %v2094_v27 = vadd.f32 %v2090_v6, %v2086_v5  ;;  %v12105_v19 = vld [vmem:[#allocation48_spill] sm:$0xff]  ;;  %v8082_v16 = vld [vmem:[#allocation7 + $0x60] sm:$0xff] }
 0x1c9   : > { %12100 = vst [vmem:[#allocation30_spill] sm:$0xff] %v7963_v28  ;;  %12101 = vst [vmem:[#allocation54_spill] sm:$0xff] %v7965_v42  ;;  %v2095_v47 = vmul.f32 %v12076_v13, %v7566_v58  ;;  %v2096_v29 = vmul.f32 %v12077_v0, %v7566_v58  ;;  %v2097_v45 = vmul.f32 %v12103_v17, %v7566_v58 }
 0x1ca   : > { %12102 = vst [vmem:[#allocation44_spill] sm:$0xff] %v7967_v48  ;;  %v2098_v46 = vmul.f32 %v7545_v21, %v7566_v58  ;;  %v2103_v35 = vmul.f32 %v7549_v25, %v12104_v38  ;;  %v2104_v51 = vmul.f32 %v7553_v61, %v12104_v38  ;;  %v2105_v7 = vmul.f32 %v7557_v15, %v12104_v38  ;;  %v8078_v48 = vld [vmem:[#allocation7 + $0x58] sm:$0xff] }
 0x1cb   : > { %v2106_v13 = vmul.f32 %v12062_v1, %v12104_v38  ;;  %v2099_v0 = vadd.f32 %v2095_v47, %v2091_v22  ;;  %v2100_v40 = vadd.f32 %v2096_v29, %v2092_v20  ;;  %v2101_v14 = vadd.f32 %v2097_v45, %v2093_v55  ;;  %v12106_v47 = vld [vmem:[#allocation45_spill] sm:$0xff]  ;;  %12120 = vst [vmem:[#allocation52_spill] sm:$0xff] %v8078_v48 }
 0x1cc   : > { %v2102_v24 = vadd.f32 %v2098_v46, %v2094_v27  ;;  %v2111_v11 = vmul.f32 %v7568_v12, %v7986_v31  ;;  %v2112_v5 = vmul.f32 %v7572_v18, %v7986_v31  ;;  %v2113_v34 = vmul.f32 %v7576_v44, %v7986_v31  ;;  %v12107_v46 = vld [vmem:[#allocation53_spill] sm:$0xff]  ;;  %12121 = vst [vmem:[#allocation34_spill] sm:$0xff] %v8082_v16 }
 0x1cd   : > { %v2114_v41 = vmul.f32 %v7580_v57, %v7986_v31  ;;  %v2107_v63 = vadd.f32 %v2103_v35, %v2099_v0  ;;  %v2108_v30 = vadd.f32 %v2104_v51, %v2100_v40  ;;  %v2109_v49 = vadd.f32 %v2105_v7, %v2101_v14  ;;  %v8013_v51 = vld [vmem:[%s5752_s13 + $0x44] ss:$0 sm:$0xff] }
 0x1ce   : > { %v2110_v23 = vadd.f32 %v2106_v13, %v2102_v24  ;;  %v2119_v9 = vmul.f32 %v7584_v39, %v7617_v4  ;;  %v2120_v56 = vmul.f32 %v7588_v50, %v7617_v4  ;;  %v2121_v60 = vmul.f32 %v12105_v19, %v7617_v4  ;;  %12108 = vst [vmem:[#allocation23_spill] sm:$0xff] %v8013_v51 }
 0x1cf   : > { %v2122_v6 = vmul.f32 %v7596_v59, %v7617_v4  ;;  %v2115_v22 = vadd.f32 %v2111_v11, %v2107_v63  ;;  %v2116_v20 = vadd.f32 %v2112_v5, %v2108_v30  ;;  %v2117_v55 = vadd.f32 %v2113_v34, %v2109_v49  ;;  %v8024_v49 = vld [vmem:[%s5752_s13 + $0xd] ss:$0 sm:$0xff]  ;;  %v8090_v4 = vld [vmem:[#allocation7 + $0x70] sm:$0xff] }
 0x1d0   : > { %v2118_v27 = vadd.f32 %v2114_v41, %v2110_v23  ;;  %v2127_v29 = vmul.f32 %v7600_v2, %v12106_v47  ;;  %v2128_v17 = vmul.f32 %v7604_v8, %v12106_v47  ;;  %v2129_v45 = vmul.f32 %v12081_v3, %v12106_v47  ;;  %12109 = vst [vmem:[#allocation27_spill] sm:$0xff] %v8024_v49  ;;  %v8026_v23 = vld [vmem:[#allocation7] sm:$0xff] }
 0x1d1   : > { %v2130_v35 = vmul.f32 %v12107_v46, %v12106_v47  ;;  %v2123_v7 = vadd.f32 %v2119_v9, %v2115_v22  ;;  %v2124_v13 = vadd.f32 %v2120_v56, %v2116_v20  ;;  %v2125_v0 = vadd.f32 %v2121_v60, %v2117_v55  ;;  %v8030_v56 = vld [vmem:[#allocation7 + $0x8] sm:$0xff]  ;;  %v8038_v20 = vld [vmem:[#allocation7 + $0x18] sm:$0xff]  ;;  %12123 = vst [vmem:[#allocation35_spill] sm:$0xff] %v8090_v4 }
 0x1d2   : > { %v2126_v40 = vadd.f32 %v2122_v6, %v2118_v27  ;;  %v2135_v14 = vmul.f32 %v7619_v52, %v8013_v51  ;;  %v2136_v24 = vmul.f32 %v7623_v54, %v8013_v51  ;;  %v2137_v11 = vmul.f32 %v7627_v43, %v8013_v51  ;;  %12110 = vst [vmem:[#allocation31_spill] sm:$0xff] %v8030_v56  ;;  %v8034_v6 = vld [vmem:[#allocation7 + $0x10] sm:$0xff] }
 0x1d3   : > { %v2138_v5 = vmul.f32 %v7631_v53, %v8013_v51  ;;  %v2131_v34 = vadd.f32 %v2127_v29, %v2123_v7  ;;  %v2132_v41 = vadd.f32 %v2128_v17, %v2124_v13  ;;  %v2133_v63 = vadd.f32 %v2129_v45, %v2125_v0  ;;  %12111 = vst [vmem:[#allocation22_spill] sm:$0xff] %v8034_v6  ;;  %v8054_v13 = vld [vmem:[#allocation7 + $0x28] sm:$0xff] }
 0x1d4   : > { %v2134_v30 = vadd.f32 %v2130_v35, %v2126_v40  ;;  %v2143_v9 = vmul.f32 %v8026_v23, %v12085_v37  ;;  %v2144_v60 = vmul.f32 %v8030_v56, %v12085_v37  ;;  %v2145_v22 = vmul.f32 %v8034_v6, %v12085_v37  ;;  %12112 = vst [vmem:[#allocation29_spill] sm:$0xff] %v8038_v20  ;;  %v8050_v35 = vld [vmem:[#allocation7 + $0x20] sm:$0xff]  ;;  %v8058_v40 = vld [vmem:[#allocation7 + $0x30] sm:$0xff] }
 0x1d5   : > { %v2146_v55 = vmul.f32 %v8038_v20, %v12085_v37  ;;  %v8042_v27 = vadd.f32 %v2135_v14, %v2131_v34  ;;  %v8044_v29 = vadd.f32 %v2136_v24, %v2132_v41  ;;  %v8046_v17 = vadd.f32 %v2137_v11, %v2133_v63  ;;  %12113 = vst [vmem:[#allocation20_spill] sm:$0xff] %v8050_v35  ;;  %v8062_v14 = vld [vmem:[#allocation7 + $0x38] sm:$0xff]  ;;  %v8066_v11 = vld [vmem:[#allocation7 + $0x40] sm:$0xff]  ;;  %v8070_v34 = vld [vmem:[#allocation7 + $0x48] sm:$0xff] }
 0x1d6   : > { %v8048_v45 = vadd.f32 %v2138_v5, %v2134_v30  ;;  %v2147_v7 = vmul.f32 %v8050_v35, %v7935_v33  ;;  %12114 = vst [vmem:[#allocation25_spill] sm:$0xff] %v8054_v13  ;;  %v2148_v0 = vmul.f32 %v8054_v13, %v7935_v33  ;;  %12115 = vst [vmem:[#allocation21_spill] sm:$0xff] %v8058_v40  ;;  %v8074_v63 = vld [vmem:[#allocation7 + $0x50] sm:$0xff] }
 0x1d7   : > { %v2149_v37 = vmul.f32 %v8058_v40, %v7935_v33  ;;  %12116 = vst [vmem:[#allocation50_spill] sm:$0xff] %v8062_v14  ;;  %v2150_v24 = vmul.f32 %v8062_v14, %v7935_v33  ;;  %12117 = vst [vmem:[#allocation24_spill] sm:$0xff] %v8066_v11  ;;  %v2155_v5 = vmul.f32 %v8066_v11, %v8024_v49  ;;  %v8086_v33 = vld [vmem:[#allocation7 + $0x68] sm:$0xff] }
 0x1d8   : > { %12118 = vst [vmem:[#allocation55_spill] sm:$0xff] %v8070_v34  ;;  %v2156_v41 = vmul.f32 %v8070_v34, %v8024_v49  ;;  %12119 = vst [vmem:[#allocation28_spill] sm:$0xff] %v8074_v63  ;;  %v2157_v30 = vmul.f32 %v8074_v63, %v8024_v49  ;;  %v2158_v10 = vmul.f32 %v8078_v48, %v8024_v49 }
 0x1d9   : > { %v2151_v42 = vadd.f32 %v2147_v7, %v2143_v9  ;;  %v2152_v32 = vadd.f32 %v2148_v0, %v2144_v60  ;;  %v2153_v28 = vadd.f32 %v2149_v37, %v2145_v22  ;;  %v2154_v62 = vadd.f32 %v2150_v24, %v2146_v55  ;;  %12122 = vst [vmem:[#allocation42_spill] sm:$0xff] %v8086_v33 }
 0x1da   : > { %v2163_v26 = vmul.f32 %v8082_v16, %v12104_v38  ;;  %v2164_v36 = vmul.f32 %v8086_v33, %v12104_v38  ;;  %v2165_v49 = vmul.f32 %v8090_v4, %v12104_v38  ;;  %v2166_v9 = vmul.f32 %v7545_v21, %v12104_v38  ;;  %v8105_v4 = vld [vmem:[%s5752_s13 + $0x29] ss:$0 sm:$0xff] }
 0x1db   : > { %v2159_v60 = vadd.f32 %v2155_v5, %v2151_v42  ;;  %v2160_v22 = vadd.f32 %v2156_v41, %v2152_v32  ;;  %v2161_v55 = vadd.f32 %v2157_v30, %v2153_v28  ;;  %v2162_v7 = vadd.f32 %v2158_v10, %v2154_v62  ;;  %12124 = vst [vmem:[#allocation40_spill] sm:$0xff] %v8105_v4 }
 0x1dc   : > { %v2171_v0 = vmul.f32 %v7549_v25, %v7986_v31  ;;  %v2172_v37 = vmul.f32 %v7553_v61, %v7986_v31  ;;  %v2173_v24 = vmul.f32 %v7557_v15, %v7986_v31  ;;  %v2174_v33 = vmul.f32 %v12062_v1, %v7986_v31 }
 0x1dd   : > { %v2167_v16 = vadd.f32 %v2163_v26, %v2159_v60  ;;  %v2168_v21 = vadd.f32 %v2164_v36, %v2160_v22  ;;  %v2169_v42 = vadd.f32 %v2165_v49, %v2161_v55  ;;  %v2170_v32 = vadd.f32 %v2166_v9, %v2162_v7 }
 0x1de   : > { %v2179_v62 = vmul.f32 %v7568_v12, %v8105_v4  ;;  %v2180_v10 = vmul.f32 %v7572_v18, %v8105_v4  ;;  %v2181_v28 = vmul.f32 %v7576_v44, %v8105_v4  ;;  %v2182_v5 = vmul.f32 %v7580_v57, %v8105_v4 }
 0x1df   : > { %v2175_v41 = vadd.f32 %v2171_v0, %v2167_v16  ;;  %v2176_v30 = vadd.f32 %v2172_v37, %v2168_v21  ;;  %v2177_v1 = vadd.f32 %v2173_v24, %v2169_v42  ;;  %v2178_v26 = vadd.f32 %v2174_v33, %v2170_v32  ;;  %v8132_v24 = vld [vmem:[%s5752_s13 + $0x45] ss:$0 sm:$0xff] }
 0x1e0   : > { %v2187_v36 = vmul.f32 %v7584_v39, %v12106_v47  ;;  %v2188_v49 = vmul.f32 %v7588_v50, %v12106_v47  ;;  %v2189_v9 = vmul.f32 %v12105_v19, %v12106_v47  ;;  %v2190_v60 = vmul.f32 %v7596_v59, %v12106_v47  ;;  %12125 = vst [vmem:[#allocation49_spill] sm:$0xff] %v8132_v24 }
 0x1e1   : > { %v2183_v22 = vadd.f32 %v2179_v62, %v2175_v41  ;;  %v2184_v55 = vadd.f32 %v2180_v10, %v2176_v30  ;;  %v2185_v7 = vadd.f32 %v2181_v28, %v2177_v1  ;;  %v2186_v16 = vadd.f32 %v2182_v5, %v2178_v26 }
 0x1e2   : > { %v2195_v21 = vmul.f32 %v7600_v2, %v8013_v51  ;;  %v2196_v33 = vmul.f32 %v7604_v8, %v8013_v51  ;;  %v2197_v0 = vmul.f32 %v12081_v3, %v8013_v51  ;;  %v2198_v37 = vmul.f32 %v12107_v46, %v8013_v51 }
 0x1e3   : > { %v2191_v42 = vadd.f32 %v2187_v36, %v2183_v22  ;;  %v2192_v32 = vadd.f32 %v2188_v49, %v2184_v55  ;;  %v2193_v62 = vadd.f32 %v2189_v9, %v2185_v7  ;;  %v2194_v10 = vadd.f32 %v2190_v60, %v2186_v16 }
 0x1e4   : > { %v2203_v1 = vmul.f32 %v7619_v52, %v8132_v24  ;;  %v2204_v28 = vmul.f32 %v7623_v54, %v8132_v24  ;;  %v2205_v5 = vmul.f32 %v7627_v43, %v8132_v24  ;;  %v2206_v41 = vmul.f32 %v7631_v53, %v8132_v24 }
 0x1e5   : > { %v2199_v30 = vadd.f32 %v2195_v21, %v2191_v42  ;;  %v2200_v26 = vadd.f32 %v2196_v33, %v2192_v32  ;;  %v2201_v4 = vadd.f32 %v2197_v0, %v2193_v62  ;;  %v2202_v46 = vadd.f32 %v2198_v37, %v2194_v10 }
 0x1e6   : > { %v2215_v36 = vmul.f32 %v8026_v23, %v7566_v58  ;;  %v2216_v49 = vmul.f32 %v8030_v56, %v7566_v58  ;;  %v2217_v9 = vmul.f32 %v8034_v6, %v7566_v58  ;;  %v2218_v60 = vmul.f32 %v8038_v20, %v7566_v58 }
 0x1e7   : > { %v8150_v22 = vadd.f32 %v2203_v1, %v2199_v30  ;;  %v8152_v55 = vadd.f32 %v2204_v28, %v2200_v26  ;;  %v8154_v7 = vadd.f32 %v2205_v5, %v2201_v4  ;;  %v8156_v16 = vadd.f32 %v2206_v41, %v2202_v46  ;;  %v12126_v26 = vld [vmem:[#allocation51_spill] sm:$0xff]  ;;  %v12127_v46 = vld [vmem:[#allocation34_spill] sm:$0xff] }
 0x1e8   : > { %v2219_v21 = vmul.f32 %v8050_v35, %v12104_v38  ;;  %v2220_v33 = vmul.f32 %v8054_v13, %v12104_v38  ;;  %v2221_v0 = vmul.f32 %v8058_v40, %v12104_v38  ;;  %v2222_v58 = vmul.f32 %v8062_v14, %v12104_v38 }
 0x1e9   : > { %v2227_v28 = vmul.f32 %v8066_v11, %v7986_v31  ;;  %v2228_v5 = vmul.f32 %v8070_v34, %v7986_v31  ;;  %v2229_v41 = vmul.f32 %v8074_v63, %v7986_v31  ;;  %v2230_v30 = vmul.f32 %v8078_v48, %v7986_v31 }
 0x1ea   : > { %v2223_v32 = vadd.f32 %v2219_v21, %v2215_v36  ;;  %v2224_v62 = vadd.f32 %v2220_v33, %v2216_v49  ;;  %v2225_v10 = vadd.f32 %v2221_v0, %v2217_v9  ;;  %v2226_v1 = vadd.f32 %v2222_v58, %v2218_v60  ;;  %v12128_v36 = vld [vmem:[#allocation42_spill] sm:$0xff]  ;;  %v12129_v9 = vld [vmem:[#allocation35_spill] sm:$0xff]  ;;  %v12130_v21 = vld [vmem:[#allocation41_spill] sm:$0xff] }
 0x1eb   : > { %v2235_v4 = vmul.f32 %v12127_v46, %v12126_v26  ;;  %v2236_v49 = vmul.f32 %v12128_v36, %v12126_v26  ;;  %v2237_v60 = vmul.f32 %v12129_v9, %v12126_v26  ;;  %v2238_v33 = vmul.f32 %v12130_v21, %v12126_v26  ;;  %v12131_v36 = vld [vmem:[#allocation47_spill] sm:$0xff] }
 0x1ec   : > { %v2231_v0 = vadd.f32 %v2227_v28, %v2223_v32  ;;  %v2232_v58 = vadd.f32 %v2228_v5, %v2224_v62  ;;  %v2233_v42 = vadd.f32 %v2229_v41, %v2225_v10  ;;  %v2234_v37 = vadd.f32 %v2230_v30, %v2226_v1  ;;  %v12132_v28 = vld [vmem:[#allocation19_spill] sm:$0xff]  ;;  %v12133_v41 = vld [vmem:[#allocation32_spill] sm:$0xff] }
 0x1ed   : > { %v2243_v24 = vmul.f32 %v7549_v25, %v12106_v47  ;;  %v2244_v48 = vmul.f32 %v7553_v61, %v12106_v47  ;;  %v2245_v46 = vmul.f32 %v7557_v15, %v12106_v47  ;;  %v2246_v63 = vmul.f32 %v12131_v36, %v12106_v47 }
 0x1ee   : > { %v2239_v9 = vadd.f32 %v2235_v4, %v2231_v0  ;;  %v2240_v34 = vadd.f32 %v2236_v49, %v2232_v58  ;;  %v2241_v11 = vadd.f32 %v2237_v60, %v2233_v42  ;;  %v2242_v26 = vadd.f32 %v2238_v33, %v2234_v37 }
 0x1ef   : > { %v2251_v32 = vmul.f32 %v7568_v12, %v8013_v51  ;;  %v2252_v62 = vmul.f32 %v7572_v18, %v8013_v51  ;;  %v2253_v25 = vmul.f32 %v7576_v44, %v8013_v51  ;;  %v2254_v61 = vmul.f32 %v7580_v57, %v8013_v51 }
 0x1f0   : > { %v2247_v15 = vadd.f32 %v2243_v24, %v2239_v9  ;;  %v2248_v10 = vadd.f32 %v2244_v48, %v2240_v34  ;;  %v2249_v1 = vadd.f32 %v2245_v46, %v2241_v11  ;;  %v2250_v4 = vadd.f32 %v2246_v63, %v2242_v26 }
 0x1f1   : > { %v2259_v37 = vmul.f32 %v7584_v39, %v12132_v28  ;;  %v2260_v12 = vmul.f32 %v7588_v50, %v12132_v28  ;;  %v2261_v18 = vmul.f32 %v12105_v19, %v12132_v28  ;;  %v2262_v44 = vmul.f32 %v7596_v59, %v12132_v28  ;;  %v12134_v50 = vld [vmem:[#allocation53_spill] sm:$0xff]  ;;  %v8223_v19 = vld [vmem:[%s5752_s13 + $0x60] ss:$0 sm:$0xff] }
 0x1f2   : > { %v2255_v42 = vadd.f32 %v2251_v32, %v2247_v15  ;;  %v2256_v5 = vadd.f32 %v2252_v62, %v2248_v10  ;;  %v2257_v57 = vadd.f32 %v2253_v25, %v2249_v1  ;;  %v2258_v24 = vadd.f32 %v2254_v61, %v2250_v4  ;;  %12135 = vst [vmem:[#allocation43_spill] sm:$0xff] %v8223_v19 }
 0x1f3   : > { %v2267_v48 = vmul.f32 %v7600_v2, %v12133_v41  ;;  %v2268_v11 = vmul.f32 %v7604_v8, %v12133_v41  ;;  %v2269_v39 = vmul.f32 %v12081_v3, %v12133_v41  ;;  %v2270_v34 = vmul.f32 %v12134_v50, %v12133_v41  ;;  %v12147_v50 = vld [vmem:[#allocation35_spill] sm:$0xff] }
 0x1f4   : > { %v2263_v63 = vadd.f32 %v2259_v37, %v2255_v42  ;;  %v2264_v59 = vadd.f32 %v2260_v12, %v2256_v5  ;;  %v2265_v46 = vadd.f32 %v2261_v18, %v2257_v57  ;;  %v2266_v30 = vadd.f32 %v2262_v44, %v2258_v24  ;;  %v12140_v42 = vld [vmem:[#allocation40_spill] sm:$0xff] }
 0x1f5   : > { %v2275_v36 = vmul.f32 %v7619_v52, %v8223_v19  ;;  %v2276_v2 = vmul.f32 %v7623_v54, %v8223_v19  ;;  %v2277_v8 = vmul.f32 %v7627_v43, %v8223_v19  ;;  %v2278_v3 = vmul.f32 %v7631_v53, %v8223_v19  ;;  %v12141_v5 = vld [vmem:[#allocation24_spill] sm:$0xff] }
 0x1f6   : > { %v2271_v49 = vadd.f32 %v2267_v48, %v2263_v63  ;;  %v2272_v9 = vadd.f32 %v2268_v11, %v2264_v59  ;;  %v2273_v60 = vadd.f32 %v2269_v39, %v2265_v46  ;;  %v2274_v21 = vadd.f32 %v2270_v34, %v2266_v30  ;;  %v12143_v24 = vld [vmem:[#allocation28_spill] sm:$0xff]  ;;  %v12146_v11 = vld [vmem:[#allocation42_spill] sm:$0xff] }
 0x1f7   : > { %v2287_v33 = vmul.f32 %v8026_v23, %v12104_v38  ;;  %v2288_v0 = vmul.f32 %v8030_v56, %v12104_v38  ;;  %v2289_v52 = vmul.f32 %v8034_v6, %v12104_v38  ;;  %v2290_v54 = vmul.f32 %v8038_v20, %v12104_v38  ;;  %v8283_v63 = vld [vmem:[#allocation7 + $0x78] sm:$0xff] }
 0x1f8   : > { %v2279_v43 = vadd.f32 %v2275_v36, %v2271_v49  ;;  %v2280_v58 = vadd.f32 %v2276_v2, %v2272_v9  ;;  %v2281_v26 = vadd.f32 %v2277_v8, %v2273_v60  ;;  %v2282_v53 = vadd.f32 %v2278_v3, %v2274_v21  ;;  %v8287_v8 = vld [vmem:[#allocation7 + $0x80] sm:$0xff]  ;;  %v8291_v49 = vld [vmem:[#allocation7 + $0x88] sm:$0xff]  ;;  %v8295_v60 = vld [vmem:[#allocation7 + $0x90] sm:$0xff] }
 0x1f9   : > { %v2291_v32 = vmul.f32 %v8050_v35, %v7986_v31  ;;  %v2292_v62 = vmul.f32 %v8054_v13, %v7986_v31  ;;  %v2293_v25 = vmul.f32 %v8058_v40, %v7986_v31  ;;  %v2294_v61 = vmul.f32 %v8062_v14, %v7986_v31 }
 0x1fa   : > { %v12136_v15 = vmax.f32 %v8042_v27, %v8150_v22  ;;  %v12137_v10 = vmax.f32 %v8044_v29, %v8152_v55  ;;  %v12138_v4 = vmax.f32 %v8046_v17, %v8154_v7  ;;  %v12139_v37 = vmax.f32 %v8048_v45, %v8156_v16  ;;  %v12142_v29 = vld [vmem:[#allocation55_spill] sm:$0xff]  ;;  %v12144_v7 = vld [vmem:[#allocation52_spill] sm:$0xff]  ;;  %v12145_v45 = vld [vmem:[#allocation34_spill] sm:$0xff] }
 0x1fb   : > { %v2295_v18 = vadd.f32 %v2291_v32, %v2287_v33  ;;  %v2296_v44 = vadd.f32 %v2292_v62, %v2288_v0  ;;  %v2297_v27 = vadd.f32 %v2293_v25, %v2289_v52  ;;  %v2298_v22 = vadd.f32 %v2294_v61, %v2290_v54  ;;  %v8307_v32 = vld [vmem:[#allocation7 + $0xa8] sm:$0xff]  ;;  %v8311_v25 = vld [vmem:[#allocation7 + $0xb0] sm:$0xff] }
 0x1fc   : > { %v8252_v38 = vmax.f32 %v12136_v15, %v2279_v43  ;;  %v8257_v1 = vmax.f32 %v12137_v10, %v2280_v58  ;;  %v8262_v28 = vmax.f32 %v12138_v4, %v2281_v26  ;;  %v8267_v12 = vmax.f32 %v12139_v37, %v2282_v53  ;;  %v8303_v58 = vld [vmem:[#allocation7 + $0xa0] sm:$0xff]  ;;  %v12149_v26 = vld [vmem:[#allocation49_spill] sm:$0xff] }
 0x1fd   : > { %v2299_v57 = vmul.f32 %v12141_v5, %v12140_v42  ;;  %v2300_v55 = vmul.f32 %v12142_v29, %v12140_v42  ;;  %v2301_v17 = vmul.f32 %v12143_v24, %v12140_v42  ;;  %v2302_v48 = vmul.f32 %v12144_v7, %v12140_v42  ;;  %v8315_v15 = vld [vmem:[#allocation7 + $0xb8] sm:$0xff] }
 0x1fe   : > { %v2307_v16 = vmul.f32 %v12145_v45, %v12106_v47  ;;  %v2308_v39 = vmul.f32 %v12146_v11, %v12106_v47  ;;  %v2309_v34 = vmul.f32 %v12147_v50, %v12106_v47  ;;  %v2310_v59 = vmul.f32 %v8283_v63, %v12106_v47  ;;  %v8299_v47 = vld [vmem:[#allocation7 + $0x98] sm:$0xff] }
 0x1ff   : > { %v2303_v46 = vadd.f32 %v2299_v57, %v2295_v18  ;;  %v2304_v30 = vadd.f32 %v2300_v55, %v2296_v44  ;;  %v2305_v36 = vadd.f32 %v2301_v17, %v2297_v27  ;;  %v2306_v2 = vadd.f32 %v2302_v48, %v2298_v22  ;;  %12148 = vst [vmem:[#allocation26_spill] sm:$0xff] %v8299_v47  ;;  %v8319_v27 = vld [vmem:[#allocation7 + $0xc0] sm:$0xff]  ;;  %v8323_v57 = vld [vmem:[#allocation7 + $0xc8] sm:$0xff]  ;;  %v8327_v17 = vld [vmem:[#allocation7 + $0xd0] sm:$0xff] }
 0x200   : > { %v2315_v3 = vmul.f32 %v8287_v8, %v8013_v51  ;;  %v2316_v9 = vmul.f32 %v8291_v49, %v8013_v51  ;;  %v2317_v21 = vmul.f32 %v8295_v60, %v8013_v51  ;;  %v2318_v33 = vmul.f32 %v8299_v47, %v8013_v51  ;;  %12150 = vst [vmem:[#allocation39_spill] sm:$0xff] %v8327_v17 }
 0x201   : > { %v2311_v0 = vadd.f32 %v2307_v16, %v2303_v46  ;;  %v2312_v52 = vadd.f32 %v2308_v39, %v2304_v30  ;;  %v2313_v54 = vadd.f32 %v2309_v34, %v2305_v36  ;;  %v2314_v43 = vadd.f32 %v2310_v59, %v2306_v2  ;;  %v8331_v16 = vld [vmem:[#allocation7 + $0xd8] sm:$0xff]  ;;  %v8335_v36 = vld [vmem:[#allocation7 + $0xe0] sm:$0xff] }
 0x202   : > { %v2323_v53 = vmul.f32 %v8303_v58, %v12149_v26  ;;  %v2324_v62 = vmul.f32 %v8307_v32, %v12149_v26  ;;  %v2325_v61 = vmul.f32 %v8311_v25, %v12149_v26  ;;  %v2326_v10 = vmul.f32 %v8315_v15, %v12149_v26 }
 0x203   : > { %v2319_v4 = vadd.f32 %v2315_v3, %v2311_v0  ;;  %v2320_v37 = vadd.f32 %v2316_v9, %v2312_v52  ;;  %v2321_v18 = vadd.f32 %v2317_v21, %v2313_v54  ;;  %v2322_v44 = vadd.f32 %v2318_v33, %v2314_v43  ;;  %v8339_v3 = vld [vmem:[#allocation7 + $0xe8] sm:$0xff]  ;;  %v8343_v21 = vld [vmem:[#allocation7 + $0xf0] sm:$0xff] }
 0x204   : > { %v2331_v22 = vmul.f32 %v8319_v27, %v12133_v41  ;;  %v2332_v55 = vmul.f32 %v8323_v57, %v12133_v41  ;;  %v2333_v48 = vmul.f32 %v8327_v17, %v12133_v41  ;;  %v2334_v39 = vmul.f32 %v8331_v16, %v12133_v41  ;;  %12151 = vst [vmem:[#allocation48_spill] sm:$0xff] %v8343_v21  ;;  %v8347_v41 = vld [vmem:[#allocation7 + $0xf8] sm:$0xff]  ;;  %v8352_v52 = vld [vmem:[%s5752_s13 + $0x61] ss:$0 sm:$0xff] }
 0x205   : > { %v2327_v34 = vadd.f32 %v2323_v53, %v2319_v4  ;;  %v2328_v59 = vadd.f32 %v2324_v62, %v2320_v37  ;;  %v2329_v46 = vadd.f32 %v2325_v61, %v2321_v18  ;;  %v2330_v30 = vadd.f32 %v2326_v10, %v2322_v44  ;;  %12152 = vst [vmem:[#allocation45_spill] sm:$0xff] %v8347_v41  ;;  %v8354_v61 = vld [vmem:[#allocation7 + $0x100] sm:$0xff]  ;;  %v8358_v4 = vld [vmem:[#allocation7 + $0x108] sm:$0xff]  ;;  %v8362_v18 = vld [vmem:[#allocation7 + $0x110] sm:$0xff] }
 0x206   : > { %v2339_v2 = vmul.f32 %v8335_v36, %v8223_v19  ;;  %v2340_v9 = vmul.f32 %v8339_v3, %v8223_v19  ;;  %v2341_v33 = vmul.f32 %v8343_v21, %v8223_v19  ;;  %v2342_v0 = vmul.f32 %v8347_v41, %v8223_v19  ;;  %12153 = vst [vmem:[#allocation51_spill] sm:$0xff] %v8352_v52  ;;  %v8366_v19 = vld [vmem:[#allocation7 + $0x118] sm:$0xff] }
 0x207   : > { %v2335_v54 = vadd.f32 %v2331_v22, %v2327_v34  ;;  %v2336_v43 = vadd.f32 %v2332_v55, %v2328_v59  ;;  %v2337_v53 = vadd.f32 %v2333_v48, %v2329_v46  ;;  %v2338_v62 = vadd.f32 %v2334_v39, %v2330_v30  ;;  %12154 = vst [vmem:[#allocation41_spill] sm:$0xff] %v8358_v4  ;;  %v12156_v59 = vld [vmem:[#allocation56_spill] sm:$0xff] }
 0x208   : > { %v2347_v10 = vmul.f32 %v8354_v61, %v8352_v52  ;;  %v2348_v37 = vmul.f32 %v8358_v4, %v8352_v52  ;;  %12155 = vst [vmem:[#allocation47_spill] sm:$0xff] %v8362_v18  ;;  %v2349_v44 = vmul.f32 %v8362_v18, %v8352_v52  ;;  %v2350_v22 = vmul.f32 %v8366_v19, %v8352_v52 }
 0x209   : > { %v2343_v55 = vadd.f32 %v2339_v2, %v2335_v54  ;;  %v2344_v48 = vadd.f32 %v2340_v9, %v2336_v43  ;;  %v2345_v39 = vadd.f32 %v2341_v33, %v2337_v53  ;;  %v2346_v34 = vadd.f32 %v2342_v0, %v2338_v62  ;;  %v12157_v54 = vld [vmem:[#allocation27_spill] sm:$0xff] }
 0x20a   : > { %v2421_v46 = vmul.f32 %v8026_v23, %v12156_v59  ;;  %v2422_v30 = vmul.f32 %v8030_v56, %v12156_v59  ;;  %v2423_v18 = vmul.f32 %v8034_v6, %v12156_v59  ;;  %v2424_v4 = vmul.f32 %v8038_v20, %v12156_v59  ;;  %v12159_v6 = vld [vmem:[#allocation36_spill] sm:$0xff] }
 0x20b   : > { %v2351_v2 = vadd.f32 %v2347_v10, %v2343_v55  ;;  %v2352_v9 = vadd.f32 %v2348_v37, %v2344_v48  ;;  %v2353_v33 = vadd.f32 %v2349_v44, %v2345_v39  ;;  %v2354_v0 = vadd.f32 %v2350_v22, %v2346_v34  ;;  %v5067_v22 = vld [vmem:[%s6629_s15 + $0xa0] sm:$0xff]  ;;  %v5068_v55 = vld [vmem:[%s6629_s15 + $0xa8] sm:$0xff]  ;;  %v5069_v48 = vld [vmem:[%s6629_s15 + $0xb0] sm:$0xff] }
 0x20c   : > { %v2425_v43 = vmul.f32 %v8050_v35, %v12157_v54  ;;  %v2426_v53 = vmul.f32 %v8054_v13, %v12157_v54  ;;  %v2427_v62 = vmul.f32 %v8058_v40, %v12157_v54  ;;  %v2428_v52 = vmul.f32 %v8062_v14, %v12157_v54  ;;  %v5070_v39 = vld [vmem:[%s6629_s15 + $0xb8] sm:$0xff]  ;;  %v8395_v40 = vld [vmem:[%s5752_s13 + $0xe] ss:$0 sm:$0xff]  ;;  %v12160_v14 = vld [vmem:[#allocation33_spill] sm:$0xff] }
 0x20d   : > { %v2355_v59 = vmax.f32 %v8252_v38, %v2351_v2  ;;  %v2356_v10 = vmax.f32 %v8257_v1, %v2352_v9  ;;  %v2357_v37 = vmax.f32 %v8262_v28, %v2353_v33  ;;  %v2358_v44 = vmax.f32 %v8267_v12, %v2354_v0  ;;  %12158 = vst [vmem:[#allocation19_spill] sm:$0xff] %v8395_v40  ;;  %v12162_v38 = vld [vmem:[#allocation38_spill] sm:$0xff]  ;;  %v12165_v28 = vld [vmem:[#allocation37_spill] sm:$0xff]  ;;  %v12169_v0 = vld [vmem:[#allocation44_spill] sm:$0xff] }
 0x20e   : > { %v2429_v34 = vadd.f32 %v2425_v43, %v2421_v46  ;;  %v2430_v13 = vadd.f32 %v2426_v53, %v2422_v30  ;;  %v2431_v35 = vadd.f32 %v2427_v62, %v2423_v18  ;;  %v2432_v20 = vadd.f32 %v2428_v52, %v2424_v4  ;;  %v12163_v1 = vld [vmem:[#allocation30_spill] sm:$0xff] }
 0x20f   : > { %v8399_v56 = vadd.f32 %v12160_v14, %v12159_v6  ;;  %v8403_v2 = vadd.f32 %v12163_v1, %v12162_v38  ;;  %v12166_v12 = vld [vmem:[#allocation54_spill] sm:$0xff]  ;;  %v2433_v52 = vmul.f32 %v12141_v5, %v8395_v40  ;;  %v2434_v4 = vmul.f32 %v12142_v29, %v8395_v40 }
 0x210   : > { %v8407_v9 = vadd.f32 %v12166_v12, %v12165_v28  ;;  %v12168_v33 = vld [vmem:[#allocation46_spill] sm:$0xff]  ;;  %v2435_v6 = vmul.f32 %v12143_v24, %v8395_v40  ;;  %v2436_v14 = vmul.f32 %v12144_v7, %v8395_v40  ;;  %v8421_v18 = vmul.f32 %v5067_v22, %v2355_v59 }
 0x211   : > { %12161 = vst [vmem:[#allocation32_spill] sm:$0xff] %v8399_v56  ;;  %12164 = vst [vmem:[#allocation53_spill] sm:$0xff] %v8403_v2  ;;  %v8411_v46 = vadd.f32 %v12169_v0, %v12168_v33  ;;  %v8423_v30 = vmul.f32 %v5068_v55, %v2356_v10  ;;  %v8425_v43 = vmul.f32 %v5069_v48, %v2357_v37  ;;  %v12187_v56 = vld [vmem:[#allocation50_spill] sm:$0xff] }
 0x212   : > { %12167 = vst [vmem:[#allocation40_spill] sm:$0xff] %v8407_v9  ;;  %12171 = vst [vmem:[#allocation56_spill] sm:$0xff] %v8421_v18  ;;  %v8427_v53 = vmul.f32 %v5070_v39, %v2358_v44  ;;  %v2437_v62 = vadd.f32 %v2433_v52, %v2429_v34  ;;  %v2438_v38 = vadd.f32 %v2434_v4, %v2430_v13  ;;  %v8446_v44 = vld [vmem:[%s5752_s13 + $0x2a] ss:$0 sm:$0xff] }
 0x213   : > { %12170 = vst [vmem:[#allocation49_spill] sm:$0xff] %v8411_v46  ;;  %12172 = vst [vmem:[#allocation27_spill] sm:$0xff] %v8423_v30  ;;  %v2439_v1 = vadd.f32 %v2435_v6, %v2431_v35  ;;  %v2440_v28 = vadd.f32 %v2436_v14, %v2432_v20  ;;  %v2441_v12 = vmul.f32 %v12145_v45, %v7986_v31 }
 0x214   : > { %12173 = vst [vmem:[#allocation36_spill] sm:$0xff] %v8425_v43  ;;  %12174 = vst [vmem:[#allocation33_spill] sm:$0xff] %v8427_v53  ;;  %v2442_v33 = vmul.f32 %v12146_v11, %v7986_v31  ;;  %v2443_v59 = vmul.f32 %v12147_v50, %v7986_v31  ;;  %v2444_v10 = vmul.f32 %v8283_v63, %v7986_v31 }
 0x215   : > { %v2449_v37 = vmul.f32 %v8287_v8, %v12140_v42  ;;  %v2450_v13 = vmul.f32 %v8291_v49, %v12140_v42  ;;  %v2451_v20 = vmul.f32 %v8295_v60, %v12140_v42  ;;  %v2452_v35 = vmul.f32 %v8299_v47, %v12140_v42  ;;  %12175 = vst [vmem:[#allocation38_spill] sm:$0xff] %v8446_v44 }
 0x216   : > { %v2445_v22 = vadd.f32 %v2441_v12, %v2437_v62  ;;  %v2446_v55 = vadd.f32 %v2442_v33, %v2438_v38  ;;  %v2447_v48 = vadd.f32 %v2443_v59, %v2439_v1  ;;  %v2448_v39 = vadd.f32 %v2444_v10, %v2440_v28 }
 0x217   : > { %v2457_v34 = vmul.f32 %v8303_v58, %v8446_v44  ;;  %v2458_v0 = vmul.f32 %v8307_v32, %v8446_v44  ;;  %v2459_v52 = vmul.f32 %v8311_v25, %v8446_v44  ;;  %v2460_v4 = vmul.f32 %v8315_v15, %v8446_v44 }
 0x218   : > { %v2453_v6 = vadd.f32 %v2449_v37, %v2445_v22  ;;  %v2454_v14 = vadd.f32 %v2450_v13, %v2446_v55  ;;  %v2455_v53 = vadd.f32 %v2451_v20, %v2447_v48  ;;  %v2456_v62 = vadd.f32 %v2452_v35, %v2448_v39  ;;  %v8473_v55 = vld [vmem:[%s5752_s13 + $0x46] ss:$0 sm:$0xff] }
 0x219   : > { %v2465_v38 = vmul.f32 %v8319_v27, %v8013_v51  ;;  %v2466_v1 = vmul.f32 %v8323_v57, %v8013_v51  ;;  %v2467_v28 = vmul.f32 %v8327_v17, %v8013_v51  ;;  %v2468_v12 = vmul.f32 %v8331_v16, %v8013_v51  ;;  %12176 = vst [vmem:[#allocation30_spill] sm:$0xff] %v8473_v55 }
 0x21a   : > { %v2461_v33 = vadd.f32 %v2457_v34, %v2453_v6  ;;  %v2462_v59 = vadd.f32 %v2458_v0, %v2454_v14  ;;  %v2463_v10 = vadd.f32 %v2459_v52, %v2455_v53  ;;  %v2464_v37 = vadd.f32 %v2460_v4, %v2456_v62  ;;  %v12177_v52 = vld [vmem:[#allocation41_spill] sm:$0xff]  ;;  %v12178_v6 = vld [vmem:[#allocation47_spill] sm:$0xff] }
 0x21b   : > { %v2473_v13 = vmul.f32 %v8335_v36, %v12149_v26  ;;  %v2474_v20 = vmul.f32 %v8339_v3, %v12149_v26  ;;  %v2475_v35 = vmul.f32 %v8343_v21, %v12149_v26  ;;  %v2476_v22 = vmul.f32 %v8347_v41, %v12149_v26 }
 0x21c   : > { %v2469_v48 = vadd.f32 %v2465_v38, %v2461_v33  ;;  %v2470_v39 = vadd.f32 %v2466_v1, %v2462_v59  ;;  %v2471_v34 = vadd.f32 %v2467_v28, %v2463_v10  ;;  %v2472_v53 = vadd.f32 %v2468_v12, %v2464_v37  ;;  %v8484_v38 = vld [vmem:[%s5752_s13 + $0xf] ss:$0 sm:$0xff]  ;;  %v12180_v28 = vld [vmem:[#allocation31_spill] sm:$0xff]  ;;  %v12182_v10 = vld [vmem:[#allocation29_spill] sm:$0xff] }
 0x21d   : > { %v2481_v0 = vmul.f32 %v8354_v61, %v8473_v55  ;;  %v2482_v4 = vmul.f32 %v12177_v52, %v8473_v55  ;;  %v2483_v14 = vmul.f32 %v12178_v6, %v8473_v55  ;;  %v2484_v62 = vmul.f32 %v8366_v19, %v8473_v55  ;;  %12179 = vst [vmem:[#allocation37_spill] sm:$0xff] %v8484_v38  ;;  %v12181_v33 = vld [vmem:[#allocation22_spill] sm:$0xff] }
 0x21e   : > { %v2477_v46 = vadd.f32 %v2473_v13, %v2469_v48  ;;  %v2478_v43 = vadd.f32 %v2474_v20, %v2470_v39  ;;  %v2479_v9 = vadd.f32 %v2475_v35, %v2471_v34  ;;  %v2480_v30 = vadd.f32 %v2476_v22, %v2472_v53  ;;  %v12184_v22 = vld [vmem:[#allocation20_spill] sm:$0xff]  ;;  %v12185_v39 = vld [vmem:[#allocation25_spill] sm:$0xff] }
 0x21f   : > { %v2489_v1 = vmul.f32 %v8026_v23, %v12157_v54  ;;  %v2490_v12 = vmul.f32 %v12180_v28, %v12157_v54  ;;  %v2491_v59 = vmul.f32 %v12181_v33, %v12157_v54  ;;  %v2492_v37 = vmul.f32 %v12182_v10, %v12157_v54  ;;  %v12186_v53 = vld [vmem:[#allocation21_spill] sm:$0xff] }
 0x220   : > { %v8494_v2 = vadd.f32 %v2481_v0, %v2477_v46  ;;  %v8496_v13 = vadd.f32 %v2482_v4, %v2478_v43  ;;  %v8498_v20 = vadd.f32 %v2483_v14, %v2479_v9  ;;  %v8500_v35 = vadd.f32 %v2484_v62, %v2480_v30 }
 0x221   : > { %v2493_v48 = vmul.f32 %v12184_v22, %v8395_v40  ;;  %v2494_v34 = vmul.f32 %v12185_v39, %v8395_v40  ;;  %v2495_v18 = vmul.f32 %v12186_v53, %v8395_v40  ;;  %v2496_v54 = vmul.f32 %v12187_v56, %v8395_v40 }
 0x222   : > { %12183 = vst [vmem:[#allocation54_spill] sm:$0xff] %v8500_v35  ;;  %v2501_v46 = vmul.f32 %v12141_v5, %v8484_v38  ;;  %v2502_v9 = vmul.f32 %v12142_v29, %v8484_v38  ;;  %v2503_v30 = vmul.f32 %v12143_v24, %v8484_v38  ;;  %v2504_v43 = vmul.f32 %v12144_v7, %v8484_v38 }
 0x223   : > { %v2497_v0 = vadd.f32 %v2493_v48, %v2489_v1  ;;  %v2498_v4 = vadd.f32 %v2494_v34, %v2490_v12  ;;  %v2499_v14 = vadd.f32 %v2495_v18, %v2491_v59  ;;  %v2500_v62 = vadd.f32 %v2496_v54, %v2492_v37  ;;  %v8535_v48 = vld [vmem:[%s5752_s13 + $0x2b] ss:$0 sm:$0xff] }
 0x224   : > { %v2509_v40 = vmul.f32 %v12145_v45, %v12140_v42  ;;  %v2510_v51 = vmul.f32 %v12146_v11, %v12140_v42  ;;  %v2511_v29 = vmul.f32 %v12147_v50, %v12140_v42  ;;  %v2512_v24 = vmul.f32 %v8283_v63, %v12140_v42  ;;  %12188 = vst [vmem:[#allocation46_spill] sm:$0xff] %v8535_v48 }
 0x225   : > { %v2505_v5 = vadd.f32 %v2501_v46, %v2497_v0  ;;  %v2506_v35 = vadd.f32 %v2502_v9, %v2498_v4  ;;  %v2507_v38 = vadd.f32 %v2503_v30, %v2499_v14  ;;  %v2508_v1 = vadd.f32 %v2504_v43, %v2500_v62 }
 0x226   : > { %v2517_v18 = vmul.f32 %v8287_v8, %v8446_v44  ;;  %v2518_v12 = vmul.f32 %v8291_v49, %v8446_v44  ;;  %v2519_v59 = vmul.f32 %v8295_v60, %v8446_v44  ;;  %v2520_v37 = vmul.f32 %v8299_v47, %v8446_v44 }
 0x227   : > { %v2513_v34 = vadd.f32 %v2509_v40, %v2505_v5  ;;  %v2514_v54 = vadd.f32 %v2510_v51, %v2506_v35  ;;  %v2515_v46 = vadd.f32 %v2511_v29, %v2507_v38  ;;  %v2516_v9 = vadd.f32 %v2512_v24, %v2508_v1 }
 0x228   : > { %v2525_v30 = vmul.f32 %v8303_v58, %v8535_v48  ;;  %v2526_v43 = vmul.f32 %v8307_v32, %v8535_v48  ;;  %v2527_v0 = vmul.f32 %v8311_v25, %v8535_v48  ;;  %v2528_v4 = vmul.f32 %v8315_v15, %v8535_v48 }
 0x229   : > { %v2521_v14 = vadd.f32 %v2517_v18, %v2513_v34  ;;  %v2522_v62 = vadd.f32 %v2518_v12, %v2514_v54  ;;  %v2523_v47 = vadd.f32 %v2519_v59, %v2515_v46  ;;  %v2524_v40 = vadd.f32 %v2520_v37, %v2516_v9  ;;  %v8562_v54 = vld [vmem:[%s5752_s13 + $0x47] ss:$0 sm:$0xff] }
 0x22a   : > { %v2533_v51 = vmul.f32 %v8319_v27, %v12149_v26  ;;  %v2534_v5 = vmul.f32 %v8323_v57, %v12149_v26  ;;  %v2535_v29 = vmul.f32 %v8327_v17, %v12149_v26  ;;  %v2536_v24 = vmul.f32 %v8331_v16, %v12149_v26  ;;  %12189 = vst [vmem:[#allocation44_spill] sm:$0xff] %v8562_v54 }
 0x22b   : > { %v2529_v38 = vadd.f32 %v2525_v30, %v2521_v14  ;;  %v2530_v35 = vadd.f32 %v2526_v43, %v2522_v62  ;;  %v2531_v1 = vadd.f32 %v2527_v0, %v2523_v47  ;;  %v2532_v18 = vadd.f32 %v2528_v4, %v2524_v40 }
 0x22c   : > { %v2541_v12 = vmul.f32 %v8335_v36, %v8473_v55  ;;  %v2542_v59 = vmul.f32 %v8339_v3, %v8473_v55  ;;  %v2543_v37 = vmul.f32 %v8343_v21, %v8473_v55  ;;  %v2544_v34 = vmul.f32 %v8347_v41, %v8473_v55 }
 0x22d   : > { %v2537_v46 = vadd.f32 %v2533_v51, %v2529_v38  ;;  %v2538_v9 = vadd.f32 %v2534_v5, %v2530_v35  ;;  %v2539_v30 = vadd.f32 %v2535_v29, %v2531_v1  ;;  %v2540_v43 = vadd.f32 %v2536_v24, %v2532_v18 }
 0x22e   : > { %v2549_v47 = vmul.f32 %v8354_v61, %v8562_v54  ;;  %v2550_v0 = vmul.f32 %v12177_v52, %v8562_v54  ;;  %v2551_v4 = vmul.f32 %v12178_v6, %v8562_v54  ;;  %v2552_v14 = vmul.f32 %v8366_v19, %v8562_v54 }
 0x22f   : > { %v2545_v62 = vadd.f32 %v2541_v12, %v2537_v46  ;;  %v2546_v40 = vadd.f32 %v2542_v59, %v2538_v9  ;;  %v2547_v48 = vadd.f32 %v2543_v37, %v2539_v30  ;;  %v2548_v41 = vadd.f32 %v2544_v34, %v2540_v43  ;;  %v12191_v46 = vld [vmem:[#allocation54_spill] sm:$0xff]  ;;  %v12194_v34 = vld [vmem:[#allocation28_spill] sm:$0xff] }
 0x230   : > { %v2561_v51 = vmul.f32 %v8026_v23, %v7986_v31  ;;  %v2562_v5 = vmul.f32 %v12180_v28, %v7986_v31  ;;  %v2563_v29 = vmul.f32 %v12181_v33, %v7986_v31  ;;  %v2564_v24 = vmul.f32 %v12182_v10, %v7986_v31 }
 0x231   : > { %v8580_v38 = vadd.f32 %v2549_v47, %v2545_v62  ;;  %v8582_v35 = vadd.f32 %v2550_v0, %v2546_v40  ;;  %v8584_v1 = vadd.f32 %v2551_v4, %v2547_v48  ;;  %v8586_v18 = vadd.f32 %v2552_v14, %v2548_v41  ;;  %v12192_v4 = vld [vmem:[#allocation24_spill] sm:$0xff]  ;;  %v12193_v62 = vld [vmem:[#allocation55_spill] sm:$0xff] }
 0x232   : > { %v2565_v12 = vmul.f32 %v12184_v22, %v12140_v42  ;;  %v2566_v59 = vmul.f32 %v12185_v39, %v12140_v42  ;;  %v2567_v37 = vmul.f32 %v12186_v53, %v12140_v42  ;;  %v2568_v31 = vmul.f32 %v12187_v56, %v12140_v42  ;;  %v12195_v41 = vld [vmem:[#allocation23_spill] sm:$0xff] }
 0x233   : > { %12190 = vst [vmem:[#allocation41_spill] sm:$0xff] %v8584_v1  ;;  %v2573_v14 = vmul.f32 %v12192_v4, %v8446_v44  ;;  %v2574_v40 = vmul.f32 %v12193_v62, %v8446_v44  ;;  %v2575_v54 = vmul.f32 %v12194_v34, %v8446_v44  ;;  %v2576_v48 = vmul.f32 %v12144_v7, %v8446_v44 }
 0x234   : > { %v2569_v30 = vadd.f32 %v2565_v12, %v2561_v51  ;;  %v2570_v43 = vadd.f32 %v2566_v59, %v2562_v5  ;;  %v2571_v47 = vadd.f32 %v2567_v37, %v2563_v29  ;;  %v2572_v0 = vadd.f32 %v2568_v31, %v2564_v24 }
 0x235   : > { %v2581_v1 = vmul.f32 %v12145_v45, %v12195_v41  ;;  %v2582_v51 = vmul.f32 %v12146_v11, %v12195_v41  ;;  %v2583_v5 = vmul.f32 %v12147_v50, %v12195_v41  ;;  %v2584_v29 = vmul.f32 %v8283_v63, %v12195_v41  ;;  %v12196_v11 = vld [vmem:[#allocation26_spill] sm:$0xff] }
 0x236   : > { %v2577_v24 = vadd.f32 %v2573_v14, %v2569_v30  ;;  %v2578_v12 = vadd.f32 %v2574_v40, %v2570_v43  ;;  %v2579_v59 = vadd.f32 %v2575_v54, %v2571_v47  ;;  %v2580_v37 = vadd.f32 %v2576_v48, %v2572_v0  ;;  %v12197_v40 = vld [vmem:[#allocation43_spill] sm:$0xff] }
 0x237   : > { %v2589_v31 = vmul.f32 %v8287_v8, %v12149_v26  ;;  %v2590_v9 = vmul.f32 %v8291_v49, %v12149_v26  ;;  %v2591_v45 = vmul.f32 %v8295_v60, %v12149_v26  ;;  %v2592_v7 = vmul.f32 %v12196_v11, %v12149_v26 }
 0x238   : > { %v2585_v50 = vadd.f32 %v2581_v1, %v2577_v24  ;;  %v2586_v34 = vadd.f32 %v2582_v51, %v2578_v12  ;;  %v2587_v62 = vadd.f32 %v2583_v5, %v2579_v59  ;;  %v2588_v41 = vadd.f32 %v2584_v29, %v2580_v37 }
 0x239   : > { %v2597_v54 = vmul.f32 %v8303_v58, %v8473_v55  ;;  %v2598_v48 = vmul.f32 %v8307_v32, %v8473_v55  ;;  %v2599_v30 = vmul.f32 %v8311_v25, %v8473_v55  ;;  %v2600_v43 = vmul.f32 %v8315_v15, %v8473_v55 }
 0x23a   : > { %v2593_v47 = vadd.f32 %v2589_v31, %v2585_v50  ;;  %v2594_v0 = vadd.f32 %v2590_v9, %v2586_v34  ;;  %v2595_v14 = vadd.f32 %v2591_v45, %v2587_v62  ;;  %v2596_v1 = vadd.f32 %v2592_v7, %v2588_v41  ;;  %v12198_v31 = vld [vmem:[#allocation51_spill] sm:$0xff]  ;;  %v12199_v9 = vld [vmem:[#allocation45_spill] sm:$0xff]  ;;  %v8653_v41 = vld [vmem:[%s5752_s13 + $0x62] ss:$0 sm:$0xff] }
 0x23b   : > { %v2605_v51 = vmul.f32 %v8319_v27, %v12197_v40  ;;  %v2606_v5 = vmul.f32 %v8323_v57, %v12197_v40  ;;  %v2607_v29 = vmul.f32 %v8327_v17, %v12197_v40  ;;  %v2608_v24 = vmul.f32 %v8331_v16, %v12197_v40  ;;  %12200 = vst [vmem:[#allocation47_spill] sm:$0xff] %v8653_v41 }
 0x23c   : > { %v2601_v12 = vadd.f32 %v2597_v54, %v2593_v47  ;;  %v2602_v59 = vadd.f32 %v2598_v48, %v2594_v0  ;;  %v2603_v37 = vadd.f32 %v2599_v30, %v2595_v14  ;;  %v2604_v50 = vadd.f32 %v2600_v43, %v2596_v1 }
 0x23d   : > { %v2613_v45 = vmul.f32 %v8335_v36, %v12198_v31  ;;  %v2614_v7 = vmul.f32 %v8339_v3, %v12198_v31  ;;  %v2615_v34 = vmul.f32 %v8343_v21, %v12198_v31  ;;  %v2616_v62 = vmul.f32 %v12199_v9, %v12198_v31 }
 0x23e   : > { %v2609_v17 = vadd.f32 %v2605_v51, %v2601_v12  ;;  %v2610_v40 = vadd.f32 %v2606_v5, %v2602_v59  ;;  %v2611_v54 = vadd.f32 %v2607_v29, %v2603_v37  ;;  %v2612_v48 = vadd.f32 %v2608_v24, %v2604_v50 }
 0x23f   : > { %v2621_v30 = vmul.f32 %v8354_v61, %v8653_v41  ;;  %v2622_v43 = vmul.f32 %v12177_v52, %v8653_v41  ;;  %v2623_v47 = vmul.f32 %v12178_v6, %v8653_v41  ;;  %v2624_v0 = vmul.f32 %v8366_v19, %v8653_v41 }
 0x240   : > { %v2617_v14 = vadd.f32 %v2613_v45, %v2609_v17  ;;  %v2618_v1 = vadd.f32 %v2614_v7, %v2610_v40  ;;  %v2619_v9 = vadd.f32 %v2615_v34, %v2611_v54  ;;  %v2620_v21 = vadd.f32 %v2616_v62, %v2612_v48  ;;  %v12206_v62 = vld [vmem:[#allocation46_spill] sm:$0xff]  ;;  %v12208_v54 = vld [vmem:[#allocation28_spill] sm:$0xff] }
 0x241   : > { %v2633_v51 = vmul.f32 %v8026_v23, %v12140_v42  ;;  %v2634_v5 = vmul.f32 %v12180_v28, %v12140_v42  ;;  %v2635_v29 = vmul.f32 %v12181_v33, %v12140_v42  ;;  %v2636_v24 = vmul.f32 %v12182_v10, %v12140_v42  ;;  %v12209_v48 = vld [vmem:[#allocation52_spill] sm:$0xff] }
 0x242   : > { %v2625_v12 = vadd.f32 %v2621_v30, %v2617_v14  ;;  %v2626_v59 = vadd.f32 %v2622_v43, %v2618_v1  ;;  %v2627_v37 = vadd.f32 %v2623_v47, %v2619_v9  ;;  %v2628_v50 = vadd.f32 %v2624_v0, %v2620_v21  ;;  %v12211_v43 = vld [vmem:[#allocation42_spill] sm:$0xff]  ;;  %v12212_v0 = vld [vmem:[#allocation35_spill] sm:$0xff] }
 0x243   : > { %v2637_v17 = vmul.f32 %v12184_v22, %v8446_v44  ;;  %v2638_v45 = vmul.f32 %v12185_v39, %v8446_v44  ;;  %v2639_v23 = vmul.f32 %v12186_v53, %v8446_v44  ;;  %v2640_v28 = vmul.f32 %v12187_v56, %v8446_v44  ;;  %v12203_v22 = vld [vmem:[#allocation41_spill] sm:$0xff] }
 0x244   : > { %v12201_v33 = vmax.f32 %v8494_v2, %v8580_v38  ;;  %v12202_v21 = vmax.f32 %v8496_v13, %v8582_v35  ;;  %v12204_v7 = vmax.f32 %v8498_v20, %v12203_v22  ;;  %v12205_v53 = vmax.f32 %v12191_v46, %v8586_v18  ;;  %v12207_v13 = vld [vmem:[#allocation55_spill] sm:$0xff]  ;;  %v12210_v18 = vld [vmem:[#allocation34_spill] sm:$0xff] }
 0x245   : > { %v2641_v56 = vadd.f32 %v2637_v17, %v2633_v51  ;;  %v2642_v9 = vadd.f32 %v2638_v45, %v2634_v5  ;;  %v2643_v2 = vadd.f32 %v2639_v23, %v2635_v29  ;;  %v2644_v38 = vadd.f32 %v2640_v28, %v2636_v24  ;;  %v12213_v23 = vld [vmem:[#allocation44_spill] sm:$0xff] }
 0x246   : > { %v8682_v42 = vmax.f32 %v12201_v33, %v2625_v12  ;;  %v8687_v10 = vmax.f32 %v12202_v21, %v2626_v59  ;;  %v8692_v39 = vmax.f32 %v12204_v7, %v2627_v37  ;;  %v8697_v34 = vmax.f32 %v12205_v53, %v2628_v50 }
 0x247   : > { %v2645_v40 = vmul.f32 %v12192_v4, %v12206_v62  ;;  %v2646_v35 = vmul.f32 %v12207_v13, %v12206_v62  ;;  %v2647_v20 = vmul.f32 %v12208_v54, %v12206_v62  ;;  %v2648_v30 = vmul.f32 %v12209_v48, %v12206_v62 }
 0x248   : > { %v2653_v46 = vmul.f32 %v12210_v18, %v12149_v26  ;;  %v2654_v47 = vmul.f32 %v12211_v43, %v12149_v26  ;;  %v2655_v14 = vmul.f32 %v12212_v0, %v12149_v26  ;;  %v2656_v4 = vmul.f32 %v8283_v63, %v12149_v26  ;;  %v12215_v43 = vld [vmem:[#allocation48_spill] sm:$0xff]  ;;  %v12216_v0 = vld [vmem:[#allocation45_spill] sm:$0xff] }
 0x249   : > { %v2649_v1 = vadd.f32 %v2645_v40, %v2641_v56  ;;  %v2650_v51 = vadd.f32 %v2646_v35, %v2642_v9  ;;  %v2651_v5 = vadd.f32 %v2647_v20, %v2643_v2  ;;  %v2652_v29 = vadd.f32 %v2648_v30, %v2644_v38  ;;  %v12214_v40 = vld [vmem:[#allocation39_spill] sm:$0xff] }
 0x24a   : > { %v2661_v24 = vmul.f32 %v8287_v8, %v8473_v55  ;;  %v2662_v12 = vmul.f32 %v8291_v49, %v8473_v55  ;;  %v2663_v59 = vmul.f32 %v8295_v60, %v8473_v55  ;;  %v2664_v37 = vmul.f32 %v12196_v11, %v8473_v55 }
 0x24b   : > { %v2657_v50 = vadd.f32 %v2653_v46, %v2649_v1  ;;  %v2658_v17 = vadd.f32 %v2654_v47, %v2650_v51  ;;  %v2659_v45 = vadd.f32 %v2655_v14, %v2651_v5  ;;  %v2660_v26 = vadd.f32 %v2656_v4, %v2652_v29  ;;  %v8748_v4 = vld [vmem:[%s5752_s13 + $0x63] ss:$0 sm:$0xff] }
 0x24c   : > { %v2669_v28 = vmul.f32 %v8303_v58, %v12213_v23  ;;  %v2670_v33 = vmul.f32 %v8307_v32, %v12213_v23  ;;  %v2671_v21 = vmul.f32 %v8311_v25, %v12213_v23  ;;  %v2672_v22 = vmul.f32 %v8315_v15, %v12213_v23  ;;  %12217 = vst [vmem:[#allocation31_spill] sm:$0xff] %v8748_v4 }
 0x24d   : > { %v2665_v7 = vadd.f32 %v2661_v24, %v2657_v50  ;;  %v2666_v53 = vadd.f32 %v2662_v12, %v2658_v17  ;;  %v2667_v56 = vadd.f32 %v2663_v59, %v2659_v45  ;;  %v2668_v9 = vadd.f32 %v2664_v37, %v2660_v26  ;;  %v8758_v26 = vld [vmem:[#allocation7] sm:$0xff] }
 0x24e   : > { %v2677_v2 = vmul.f32 %v8319_v27, %v12198_v31  ;;  %v2678_v38 = vmul.f32 %v8323_v57, %v12198_v31  ;;  %v2679_v13 = vmul.f32 %v12214_v40, %v12198_v31  ;;  %v2680_v35 = vmul.f32 %v8331_v16, %v12198_v31 }
 0x24f   : > { %v2673_v54 = vadd.f32 %v2669_v28, %v2665_v7  ;;  %v2674_v20 = vadd.f32 %v2670_v33, %v2666_v53  ;;  %v2675_v48 = vadd.f32 %v2671_v21, %v2667_v56  ;;  %v2676_v30 = vadd.f32 %v2672_v22, %v2668_v9  ;;  %v12218_v28 = vld [vmem:[#allocation19_spill] sm:$0xff]  ;;  %v8766_v7 = vld [vmem:[#allocation7 + $0x10] sm:$0xff]  ;;  %v8770_v56 = vld [vmem:[#allocation7 + $0x18] sm:$0xff] }
 0x250   : > { %v2685_v18 = vmul.f32 %v8335_v36, %v8653_v41  ;;  %v2686_v46 = vmul.f32 %v8339_v3, %v8653_v41  ;;  %v2687_v47 = vmul.f32 %v12215_v43, %v8653_v41  ;;  %v2688_v14 = vmul.f32 %v12216_v0, %v8653_v41  ;;  %v8762_v21 = vld [vmem:[#allocation7 + $0x8] sm:$0xff] }
 0x251   : > { %v2681_v1 = vadd.f32 %v2677_v2, %v2673_v54  ;;  %v2682_v31 = vadd.f32 %v2678_v38, %v2674_v20  ;;  %v2683_v51 = vadd.f32 %v2679_v13, %v2675_v48  ;;  %v2684_v5 = vadd.f32 %v2680_v35, %v2676_v30  ;;  %v8774_v54 = vld [vmem:[#allocation7 + $0x20] sm:$0xff]  ;;  %v12220_v20 = vld [vmem:[#allocation37_spill] sm:$0xff]  ;;  %v8778_v30 = vld [vmem:[#allocation7 + $0x28] sm:$0xff] }
 0x252   : > { %v2693_v29 = vmul.f32 %v8354_v61, %v8748_v4  ;;  %v2694_v24 = vmul.f32 %v12177_v52, %v8748_v4  ;;  %v2695_v12 = vmul.f32 %v12178_v6, %v8748_v4  ;;  %v2696_v59 = vmul.f32 %v8366_v19, %v8748_v4  ;;  %12219 = vst [vmem:[#allocation22_spill] sm:$0xff] %v8774_v54  ;;  %v8799_v4 = vld [vmem:[%s5752_s13 + $0x10] ss:$0 sm:$0xff]  ;;  %v12225_v41 = vld [vmem:[#allocation32_spill] sm:$0xff] }
 0x253   : > { %v2689_v37 = vadd.f32 %v2685_v18, %v2681_v1  ;;  %v2690_v50 = vadd.f32 %v2686_v46, %v2682_v31  ;;  %v2691_v17 = vadd.f32 %v2687_v47, %v2683_v51  ;;  %v2692_v45 = vadd.f32 %v2688_v14, %v2684_v5  ;;  %12221 = vst [vmem:[#allocation29_spill] sm:$0xff] %v8778_v30  ;;  %v8782_v46 = vld [vmem:[#allocation7 + $0x30] sm:$0xff]  ;;  %v8786_v14 = vld [vmem:[#allocation7 + $0x38] sm:$0xff] }
 0x254   : > { %v2767_v33 = vmul.f32 %v8758_v26, %v12218_v28  ;;  %v2768_v22 = vmul.f32 %v8762_v21, %v12218_v28  ;;  %v2769_v53 = vmul.f32 %v8766_v7, %v12218_v28  ;;  %v2770_v9 = vmul.f32 %v8770_v56, %v12218_v28  ;;  %12222 = vst [vmem:[#allocation20_spill] sm:$0xff] %v8782_v46 }
 0x255   : > { %v2697_v2 = vadd.f32 %v2693_v29, %v2689_v37  ;;  %v2698_v38 = vadd.f32 %v2694_v24, %v2690_v50  ;;  %v2699_v13 = vadd.f32 %v2695_v12, %v2691_v17  ;;  %v2700_v35 = vadd.f32 %v2696_v59, %v2692_v45  ;;  %12223 = vst [vmem:[#allocation25_spill] sm:$0xff] %v8786_v14  ;;  %v5079_v24 = vld [vmem:[%s6629_s15 + $0xc0] sm:$0xff]  ;;  %v5080_v12 = vld [vmem:[%s6629_s15 + $0xc8] sm:$0xff]  ;;  %v5081_v59 = vld [vmem:[%s6629_s15 + $0xd0] sm:$0xff] }
 0x256   : > { %v2771_v48 = vmul.f32 %v8774_v54, %v12220_v20  ;;  %v2772_v18 = vmul.f32 %v8778_v30, %v12220_v20  ;;  %v2773_v47 = vmul.f32 %v8782_v46, %v12220_v20  ;;  %v2774_v1 = vmul.f32 %v8786_v14, %v12220_v20  ;;  %v5082_v37 = vld [vmem:[%s6629_s15 + $0xd8] sm:$0xff]  ;;  %12224 = vst [vmem:[#allocation21_spill] sm:$0xff] %v8799_v4 }
 0x257   : > { %v2701_v31 = vmax.f32 %v8682_v42, %v2697_v2  ;;  %v2702_v51 = vmax.f32 %v8687_v10, %v2698_v38  ;;  %v2703_v5 = vmax.f32 %v8692_v39, %v2699_v13  ;;  %v2704_v29 = vmax.f32 %v8697_v34, %v2700_v35  ;;  %v12226_v14 = vld [vmem:[#allocation56_spill] sm:$0xff]  ;;  %v12228_v42 = vld [vmem:[#allocation53_spill] sm:$0xff]  ;;  %v12229_v10 = vld [vmem:[#allocation27_spill] sm:$0xff] }
 0x258   : > { %v2775_v50 = vadd.f32 %v2771_v48, %v2767_v33  ;;  %v2776_v17 = vadd.f32 %v2772_v18, %v2768_v22  ;;  %v2777_v45 = vadd.f32 %v2773_v47, %v2769_v53  ;;  %v2778_v28 = vadd.f32 %v2774_v1, %v2770_v9  ;;  %v12231_v39 = vld [vmem:[#allocation40_spill] sm:$0xff]  ;;  %v12234_v13 = vld [vmem:[#allocation49_spill] sm:$0xff]  ;;  %v8817_v22 = vld [vmem:[#allocation7 + $0x40] sm:$0xff] }
 0x259   : > { %v8803_v46 = vadd.f32 %v12226_v14, %v12225_v41  ;;  %v8807_v2 = vadd.f32 %v12229_v10, %v12228_v42  ;;  %v12232_v34 = vld [vmem:[#allocation36_spill] sm:$0xff]  ;;  %v12235_v35 = vld [vmem:[#allocation33_spill] sm:$0xff]  ;;  %12237 = vst [vmem:[#allocation26_spill] sm:$0xff] %v8817_v22  ;;  %v2779_v53 = vmul.f32 %v8817_v22, %v8799_v4  ;;  %v8833_v1 = vmul.f32 %v5079_v24, %v2701_v31 }
 0x25a   : > { %v8811_v38 = vadd.f32 %v12232_v34, %v12231_v39  ;;  %v8815_v33 = vadd.f32 %v12235_v35, %v12234_v13  ;;  %v8821_v9 = vld [vmem:[#allocation7 + $0x48] sm:$0xff]  ;;  %v8825_v48 = vld [vmem:[#allocation7 + $0x50] sm:$0xff]  ;;  %v8829_v47 = vld [vmem:[#allocation7 + $0x58] sm:$0xff]  ;;  %v8835_v42 = vmul.f32 %v5080_v12, %v2702_v51  ;;  %v8837_v10 = vmul.f32 %v5081_v59, %v2703_v5 }
 0x25b   : > { %12227 = vst [vmem:[#allocation50_spill] sm:$0xff] %v8803_v46  ;;  %12230 = vst [vmem:[#allocation54_spill] sm:$0xff] %v8807_v2  ;;  %v2780_v41 = vmul.f32 %v8821_v9, %v8799_v4  ;;  %v2781_v18 = vmul.f32 %v8825_v48, %v8799_v4  ;;  %v2782_v14 = vmul.f32 %v8829_v47, %v8799_v4  ;;  %v8845_v46 = vld [vmem:[#allocation7 + $0x68] sm:$0xff]  ;;  %v8849_v51 = vld [vmem:[#allocation7 + $0x70] sm:$0xff] }
 0x25c   : > { %12233 = vst [vmem:[#allocation24_spill] sm:$0xff] %v8811_v38  ;;  %12236 = vst [vmem:[#allocation23_spill] sm:$0xff] %v8815_v33  ;;  %v8839_v39 = vmul.f32 %v5082_v37, %v2704_v29  ;;  %v2783_v34 = vadd.f32 %v2779_v53, %v2775_v50  ;;  %v8841_v38 = vld [vmem:[#allocation7 + $0x60] sm:$0xff]  ;;  %v2788_v31 = vmul.f32 %v8845_v46, %v8446_v44  ;;  %v8864_v50 = vld [vmem:[%s5752_s13 + $0x2c] ss:$0 sm:$0xff] }
 0x25d   : > { %12238 = vst [vmem:[#allocation43_spill] sm:$0xff] %v8821_v9  ;;  %12239 = vst [vmem:[#allocation51_spill] sm:$0xff] %v8825_v48  ;;  %v2784_v13 = vadd.f32 %v2780_v41, %v2776_v17  ;;  %v2785_v35 = vadd.f32 %v2781_v18, %v2777_v45  ;;  %v2786_v33 = vadd.f32 %v2782_v14, %v2778_v28 }
 0x25e   : > { %12240 = vst [vmem:[#allocation41_spill] sm:$0xff] %v8833_v1  ;;  %12241 = vst [vmem:[#allocation46_spill] sm:$0xff] %v8835_v42  ;;  %v2787_v2 = vmul.f32 %v8841_v38, %v8446_v44  ;;  %v2789_v5 = vmul.f32 %v8849_v51, %v8446_v44  ;;  %v2790_v29 = vmul.f32 %v8283_v63, %v8446_v44 }
 0x25f   : > { %12242 = vst [vmem:[#allocation55_spill] sm:$0xff] %v8837_v10  ;;  %12243 = vst [vmem:[#allocation28_spill] sm:$0xff] %v8839_v39  ;;  %v2795_v24 = vmul.f32 %v8287_v8, %v12206_v62  ;;  %v2796_v12 = vmul.f32 %v8291_v49, %v12206_v62  ;;  %v2797_v59 = vmul.f32 %v8295_v60, %v12206_v62 }
 0x260   : > { %v2798_v37 = vmul.f32 %v12196_v11, %v12206_v62  ;;  %v2791_v17 = vadd.f32 %v2787_v2, %v2783_v34  ;;  %v2792_v45 = vadd.f32 %v2788_v31, %v2784_v13  ;;  %v2793_v28 = vadd.f32 %v2789_v5, %v2785_v35 }
 0x261   : > { %v2794_v53 = vadd.f32 %v2790_v29, %v2786_v33  ;;  %v2803_v41 = vmul.f32 %v8303_v58, %v8864_v50  ;;  %v2804_v18 = vmul.f32 %v8307_v32, %v8864_v50  ;;  %v2805_v14 = vmul.f32 %v8311_v25, %v8864_v50 }
 0x262   : > { %v2806_v39 = vmul.f32 %v8315_v15, %v8864_v50  ;;  %v2799_v10 = vadd.f32 %v2795_v24, %v2791_v17  ;;  %v2800_v42 = vadd.f32 %v2796_v12, %v2792_v45  ;;  %v2801_v1 = vadd.f32 %v2797_v59, %v2793_v28  ;;  %v8891_v45 = vld [vmem:[%s5752_s13 + $0x48] ss:$0 sm:$0xff] }
 0x263   : > { %v2802_v2 = vadd.f32 %v2798_v37, %v2794_v53  ;;  %v2811_v33 = vmul.f32 %v8319_v27, %v8473_v55  ;;  %v2812_v34 = vmul.f32 %v8323_v57, %v8473_v55  ;;  %v2813_v13 = vmul.f32 %v12214_v40, %v8473_v55  ;;  %12244 = vst [vmem:[#allocation52_spill] sm:$0xff] %v8891_v45 }
 0x264   : > { %v2814_v35 = vmul.f32 %v8331_v16, %v8473_v55  ;;  %v2807_v31 = vadd.f32 %v2803_v41, %v2799_v10  ;;  %v2808_v5 = vadd.f32 %v2804_v18, %v2800_v42  ;;  %v2809_v29 = vadd.f32 %v2805_v14, %v2801_v1 }
 0x265   : > { %v2810_v24 = vadd.f32 %v2806_v39, %v2802_v2  ;;  %v2819_v12 = vmul.f32 %v8335_v36, %v12213_v23  ;;  %v2820_v59 = vmul.f32 %v8339_v3, %v12213_v23  ;;  %v2821_v37 = vmul.f32 %v12215_v43, %v12213_v23 }
 0x266   : > { %v2822_v17 = vmul.f32 %v12216_v0, %v12213_v23  ;;  %v2815_v28 = vadd.f32 %v2811_v33, %v2807_v31  ;;  %v2816_v10 = vadd.f32 %v2812_v34, %v2808_v5  ;;  %v2817_v42 = vadd.f32 %v2813_v13, %v2809_v29  ;;  %v8902_v33 = vld [vmem:[%s5752_s13 + $0x11] ss:$0 sm:$0xff] }
 0x267   : > { %v2818_v1 = vadd.f32 %v2814_v35, %v2810_v24  ;;  %v2827_v39 = vmul.f32 %v8354_v61, %v8891_v45  ;;  %v2828_v53 = vmul.f32 %v12177_v52, %v8891_v45  ;;  %v2829_v41 = vmul.f32 %v12178_v6, %v8891_v45  ;;  %12245 = vst [vmem:[#allocation34_spill] sm:$0xff] %v8902_v33 }
 0x268   : > { %v2830_v18 = vmul.f32 %v8366_v19, %v8891_v45  ;;  %v2823_v14 = vadd.f32 %v2819_v12, %v2815_v28  ;;  %v2824_v2 = vadd.f32 %v2820_v59, %v2816_v10  ;;  %v2825_v55 = vadd.f32 %v2821_v37, %v2817_v42  ;;  %v12247_v10 = vld [vmem:[#allocation25_spill] sm:$0xff] }
 0x269   : > { %v2826_v44 = vadd.f32 %v2822_v17, %v2818_v1  ;;  %v2835_v34 = vmul.f32 %v8758_v26, %v12220_v20  ;;  %v2836_v13 = vmul.f32 %v8762_v21, %v12220_v20  ;;  %v2837_v35 = vmul.f32 %v8766_v7, %v12220_v20  ;;  %v12246_v17 = vld [vmem:[#allocation20_spill] sm:$0xff] }
 0x26a   : > { %v2838_v31 = vmul.f32 %v8770_v56, %v12220_v20  ;;  %v8912_v5 = vadd.f32 %v2827_v39, %v2823_v14  ;;  %v8914_v29 = vadd.f32 %v2828_v53, %v2824_v2  ;;  %v8916_v24 = vadd.f32 %v2829_v41, %v2825_v55 }
 0x26b   : > { %v8918_v12 = vadd.f32 %v2830_v18, %v2826_v44  ;;  %v2839_v59 = vmul.f32 %v8774_v54, %v8799_v4  ;;  %v2840_v37 = vmul.f32 %v8778_v30, %v8799_v4  ;;  %v2841_v28 = vmul.f32 %v12246_v17, %v8799_v4 }
 0x26c   : > { %v2842_v20 = vmul.f32 %v12247_v10, %v8799_v4  ;;  %v2847_v42 = vmul.f32 %v8817_v22, %v8902_v33  ;;  %v2848_v55 = vmul.f32 %v8821_v9, %v8902_v33  ;;  %v2849_v44 = vmul.f32 %v8825_v48, %v8902_v33 }
 0x26d   : > { %v2850_v1 = vmul.f32 %v8829_v47, %v8902_v33  ;;  %v2843_v39 = vadd.f32 %v2839_v59, %v2835_v34  ;;  %v2844_v53 = vadd.f32 %v2840_v37, %v2836_v13  ;;  %v2845_v41 = vadd.f32 %v2841_v28, %v2837_v35  ;;  %v8953_v37 = vld [vmem:[%s5752_s13 + $0x2d] ss:$0 sm:$0xff] }
 0x26e   : > { %v2846_v18 = vadd.f32 %v2842_v20, %v2838_v31  ;;  %v2855_v14 = vmul.f32 %v8841_v38, %v12206_v62  ;;  %v2856_v2 = vmul.f32 %v8845_v46, %v12206_v62  ;;  %v2857_v4 = vmul.f32 %v8849_v51, %v12206_v62 }
 0x26f   : > { %v2858_v48 = vmul.f32 %v8283_v63, %v12206_v62  ;;  %v2851_v9 = vadd.f32 %v2847_v42, %v2843_v39  ;;  %v2852_v22 = vadd.f32 %v2848_v55, %v2844_v53  ;;  %v2853_v33 = vadd.f32 %v2849_v44, %v2845_v41 }
 0x270   : > { %v2854_v34 = vadd.f32 %v2850_v1, %v2846_v18  ;;  %v2863_v13 = vmul.f32 %v8287_v8, %v8864_v50  ;;  %v2864_v35 = vmul.f32 %v8291_v49, %v8864_v50  ;;  %v2865_v31 = vmul.f32 %v8295_v60, %v8864_v50 }
 0x271   : > { %v2866_v59 = vmul.f32 %v12196_v11, %v8864_v50  ;;  %v2859_v28 = vadd.f32 %v2855_v14, %v2851_v9  ;;  %v2860_v63 = vadd.f32 %v2856_v2, %v2852_v22  ;;  %v2861_v20 = vadd.f32 %v2857_v4, %v2853_v33 }
 0x272   : > { %v2862_v42 = vadd.f32 %v2858_v48, %v2854_v34  ;;  %v2871_v55 = vmul.f32 %v8303_v58, %v8953_v37  ;;  %v2872_v8 = vmul.f32 %v8307_v32, %v8953_v37  ;;  %v2873_v49 = vmul.f32 %v8311_v25, %v8953_v37 }
 0x273   : > { %v2874_v60 = vmul.f32 %v8315_v15, %v8953_v37  ;;  %v2867_v44 = vadd.f32 %v2863_v13, %v2859_v28  ;;  %v2868_v11 = vadd.f32 %v2864_v35, %v2860_v63  ;;  %v2869_v1 = vadd.f32 %v2865_v31, %v2861_v20  ;;  %v12249_v31 = vld [vmem:[#allocation38_spill] sm:$0xff] }
 0x274   : > { %v2870_v9 = vadd.f32 %v2866_v59, %v2862_v42  ;;  %v2879_v4 = vmul.f32 %v8319_v27, %v12213_v23  ;;  %v2880_v58 = vmul.f32 %v8323_v57, %v12213_v23  ;;  %v2881_v32 = vmul.f32 %v12214_v40, %v12213_v23  ;;  %v8980_v40 = vld [vmem:[%s5752_s13 + $0x49] ss:$0 sm:$0xff] }
 0x275   : > { %v2882_v25 = vmul.f32 %v8331_v16, %v12213_v23  ;;  %v2875_v22 = vadd.f32 %v2871_v55, %v2867_v44  ;;  %v2876_v48 = vadd.f32 %v2872_v8, %v2868_v11  ;;  %v2877_v15 = vadd.f32 %v2873_v49, %v2869_v1  ;;  %12248 = vst [vmem:[#allocation42_spill] sm:$0xff] %v8980_v40  ;;  %v9092_v44 = vld [vmem:[#allocation7 + $0xe8] sm:$0xff] }
 0x276   : > { %v2878_v33 = vadd.f32 %v2874_v60, %v2870_v9  ;;  %v2887_v39 = vmul.f32 %v8335_v36, %v8891_v45  ;;  %v2888_v53 = vmul.f32 %v8339_v3, %v8891_v45  ;;  %v2889_v27 = vmul.f32 %v12215_v43, %v8891_v45  ;;  %12262 = vst [vmem:[#allocation37_spill] sm:$0xff] %v9092_v44 }
 0x277   : > { %v2890_v57 = vmul.f32 %v12216_v0, %v8891_v45  ;;  %v2883_v41 = vadd.f32 %v2879_v4, %v2875_v22  ;;  %v2884_v16 = vadd.f32 %v2880_v58, %v2876_v48  ;;  %v2885_v18 = vadd.f32 %v2881_v32, %v2877_v15  ;;  %v12251_v48 = vld [vmem:[#allocation43_spill] sm:$0xff] }
 0x278   : > { %v2886_v14 = vadd.f32 %v2882_v25, %v2878_v33  ;;  %v2895_v2 = vmul.f32 %v8354_v61, %v8980_v40  ;;  %v2896_v36 = vmul.f32 %v12177_v52, %v8980_v40  ;;  %v2897_v3 = vmul.f32 %v12178_v6, %v8980_v40  ;;  %v12250_v25 = vld [vmem:[#allocation26_spill] sm:$0xff]  ;;  %v12252_v33 = vld [vmem:[#allocation51_spill] sm:$0xff] }
 0x279   : > { %v2898_v43 = vmul.f32 %v8366_v19, %v8980_v40  ;;  %v2891_v34 = vadd.f32 %v2887_v39, %v2883_v41  ;;  %v2892_v0 = vadd.f32 %v2888_v53, %v2884_v16  ;;  %v2893_v13 = vadd.f32 %v2889_v27, %v2885_v18  ;;  %v12253_v27 = vld [vmem:[#allocation30_spill] sm:$0xff] }
 0x27a   : > { %v2894_v35 = vadd.f32 %v2890_v57, %v2886_v14  ;;  %v2907_v59 = vmul.f32 %v8758_v26, %v12249_v31  ;;  %v2908_v28 = vmul.f32 %v8762_v21, %v12249_v31  ;;  %v2909_v61 = vmul.f32 %v8766_v7, %v12249_v31  ;;  %v9036_v18 = vld [vmem:[#allocation7 + $0x78] sm:$0xff] }
 0x27b   : > { %v2910_v52 = vmul.f32 %v8770_v56, %v12249_v31  ;;  %v8998_v6 = vadd.f32 %v2895_v2, %v2891_v34  ;;  %v9000_v63 = vadd.f32 %v2896_v36, %v2892_v0  ;;  %v9002_v19 = vadd.f32 %v2897_v3, %v2893_v13  ;;  %v9040_v34 = vld [vmem:[#allocation7 + $0x80] sm:$0xff]  ;;  %v9044_v13 = vld [vmem:[#allocation7 + $0x88] sm:$0xff]  ;;  %v9048_v31 = vld [vmem:[#allocation7 + $0x90] sm:$0xff] }
 0x27c   : > { %v9004_v20 = vadd.f32 %v2898_v43, %v2894_v35  ;;  %v2911_v42 = vmul.f32 %v8774_v54, %v12206_v62  ;;  %v2912_v55 = vmul.f32 %v8778_v30, %v12206_v62  ;;  %v2913_v8 = vmul.f32 %v12246_v17, %v12206_v62 }
 0x27d   : > { %v2914_v49 = vmul.f32 %v12247_v10, %v12206_v62  ;;  %v2919_v22 = vmul.f32 %v12250_v25, %v8864_v50  ;;  %v2920_v15 = vmul.f32 %v12251_v48, %v8864_v50  ;;  %v2921_v39 = vmul.f32 %v12252_v33, %v8864_v50 }
 0x27e   : > { %v2915_v9 = vadd.f32 %v2911_v42, %v2907_v59  ;;  %v2916_v4 = vadd.f32 %v2912_v55, %v2908_v28  ;;  %v2917_v58 = vadd.f32 %v2913_v8, %v2909_v61  ;;  %v2922_v53 = vmul.f32 %v8829_v47, %v8864_v50  ;;  %v9052_v28 = vld [vmem:[#allocation7 + $0x98] sm:$0xff] }
 0x27f   : > { %v2918_v32 = vadd.f32 %v2914_v49, %v2910_v52  ;;  %v2927_v57 = vmul.f32 %v8841_v38, %v12253_v27  ;;  %v2928_v41 = vmul.f32 %v8845_v46, %v12253_v27  ;;  %v2929_v16 = vmul.f32 %v8849_v51, %v12253_v27  ;;  %12254 = vst [vmem:[#allocation35_spill] sm:$0xff] %v9052_v28  ;;  %v9056_v49 = vld [vmem:[#allocation7 + $0xa0] sm:$0xff] }
 0x280   : > { %v2930_v14 = vmul.f32 %v9036_v18, %v12253_v27  ;;  %v2923_v2 = vadd.f32 %v2919_v22, %v2915_v9  ;;  %v2924_v36 = vadd.f32 %v2920_v15, %v2916_v4  ;;  %v2925_v3 = vadd.f32 %v2921_v39, %v2917_v58  ;;  %v9060_v4 = vld [vmem:[#allocation7 + $0xa8] sm:$0xff]  ;;  %v9068_v15 = vld [vmem:[#allocation7 + $0xb8] sm:$0xff] }
 0x281   : > { %v2926_v43 = vadd.f32 %v2922_v53, %v2918_v32  ;;  %v2935_v0 = vmul.f32 %v9040_v34, %v12213_v23  ;;  %v2936_v35 = vmul.f32 %v9044_v13, %v12213_v23  ;;  %v2937_v59 = vmul.f32 %v9048_v31, %v12213_v23  ;;  %v9064_v32 = vld [vmem:[#allocation7 + $0xb0] sm:$0xff] }
 0x282   : > { %v2938_v61 = vmul.f32 %v9052_v28, %v12213_v23  ;;  %v2931_v52 = vadd.f32 %v2927_v57, %v2923_v2  ;;  %v2932_v42 = vadd.f32 %v2928_v41, %v2924_v36  ;;  %v2933_v55 = vadd.f32 %v2929_v16, %v2925_v3  ;;  %v9072_v16 = vld [vmem:[#allocation7 + $0xc0] sm:$0xff]  ;;  %v9076_v36 = vld [vmem:[#allocation7 + $0xc8] sm:$0xff] }
 0x283   : > { %v2934_v8 = vadd.f32 %v2930_v14, %v2926_v43  ;;  %v2943_v9 = vmul.f32 %v9056_v49, %v8891_v45  ;;  %v2944_v58 = vmul.f32 %v9060_v4, %v8891_v45  ;;  %v2945_v22 = vmul.f32 %v9064_v32, %v8891_v45  ;;  %12255 = vst [vmem:[#allocation44_spill] sm:$0xff] %v9072_v16  ;;  %v12256_v14 = vld [vmem:[#allocation47_spill] sm:$0xff]  ;;  %v9080_v43 = vld [vmem:[#allocation7 + $0xd0] sm:$0xff] }
 0x284   : > { %v2946_v39 = vmul.f32 %v9068_v15, %v8891_v45  ;;  %v2939_v53 = vadd.f32 %v2935_v0, %v2931_v52  ;;  %v2940_v27 = vadd.f32 %v2936_v35, %v2932_v42  ;;  %v2941_v57 = vadd.f32 %v2937_v59, %v2933_v55  ;;  %12257 = vst [vmem:[#allocation39_spill] sm:$0xff] %v9076_v36  ;;  %v9084_v0 = vld [vmem:[#allocation7 + $0xd8] sm:$0xff]  ;;  %v9088_v55 = vld [vmem:[#allocation7 + $0xe0] sm:$0xff] }
 0x285   : > { %v2942_v41 = vadd.f32 %v2938_v61, %v2934_v8  ;;  %v2951_v2 = vmul.f32 %v9072_v16, %v12256_v14  ;;  %v2952_v3 = vmul.f32 %v9076_v36, %v12256_v14  ;;  %12258 = vst [vmem:[#allocation48_spill] sm:$0xff] %v9080_v43  ;;  %v2953_v1 = vmul.f32 %v9080_v43, %v12256_v14  ;;  %v12261_v8 = vld [vmem:[#allocation31_spill] sm:$0xff]  ;;  %v9096_v43 = vld [vmem:[#allocation7 + $0xf0] sm:$0xff] }
 0x286   : > { %12259 = vst [vmem:[#allocation45_spill] sm:$0xff] %v9084_v0  ;;  %v2954_v35 = vmul.f32 %v9084_v0, %v12256_v14  ;;  %v2947_v59 = vadd.f32 %v2943_v9, %v2939_v53  ;;  %v2948_v61 = vadd.f32 %v2944_v58, %v2940_v27  ;;  %v2949_v52 = vadd.f32 %v2945_v22, %v2941_v57  ;;  %v9100_v14 = vld [vmem:[#allocation7 + $0xf8] sm:$0xff]  ;;  %v9105_v58 = vld [vmem:[%s5752_s13 + $0x64] ss:$0 sm:$0xff]  ;;  %v9107_v57 = vld [vmem:[#allocation7 + $0x100] sm:$0xff] }
 0x287   : > { %v2950_v42 = vadd.f32 %v2946_v39, %v2942_v41  ;;  %12260 = vst [vmem:[#allocation19_spill] sm:$0xff] %v9088_v55  ;;  %v2959_v11 = vmul.f32 %v9088_v55, %v12261_v8  ;;  %v2960_v60 = vmul.f32 %v9092_v44, %v12261_v8  ;;  %12263 = vst [vmem:[#allocation32_spill] sm:$0xff] %v9096_v43  ;;  %v9111_v44 = vld [vmem:[#allocation7 + $0x108] sm:$0xff]  ;;  %v9115_v55 = vld [vmem:[#allocation7 + $0x110] sm:$0xff] }
 0x288   : > { %v2961_v36 = vmul.f32 %v9096_v43, %v12261_v8  ;;  %12264 = vst [vmem:[#allocation56_spill] sm:$0xff] %v9100_v14  ;;  %v2962_v9 = vmul.f32 %v9100_v14, %v12261_v8  ;;  %12265 = vst [vmem:[#allocation53_spill] sm:$0xff] %v9105_v58  ;;  %v2955_v22 = vadd.f32 %v2951_v2, %v2947_v59  ;;  %v9119_v0 = vld [vmem:[#allocation7 + $0x118] sm:$0xff] }
 0x289   : > { %v2956_v39 = vadd.f32 %v2952_v3, %v2948_v61  ;;  %v2957_v53 = vadd.f32 %v2953_v1, %v2949_v52  ;;  %v2958_v27 = vadd.f32 %v2954_v35, %v2950_v42  ;;  %12266 = vst [vmem:[#allocation27_spill] sm:$0xff] %v9107_v57  ;;  %v2967_v41 = vmul.f32 %v9107_v57, %v9105_v58 }
 0x28a   : > { %12267 = vst [vmem:[#allocation40_spill] sm:$0xff] %v9111_v44  ;;  %v2968_v43 = vmul.f32 %v9111_v44, %v9105_v58  ;;  %12268 = vst [vmem:[#allocation36_spill] sm:$0xff] %v9115_v55  ;;  %v2969_v14 = vmul.f32 %v9115_v55, %v9105_v58  ;;  %v2970_v1 = vmul.f32 %v9119_v0, %v9105_v58 }
 0x28b   : > { %12269 = vst [vmem:[#allocation49_spill] sm:$0xff] %v9119_v0  ;;  %v2963_v2 = vadd.f32 %v2959_v11, %v2955_v22  ;;  %v2964_v3 = vadd.f32 %v2960_v60, %v2956_v39  ;;  %v2965_v35 = vadd.f32 %v2961_v36, %v2957_v53  ;;  %v2966_v59 = vadd.f32 %v2962_v9, %v2958_v27 }
 0x28c   : > { %v2979_v61 = vmul.f32 %v8758_v26, %v12206_v62  ;;  %v2980_v52 = vmul.f32 %v8762_v21, %v12206_v62  ;;  %v2981_v42 = vmul.f32 %v8766_v7, %v12206_v62  ;;  %v2982_v55 = vmul.f32 %v8770_v56, %v12206_v62 }
 0x28d   : > { %v2971_v44 = vadd.f32 %v2967_v41, %v2963_v2  ;;  %v2972_v57 = vadd.f32 %v2968_v43, %v2964_v3  ;;  %v2973_v16 = vadd.f32 %v2969_v14, %v2965_v35  ;;  %v2974_v0 = vadd.f32 %v2970_v1, %v2966_v59 }
 0x28e   : > { %v2983_v60 = vmul.f32 %v8774_v54, %v8864_v50  ;;  %v2984_v11 = vmul.f32 %v8778_v30, %v8864_v50  ;;  %v2985_v36 = vmul.f32 %v12246_v17, %v8864_v50  ;;  %v2986_v9 = vmul.f32 %v12247_v10, %v8864_v50 }
 0x28f   : > { %v12270_v22 = vmax.f32 %v8912_v5, %v8998_v6  ;;  %v12271_v43 = vmax.f32 %v8914_v29, %v9000_v63  ;;  %v12272_v39 = vmax.f32 %v8916_v24, %v9002_v19  ;;  %v12273_v27 = vmax.f32 %v8918_v12, %v9004_v20 }
 0x290   : > { %v2987_v1 = vadd.f32 %v2983_v60, %v2979_v61  ;;  %v2988_v2 = vadd.f32 %v2984_v11, %v2980_v52  ;;  %v2989_v5 = vadd.f32 %v2985_v36, %v2981_v42  ;;  %v2990_v6 = vadd.f32 %v2986_v9, %v2982_v55 }
 0x291   : > { %v9142_v62 = vmax.f32 %v12270_v22, %v2971_v44  ;;  %v9147_v14 = vmax.f32 %v12271_v43, %v2972_v57  ;;  %v9152_v53 = vmax.f32 %v12272_v39, %v2973_v16  ;;  %v9157_v41 = vmax.f32 %v12273_v27, %v2974_v0 }
 0x292   : > { %v2991_v44 = vmul.f32 %v12250_v25, %v8953_v37  ;;  %v2992_v29 = vmul.f32 %v12251_v48, %v8953_v37  ;;  %v2993_v24 = vmul.f32 %v12252_v33, %v8953_v37  ;;  %v2994_v63 = vmul.f32 %v8829_v47, %v8953_v37 }
 0x293   : > { %v2999_v12 = vmul.f32 %v8841_v38, %v12213_v23  ;;  %v3000_v19 = vmul.f32 %v8845_v46, %v12213_v23  ;;  %v3001_v20 = vmul.f32 %v8849_v51, %v12213_v23  ;;  %v3002_v16 = vmul.f32 %v9036_v18, %v12213_v23 }
 0x294   : > { %v2995_v0 = vadd.f32 %v2991_v44, %v2987_v1  ;;  %v2996_v55 = vadd.f32 %v2992_v29, %v2988_v2  ;;  %v2997_v57 = vadd.f32 %v2993_v24, %v2989_v5  ;;  %v2998_v3 = vadd.f32 %v2994_v63, %v2990_v6  ;;  %v12274_v5 = vld [vmem:[#allocation44_spill] sm:$0xff]  ;;  %v12275_v44 = vld [vmem:[#allocation39_spill] sm:$0xff] }
 0x295   : > { %v3007_v35 = vmul.f32 %v9040_v34, %v8891_v45  ;;  %v3008_v59 = vmul.f32 %v9044_v13, %v8891_v45  ;;  %v3009_v61 = vmul.f32 %v9048_v31, %v8891_v45  ;;  %v3010_v52 = vmul.f32 %v9052_v28, %v8891_v45  ;;  %v12276_v24 = vld [vmem:[#allocation48_spill] sm:$0xff] }
 0x296   : > { %v3003_v42 = vadd.f32 %v2999_v12, %v2995_v0  ;;  %v3004_v60 = vadd.f32 %v3000_v19, %v2996_v55  ;;  %v3005_v11 = vadd.f32 %v3001_v20, %v2997_v57  ;;  %v3006_v23 = vadd.f32 %v3002_v16, %v2998_v3  ;;  %v12277_v12 = vld [vmem:[#allocation45_spill] sm:$0xff]  ;;  %v12278_v57 = vld [vmem:[#allocation19_spill] sm:$0xff] }
 0x297   : > { %v3015_v36 = vmul.f32 %v9056_v49, %v8980_v40  ;;  %v3016_v9 = vmul.f32 %v9060_v4, %v8980_v40  ;;  %v3017_v22 = vmul.f32 %v9064_v32, %v8980_v40  ;;  %v3018_v43 = vmul.f32 %v9068_v15, %v8980_v40 }
 0x298   : > { %v3011_v39 = vadd.f32 %v3007_v35, %v3003_v42  ;;  %v3012_v27 = vadd.f32 %v3008_v59, %v3004_v60  ;;  %v3013_v1 = vadd.f32 %v3009_v61, %v3005_v11  ;;  %v3014_v2 = vadd.f32 %v3010_v52, %v3006_v23  ;;  %v12279_v35 = vld [vmem:[#allocation37_spill] sm:$0xff]  ;;  %v12280_v61 = vld [vmem:[#allocation32_spill] sm:$0xff] }
 0x299   : > { %v3023_v6 = vmul.f32 %v12274_v5, %v12261_v8  ;;  %v3024_v29 = vmul.f32 %v12275_v44, %v12261_v8  ;;  %v3025_v63 = vmul.f32 %v12276_v24, %v12261_v8  ;;  %v3026_v19 = vmul.f32 %v12277_v12, %v12261_v8  ;;  %v12281_v42 = vld [vmem:[#allocation56_spill] sm:$0xff]  ;;  %v9208_v11 = vld [vmem:[%s5752_s13 + $0x65] ss:$0 sm:$0xff] }
 0x29a   : > { %v3019_v20 = vadd.f32 %v3015_v36, %v3011_v39  ;;  %v3020_v16 = vadd.f32 %v3016_v9, %v3012_v27  ;;  %v3021_v0 = vadd.f32 %v3017_v22, %v3013_v1  ;;  %v3022_v55 = vadd.f32 %v3018_v43, %v3014_v2  ;;  %12282 = vst [vmem:[#allocation33_spill] sm:$0xff] %v9208_v11  ;;  %v12283_v22 = vld [vmem:[#allocation27_spill] sm:$0xff]  ;;  %v12284_v39 = vld [vmem:[#allocation40_spill] sm:$0xff] }
 0x29b   : > { %v3031_v3 = vmul.f32 %v12278_v57, %v9105_v58  ;;  %v3032_v59 = vmul.f32 %v12279_v35, %v9105_v58  ;;  %v3033_v52 = vmul.f32 %v12280_v61, %v9105_v58  ;;  %v3034_v60 = vmul.f32 %v12281_v42, %v9105_v58  ;;  %v12285_v1 = vld [vmem:[#allocation36_spill] sm:$0xff]  ;;  %v12286_v61 = vld [vmem:[#allocation49_spill] sm:$0xff] }
 0x29c   : > { %v3027_v23 = vadd.f32 %v3023_v6, %v3019_v20  ;;  %v3028_v8 = vadd.f32 %v3024_v29, %v3020_v16  ;;  %v3029_v36 = vadd.f32 %v3025_v63, %v3021_v0  ;;  %v3030_v9 = vadd.f32 %v3026_v19, %v3022_v55  ;;  %v12287_v6 = vld [vmem:[#allocation21_spill] sm:$0xff] }
 0x29d   : > { %v3039_v43 = vmul.f32 %v12283_v22, %v9208_v11  ;;  %v3040_v27 = vmul.f32 %v12284_v39, %v9208_v11  ;;  %v3041_v2 = vmul.f32 %v12285_v1, %v9208_v11  ;;  %v3042_v35 = vmul.f32 %v12286_v61, %v9208_v11 }
 0x29e   : > { %v3035_v57 = vadd.f32 %v3031_v3, %v3027_v23  ;;  %v3036_v58 = vadd.f32 %v3032_v59, %v3028_v8  ;;  %v3037_v42 = vadd.f32 %v3033_v52, %v3029_v36  ;;  %v3038_v40 = vadd.f32 %v3034_v60, %v3030_v9  ;;  %v12288_v59 = vld [vmem:[#allocation34_spill] sm:$0xff] }
 0x29f   : > { %v3113_v29 = vmul.f32 %v8758_v26, %v12287_v6  ;;  %v3114_v63 = vmul.f32 %v8762_v21, %v12287_v6  ;;  %v3115_v19 = vmul.f32 %v8766_v7, %v12287_v6  ;;  %v3116_v20 = vmul.f32 %v8770_v56, %v12287_v6  ;;  %v5093_v9 = vld [vmem:[%s6629_s15 + $0xf0] sm:$0xff] }
 0x2a0   : > { %v3043_v16 = vadd.f32 %v3039_v43, %v3035_v57  ;;  %v3044_v0 = vadd.f32 %v3040_v27, %v3036_v58  ;;  %v3045_v55 = vadd.f32 %v3041_v2, %v3037_v42  ;;  %v3046_v3 = vadd.f32 %v3042_v35, %v3038_v40  ;;  %v5091_v35 = vld [vmem:[%s6629_s15 + $0xe0] sm:$0xff]  ;;  %v5092_v42 = vld [vmem:[%s6629_s15 + $0xe8] sm:$0xff]  ;;  %v5094_v43 = vld [vmem:[%s6629_s15 + $0xf8] sm:$0xff] }
 0x2a1   : > { %v3117_v52 = vmul.f32 %v8774_v54, %v12288_v59  ;;  %v3118_v60 = vmul.f32 %v8778_v30, %v12288_v59  ;;  %v3119_v23 = vmul.f32 %v12246_v17, %v12288_v59  ;;  %v3120_v8 = vmul.f32 %v12247_v10, %v12288_v59  ;;  %v9243_v17 = vld [vmem:[%s5752_s13 + $0x12] ss:$0 sm:$0xff]  ;;  %v12291_v10 = vld [vmem:[#allocation41_spill] sm:$0xff] }
 0x2a2   : > { %v3047_v36 = vmax.f32 %v9142_v62, %v3043_v16  ;;  %v3048_v57 = vmax.f32 %v9147_v14, %v3044_v0  ;;  %v3049_v58 = vmax.f32 %v9152_v53, %v3045_v55  ;;  %v3050_v40 = vmax.f32 %v9157_v41, %v3046_v3  ;;  %12289 = vst [vmem:[#allocation38_spill] sm:$0xff] %v9243_v17  ;;  %v12290_v30 = vld [vmem:[#allocation50_spill] sm:$0xff]  ;;  %v12296_v53 = vld [vmem:[#allocation24_spill] sm:$0xff]  ;;  %v12297_v41 = vld [vmem:[#allocation55_spill] sm:$0xff] }
 0x2a3   : > { %v3121_v27 = vadd.f32 %v3117_v52, %v3113_v29  ;;  %v3122_v2 = vadd.f32 %v3118_v60, %v3114_v63  ;;  %v3123_v6 = vadd.f32 %v3119_v23, %v3115_v19  ;;  %v3124_v11 = vadd.f32 %v3120_v8, %v3116_v20  ;;  %v12293_v62 = vld [vmem:[#allocation54_spill] sm:$0xff]  ;;  %v12299_v55 = vld [vmem:[#allocation23_spill] sm:$0xff]  ;;  %v12300_v3 = vld [vmem:[#allocation28_spill] sm:$0xff] }
 0x2a4   : > { %v9247_v54 = vadd.f32 %v12291_v10, %v12290_v30  ;;  %v12294_v14 = vld [vmem:[#allocation46_spill] sm:$0xff]  ;;  %v9255_v0 = vadd.f32 %v12297_v41, %v12296_v53  ;;  %v9259_v29 = vadd.f32 %v12300_v3, %v12299_v55  ;;  %v3125_v63 = vmul.f32 %v12250_v25, %v9243_v17 }
 0x2a5   : > { %v9251_v16 = vadd.f32 %v12294_v14, %v12293_v62  ;;  %v3126_v19 = vmul.f32 %v12251_v48, %v9243_v17  ;;  %v3127_v30 = vmul.f32 %v12252_v33, %v9243_v17  ;;  %v3128_v10 = vmul.f32 %v8829_v47, %v9243_v17 }
 0x2a6   : > { %12292 = vst [vmem:[#allocation30_spill] sm:$0xff] %v9247_v54  ;;  %12298 = vst [vmem:[#allocation31_spill] sm:$0xff] %v9255_v0  ;;  %v9269_v20 = vmul.f32 %v5091_v35, %v3047_v36  ;;  %v9271_v52 = vmul.f32 %v5092_v42, %v3048_v57  ;;  %v9273_v60 = vmul.f32 %v5093_v9, %v3049_v58  ;;  %v9294_v42 = vld [vmem:[%s5752_s13 + $0x2e] ss:$0 sm:$0xff]  ;;  %v9321_v0 = vld [vmem:[%s5752_s13 + $0x4a] ss:$0 sm:$0xff] }
 0x2a7   : > { %12295 = vst [vmem:[#allocation47_spill] sm:$0xff] %v9251_v16  ;;  %12301 = vst [vmem:[#allocation44_spill] sm:$0xff] %v9259_v29  ;;  %v9275_v23 = vmul.f32 %v5094_v43, %v3050_v40  ;;  %v3129_v8 = vadd.f32 %v3125_v63, %v3121_v27  ;;  %v3130_v62 = vadd.f32 %v3126_v19, %v3122_v2  ;;  %v12311_v29 = vld [vmem:[#allocation56_spill] sm:$0xff] }
 0x2a8   : > { %12302 = vst [vmem:[#allocation39_spill] sm:$0xff] %v9269_v20  ;;  %12303 = vst [vmem:[#allocation48_spill] sm:$0xff] %v9271_v52  ;;  %v3131_v14 = vadd.f32 %v3127_v30, %v3123_v6  ;;  %v3132_v53 = vadd.f32 %v3128_v10, %v3124_v11  ;;  %v3133_v41 = vmul.f32 %v8841_v38, %v8864_v50 }
 0x2a9   : > { %12304 = vst [vmem:[#allocation45_spill] sm:$0xff] %v9273_v60  ;;  %12305 = vst [vmem:[#allocation27_spill] sm:$0xff] %v9275_v23  ;;  %v3134_v55 = vmul.f32 %v8845_v46, %v8864_v50  ;;  %v3135_v36 = vmul.f32 %v8849_v51, %v8864_v50  ;;  %v3136_v57 = vmul.f32 %v9036_v18, %v8864_v50 }
 0x2aa   : > { %v3141_v58 = vmul.f32 %v9040_v34, %v8953_v37  ;;  %v3142_v40 = vmul.f32 %v9044_v13, %v8953_v37  ;;  %v3143_v11 = vmul.f32 %v9048_v31, %v8953_v37  ;;  %v3144_v35 = vmul.f32 %v9052_v28, %v8953_v37  ;;  %12306 = vst [vmem:[#allocation40_spill] sm:$0xff] %v9294_v42 }
 0x2ab   : > { %v3137_v9 = vadd.f32 %v3133_v41, %v3129_v8  ;;  %v3138_v43 = vadd.f32 %v3134_v55, %v3130_v62  ;;  %v3139_v27 = vadd.f32 %v3135_v36, %v3131_v14  ;;  %v3140_v2 = vadd.f32 %v3136_v57, %v3132_v53 }
 0x2ac   : > { %v3149_v6 = vmul.f32 %v9056_v49, %v9294_v42  ;;  %v3150_v3 = vmul.f32 %v9060_v4, %v9294_v42  ;;  %v3151_v63 = vmul.f32 %v9064_v32, %v9294_v42  ;;  %v3152_v19 = vmul.f32 %v9068_v15, %v9294_v42 }
 0x2ad   : > { %v3145_v30 = vadd.f32 %v3141_v58, %v3137_v9  ;;  %v3146_v10 = vadd.f32 %v3142_v40, %v3138_v43  ;;  %v3147_v23 = vadd.f32 %v3143_v11, %v3139_v27  ;;  %v3148_v8 = vadd.f32 %v3144_v35, %v3140_v2  ;;  %v12307_v9 = vld [vmem:[#allocation42_spill] sm:$0xff]  ;;  %v12308_v40 = vld [vmem:[#allocation19_spill] sm:$0xff]  ;;  %v12309_v35 = vld [vmem:[#allocation37_spill] sm:$0xff] }
 0x2ae   : > { %v3157_v62 = vmul.f32 %v12274_v5, %v8891_v45  ;;  %v3158_v14 = vmul.f32 %v12275_v44, %v8891_v45  ;;  %v3159_v53 = vmul.f32 %v12276_v24, %v8891_v45  ;;  %v3160_v41 = vmul.f32 %v12277_v12, %v8891_v45  ;;  %v12310_v27 = vld [vmem:[#allocation32_spill] sm:$0xff] }
 0x2af   : > { %v3153_v55 = vadd.f32 %v3149_v6, %v3145_v30  ;;  %v3154_v36 = vadd.f32 %v3150_v3, %v3146_v10  ;;  %v3155_v57 = vadd.f32 %v3151_v63, %v3147_v23  ;;  %v3156_v58 = vadd.f32 %v3152_v19, %v3148_v8 }
 0x2b0   : > { %v3165_v11 = vmul.f32 %v12308_v40, %v12307_v9  ;;  %v3166_v43 = vmul.f32 %v12309_v35, %v12307_v9  ;;  %v3167_v2 = vmul.f32 %v12310_v27, %v12307_v9  ;;  %v3168_v60 = vmul.f32 %v12311_v29, %v12307_v9 }
 0x2b1   : > { %v3161_v52 = vadd.f32 %v3157_v62, %v3153_v55  ;;  %v3162_v6 = vadd.f32 %v3158_v14, %v3154_v36  ;;  %v3163_v3 = vadd.f32 %v3159_v53, %v3155_v57  ;;  %v3164_v23 = vadd.f32 %v3160_v41, %v3156_v58  ;;  %v9332_v62 = vld [vmem:[%s5752_s13 + $0x13] ss:$0 sm:$0xff] }
 0x2b2   : > { %v3173_v63 = vmul.f32 %v12283_v22, %v9321_v0  ;;  %v3174_v19 = vmul.f32 %v12284_v39, %v9321_v0  ;;  %v3175_v30 = vmul.f32 %v12285_v1, %v9321_v0  ;;  %v3176_v10 = vmul.f32 %v12286_v61, %v9321_v0  ;;  %12312 = vst [vmem:[#allocation36_spill] sm:$0xff] %v9332_v62  ;;  %v12314_v58 = vld [vmem:[#allocation22_spill] sm:$0xff] }
 0x2b3   : > { %v3169_v8 = vadd.f32 %v3165_v11, %v3161_v52  ;;  %v3170_v16 = vadd.f32 %v3166_v43, %v3162_v6  ;;  %v3171_v20 = vadd.f32 %v3167_v2, %v3163_v3  ;;  %v3172_v54 = vadd.f32 %v3168_v60, %v3164_v23  ;;  %v12315_v43 = vld [vmem:[#allocation29_spill] sm:$0xff]  ;;  %v12316_v6 = vld [vmem:[#allocation20_spill] sm:$0xff] }
 0x2b4   : > { %v3181_v14 = vmul.f32 %v8758_v26, %v12288_v59  ;;  %v3182_v53 = vmul.f32 %v8762_v21, %v12288_v59  ;;  %v3183_v41 = vmul.f32 %v8766_v7, %v12288_v59  ;;  %v3184_v55 = vmul.f32 %v8770_v56, %v12288_v59  ;;  %v12317_v23 = vld [vmem:[#allocation25_spill] sm:$0xff] }
 0x2b5   : > { %v9342_v36 = vadd.f32 %v3173_v63, %v3169_v8  ;;  %v9344_v52 = vadd.f32 %v3174_v19, %v3170_v16  ;;  %v9346_v57 = vadd.f32 %v3175_v30, %v3171_v20  ;;  %v9348_v60 = vadd.f32 %v3176_v10, %v3172_v54 }
 0x2b6   : > { %v3185_v11 = vmul.f32 %v12314_v58, %v9243_v17  ;;  %v3186_v2 = vmul.f32 %v12315_v43, %v9243_v17  ;;  %v3187_v3 = vmul.f32 %v12316_v6, %v9243_v17  ;;  %v3188_v59 = vmul.f32 %v12317_v23, %v9243_v17 }
 0x2b7   : > { %12313 = vst [vmem:[#allocation49_spill] sm:$0xff] %v9348_v60  ;;  %v3193_v16 = vmul.f32 %v12250_v25, %v9332_v62  ;;  %v3194_v20 = vmul.f32 %v12251_v48, %v9332_v62  ;;  %v3195_v54 = vmul.f32 %v12252_v33, %v9332_v62  ;;  %v3196_v63 = vmul.f32 %v8829_v47, %v9332_v62 }
 0x2b8   : > { %v3189_v19 = vadd.f32 %v3185_v11, %v3181_v14  ;;  %v3190_v30 = vadd.f32 %v3186_v2, %v3182_v53  ;;  %v3191_v10 = vadd.f32 %v3187_v3, %v3183_v41  ;;  %v3192_v8 = vadd.f32 %v3188_v59, %v3184_v55  ;;  %v9383_v2 = vld [vmem:[%s5752_s13 + $0x2f] ss:$0 sm:$0xff] }
 0x2b9   : > { %v3201_v17 = vmul.f32 %v8841_v38, %v8953_v37  ;;  %v3202_v45 = vmul.f32 %v8845_v46, %v8953_v37  ;;  %v3203_v48 = vmul.f32 %v8849_v51, %v8953_v37  ;;  %v3204_v33 = vmul.f32 %v9036_v18, %v8953_v37  ;;  %12318 = vst [vmem:[#allocation21_spill] sm:$0xff] %v9383_v2 }
 0x2ba   : > { %v3197_v25 = vadd.f32 %v3193_v16, %v3189_v19  ;;  %v3198_v60 = vadd.f32 %v3194_v20, %v3190_v30  ;;  %v3199_v62 = vadd.f32 %v3195_v54, %v3191_v10  ;;  %v3200_v14 = vadd.f32 %v3196_v63, %v3192_v8 }
 0x2bb   : > { %v3209_v53 = vmul.f32 %v9040_v34, %v9294_v42  ;;  %v3210_v41 = vmul.f32 %v9044_v13, %v9294_v42  ;;  %v3211_v55 = vmul.f32 %v9048_v31, %v9294_v42  ;;  %v3212_v11 = vmul.f32 %v9052_v28, %v9294_v42 }
 0x2bc   : > { %v3205_v3 = vadd.f32 %v3201_v17, %v3197_v25  ;;  %v3206_v59 = vadd.f32 %v3202_v45, %v3198_v60  ;;  %v3207_v16 = vadd.f32 %v3203_v48, %v3199_v62  ;;  %v3208_v20 = vadd.f32 %v3204_v33, %v3200_v14 }
 0x2bd   : > { %v3217_v54 = vmul.f32 %v9056_v49, %v9383_v2  ;;  %v3218_v63 = vmul.f32 %v9060_v4, %v9383_v2  ;;  %v3219_v19 = vmul.f32 %v9064_v32, %v9383_v2  ;;  %v3220_v30 = vmul.f32 %v9068_v15, %v9383_v2 }
 0x2be   : > { %v3213_v10 = vadd.f32 %v3209_v53, %v3205_v3  ;;  %v3214_v8 = vadd.f32 %v3210_v41, %v3206_v59  ;;  %v3215_v28 = vadd.f32 %v3211_v55, %v3207_v16  ;;  %v3216_v17 = vadd.f32 %v3212_v11, %v3208_v20  ;;  %v9410_v59 = vld [vmem:[%s5752_s13 + $0x4b] ss:$0 sm:$0xff] }
 0x2bf   : > { %v3225_v45 = vmul.f32 %v12274_v5, %v12307_v9  ;;  %v3226_v25 = vmul.f32 %v12275_v44, %v12307_v9  ;;  %v3227_v48 = vmul.f32 %v12276_v24, %v12307_v9  ;;  %v3228_v33 = vmul.f32 %v12277_v12, %v12307_v9 }
 0x2c0   : > { %v3221_v62 = vadd.f32 %v3217_v54, %v3213_v10  ;;  %v3222_v60 = vadd.f32 %v3218_v63, %v3214_v8  ;;  %v3223_v14 = vadd.f32 %v3219_v19, %v3215_v28  ;;  %v3224_v53 = vadd.f32 %v3220_v30, %v3216_v17 }
 0x2c1   : > { %v3233_v41 = vmul.f32 %v12308_v40, %v9321_v0  ;;  %v3234_v55 = vmul.f32 %v12309_v35, %v9321_v0  ;;  %v3235_v11 = vmul.f32 %v12310_v27, %v9321_v0  ;;  %v3236_v3 = vmul.f32 %v12311_v29, %v9321_v0 }
 0x2c2   : > { %v3229_v16 = vadd.f32 %v3225_v45, %v3221_v62  ;;  %v3230_v20 = vadd.f32 %v3226_v25, %v3222_v60  ;;  %v3231_v54 = vadd.f32 %v3227_v48, %v3223_v14  ;;  %v3232_v63 = vadd.f32 %v3228_v33, %v3224_v53 }
 0x2c3   : > { %v3241_v28 = vmul.f32 %v12283_v22, %v9410_v59  ;;  %v3242_v19 = vmul.f32 %v12284_v39, %v9410_v59  ;;  %v3243_v30 = vmul.f32 %v12285_v1, %v9410_v59  ;;  %v3244_v10 = vmul.f32 %v12286_v61, %v9410_v59 }
 0x2c4   : > { %v3237_v8 = vadd.f32 %v3233_v41, %v3229_v16  ;;  %v3238_v17 = vadd.f32 %v3234_v55, %v3230_v20  ;;  %v3239_v2 = vadd.f32 %v3235_v11, %v3231_v54  ;;  %v3240_v29 = vadd.f32 %v3236_v3, %v3232_v63  ;;  %v12322_v54 = vld [vmem:[#allocation51_spill] sm:$0xff]  ;;  %v9535_v41 = vld [vmem:[#allocation7 + $0x30] sm:$0xff] }
 0x2c5   : > { %v3253_v45 = vmul.f32 %v8758_v26, %v8864_v50  ;;  %v3254_v25 = vmul.f32 %v8762_v21, %v8864_v50  ;;  %v3255_v48 = vmul.f32 %v8766_v7, %v8864_v50  ;;  %v3256_v33 = vmul.f32 %v8770_v56, %v8864_v50  ;;  %12331 = vst [vmem:[#allocation54_spill] sm:$0xff] %v9535_v41 }
 0x2c6   : > { %v9428_v62 = vadd.f32 %v3241_v28, %v3237_v8  ;;  %v9430_v60 = vadd.f32 %v3242_v19, %v3238_v17  ;;  %v9432_v14 = vadd.f32 %v3243_v30, %v3239_v2  ;;  %v9434_v53 = vadd.f32 %v3244_v10, %v3240_v29  ;;  %v12323_v19 = vld [vmem:[#allocation52_spill] sm:$0xff] }
 0x2c7   : > { %v3257_v26 = vmul.f32 %v12314_v58, %v8953_v37  ;;  %v3258_v21 = vmul.f32 %v12315_v43, %v8953_v37  ;;  %v3259_v7 = vmul.f32 %v12316_v6, %v8953_v37  ;;  %v3260_v56 = vmul.f32 %v12317_v23, %v8953_v37  ;;  %v12319_v58 = vld [vmem:[#allocation49_spill] sm:$0xff]  ;;  %v12320_v6 = vld [vmem:[#allocation26_spill] sm:$0xff]  ;;  %v12321_v23 = vld [vmem:[#allocation43_spill] sm:$0xff] }
 0x2c8   : > { %v3249_v50 = vmax.f32 %v9342_v36, %v9428_v62  ;;  %v3250_v2 = vmax.f32 %v9344_v52, %v9430_v60  ;;  %v3265_v16 = vmul.f32 %v12320_v6, %v9294_v42  ;;  %v3266_v20 = vmul.f32 %v12321_v23, %v9294_v42  ;;  %v9567_v60 = vld [vmem:[#allocation7 + $0x48] sm:$0xff] }
 0x2c9   : > { %v3261_v55 = vadd.f32 %v3257_v26, %v3253_v45  ;;  %v3262_v43 = vadd.f32 %v3258_v21, %v3254_v25  ;;  %v3263_v11 = vadd.f32 %v3259_v7, %v3255_v48  ;;  %v3264_v3 = vadd.f32 %v3260_v56, %v3256_v33 }
 0x2ca   : > { %v3267_v63 = vmul.f32 %v12322_v54, %v9294_v42  ;;  %v3268_v28 = vmul.f32 %v8829_v47, %v9294_v42  ;;  %v3273_v30 = vmul.f32 %v8841_v38, %v12323_v19  ;;  %v3274_v10 = vmul.f32 %v8845_v46, %v12323_v19  ;;  %v12324_v46 = vld [vmem:[#allocation35_spill] sm:$0xff] }
 0x2cb   : > { %v3275_v8 = vmul.f32 %v8849_v51, %v12323_v19  ;;  %v3276_v17 = vmul.f32 %v9036_v18, %v12323_v19  ;;  %v3269_v45 = vadd.f32 %v3265_v16, %v3261_v55  ;;  %v3270_v25 = vadd.f32 %v3266_v20, %v3262_v43 }
 0x2cc   : > { %v3271_v48 = vadd.f32 %v3267_v63, %v3263_v11  ;;  %v3272_v33 = vadd.f32 %v3268_v28, %v3264_v3  ;;  %v3281_v26 = vmul.f32 %v9040_v34, %v12307_v9  ;;  %v3282_v47 = vmul.f32 %v9044_v13, %v12307_v9  ;;  %v12325_v63 = vld [vmem:[#allocation53_spill] sm:$0xff] }
 0x2cd   : > { %v3283_v38 = vmul.f32 %v9048_v31, %v12307_v9  ;;  %v3284_v21 = vmul.f32 %v12324_v46, %v12307_v9  ;;  %v3277_v51 = vadd.f32 %v3273_v30, %v3269_v45  ;;  %v3278_v7 = vadd.f32 %v3274_v10, %v3270_v25 }
 0x2ce   : > { %v3279_v56 = vadd.f32 %v3275_v8, %v3271_v48  ;;  %v3280_v6 = vadd.f32 %v3276_v17, %v3272_v33  ;;  %v3289_v55 = vmul.f32 %v9056_v49, %v9321_v0  ;;  %v3290_v43 = vmul.f32 %v9060_v4, %v9321_v0  ;;  %v12326_v48 = vld [vmem:[#allocation33_spill] sm:$0xff] }
 0x2cf   : > { %v3291_v11 = vmul.f32 %v9064_v32, %v9321_v0  ;;  %v3292_v3 = vmul.f32 %v9068_v15, %v9321_v0  ;;  %v3285_v16 = vadd.f32 %v3281_v26, %v3277_v51  ;;  %v3286_v23 = vadd.f32 %v3282_v47, %v3278_v7  ;;  %v9501_v51 = vld [vmem:[%s5752_s13 + $0x66] ss:$0 sm:$0xff] }
 0x2d0   : > { %v3287_v20 = vadd.f32 %v3283_v38, %v3279_v56  ;;  %v3288_v54 = vadd.f32 %v3284_v21, %v3280_v6  ;;  %v3297_v28 = vmul.f32 %v12274_v5, %v12325_v63  ;;  %v3298_v19 = vmul.f32 %v12275_v44, %v12325_v63  ;;  %v12327_v38 = vld [vmem:[#allocation56_spill] sm:$0xff]  ;;  %12328 = vst [vmem:[#allocation34_spill] sm:$0xff] %v9501_v51 }
 0x2d1   : > { %v3299_v30 = vmul.f32 %v12276_v24, %v12325_v63  ;;  %v3300_v10 = vmul.f32 %v12277_v12, %v12325_v63  ;;  %v3293_v8 = vadd.f32 %v3289_v55, %v3285_v16  ;;  %v3294_v17 = vadd.f32 %v3290_v43, %v3286_v23 }
 0x2d2   : > { %v3295_v45 = vadd.f32 %v3291_v11, %v3287_v20  ;;  %v3296_v25 = vadd.f32 %v3292_v3, %v3288_v54  ;;  %v3305_v33 = vmul.f32 %v12308_v40, %v12326_v48  ;;  %v3306_v26 = vmul.f32 %v12309_v35, %v12326_v48 }
 0x2d3   : > { %v3307_v47 = vmul.f32 %v12310_v27, %v12326_v48  ;;  %v3308_v21 = vmul.f32 %v12327_v38, %v12326_v48  ;;  %v3301_v7 = vadd.f32 %v3297_v28, %v3293_v8  ;;  %v3302_v56 = vadd.f32 %v3298_v19, %v3294_v17  ;;  %v9511_v28 = vld [vmem:[#allocation7] sm:$0xff]  ;;  %v9519_v8 = vld [vmem:[#allocation7 + $0x10] sm:$0xff] }
 0x2d4   : > { %v3303_v6 = vadd.f32 %v3299_v30, %v3295_v45  ;;  %v3304_v55 = vadd.f32 %v3300_v10, %v3296_v25  ;;  %v3313_v43 = vmul.f32 %v12283_v22, %v9501_v51  ;;  %v3314_v11 = vmul.f32 %v12284_v39, %v9501_v51  ;;  %v9515_v30 = vld [vmem:[#allocation7 + $0x8] sm:$0xff]  ;;  %v9523_v45 = vld [vmem:[#allocation7 + $0x18] sm:$0xff] }
 0x2d5   : > { %v3315_v3 = vmul.f32 %v12285_v1, %v9501_v51  ;;  %v3316_v16 = vmul.f32 %v12286_v61, %v9501_v51  ;;  %v3309_v23 = vadd.f32 %v3305_v33, %v3301_v7  ;;  %v3310_v20 = vadd.f32 %v3306_v26, %v3302_v56  ;;  %v9527_v7 = vld [vmem:[#allocation7 + $0x20] sm:$0xff] }
 0x2d6   : > { %v3311_v54 = vadd.f32 %v3307_v47, %v3303_v6  ;;  %v3312_v63 = vadd.f32 %v3308_v21, %v3304_v55  ;;  %v3325_v19 = vmul.f32 %v9511_v28, %v8953_v37  ;;  %v3326_v10 = vmul.f32 %v9515_v30, %v8953_v37  ;;  %12329 = vst [vmem:[#allocation50_spill] sm:$0xff] %v9527_v7  ;;  %v9531_v6 = vld [vmem:[#allocation7 + $0x28] sm:$0xff] }
 0x2d7   : > { %v3327_v17 = vmul.f32 %v9519_v8, %v8953_v37  ;;  %v3328_v25 = vmul.f32 %v9523_v45, %v8953_v37  ;;  %v3317_v33 = vadd.f32 %v3313_v43, %v3309_v23  ;;  %v3318_v26 = vadd.f32 %v3314_v11, %v3310_v20  ;;  %12330 = vst [vmem:[#allocation41_spill] sm:$0xff] %v9531_v6  ;;  %v9539_v37 = vld [vmem:[#allocation7 + $0x38] sm:$0xff] }
 0x2d8   : > { %v3319_v47 = vadd.f32 %v3315_v3, %v3311_v54  ;;  %v3320_v21 = vadd.f32 %v3316_v16, %v3312_v63  ;;  %v3329_v56 = vmul.f32 %v9527_v7, %v9294_v42  ;;  %v3330_v55 = vmul.f32 %v9531_v6, %v9294_v42  ;;  %12332 = vst [vmem:[#allocation46_spill] sm:$0xff] %v9539_v37 }
 0x2d9   : > { %v3331_v29 = vmul.f32 %v9535_v41, %v9294_v42  ;;  %v3332_v43 = vmul.f32 %v9539_v37, %v9294_v42  ;;  %v9546_v11 = vmax.f32 %v3249_v50, %v3317_v33  ;;  %v9551_v3 = vmax.f32 %v3250_v2, %v3318_v26  ;;  %v9563_v50 = vld [vmem:[#allocation7 + $0x40] sm:$0xff]  ;;  %v12335_v33 = vld [vmem:[#allocation21_spill] sm:$0xff] }
 0x2da   : > { %v12333_v16 = vmax.f32 %v9346_v57, %v9432_v14  ;;  %v12334_v20 = vmax.f32 %v12319_v58, %v9434_v53  ;;  %v3333_v63 = vadd.f32 %v3329_v56, %v3325_v19  ;;  %v3334_v42 = vadd.f32 %v3330_v55, %v3326_v10  ;;  %v9571_v14 = vld [vmem:[#allocation7 + $0x50] sm:$0xff]  ;;  %v9575_v2 = vld [vmem:[#allocation7 + $0x58] sm:$0xff]  ;;  %v9579_v58 = vld [vmem:[#allocation7 + $0x60] sm:$0xff] }
 0x2db   : > { %v3335_v36 = vadd.f32 %v3331_v29, %v3327_v17  ;;  %v3336_v62 = vadd.f32 %v3332_v43, %v3328_v25  ;;  %v3337_v52 = vmul.f32 %v9563_v50, %v12335_v33  ;;  %v3338_v57 = vmul.f32 %v9567_v60, %v12335_v33  ;;  %12336 = vst [vmem:[#allocation24_spill] sm:$0xff] %v9575_v2  ;;  %v9583_v10 = vld [vmem:[#allocation7 + $0x68] sm:$0xff]  ;;  %v9587_v25 = vld [vmem:[#allocation7 + $0x70] sm:$0xff] }
 0x2dc   : > { %v9556_v23 = vmax.f32 %v12333_v16, %v3319_v47  ;;  %v9561_v54 = vmax.f32 %v12334_v20, %v3320_v21  ;;  %v3339_v53 = vmul.f32 %v9571_v14, %v12335_v33  ;;  %v3340_v29 = vmul.f32 %v9575_v2, %v12335_v33  ;;  %12337 = vst [vmem:[#allocation55_spill] sm:$0xff] %v9579_v58 }
 0x2dd   : > { %v3345_v19 = vmul.f32 %v9579_v58, %v12307_v9  ;;  %12338 = vst [vmem:[#allocation23_spill] sm:$0xff] %v9583_v10  ;;  %v3346_v17 = vmul.f32 %v9583_v10, %v12307_v9  ;;  %12339 = vst [vmem:[#allocation28_spill] sm:$0xff] %v9587_v25  ;;  %v3347_v26 = vmul.f32 %v9587_v25, %v12307_v9 }
 0x2de   : > { %v3348_v47 = vmul.f32 %v9036_v18, %v12307_v9  ;;  %v3341_v21 = vadd.f32 %v3337_v52, %v3333_v63  ;;  %v3342_v56 = vadd.f32 %v3338_v57, %v3334_v42  ;;  %v3343_v55 = vadd.f32 %v3339_v53, %v3335_v36 }
 0x2df   : > { %v3344_v43 = vadd.f32 %v3340_v29, %v3336_v62  ;;  %v3353_v16 = vmul.f32 %v9040_v34, %v9321_v0  ;;  %v3354_v20 = vmul.f32 %v9044_v13, %v9321_v0  ;;  %v3355_v33 = vmul.f32 %v9048_v31, %v9321_v0 }
 0x2e0   : > { %v3356_v10 = vmul.f32 %v12324_v46, %v9321_v0  ;;  %v3349_v25 = vadd.f32 %v3345_v19, %v3341_v21  ;;  %v3350_v58 = vadd.f32 %v3346_v17, %v3342_v56  ;;  %v3351_v2 = vadd.f32 %v3347_v26, %v3343_v55 }
 0x2e1   : > { %v3352_v9 = vadd.f32 %v3348_v47, %v3344_v43  ;;  %v3361_v42 = vmul.f32 %v9056_v49, %v9410_v59  ;;  %v3362_v63 = vmul.f32 %v9060_v4, %v9410_v59  ;;  %v3363_v36 = vmul.f32 %v9064_v32, %v9410_v59  ;;  %v9626_v43 = vld [vmem:[%s5752_s13 + $0x67] ss:$0 sm:$0xff] }
 0x2e2   : > { %v3364_v62 = vmul.f32 %v9068_v15, %v9410_v59  ;;  %v3357_v52 = vadd.f32 %v3353_v16, %v3349_v25  ;;  %v3358_v57 = vadd.f32 %v3354_v20, %v3350_v58  ;;  %v3359_v53 = vadd.f32 %v3355_v33, %v3351_v2  ;;  %12340 = vst [vmem:[#allocation42_spill] sm:$0xff] %v9626_v43 }
 0x2e3   : > { %v3360_v29 = vadd.f32 %v3356_v10, %v3352_v9  ;;  %v3369_v19 = vmul.f32 %v12274_v5, %v12326_v48  ;;  %v3370_v17 = vmul.f32 %v12275_v44, %v12326_v48  ;;  %v3371_v26 = vmul.f32 %v12276_v24, %v12326_v48 }
 0x2e4   : > { %v3372_v47 = vmul.f32 %v12277_v12, %v12326_v48  ;;  %v3365_v21 = vadd.f32 %v3361_v42, %v3357_v52  ;;  %v3366_v56 = vadd.f32 %v3362_v63, %v3358_v57  ;;  %v3367_v55 = vadd.f32 %v3363_v36, %v3359_v53 }
 0x2e5   : > { %v3368_v25 = vadd.f32 %v3364_v62, %v3360_v29  ;;  %v3377_v33 = vmul.f32 %v12308_v40, %v9501_v51  ;;  %v3378_v2 = vmul.f32 %v12309_v35, %v9501_v51  ;;  %v3379_v58 = vmul.f32 %v12310_v27, %v9501_v51 }
 0x2e6   : > { %v3380_v10 = vmul.f32 %v12327_v38, %v9501_v51  ;;  %v3373_v16 = vadd.f32 %v3369_v19, %v3365_v21  ;;  %v3374_v48 = vadd.f32 %v3370_v17, %v3366_v56  ;;  %v3375_v20 = vadd.f32 %v3371_v26, %v3367_v55  ;;  %v12341_v19 = vld [vmem:[#allocation38_spill] sm:$0xff]  ;;  %v9661_v51 = vld [vmem:[%s5752_s13 + $0x14] ss:$0 sm:$0xff] }
 0x2e7   : > { %v3376_v9 = vadd.f32 %v3372_v47, %v3368_v25  ;;  %v3385_v42 = vmul.f32 %v12283_v22, %v9626_v43  ;;  %v3386_v63 = vmul.f32 %v12284_v39, %v9626_v43  ;;  %v3387_v36 = vmul.f32 %v12285_v1, %v9626_v43  ;;  %12343 = vst [vmem:[#allocation19_spill] sm:$0xff] %v9661_v51 }
 0x2e8   : > { %v3388_v62 = vmul.f32 %v12286_v61, %v9626_v43  ;;  %v3381_v52 = vadd.f32 %v3377_v33, %v3373_v16  ;;  %v3382_v57 = vadd.f32 %v3378_v2, %v3374_v48  ;;  %v3383_v53 = vadd.f32 %v3379_v58, %v3375_v20  ;;  %v12342_v2 = vld [vmem:[#allocation36_spill] sm:$0xff] }
 0x2e9   : > { %v3384_v29 = vadd.f32 %v3380_v10, %v3376_v9  ;;  %v3459_v17 = vmul.f32 %v9511_v28, %v12341_v19  ;;  %v3460_v26 = vmul.f32 %v9515_v30, %v12341_v19  ;;  %v3461_v47 = vmul.f32 %v9519_v8, %v12341_v19 }
 0x2ea   : > { %v3462_v21 = vmul.f32 %v9523_v45, %v12341_v19  ;;  %v3389_v56 = vadd.f32 %v3385_v42, %v3381_v52  ;;  %v3390_v55 = vadd.f32 %v3386_v63, %v3382_v57  ;;  %v3391_v25 = vadd.f32 %v3387_v36, %v3383_v53  ;;  %v5103_v36 = vld [vmem:[%s6629_s15 + $0x100] sm:$0xff]  ;;  %v5105_v52 = vld [vmem:[%s6629_s15 + $0x110] sm:$0xff]  ;;  %v5106_v57 = vld [vmem:[%s6629_s15 + $0x118] sm:$0xff] }
 0x2eb   : > { %v3392_v33 = vadd.f32 %v3388_v62, %v3384_v29  ;;  %v3463_v58 = vmul.f32 %v9527_v7, %v12342_v2  ;;  %v3464_v10 = vmul.f32 %v9531_v6, %v12342_v2  ;;  %v3465_v16 = vmul.f32 %v9535_v41, %v12342_v2  ;;  %v5104_v62 = vld [vmem:[%s6629_s15 + $0x108] sm:$0xff] }
 0x2ec   : > { %v3466_v48 = vmul.f32 %v9539_v37, %v12342_v2  ;;  %v3393_v20 = vmax.f32 %v9546_v11, %v3389_v56  ;;  %v3394_v9 = vmax.f32 %v9551_v3, %v3390_v55  ;;  %v3395_v42 = vmax.f32 %v9556_v23, %v3391_v25  ;;  %v12344_v41 = vld [vmem:[#allocation30_spill] sm:$0xff]  ;;  %v12345_v37 = vld [vmem:[#allocation39_spill] sm:$0xff]  ;;  %v12348_v3 = vld [vmem:[#allocation48_spill] sm:$0xff] }
 0x2ed   : > { %v3396_v63 = vmax.f32 %v9561_v54, %v3392_v33  ;;  %v3467_v53 = vadd.f32 %v3463_v58, %v3459_v17  ;;  %v3468_v29 = vadd.f32 %v3464_v10, %v3460_v26  ;;  %v3469_v19 = vadd.f32 %v3465_v16, %v3461_v47  ;;  %v12347_v11 = vld [vmem:[#allocation47_spill] sm:$0xff]  ;;  %v12351_v54 = vld [vmem:[#allocation45_spill] sm:$0xff]  ;;  %v12353_v25 = vld [vmem:[#allocation44_spill] sm:$0xff] }
 0x2ee   : > { %v3470_v43 = vadd.f32 %v3466_v48, %v3462_v21  ;;  %v9665_v6 = vadd.f32 %v12345_v37, %v12344_v41  ;;  %v9669_v56 = vadd.f32 %v12348_v3, %v12347_v11  ;;  %v12350_v23 = vld [vmem:[#allocation31_spill] sm:$0xff]  ;;  %v3471_v26 = vmul.f32 %v9563_v50, %v9661_v51  ;;  %v12356_v37 = vld [vmem:[#allocation24_spill] sm:$0xff] }
 0x2ef   : > { %v9673_v55 = vadd.f32 %v12351_v54, %v12350_v23  ;;  %v12354_v33 = vld [vmem:[#allocation27_spill] sm:$0xff]  ;;  %v3472_v47 = vmul.f32 %v9567_v60, %v9661_v51  ;;  %v3473_v41 = vmul.f32 %v9571_v14, %v9661_v51  ;;  %v3474_v21 = vmul.f32 %v12356_v37, %v9661_v51 }
 0x2f0   : > { %12346 = vst [vmem:[#allocation37_spill] sm:$0xff] %v9665_v6  ;;  %12349 = vst [vmem:[#allocation32_spill] sm:$0xff] %v9669_v56  ;;  %v9677_v17 = vadd.f32 %v12354_v33, %v12353_v25  ;;  %v9687_v58 = vmul.f32 %v5103_v36, %v3393_v20  ;;  %v9689_v10 = vmul.f32 %v5104_v62, %v3394_v9  ;;  %v12361_v25 = vld [vmem:[#allocation40_spill] sm:$0xff]  ;;  %v12362_v33 = vld [vmem:[#allocation55_spill] sm:$0xff] }
 0x2f1   : > { %12352 = vst [vmem:[#allocation22_spill] sm:$0xff] %v9673_v55  ;;  %v9691_v16 = vmul.f32 %v5105_v52, %v3395_v42  ;;  %v9693_v48 = vmul.f32 %v5106_v57, %v3396_v63  ;;  %v3475_v11 = vadd.f32 %v3471_v26, %v3467_v53  ;;  %v3476_v3 = vadd.f32 %v3472_v47, %v3468_v29  ;;  %v12363_v55 = vld [vmem:[#allocation23_spill] sm:$0xff]  ;;  %v12364_v20 = vld [vmem:[#allocation28_spill] sm:$0xff]  ;;  %v12365_v42 = vld [vmem:[#allocation21_spill] sm:$0xff] }
 0x2f2   : > { %12355 = vst [vmem:[#allocation29_spill] sm:$0xff] %v9677_v17  ;;  %12357 = vst [vmem:[#allocation20_spill] sm:$0xff] %v9687_v58  ;;  %v3477_v23 = vadd.f32 %v3473_v41, %v3469_v19  ;;  %v3478_v54 = vadd.f32 %v3474_v21, %v3470_v43  ;;  %v3479_v17 = vmul.f32 %v12362_v33, %v12361_v25  ;;  %v9712_v57 = vld [vmem:[%s5752_s13 + $0x30] ss:$0 sm:$0xff] }
 0x2f3   : > { %12358 = vst [vmem:[#allocation25_spill] sm:$0xff] %v9689_v10  ;;  %12359 = vst [vmem:[#allocation49_spill] sm:$0xff] %v9691_v16  ;;  %v3480_v56 = vmul.f32 %v12363_v55, %v12361_v25  ;;  %v3481_v36 = vmul.f32 %v12364_v20, %v12361_v25  ;;  %v3482_v9 = vmul.f32 %v9036_v18, %v12361_v25  ;;  %v9853_v10 = vld [vmem:[#allocation7 + $0xf0] sm:$0xff]  ;;  %v9857_v6 = vld [vmem:[#allocation7 + $0xf8] sm:$0xff] }
 0x2f4   : > { %12360 = vst [vmem:[#allocation26_spill] sm:$0xff] %v9693_v48  ;;  %v3487_v63 = vmul.f32 %v9040_v34, %v12365_v42  ;;  %v3488_v62 = vmul.f32 %v9044_v13, %v12365_v42  ;;  %v3489_v43 = vmul.f32 %v9048_v31, %v12365_v42  ;;  %v3490_v52 = vmul.f32 %v12324_v46, %v12365_v42  ;;  %v9849_v48 = vld [vmem:[#allocation7 + $0xe8] sm:$0xff] }
 0x2f5   : > { %v3483_v53 = vadd.f32 %v3479_v17, %v3475_v11  ;;  %v3484_v29 = vadd.f32 %v3480_v56, %v3476_v3  ;;  %v3485_v19 = vadd.f32 %v3481_v36, %v3477_v23  ;;  %v3486_v26 = vadd.f32 %v3482_v9, %v3478_v54  ;;  %12376 = vst [vmem:[#allocation38_spill] sm:$0xff] %v9849_v48 }
 0x2f6   : > { %v3495_v18 = vmul.f32 %v9056_v49, %v9712_v57  ;;  %v3496_v34 = vmul.f32 %v9060_v4, %v9712_v57  ;;  %v3497_v13 = vmul.f32 %v9064_v32, %v9712_v57  ;;  %v3498_v31 = vmul.f32 %v9068_v15, %v9712_v57  ;;  %12377 = vst [vmem:[#allocation36_spill] sm:$0xff] %v9853_v10 }
 0x2f7   : > { %v3491_v47 = vadd.f32 %v3487_v63, %v3483_v53  ;;  %v3492_v46 = vadd.f32 %v3488_v62, %v3484_v29  ;;  %v3493_v41 = vadd.f32 %v3489_v43, %v3485_v19  ;;  %v3494_v17 = vadd.f32 %v3490_v52, %v3486_v26  ;;  %v9750_v29 = vld [vmem:[%s5752_s13 + $0x15] ss:$0 sm:$0xff]  ;;  %12378 = vst [vmem:[#allocation30_spill] sm:$0xff] %v9857_v6 }
 0x2f8   : > { %v3503_v56 = vmul.f32 %v12274_v5, %v9321_v0  ;;  %v3504_v49 = vmul.f32 %v12275_v44, %v9321_v0  ;;  %v3505_v4 = vmul.f32 %v12276_v24, %v9321_v0  ;;  %v3506_v32 = vmul.f32 %v12277_v12, %v9321_v0  ;;  %v9739_v24 = vld [vmem:[%s5752_s13 + $0x4c] ss:$0 sm:$0xff]  ;;  %12366 = vst [vmem:[#allocation43_spill] sm:$0xff] %v9750_v29 }
 0x2f9   : > { %v3499_v21 = vadd.f32 %v3495_v18, %v3491_v47  ;;  %v3500_v11 = vadd.f32 %v3496_v34, %v3492_v46  ;;  %v3501_v15 = vadd.f32 %v3497_v13, %v3493_v41  ;;  %v3502_v3 = vadd.f32 %v3498_v31, %v3494_v17  ;;  %v12367_v31 = vld [vmem:[#allocation41_spill] sm:$0xff]  ;;  %v12368_v46 = vld [vmem:[#allocation54_spill] sm:$0xff] }
 0x2fa   : > { %v3511_v23 = vmul.f32 %v12308_v40, %v9410_v59  ;;  %v3512_v54 = vmul.f32 %v12309_v35, %v9410_v59  ;;  %v3513_v5 = vmul.f32 %v12310_v27, %v9410_v59  ;;  %v3514_v44 = vmul.f32 %v12327_v38, %v9410_v59  ;;  %v12369_v17 = vld [vmem:[#allocation46_spill] sm:$0xff] }
 0x2fb   : > { %v3507_v12 = vadd.f32 %v3503_v56, %v3499_v21  ;;  %v3508_v36 = vadd.f32 %v3504_v49, %v3500_v11  ;;  %v3509_v9 = vadd.f32 %v3505_v4, %v3501_v15  ;;  %v3510_v63 = vadd.f32 %v3506_v32, %v3502_v3 }
 0x2fc   : > { %v3519_v62 = vmul.f32 %v12283_v22, %v9739_v24  ;;  %v3520_v40 = vmul.f32 %v12284_v39, %v9739_v24  ;;  %v3521_v35 = vmul.f32 %v12285_v1, %v9739_v24  ;;  %v3522_v27 = vmul.f32 %v12286_v61, %v9739_v24 }
 0x2fd   : > { %v3515_v43 = vadd.f32 %v3511_v23, %v3507_v12  ;;  %v3516_v38 = vadd.f32 %v3512_v54, %v3508_v36  ;;  %v3517_v52 = vadd.f32 %v3513_v5, %v3509_v9  ;;  %v3518_v53 = vadd.f32 %v3514_v44, %v3510_v63  ;;  %v9790_v44 = vld [vmem:[#allocation7 + $0x78] sm:$0xff] }
 0x2fe   : > { %v3527_v19 = vmul.f32 %v9511_v28, %v12342_v2  ;;  %v3528_v22 = vmul.f32 %v9515_v30, %v12342_v2  ;;  %v3529_v39 = vmul.f32 %v9519_v8, %v12342_v2  ;;  %v3530_v1 = vmul.f32 %v9523_v45, %v12342_v2 }
 0x2ff   : > { %v9760_v26 = vadd.f32 %v3519_v62, %v3515_v43  ;;  %v9762_v61 = vadd.f32 %v3520_v40, %v3516_v38  ;;  %v9764_v18 = vadd.f32 %v3521_v35, %v3517_v52  ;;  %v9766_v34 = vadd.f32 %v3522_v27, %v3518_v53  ;;  %v9794_v40 = vld [vmem:[#allocation7 + $0x80] sm:$0xff]  ;;  %v9798_v27 = vld [vmem:[#allocation7 + $0x88] sm:$0xff]  ;;  %v9802_v38 = vld [vmem:[#allocation7 + $0x90] sm:$0xff] }
 0x300   : > { %v3531_v13 = vmul.f32 %v9527_v7, %v9661_v51  ;;  %v3532_v47 = vmul.f32 %v12367_v31, %v9661_v51  ;;  %v3533_v41 = vmul.f32 %v12368_v46, %v9661_v51  ;;  %v3534_v2 = vmul.f32 %v12369_v17, %v9661_v51  ;;  %v9806_v53 = vld [vmem:[#allocation7 + $0x98] sm:$0xff] }
 0x301   : > { %v3539_v56 = vmul.f32 %v9563_v50, %v9750_v29  ;;  %v3540_v49 = vmul.f32 %v9567_v60, %v9750_v29  ;;  %v3541_v4 = vmul.f32 %v9571_v14, %v9750_v29  ;;  %v3542_v32 = vmul.f32 %v12356_v37, %v9750_v29  ;;  %v9868_v29 = vld [vmem:[#allocation7 + $0x108] sm:$0xff] }
 0x302   : > { %v3535_v21 = vadd.f32 %v3531_v13, %v3527_v19  ;;  %v3536_v11 = vadd.f32 %v3532_v47, %v3528_v22  ;;  %v3537_v15 = vadd.f32 %v3533_v41, %v3529_v39  ;;  %v3538_v3 = vadd.f32 %v3534_v2, %v3530_v1  ;;  %v9811_v22 = vld [vmem:[%s5752_s13 + $0x31] ss:$0 sm:$0xff]  ;;  %v9813_v41 = vld [vmem:[#allocation7 + $0xa0] sm:$0xff]  ;;  %12381 = vst [vmem:[#allocation48_spill] sm:$0xff] %v9868_v29 }
 0x303   : > { %v3547_v23 = vmul.f32 %v12362_v33, %v12365_v42  ;;  %v3548_v54 = vmul.f32 %v12363_v55, %v12365_v42  ;;  %v3549_v5 = vmul.f32 %v12364_v20, %v12365_v42  ;;  %v3550_v12 = vmul.f32 %v9790_v44, %v12365_v42  ;;  %12370 = vst [vmem:[#allocation51_spill] sm:$0xff] %v9811_v22 }
 0x304   : > { %v3543_v36 = vadd.f32 %v3539_v56, %v3535_v21  ;;  %v3544_v9 = vadd.f32 %v3540_v49, %v3536_v11  ;;  %v3545_v63 = vadd.f32 %v3541_v4, %v3537_v15  ;;  %v3546_v62 = vadd.f32 %v3542_v32, %v3538_v3  ;;  %v9817_v56 = vld [vmem:[#allocation7 + $0xa8] sm:$0xff]  ;;  %v9821_v4 = vld [vmem:[#allocation7 + $0xb0] sm:$0xff]  ;;  %v9825_v21 = vld [vmem:[#allocation7 + $0xb8] sm:$0xff] }
 0x305   : > { %v3555_v35 = vmul.f32 %v9794_v40, %v9712_v57  ;;  %v3556_v43 = vmul.f32 %v9798_v27, %v9712_v57  ;;  %v3557_v52 = vmul.f32 %v9802_v38, %v9712_v57  ;;  %v3558_v19 = vmul.f32 %v9806_v53, %v9712_v57 }
 0x306   : > { %v3551_v39 = vadd.f32 %v3547_v23, %v3543_v36  ;;  %v3552_v1 = vadd.f32 %v3548_v54, %v3544_v9  ;;  %v3553_v13 = vadd.f32 %v3549_v5, %v3545_v63  ;;  %v3554_v47 = vadd.f32 %v3550_v12, %v3546_v62  ;;  %v9829_v5 = vld [vmem:[#allocation7 + $0xc0] sm:$0xff]  ;;  %v9833_v36 = vld [vmem:[#allocation7 + $0xc8] sm:$0xff]  ;;  %v9837_v63 = vld [vmem:[#allocation7 + $0xd0] sm:$0xff] }
 0x307   : > { %v3563_v2 = vmul.f32 %v9813_v41, %v9811_v22  ;;  %v3564_v49 = vmul.f32 %v9817_v56, %v9811_v22  ;;  %v3565_v32 = vmul.f32 %v9821_v4, %v9811_v22  ;;  %v3566_v11 = vmul.f32 %v9825_v21, %v9811_v22  ;;  %12371 = vst [vmem:[#allocation52_spill] sm:$0xff] %v9829_v5  ;;  %v9872_v22 = vld [vmem:[#allocation7 + $0x110] sm:$0xff] }
 0x308   : > { %v3559_v15 = vadd.f32 %v3555_v35, %v3551_v39  ;;  %v3560_v3 = vadd.f32 %v3556_v43, %v3552_v1  ;;  %v3561_v23 = vadd.f32 %v3557_v52, %v3553_v13  ;;  %v3562_v54 = vadd.f32 %v3558_v19, %v3554_v47  ;;  %12372 = vst [vmem:[#allocation35_spill] sm:$0xff] %v9833_v36  ;;  %v9841_v35 = vld [vmem:[#allocation7 + $0xd8] sm:$0xff]  ;;  %v9845_v13 = vld [vmem:[#allocation7 + $0xe0] sm:$0xff] }
 0x309   : > { %v3571_v12 = vmul.f32 %v9829_v5, %v9410_v59  ;;  %v3572_v9 = vmul.f32 %v9833_v36, %v9410_v59  ;;  %12373 = vst [vmem:[#allocation53_spill] sm:$0xff] %v9837_v63  ;;  %v3573_v62 = vmul.f32 %v9837_v63, %v9410_v59  ;;  %12374 = vst [vmem:[#allocation33_spill] sm:$0xff] %v9841_v35 }
 0x30a   : > { %v3574_v43 = vmul.f32 %v9841_v35, %v9410_v59  ;;  %v3567_v52 = vadd.f32 %v3563_v2, %v3559_v15  ;;  %v3568_v19 = vadd.f32 %v3564_v49, %v3560_v3  ;;  %v3569_v39 = vadd.f32 %v3565_v32, %v3561_v23  ;;  %12375 = vst [vmem:[#allocation56_spill] sm:$0xff] %v9845_v13  ;;  %v9862_v49 = vld [vmem:[%s5752_s13 + $0x4d] ss:$0 sm:$0xff]  ;;  %v9864_v23 = vld [vmem:[#allocation7 + $0x100] sm:$0xff] }
 0x30b   : > { %v3570_v1 = vadd.f32 %v3566_v11, %v3562_v54  ;;  %v3579_v47 = vmul.f32 %v9845_v13, %v9739_v24  ;;  %v3580_v16 = vmul.f32 %v9849_v48, %v9739_v24  ;;  %v3581_v58 = vmul.f32 %v9853_v10, %v9739_v24  ;;  %12379 = vst [vmem:[#allocation39_spill] sm:$0xff] %v9862_v49  ;;  %v9876_v10 = vld [vmem:[#allocation7 + $0x118] sm:$0xff] }
 0x30c   : > { %v3582_v2 = vmul.f32 %v9857_v6, %v9739_v24  ;;  %v3575_v32 = vadd.f32 %v3571_v12, %v3567_v52  ;;  %v3576_v11 = vadd.f32 %v3572_v9, %v3568_v19  ;;  %v3577_v15 = vadd.f32 %v3573_v62, %v3569_v39  ;;  %12380 = vst [vmem:[#allocation47_spill] sm:$0xff] %v9864_v23 }
 0x30d   : > { %v3578_v3 = vadd.f32 %v3574_v43, %v3570_v1  ;;  %v3587_v54 = vmul.f32 %v9864_v23, %v9862_v49  ;;  %v3588_v51 = vmul.f32 %v9868_v29, %v9862_v49  ;;  %12382 = vst [vmem:[#allocation31_spill] sm:$0xff] %v9872_v22  ;;  %v3589_v6 = vmul.f32 %v9872_v22, %v9862_v49 }
 0x30e   : > { %v3590_v12 = vmul.f32 %v9876_v10, %v9862_v49  ;;  %v3583_v9 = vadd.f32 %v3579_v47, %v3575_v32  ;;  %v3584_v62 = vadd.f32 %v3580_v16, %v3576_v11  ;;  %v3585_v43 = vadd.f32 %v3581_v58, %v3577_v15 }
 0x30f   : > { %v3586_v52 = vadd.f32 %v3582_v2, %v3578_v3  ;;  %v3599_v19 = vmul.f32 %v9511_v28, %v12361_v25  ;;  %v3600_v39 = vmul.f32 %v9515_v30, %v12361_v25  ;;  %v3601_v1 = vmul.f32 %v9519_v8, %v12361_v25 }
 0x310   : > { %v3602_v22 = vmul.f32 %v9523_v45, %v12361_v25  ;;  %v9888_v29 = vadd.f32 %v3587_v54, %v3583_v9  ;;  %v9890_v23 = vadd.f32 %v3588_v51, %v3584_v62  ;;  %v9892_v47 = vadd.f32 %v3589_v6, %v3585_v43 }
 0x311   : > { %v9894_v58 = vadd.f32 %v3590_v12, %v3586_v52  ;;  %v3603_v16 = vmul.f32 %v9527_v7, %v12365_v42  ;;  %v3604_v2 = vmul.f32 %v12367_v31, %v12365_v42  ;;  %v3605_v32 = vmul.f32 %v12368_v46, %v12365_v42 }
 0x312   : > { %v3606_v25 = vmul.f32 %v12369_v17, %v12365_v42  ;;  %v3611_v62 = vmul.f32 %v9563_v50, %v9712_v57  ;;  %v3612_v43 = vmul.f32 %v9567_v60, %v9712_v57  ;;  %v3613_v52 = vmul.f32 %v9571_v14, %v9712_v57 }
 0x313   : > { %v3607_v3 = vadd.f32 %v3603_v16, %v3599_v19  ;;  %v3608_v54 = vadd.f32 %v3604_v2, %v3600_v39  ;;  %v3609_v12 = vadd.f32 %v3605_v32, %v3601_v1  ;;  %v3614_v6 = vmul.f32 %v12356_v37, %v9712_v57 }
 0x314   : > { %v3610_v9 = vadd.f32 %v3606_v25, %v3602_v22  ;;  %v3619_v11 = vmul.f32 %v12362_v33, %v9321_v0  ;;  %v3620_v19 = vmul.f32 %v12363_v55, %v9321_v0  ;;  %v3621_v22 = vmul.f32 %v12364_v20, %v9321_v0 }
 0x315   : > { %v3622_v39 = vmul.f32 %v9790_v44, %v9321_v0  ;;  %v3615_v1 = vadd.f32 %v3611_v62, %v3607_v3  ;;  %v3616_v16 = vadd.f32 %v3612_v43, %v3608_v54  ;;  %v3617_v2 = vadd.f32 %v3613_v52, %v3609_v12  ;;  %v12383_v52 = vld [vmem:[#allocation34_spill] sm:$0xff] }
 0x316   : > { %v3618_v32 = vadd.f32 %v3614_v6, %v3610_v9  ;;  %v3627_v25 = vmul.f32 %v9794_v40, %v9410_v59  ;;  %v3628_v15 = vmul.f32 %v9798_v27, %v9410_v59  ;;  %v3629_v51 = vmul.f32 %v9802_v38, %v9410_v59 }
 0x317   : > { %v3630_v49 = vmul.f32 %v9806_v53, %v9410_v59  ;;  %v3623_v20 = vadd.f32 %v3619_v11, %v3615_v1  ;;  %v3624_v55 = vadd.f32 %v3620_v19, %v3616_v16  ;;  %v3625_v33 = vadd.f32 %v3621_v22, %v3617_v2 }
 0x318   : > { %v3626_v0 = vadd.f32 %v3622_v39, %v3618_v32  ;;  %v3635_v3 = vmul.f32 %v9813_v41, %v9739_v24  ;;  %v3636_v6 = vmul.f32 %v9817_v56, %v9739_v24  ;;  %v3637_v54 = vmul.f32 %v9821_v4, %v9739_v24 }
 0x319   : > { %v3638_v12 = vmul.f32 %v9825_v21, %v9739_v24  ;;  %v3631_v9 = vadd.f32 %v3627_v25, %v3623_v20  ;;  %v3632_v62 = vadd.f32 %v3628_v15, %v3624_v55  ;;  %v3633_v43 = vadd.f32 %v3629_v51, %v3625_v33  ;;  %v12384_v25 = vld [vmem:[#allocation42_spill] sm:$0xff] }
 0x31a   : > { %v3634_v11 = vadd.f32 %v3630_v49, %v3626_v0  ;;  %v3643_v19 = vmul.f32 %v9829_v5, %v12383_v52  ;;  %v3644_v22 = vmul.f32 %v9833_v36, %v12383_v52  ;;  %v3645_v39 = vmul.f32 %v9837_v63, %v12383_v52  ;;  %v12385_v49 = vld [vmem:[#allocation36_spill] sm:$0xff]  ;;  %v12386_v15 = vld [vmem:[#allocation30_spill] sm:$0xff]  ;;  %v9961_v63 = vld [vmem:[%s5752_s13 + $0x68] ss:$0 sm:$0xff] }
 0x31b   : > { %v3646_v1 = vmul.f32 %v9841_v35, %v12383_v52  ;;  %v3639_v16 = vadd.f32 %v3635_v3, %v3631_v9  ;;  %v3640_v2 = vadd.f32 %v3636_v6, %v3632_v62  ;;  %v3641_v32 = vadd.f32 %v3637_v54, %v3633_v43  ;;  %12387 = vst [vmem:[#allocation45_spill] sm:$0xff] %v9961_v63  ;;  %v12388_v54 = vld [vmem:[#allocation47_spill] sm:$0xff]  ;;  %v12389_v9 = vld [vmem:[#allocation48_spill] sm:$0xff] }
 0x31c   : > { %v3642_v20 = vadd.f32 %v3638_v12, %v3634_v11  ;;  %v3651_v55 = vmul.f32 %v9845_v13, %v12384_v25  ;;  %v3652_v33 = vmul.f32 %v9849_v48, %v12384_v25  ;;  %v3653_v51 = vmul.f32 %v12385_v49, %v12384_v25  ;;  %v12390_v43 = vld [vmem:[#allocation31_spill] sm:$0xff] }
 0x31d   : > { %v3654_v0 = vmul.f32 %v12386_v15, %v12384_v25  ;;  %v3647_v36 = vadd.f32 %v3643_v19, %v3639_v16  ;;  %v3648_v52 = vadd.f32 %v3644_v22, %v3640_v2  ;;  %v3649_v3 = vadd.f32 %v3645_v39, %v3641_v32 }
 0x31e   : > { %v3650_v6 = vadd.f32 %v3646_v1, %v3642_v20  ;;  %v3659_v12 = vmul.f32 %v12388_v54, %v9961_v63  ;;  %v3660_v62 = vmul.f32 %v12389_v9, %v9961_v63  ;;  %v3661_v11 = vmul.f32 %v12390_v43, %v9961_v63 }
 0x31f   : > { %v3662_v49 = vmul.f32 %v9876_v10, %v9961_v63  ;;  %v3655_v48 = vadd.f32 %v3651_v55, %v3647_v36  ;;  %v3656_v15 = vadd.f32 %v3652_v33, %v3648_v52  ;;  %v3657_v13 = vadd.f32 %v3653_v51, %v3649_v3 }
 0x320   : > { %v3658_v35 = vadd.f32 %v3654_v0, %v3650_v6  ;;  %v3671_v19 = vmul.f32 %v9511_v28, %v12365_v42  ;;  %v3672_v22 = vmul.f32 %v9515_v30, %v12365_v42  ;;  %v3673_v39 = vmul.f32 %v9519_v8, %v12365_v42 }
 0x321   : > { %v3674_v1 = vmul.f32 %v9523_v45, %v12365_v42  ;;  %v3663_v16 = vadd.f32 %v3659_v12, %v3655_v48  ;;  %v3664_v2 = vadd.f32 %v3660_v62, %v3656_v15  ;;  %v3665_v32 = vadd.f32 %v3661_v11, %v3657_v13  ;;  %v12395_v12 = vld [vmem:[#allocation51_spill] sm:$0xff] }
 0x322   : > { %v3666_v20 = vadd.f32 %v3662_v49, %v3658_v35  ;;  %v3675_v36 = vmul.f32 %v9527_v7, %v9712_v57  ;;  %v3676_v55 = vmul.f32 %v12367_v31, %v9712_v57  ;;  %v3677_v33 = vmul.f32 %v12368_v46, %v9712_v57 }
 0x323   : > { %v3678_v51 = vmul.f32 %v12369_v17, %v9712_v57  ;;  %v12391_v0 = vmax.f32 %v9760_v26, %v9888_v29  ;;  %v12392_v48 = vmax.f32 %v9762_v61, %v9890_v23  ;;  %v12393_v13 = vmax.f32 %v9764_v18, %v9892_v47 }
 0x324   : > { %v12394_v15 = vmax.f32 %v9766_v34, %v9894_v58  ;;  %v3679_v3 = vadd.f32 %v3675_v36, %v3671_v19  ;;  %v3680_v6 = vadd.f32 %v3676_v55, %v3672_v22  ;;  %v3681_v29 = vadd.f32 %v3677_v33, %v3673_v39  ;;  %v12396_v34 = vld [vmem:[#allocation55_spill] sm:$0xff]  ;;  %v12398_v19 = vld [vmem:[#allocation28_spill] sm:$0xff] }
 0x325   : > { %v9990_v42 = vmax.f32 %v12391_v0, %v3663_v16  ;;  %v9995_v35 = vmax.f32 %v12392_v48, %v3664_v2  ;;  %v10000_v49 = vmax.f32 %v12393_v13, %v3665_v32  ;;  %v3682_v26 = vadd.f32 %v3678_v51, %v3674_v1  ;;  %v12397_v58 = vld [vmem:[#allocation23_spill] sm:$0xff] }
 0x326   : > { %v10005_v52 = vmax.f32 %v12394_v15, %v3666_v20  ;;  %v3683_v62 = vmul.f32 %v9563_v50, %v12395_v12  ;;  %v3684_v61 = vmul.f32 %v9567_v60, %v12395_v12  ;;  %v3685_v18 = vmul.f32 %v9571_v14, %v12395_v12  ;;  %v12399_v13 = vld [vmem:[#allocation39_spill] sm:$0xff] }
 0x327   : > { %v3686_v23 = vmul.f32 %v12356_v37, %v12395_v12  ;;  %v3691_v47 = vmul.f32 %v12396_v34, %v9410_v59  ;;  %v3692_v11 = vmul.f32 %v12397_v58, %v9410_v59  ;;  %v3693_v22 = vmul.f32 %v12398_v19, %v9410_v59 }
 0x328   : > { %v3694_v39 = vmul.f32 %v9790_v44, %v9410_v59  ;;  %v3687_v1 = vadd.f32 %v3683_v62, %v3679_v3  ;;  %v3688_v16 = vadd.f32 %v3684_v61, %v3680_v6  ;;  %v3689_v2 = vadd.f32 %v3685_v18, %v3681_v29 }
 0x329   : > { %v3690_v32 = vadd.f32 %v3686_v23, %v3682_v26  ;;  %v3699_v20 = vmul.f32 %v9794_v40, %v9739_v24  ;;  %v3700_v36 = vmul.f32 %v9798_v27, %v9739_v24  ;;  %v3701_v55 = vmul.f32 %v9802_v38, %v9739_v24 }
 0x32a   : > { %v3702_v33 = vmul.f32 %v9806_v53, %v9739_v24  ;;  %v3695_v51 = vadd.f32 %v3691_v47, %v3687_v1  ;;  %v3696_v0 = vadd.f32 %v3692_v11, %v3688_v16  ;;  %v3697_v48 = vadd.f32 %v3693_v22, %v3689_v2  ;;  %v12400_v47 = vld [vmem:[#allocation35_spill] sm:$0xff]  ;;  %v12401_v22 = vld [vmem:[#allocation53_spill] sm:$0xff] }
 0x32b   : > { %v3698_v59 = vadd.f32 %v3694_v39, %v3690_v32  ;;  %v3707_v15 = vmul.f32 %v9813_v41, %v12399_v13  ;;  %v3708_v3 = vmul.f32 %v9817_v56, %v12399_v13  ;;  %v3709_v6 = vmul.f32 %v9821_v4, %v12399_v13  ;;  %v12402_v1 = vld [vmem:[#allocation33_spill] sm:$0xff] }
 0x32c   : > { %v3710_v29 = vmul.f32 %v9825_v21, %v12399_v13  ;;  %v3703_v26 = vadd.f32 %v3699_v20, %v3695_v51  ;;  %v3704_v62 = vadd.f32 %v3700_v36, %v3696_v0  ;;  %v3705_v61 = vadd.f32 %v3701_v55, %v3697_v48  ;;  %v12403_v36 = vld [vmem:[#allocation56_spill] sm:$0xff] }
 0x32d   : > { %v3706_v18 = vadd.f32 %v3702_v33, %v3698_v59  ;;  %v3715_v23 = vmul.f32 %v9829_v5, %v12384_v25  ;;  %v3716_v11 = vmul.f32 %v12400_v47, %v12384_v25  ;;  %v3717_v39 = vmul.f32 %v12401_v22, %v12384_v25  ;;  %v12404_v33 = vld [vmem:[#allocation38_spill] sm:$0xff]  ;;  %v12405_v0 = vld [vmem:[#allocation36_spill] sm:$0xff]  ;;  %v10056_v22 = vld [vmem:[%s5752_s13 + $0x69] ss:$0 sm:$0xff] }
 0x32e   : > { %v3718_v16 = vmul.f32 %v12402_v1, %v12384_v25  ;;  %v3711_v2 = vadd.f32 %v3707_v15, %v3703_v26  ;;  %v3712_v32 = vadd.f32 %v3708_v3, %v3704_v62  ;;  %v3713_v13 = vadd.f32 %v3709_v6, %v3705_v61  ;;  %v12406_v59 = vld [vmem:[#allocation30_spill] sm:$0xff]  ;;  %12407 = vst [vmem:[#allocation44_spill] sm:$0xff] %v10056_v22 }
 0x32f   : > { %v3714_v20 = vadd.f32 %v3710_v29, %v3706_v18  ;;  %v3723_v55 = vmul.f32 %v12403_v36, %v9961_v63  ;;  %v3724_v51 = vmul.f32 %v12404_v33, %v9961_v63  ;;  %v3725_v48 = vmul.f32 %v12405_v0, %v9961_v63 }
 0x330   : > { %v3726_v47 = vmul.f32 %v12406_v59, %v9961_v63  ;;  %v3719_v5 = vadd.f32 %v3715_v23, %v3711_v2  ;;  %v3720_v25 = vadd.f32 %v3716_v11, %v3712_v32  ;;  %v3721_v15 = vadd.f32 %v3717_v39, %v3713_v13  ;;  %v12408_v23 = vld [vmem:[#allocation19_spill] sm:$0xff] }
 0x331   : > { %v3722_v3 = vadd.f32 %v3718_v16, %v3714_v20  ;;  %v3731_v6 = vmul.f32 %v12388_v54, %v10056_v22  ;;  %v3732_v29 = vmul.f32 %v12389_v9, %v10056_v22  ;;  %v3733_v26 = vmul.f32 %v12390_v43, %v10056_v22  ;;  %v12409_v20 = vld [vmem:[#allocation43_spill] sm:$0xff] }
 0x332   : > { %v3734_v62 = vmul.f32 %v9876_v10, %v10056_v22  ;;  %v3727_v61 = vadd.f32 %v3723_v55, %v3719_v5  ;;  %v3728_v18 = vadd.f32 %v3724_v51, %v3720_v25  ;;  %v3729_v63 = vadd.f32 %v3725_v48, %v3721_v15 }
 0x333   : > { %v3730_v59 = vadd.f32 %v3726_v47, %v3722_v3  ;;  %v3805_v13 = vmul.f32 %v9511_v28, %v12408_v23  ;;  %v3806_v11 = vmul.f32 %v9515_v30, %v12408_v23  ;;  %v3807_v39 = vmul.f32 %v9519_v8, %v12408_v23 }
 0x334   : > { %v3808_v16 = vmul.f32 %v9523_v45, %v12408_v23  ;;  %v3735_v5 = vadd.f32 %v3731_v6, %v3727_v61  ;;  %v3736_v2 = vadd.f32 %v3732_v29, %v3728_v18  ;;  %v3737_v32 = vadd.f32 %v3733_v26, %v3729_v63  ;;  %v5115_v6 = vld [vmem:[%s6629_s15 + $0x120] sm:$0xff]  ;;  %v5116_v29 = vld [vmem:[%s6629_s15 + $0x128] sm:$0xff]  ;;  %v5117_v26 = vld [vmem:[%s6629_s15 + $0x130] sm:$0xff] }
 0x335   : > { %v3738_v47 = vadd.f32 %v3734_v62, %v3730_v59  ;;  %v3809_v55 = vmul.f32 %v9527_v7, %v12409_v20  ;;  %v3810_v51 = vmul.f32 %v12367_v31, %v12409_v20  ;;  %v3811_v48 = vmul.f32 %v12368_v46, %v12409_v20  ;;  %v5118_v62 = vld [vmem:[%s6629_s15 + $0x138] sm:$0xff]  ;;  %v10091_v46 = vld [vmem:[%s5752_s13 + $0x16] ss:$0 sm:$0xff]  ;;  %v12411_v31 = vld [vmem:[#allocation37_spill] sm:$0xff] }
 0x336   : > { %v3812_v25 = vmul.f32 %v12369_v17, %v12409_v20  ;;  %v3739_v15 = vmax.f32 %v9990_v42, %v3735_v5  ;;  %v3740_v3 = vmax.f32 %v9995_v35, %v3736_v2  ;;  %v3741_v63 = vmax.f32 %v10000_v49, %v3737_v32  ;;  %12410 = vst [vmem:[#allocation27_spill] sm:$0xff] %v10091_v46  ;;  %v12412_v17 = vld [vmem:[#allocation20_spill] sm:$0xff]  ;;  %v12415_v35 = vld [vmem:[#allocation25_spill] sm:$0xff]  ;;  %v12417_v49 = vld [vmem:[#allocation22_spill] sm:$0xff] }
 0x337   : > { %v3742_v59 = vmax.f32 %v10005_v52, %v3738_v47  ;;  %v3813_v61 = vadd.f32 %v3809_v55, %v3805_v13  ;;  %v3814_v18 = vadd.f32 %v3810_v51, %v3806_v11  ;;  %v3815_v23 = vadd.f32 %v3811_v48, %v3807_v39  ;;  %v12414_v42 = vld [vmem:[#allocation32_spill] sm:$0xff]  ;;  %v12418_v52 = vld [vmem:[#allocation49_spill] sm:$0xff]  ;;  %v12421_v47 = vld [vmem:[#allocation26_spill] sm:$0xff] }
 0x338   : > { %v3816_v22 = vadd.f32 %v3812_v25, %v3808_v16  ;;  %v10095_v7 = vadd.f32 %v12412_v17, %v12411_v31  ;;  %v10099_v5 = vadd.f32 %v12415_v35, %v12414_v42  ;;  %v10103_v2 = vadd.f32 %v12418_v52, %v12417_v49  ;;  %v12420_v32 = vld [vmem:[#allocation29_spill] sm:$0xff] }
 0x339   : > { %v10107_v13 = vadd.f32 %v12421_v47, %v12420_v32  ;;  %v3817_v11 = vmul.f32 %v9563_v50, %v10091_v46  ;;  %v3818_v39 = vmul.f32 %v9567_v60, %v10091_v46  ;;  %v3819_v31 = vmul.f32 %v9571_v14, %v10091_v46 }
 0x33a   : > { %12413 = vst [vmem:[#allocation24_spill] sm:$0xff] %v10095_v7  ;;  %12416 = vst [vmem:[#allocation40_spill] sm:$0xff] %v10099_v5  ;;  %v3820_v17 = vmul.f32 %v12356_v37, %v10091_v46  ;;  %v10117_v16 = vmul.f32 %v5115_v6, %v3739_v15  ;;  %v10119_v55 = vmul.f32 %v5116_v29, %v3740_v3  ;;  %v10142_v29 = vld [vmem:[%s5752_s13 + $0x32] ss:$0 sm:$0xff] }
 0x33b   : > { %12419 = vst [vmem:[#allocation21_spill] sm:$0xff] %v10103_v2  ;;  %12422 = vst [vmem:[#allocation34_spill] sm:$0xff] %v10107_v13  ;;  %v10121_v51 = vmul.f32 %v5117_v26, %v3741_v63  ;;  %v10123_v48 = vmul.f32 %v5118_v62, %v3742_v59  ;;  %v3821_v25 = vadd.f32 %v3817_v11, %v3813_v61 }
 0x33c   : > { %12423 = vst [vmem:[#allocation42_spill] sm:$0xff] %v10117_v16  ;;  %12424 = vst [vmem:[#allocation47_spill] sm:$0xff] %v10119_v55  ;;  %v3822_v42 = vadd.f32 %v3818_v39, %v3814_v18  ;;  %v3823_v35 = vadd.f32 %v3819_v31, %v3815_v23  ;;  %v3824_v49 = vadd.f32 %v3820_v17, %v3816_v22 }
 0x33d   : > { %12425 = vst [vmem:[#allocation48_spill] sm:$0xff] %v10121_v51  ;;  %12426 = vst [vmem:[#allocation31_spill] sm:$0xff] %v10123_v48  ;;  %v3825_v52 = vmul.f32 %v12396_v34, %v9712_v57  ;;  %v3826_v32 = vmul.f32 %v12397_v58, %v9712_v57  ;;  %v3827_v15 = vmul.f32 %v12398_v19, %v9712_v57 }
 0x33e   : > { %v3828_v3 = vmul.f32 %v9790_v44, %v9712_v57  ;;  %v3833_v63 = vmul.f32 %v9794_v40, %v12395_v12  ;;  %v3834_v59 = vmul.f32 %v9798_v27, %v12395_v12  ;;  %v3835_v22 = vmul.f32 %v9802_v38, %v12395_v12  ;;  %12427 = vst [vmem:[#allocation51_spill] sm:$0xff] %v10142_v29 }
 0x33f   : > { %v3836_v6 = vmul.f32 %v9806_v53, %v12395_v12  ;;  %v3829_v26 = vadd.f32 %v3825_v52, %v3821_v25  ;;  %v3830_v62 = vadd.f32 %v3826_v32, %v3822_v42  ;;  %v3831_v61 = vadd.f32 %v3827_v15, %v3823_v35  ;;  %v12428_v42 = vld [vmem:[#allocation52_spill] sm:$0xff]  ;;  %v12430_v32 = vld [vmem:[#allocation53_spill] sm:$0xff] }
 0x340   : > { %v3832_v18 = vadd.f32 %v3828_v3, %v3824_v49  ;;  %v3841_v23 = vmul.f32 %v9813_v41, %v10142_v29  ;;  %v3842_v47 = vmul.f32 %v9817_v56, %v10142_v29  ;;  %v3843_v11 = vmul.f32 %v9821_v4, %v10142_v29  ;;  %v12429_v49 = vld [vmem:[#allocation35_spill] sm:$0xff] }
 0x341   : > { %v3844_v39 = vmul.f32 %v9825_v21, %v10142_v29  ;;  %v3837_v31 = vadd.f32 %v3833_v63, %v3829_v26  ;;  %v3838_v17 = vadd.f32 %v3834_v59, %v3830_v62  ;;  %v3839_v48 = vadd.f32 %v3835_v22, %v3831_v61  ;;  %v12431_v26 = vld [vmem:[#allocation39_spill] sm:$0xff]  ;;  %v12432_v62 = vld [vmem:[#allocation30_spill] sm:$0xff] }
 0x342   : > { %v3840_v25 = vadd.f32 %v3836_v6, %v3832_v18  ;;  %v3849_v35 = vmul.f32 %v12428_v42, %v9739_v24  ;;  %v3850_v52 = vmul.f32 %v12429_v49, %v9739_v24  ;;  %v3851_v15 = vmul.f32 %v12430_v32, %v9739_v24  ;;  %v10169_v18 = vld [vmem:[%s5752_s13 + $0x4e] ss:$0 sm:$0xff] }
 0x343   : > { %v3852_v3 = vmul.f32 %v12402_v1, %v9739_v24  ;;  %v3845_v13 = vadd.f32 %v3841_v23, %v3837_v31  ;;  %v3846_v51 = vadd.f32 %v3842_v47, %v3838_v17  ;;  %v3847_v2 = vadd.f32 %v3843_v11, %v3839_v48  ;;  %12433 = vst [vmem:[#allocation55_spill] sm:$0xff] %v10169_v18 }
 0x344   : > { %v3848_v63 = vadd.f32 %v3844_v39, %v3840_v25  ;;  %v3857_v59 = vmul.f32 %v12403_v36, %v12431_v26  ;;  %v3858_v22 = vmul.f32 %v12404_v33, %v12431_v26  ;;  %v3859_v6 = vmul.f32 %v12405_v0, %v12431_v26 }
 0x345   : > { %v3860_v61 = vmul.f32 %v12432_v62, %v12431_v26  ;;  %v3853_v55 = vadd.f32 %v3849_v35, %v3845_v13  ;;  %v3854_v23 = vadd.f32 %v3850_v52, %v3846_v51  ;;  %v3855_v47 = vadd.f32 %v3851_v15, %v3847_v2  ;;  %v10180_v13 = vld [vmem:[%s5752_s13 + $0x17] ss:$0 sm:$0xff] }
 0x346   : > { %v3856_v48 = vadd.f32 %v3852_v3, %v3848_v63  ;;  %v3865_v11 = vmul.f32 %v12388_v54, %v10169_v18  ;;  %v3866_v39 = vmul.f32 %v12389_v9, %v10169_v18  ;;  %v3867_v31 = vmul.f32 %v12390_v43, %v10169_v18  ;;  %12434 = vst [vmem:[#allocation23_spill] sm:$0xff] %v10180_v13 }
 0x347   : > { %v3868_v17 = vmul.f32 %v9876_v10, %v10169_v18  ;;  %v3861_v25 = vadd.f32 %v3857_v59, %v3853_v55  ;;  %v3862_v5 = vadd.f32 %v3858_v22, %v3854_v23  ;;  %v3863_v16 = vadd.f32 %v3859_v6, %v3855_v47  ;;  %v12435_v59 = vld [vmem:[#allocation50_spill] sm:$0xff]  ;;  %v12436_v22 = vld [vmem:[#allocation41_spill] sm:$0xff] }
 0x348   : > { %v3864_v7 = vadd.f32 %v3860_v61, %v3856_v48  ;;  %v3873_v2 = vmul.f32 %v9511_v28, %v12409_v20  ;;  %v3874_v51 = vmul.f32 %v9515_v30, %v12409_v20  ;;  %v3875_v35 = vmul.f32 %v9519_v8, %v12409_v20  ;;  %v12437_v6 = vld [vmem:[#allocation54_spill] sm:$0xff] }
 0x349   : > { %v3876_v52 = vmul.f32 %v9523_v45, %v12409_v20  ;;  %v10190_v15 = vadd.f32 %v3865_v11, %v3861_v25  ;;  %v10192_v55 = vadd.f32 %v3866_v39, %v3862_v5  ;;  %v10194_v3 = vadd.f32 %v3867_v31, %v3863_v16  ;;  %v12438_v61 = vld [vmem:[#allocation46_spill] sm:$0xff] }
 0x34a   : > { %v10196_v63 = vadd.f32 %v3868_v17, %v3864_v7  ;;  %v3877_v28 = vmul.f32 %v12435_v59, %v10091_v46  ;;  %v3878_v30 = vmul.f32 %v12436_v22, %v10091_v46  ;;  %v3879_v8 = vmul.f32 %v12437_v6, %v10091_v46 }
 0x34b   : > { %v3880_v45 = vmul.f32 %v12438_v61, %v10091_v46  ;;  %v3885_v20 = vmul.f32 %v9563_v50, %v10180_v13  ;;  %v3886_v5 = vmul.f32 %v9567_v60, %v10180_v13  ;;  %v3887_v7 = vmul.f32 %v9571_v14, %v10180_v13 }
 0x34c   : > { %v3888_v16 = vmul.f32 %v12356_v37, %v10180_v13  ;;  %v3881_v23 = vadd.f32 %v3877_v28, %v3873_v2  ;;  %v3882_v47 = vadd.f32 %v3878_v30, %v3874_v51  ;;  %v3883_v48 = vadd.f32 %v3879_v8, %v3875_v35  ;;  %v10320_v13 = vld [vmem:[#allocation7 + $0x48] sm:$0xff] }
 0x34d   : > { %v3884_v11 = vadd.f32 %v3880_v45, %v3876_v52  ;;  %v3893_v39 = vmul.f32 %v12396_v34, %v12395_v12  ;;  %v3894_v50 = vmul.f32 %v12397_v58, %v12395_v12  ;;  %v3895_v60 = vmul.f32 %v12398_v19, %v12395_v12  ;;  %v10231_v19 = vld [vmem:[%s5752_s13 + $0x33] ss:$0 sm:$0xff]  ;;  %12443 = vst [vmem:[#allocation19_spill] sm:$0xff] %v10320_v13 }
 0x34e   : > { %v3896_v14 = vmul.f32 %v9790_v44, %v12395_v12  ;;  %v3889_v31 = vadd.f32 %v3885_v20, %v3881_v23  ;;  %v3890_v17 = vadd.f32 %v3886_v5, %v3882_v47  ;;  %v3891_v37 = vadd.f32 %v3887_v7, %v3883_v48  ;;  %12439 = vst [vmem:[#allocation28_spill] sm:$0xff] %v10231_v19 }
 0x34f   : > { %v3892_v25 = vadd.f32 %v3888_v16, %v3884_v11  ;;  %v3901_v2 = vmul.f32 %v9794_v40, %v10142_v29  ;;  %v3902_v51 = vmul.f32 %v9798_v27, %v10142_v29  ;;  %v3903_v34 = vmul.f32 %v9802_v38, %v10142_v29 }
 0x350   : > { %v3904_v58 = vmul.f32 %v9806_v53, %v10142_v29  ;;  %v3897_v35 = vadd.f32 %v3893_v39, %v3889_v31  ;;  %v3898_v52 = vadd.f32 %v3894_v50, %v3890_v17  ;;  %v3899_v59 = vadd.f32 %v3895_v60, %v3891_v37  ;;  %v10258_v37 = vld [vmem:[%s5752_s13 + $0x4f] ss:$0 sm:$0xff] }
 0x351   : > { %v3900_v28 = vadd.f32 %v3896_v14, %v3892_v25  ;;  %v3909_v22 = vmul.f32 %v9813_v41, %v10231_v19  ;;  %v3910_v30 = vmul.f32 %v9817_v56, %v10231_v19  ;;  %v3911_v6 = vmul.f32 %v9821_v4, %v10231_v19  ;;  %12440 = vst [vmem:[#allocation33_spill] sm:$0xff] %v10258_v37 }
 0x352   : > { %v3912_v8 = vmul.f32 %v9825_v21, %v10231_v19  ;;  %v3905_v61 = vadd.f32 %v3901_v2, %v3897_v35  ;;  %v3906_v45 = vadd.f32 %v3902_v51, %v3898_v52  ;;  %v3907_v20 = vadd.f32 %v3903_v34, %v3899_v59 }
 0x353   : > { %v3908_v5 = vadd.f32 %v3904_v58, %v3900_v28  ;;  %v3917_v7 = vmul.f32 %v12428_v42, %v12431_v26  ;;  %v3918_v16 = vmul.f32 %v12429_v49, %v12431_v26  ;;  %v3919_v23 = vmul.f32 %v12430_v32, %v12431_v26 }
 0x354   : > { %v3920_v47 = vmul.f32 %v12402_v1, %v12431_v26  ;;  %v3913_v48 = vadd.f32 %v3909_v22, %v3905_v61  ;;  %v3914_v11 = vadd.f32 %v3910_v30, %v3906_v45  ;;  %v3915_v39 = vadd.f32 %v3911_v6, %v3907_v20  ;;  %v10272_v45 = vld [vmem:[#allocation7 + $0x8] sm:$0xff] }
 0x355   : > { %v3916_v50 = vadd.f32 %v3912_v8, %v3908_v5  ;;  %v3925_v60 = vmul.f32 %v12403_v36, %v10169_v18  ;;  %v3926_v14 = vmul.f32 %v12404_v33, %v10169_v18  ;;  %v3927_v31 = vmul.f32 %v12405_v0, %v10169_v18  ;;  %v10268_v8 = vld [vmem:[#allocation7] sm:$0xff]  ;;  %v10276_v5 = vld [vmem:[#allocation7 + $0x10] sm:$0xff] }
 0x356   : > { %v3928_v17 = vmul.f32 %v12432_v62, %v10169_v18  ;;  %v3921_v25 = vadd.f32 %v3917_v7, %v3913_v48  ;;  %v3922_v2 = vadd.f32 %v3918_v16, %v3914_v11  ;;  %v3923_v51 = vadd.f32 %v3919_v23, %v3915_v39  ;;  %v10280_v16 = vld [vmem:[#allocation7 + $0x18] sm:$0xff] }
 0x357   : > { %v3924_v34 = vadd.f32 %v3920_v47, %v3916_v50  ;;  %v3933_v58 = vmul.f32 %v12388_v54, %v10258_v37  ;;  %v3934_v35 = vmul.f32 %v12389_v9, %v10258_v37  ;;  %v3935_v52 = vmul.f32 %v12390_v43, %v10258_v37  ;;  %v10292_v50 = vld [vmem:[#allocation7 + $0x20] sm:$0xff] }
 0x358   : > { %v3936_v59 = vmul.f32 %v9876_v10, %v10258_v37  ;;  %v3929_v28 = vadd.f32 %v3925_v60, %v3921_v25  ;;  %v3930_v22 = vadd.f32 %v3926_v14, %v3922_v2  ;;  %v3931_v30 = vadd.f32 %v3927_v31, %v3923_v51  ;;  %v10296_v14 = vld [vmem:[#allocation7 + $0x28] sm:$0xff]  ;;  %v10304_v25 = vld [vmem:[#allocation7 + $0x38] sm:$0xff]  ;;  %v10324_v51 = vld [vmem:[#allocation7 + $0x50] sm:$0xff] }
 0x359   : > { %v3932_v6 = vadd.f32 %v3928_v17, %v3924_v34  ;;  %v3945_v61 = vmul.f32 %v10268_v8, %v9712_v57  ;;  %v3946_v20 = vmul.f32 %v10272_v45, %v9712_v57  ;;  %v3947_v7 = vmul.f32 %v10276_v5, %v9712_v57  ;;  %v10300_v17 = vld [vmem:[#allocation7 + $0x30] sm:$0xff]  ;;  %12444 = vst [vmem:[#allocation43_spill] sm:$0xff] %v10324_v51 }
 0x35a   : > { %v3948_v23 = vmul.f32 %v10280_v16, %v9712_v57  ;;  %v10284_v47 = vadd.f32 %v3933_v58, %v3929_v28  ;;  %v10286_v48 = vadd.f32 %v3934_v35, %v3930_v22  ;;  %v10288_v11 = vadd.f32 %v3935_v52, %v3931_v30  ;;  %v10316_v30 = vld [vmem:[#allocation7 + $0x40] sm:$0xff]  ;;  %v10328_v35 = vld [vmem:[#allocation7 + $0x58] sm:$0xff] }
 0x35b   : > { %v10290_v39 = vadd.f32 %v3936_v59, %v3932_v6  ;;  %v3949_v60 = vmul.f32 %v10292_v50, %v12395_v12  ;;  %v3950_v31 = vmul.f32 %v10296_v14, %v12395_v12  ;;  %v3951_v57 = vmul.f32 %v10300_v17, %v12395_v12  ;;  %12442 = vst [vmem:[#allocation38_spill] sm:$0xff] %v10316_v30 }
 0x35c   : > { %v3952_v2 = vmul.f32 %v10304_v25, %v12395_v12  ;;  %v3957_v6 = vmul.f32 %v10316_v30, %v10142_v29  ;;  %v3958_v34 = vmul.f32 %v10320_v13, %v10142_v29  ;;  %v3959_v58 = vmul.f32 %v10324_v51, %v10142_v29  ;;  %12445 = vst [vmem:[#allocation37_spill] sm:$0xff] %v10328_v35 }
 0x35d   : > { %12441 = vst [vmem:[#allocation56_spill] sm:$0xff] %v10290_v39  ;;  %v3953_v52 = vadd.f32 %v3949_v60, %v3945_v61  ;;  %v3954_v59 = vadd.f32 %v3950_v31, %v3946_v20  ;;  %v3955_v28 = vadd.f32 %v3951_v57, %v3947_v7  ;;  %v3960_v61 = vmul.f32 %v10328_v35, %v10142_v29  ;;  %v10332_v20 = vld [vmem:[#allocation7 + $0x60] sm:$0xff]  ;;  %v10340_v31 = vld [vmem:[#allocation7 + $0x70] sm:$0xff] }
 0x35e   : > { %v3956_v22 = vadd.f32 %v3952_v2, %v3948_v23  ;;  %12446 = vst [vmem:[#allocation20_spill] sm:$0xff] %v10332_v20  ;;  %v3965_v7 = vmul.f32 %v10332_v20, %v9739_v24  ;;  %v10336_v23 = vld [vmem:[#allocation7 + $0x68] sm:$0xff]  ;;  %12448 = vst [vmem:[#allocation25_spill] sm:$0xff] %v10340_v31  ;;  %v3967_v57 = vmul.f32 %v10340_v31, %v9739_v24 }
 0x35f   : > { %12447 = vst [vmem:[#allocation32_spill] sm:$0xff] %v10336_v23  ;;  %v3966_v60 = vmul.f32 %v10336_v23, %v9739_v24  ;;  %v3968_v2 = vmul.f32 %v9790_v44, %v9739_v24  ;;  %v3961_v46 = vadd.f32 %v3957_v6, %v3953_v52  ;;  %v3962_v37 = vadd.f32 %v3958_v34, %v3954_v59 }
 0x360   : > { %v3963_v35 = vadd.f32 %v3959_v58, %v3955_v28  ;;  %v3964_v51 = vadd.f32 %v3960_v61, %v3956_v22  ;;  %v3973_v20 = vmul.f32 %v9794_v40, %v12431_v26  ;;  %v3974_v13 = vmul.f32 %v9798_v27, %v12431_v26 }
 0x361   : > { %v3975_v23 = vmul.f32 %v9802_v38, %v12431_v26  ;;  %v3976_v30 = vmul.f32 %v9806_v53, %v12431_v26  ;;  %v3969_v31 = vadd.f32 %v3965_v7, %v3961_v46  ;;  %v3970_v19 = vadd.f32 %v3966_v60, %v3962_v37  ;;  %v12449_v37 = vld [vmem:[#allocation45_spill] sm:$0xff] }
 0x362   : > { %v3971_v39 = vadd.f32 %v3967_v57, %v3963_v35  ;;  %v3972_v24 = vadd.f32 %v3968_v2, %v3964_v51  ;;  %v3981_v34 = vmul.f32 %v9813_v41, %v10169_v18  ;;  %v3982_v58 = vmul.f32 %v9817_v56, %v10169_v18 }
 0x363   : > { %v3983_v52 = vmul.f32 %v9821_v4, %v10169_v18  ;;  %v3984_v59 = vmul.f32 %v9825_v21, %v10169_v18  ;;  %v3977_v28 = vadd.f32 %v3973_v20, %v3969_v31  ;;  %v3978_v22 = vadd.f32 %v3974_v13, %v3970_v19  ;;  %v12450_v31 = vld [vmem:[#allocation44_spill] sm:$0xff] }
 0x364   : > { %v3979_v6 = vadd.f32 %v3975_v23, %v3971_v39  ;;  %v3980_v46 = vadd.f32 %v3976_v30, %v3972_v24  ;;  %v3989_v51 = vmul.f32 %v12428_v42, %v12449_v37  ;;  %v3990_v35 = vmul.f32 %v12429_v49, %v12449_v37  ;;  %v10379_v23 = vld [vmem:[%s5752_s13 + $0x6a] ss:$0 sm:$0xff] }
 0x365   : > { %v3991_v61 = vmul.f32 %v12430_v32, %v12449_v37  ;;  %v3992_v7 = vmul.f32 %v12402_v1, %v12449_v37  ;;  %v3985_v60 = vadd.f32 %v3981_v34, %v3977_v28  ;;  %v3986_v57 = vadd.f32 %v3982_v58, %v3978_v22  ;;  %12451 = vst [vmem:[#allocation22_spill] sm:$0xff] %v10379_v23 }
 0x366   : > { %v3987_v2 = vadd.f32 %v3983_v52, %v3979_v6  ;;  %v3988_v20 = vadd.f32 %v3984_v59, %v3980_v46  ;;  %v3997_v13 = vmul.f32 %v12403_v36, %v12450_v31  ;;  %v3998_v19 = vmul.f32 %v12404_v33, %v12450_v31 }
 0x367   : > { %v3999_v39 = vmul.f32 %v12405_v0, %v12450_v31  ;;  %v4000_v30 = vmul.f32 %v12432_v62, %v12450_v31  ;;  %v3993_v24 = vadd.f32 %v3989_v51, %v3985_v60  ;;  %v3994_v37 = vadd.f32 %v3990_v35, %v3986_v57 }
 0x368   : > { %v3995_v34 = vadd.f32 %v3991_v61, %v3987_v2  ;;  %v3996_v58 = vadd.f32 %v3992_v7, %v3988_v20  ;;  %v4005_v52 = vmul.f32 %v12388_v54, %v10379_v23  ;;  %v4006_v59 = vmul.f32 %v12389_v9, %v10379_v23 }
 0x369   : > { %v4007_v28 = vmul.f32 %v12390_v43, %v10379_v23  ;;  %v4008_v22 = vmul.f32 %v9876_v10, %v10379_v23  ;;  %v4001_v6 = vadd.f32 %v3997_v13, %v3993_v24  ;;  %v4002_v46 = vadd.f32 %v3998_v19, %v3994_v37 }
 0x36a   : > { %v4003_v62 = vadd.f32 %v3999_v39, %v3995_v34  ;;  %v4004_v0 = vadd.f32 %v4000_v30, %v3996_v58  ;;  %v4017_v51 = vmul.f32 %v10268_v8, %v12395_v12  ;;  %v4018_v35 = vmul.f32 %v10272_v45, %v12395_v12  ;;  %v12455_v58 = vld [vmem:[#allocation56_spill] sm:$0xff] }
 0x36b   : > { %v4019_v61 = vmul.f32 %v10276_v5, %v12395_v12  ;;  %v4020_v7 = vmul.f32 %v10280_v16, %v12395_v12  ;;  %v4009_v60 = vadd.f32 %v4005_v52, %v4001_v6  ;;  %v4010_v57 = vadd.f32 %v4006_v59, %v4002_v46  ;;  %v12457_v6 = vld [vmem:[#allocation28_spill] sm:$0xff]  ;;  %v12458_v46 = vld [vmem:[#allocation38_spill] sm:$0xff] }
 0x36c   : > { %v4011_v2 = vadd.f32 %v4007_v28, %v4003_v62  ;;  %v4012_v20 = vadd.f32 %v4008_v22, %v4004_v0  ;;  %v4021_v13 = vmul.f32 %v10292_v50, %v10142_v29  ;;  %v4022_v19 = vmul.f32 %v10296_v14, %v10142_v29 }
 0x36d   : > { %v4023_v39 = vmul.f32 %v10300_v17, %v10142_v29  ;;  %v4024_v30 = vmul.f32 %v10304_v25, %v10142_v29  ;;  %v12452_v24 = vmax.f32 %v10190_v15, %v10284_v47  ;;  %v12453_v0 = vmax.f32 %v10192_v55, %v10286_v48  ;;  %v12459_v55 = vld [vmem:[#allocation19_spill] sm:$0xff] }
 0x36e   : > { %v12454_v37 = vmax.f32 %v10194_v3, %v10288_v11  ;;  %v12456_v52 = vmax.f32 %v10196_v63, %v12455_v58  ;;  %v4025_v28 = vadd.f32 %v4021_v13, %v4017_v51  ;;  %v4026_v22 = vadd.f32 %v4022_v19, %v4018_v35  ;;  %v12461_v11 = vld [vmem:[#allocation37_spill] sm:$0xff]  ;;  %v12462_v63 = vld [vmem:[#allocation20_spill] sm:$0xff] }
 0x36f   : > { %v10408_v12 = vmax.f32 %v12452_v24, %v4009_v60  ;;  %v10413_v62 = vmax.f32 %v12453_v0, %v4010_v57  ;;  %v4027_v15 = vadd.f32 %v4023_v39, %v4019_v61  ;;  %v4028_v47 = vadd.f32 %v4024_v30, %v4020_v7  ;;  %v12460_v57 = vld [vmem:[#allocation43_spill] sm:$0xff]  ;;  %v12463_v51 = vld [vmem:[#allocation32_spill] sm:$0xff]  ;;  %v12464_v61 = vld [vmem:[#allocation25_spill] sm:$0xff] }
 0x370   : > { %v10418_v34 = vmax.f32 %v12454_v37, %v4011_v2  ;;  %v10423_v59 = vmax.f32 %v12456_v52, %v4012_v20  ;;  %v4029_v60 = vmul.f32 %v12458_v46, %v12457_v6  ;;  %v4030_v48 = vmul.f32 %v12459_v55, %v12457_v6 }
 0x371   : > { %v4031_v3 = vmul.f32 %v12460_v57, %v12457_v6  ;;  %v4032_v2 = vmul.f32 %v12461_v11, %v12457_v6  ;;  %v4037_v20 = vmul.f32 %v12462_v63, %v12431_v26  ;;  %v4038_v35 = vmul.f32 %v12463_v51, %v12431_v26 }
 0x372   : > { %v4039_v7 = vmul.f32 %v12464_v61, %v12431_v26  ;;  %v4040_v13 = vmul.f32 %v9790_v44, %v12431_v26  ;;  %v4033_v19 = vadd.f32 %v4029_v60, %v4025_v28  ;;  %v4034_v39 = vadd.f32 %v4030_v48, %v4026_v22  ;;  %v12465_v26 = vld [vmem:[#allocation33_spill] sm:$0xff] }
 0x373   : > { %v4035_v30 = vadd.f32 %v4031_v3, %v4027_v15  ;;  %v4036_v24 = vadd.f32 %v4032_v2, %v4028_v47  ;;  %v4045_v0 = vmul.f32 %v9794_v40, %v10169_v18  ;;  %v4046_v37 = vmul.f32 %v9798_v27, %v10169_v18 }
 0x374   : > { %v4047_v58 = vmul.f32 %v9802_v38, %v10169_v18  ;;  %v4048_v52 = vmul.f32 %v9806_v53, %v10169_v18  ;;  %v4041_v6 = vadd.f32 %v4037_v20, %v4033_v19  ;;  %v4042_v61 = vadd.f32 %v4038_v35, %v4034_v39 }
 0x375   : > { %v4043_v51 = vadd.f32 %v4039_v7, %v4035_v30  ;;  %v4044_v44 = vadd.f32 %v4040_v13, %v4036_v24  ;;  %v4053_v28 = vmul.f32 %v9813_v41, %v12465_v26  ;;  %v4054_v22 = vmul.f32 %v9817_v56, %v12465_v26 }
 0x376   : > { %v4055_v40 = vmul.f32 %v9821_v4, %v12465_v26  ;;  %v4056_v27 = vmul.f32 %v9825_v21, %v12465_v26  ;;  %v4049_v38 = vadd.f32 %v4045_v0, %v4041_v6  ;;  %v4050_v15 = vadd.f32 %v4046_v37, %v4042_v61  ;;  %v12469_v37 = vld [vmem:[#allocation27_spill] sm:$0xff] }
 0x377   : > { %v4051_v53 = vadd.f32 %v4047_v58, %v4043_v51  ;;  %v4052_v47 = vadd.f32 %v4048_v52, %v4044_v44  ;;  %v4061_v60 = vmul.f32 %v12428_v42, %v12450_v31  ;;  %v4062_v41 = vmul.f32 %v12429_v49, %v12450_v31  ;;  %v12466_v42 = vld [vmem:[#allocation36_spill] sm:$0xff]  ;;  %v12467_v49 = vld [vmem:[#allocation30_spill] sm:$0xff] }
 0x378   : > { %v4063_v56 = vmul.f32 %v12430_v32, %v12450_v31  ;;  %v4064_v4 = vmul.f32 %v12402_v1, %v12450_v31  ;;  %v4057_v48 = vadd.f32 %v4053_v28, %v4049_v38  ;;  %v4058_v3 = vadd.f32 %v4054_v22, %v4050_v15  ;;  %v10474_v32 = vld [vmem:[%s5752_s13 + $0x6b] ss:$0 sm:$0xff]  ;;  %v12470_v22 = vld [vmem:[#allocation23_spill] sm:$0xff] }
 0x379   : > { %v4059_v21 = vadd.f32 %v4055_v40, %v4051_v53  ;;  %v4060_v6 = vadd.f32 %v4056_v27, %v4052_v47  ;;  %v4069_v2 = vmul.f32 %v12403_v36, %v10379_v23  ;;  %v4070_v20 = vmul.f32 %v12404_v33, %v10379_v23  ;;  %12468 = vst [vmem:[#allocation49_spill] sm:$0xff] %v10474_v32 }
 0x37a   : > { %v4071_v51 = vmul.f32 %v12466_v42, %v10379_v23  ;;  %v4072_v35 = vmul.f32 %v12467_v49, %v10379_v23  ;;  %v4065_v61 = vadd.f32 %v4061_v60, %v4057_v48  ;;  %v4066_v1 = vadd.f32 %v4062_v41, %v4058_v3  ;;  %v5129_v48 = vld [vmem:[%s6629_s15 + $0x150] sm:$0xff]  ;;  %v5130_v3 = vld [vmem:[%s6629_s15 + $0x158] sm:$0xff] }
 0x37b   : > { %v4067_v31 = vadd.f32 %v4063_v56, %v4059_v21  ;;  %v4068_v7 = vadd.f32 %v4064_v4, %v4060_v6  ;;  %v4077_v13 = vmul.f32 %v12388_v54, %v10474_v32  ;;  %v4078_v36 = vmul.f32 %v12389_v9, %v10474_v32  ;;  %v5127_v56 = vld [vmem:[%s6629_s15 + $0x140] sm:$0xff]  ;;  %v5128_v4 = vld [vmem:[%s6629_s15 + $0x148] sm:$0xff]  ;;  %v10509_v42 = vld [vmem:[%s5752_s13 + $0x18] ss:$0 sm:$0xff] }
 0x37c   : > { %v4079_v33 = vmul.f32 %v12390_v43, %v10474_v32  ;;  %v4080_v19 = vmul.f32 %v9876_v10, %v10474_v32  ;;  %v4073_v39 = vadd.f32 %v4069_v2, %v4065_v61  ;;  %v4074_v30 = vadd.f32 %v4070_v20, %v4066_v1  ;;  %12471 = vst [vmem:[#allocation29_spill] sm:$0xff] %v10509_v42  ;;  %v12473_v49 = vld [vmem:[#allocation42_spill] sm:$0xff] }
 0x37d   : > { %v4075_v24 = vadd.f32 %v4071_v51, %v4067_v31  ;;  %v4076_v0 = vadd.f32 %v4072_v35, %v4068_v7  ;;  %v4151_v58 = vmul.f32 %v10268_v8, %v12469_v37  ;;  %v4152_v54 = vmul.f32 %v10272_v45, %v12469_v37  ;;  %v12472_v51 = vld [vmem:[#allocation24_spill] sm:$0xff]  ;;  %v12481_v31 = vld [vmem:[#allocation34_spill] sm:$0xff]  ;;  %v12482_v7 = vld [vmem:[#allocation31_spill] sm:$0xff] }
 0x37e   : > { %v4153_v9 = vmul.f32 %v10276_v5, %v12469_v37  ;;  %v4154_v43 = vmul.f32 %v10280_v16, %v12469_v37  ;;  %v4081_v10 = vadd.f32 %v4077_v13, %v4073_v39  ;;  %v4082_v52 = vadd.f32 %v4078_v36, %v4074_v30 }
 0x37f   : > { %v4083_v44 = vadd.f32 %v4079_v33, %v4075_v24  ;;  %v4084_v28 = vadd.f32 %v4080_v19, %v4076_v0  ;;  %v4155_v40 = vmul.f32 %v10292_v50, %v12470_v22  ;;  %v4156_v27 = vmul.f32 %v10296_v14, %v12470_v22 }
 0x380   : > { %v4157_v38 = vmul.f32 %v10300_v17, %v12470_v22  ;;  %v4158_v15 = vmul.f32 %v10304_v25, %v12470_v22  ;;  %v4085_v53 = vmax.f32 %v10408_v12, %v4081_v10  ;;  %v4086_v47 = vmax.f32 %v10413_v62, %v4082_v52  ;;  %v12475_v12 = vld [vmem:[#allocation40_spill] sm:$0xff]  ;;  %v12476_v62 = vld [vmem:[#allocation47_spill] sm:$0xff] }
 0x381   : > { %v4087_v60 = vmax.f32 %v10418_v34, %v4083_v44  ;;  %v4088_v41 = vmax.f32 %v10423_v59, %v4084_v28  ;;  %v4159_v21 = vadd.f32 %v4155_v40, %v4151_v58  ;;  %v4160_v6 = vadd.f32 %v4156_v27, %v4152_v54  ;;  %v12478_v34 = vld [vmem:[#allocation21_spill] sm:$0xff]  ;;  %v12479_v59 = vld [vmem:[#allocation48_spill] sm:$0xff] }
 0x382   : > { %v4161_v2 = vadd.f32 %v4157_v38, %v4153_v9  ;;  %v4162_v20 = vadd.f32 %v4158_v15, %v4154_v43  ;;  %v10513_v35 = vadd.f32 %v12473_v49, %v12472_v51  ;;  %v10517_v61 = vadd.f32 %v12476_v62, %v12475_v12  ;;  %v12488_v52 = vld [vmem:[#allocation32_spill] sm:$0xff]  ;;  %v12489_v28 = vld [vmem:[#allocation25_spill] sm:$0xff]  ;;  %v10553_v15 = vld [vmem:[#allocation7 + $0x80] sm:$0xff] }
 0x383   : > { %v10521_v1 = vadd.f32 %v12479_v59, %v12478_v34  ;;  %v10525_v13 = vadd.f32 %v12482_v7, %v12481_v31  ;;  %v4163_v36 = vmul.f32 %v12458_v46, %v10509_v42  ;;  %v4164_v33 = vmul.f32 %v12459_v55, %v10509_v42  ;;  %v10549_v27 = vld [vmem:[#allocation7 + $0x78] sm:$0xff]  ;;  %v10572_v49 = vld [vmem:[#allocation7 + $0xa0] sm:$0xff]  ;;  %v10576_v62 = vld [vmem:[#allocation7 + $0xa8] sm:$0xff] }
 0x384   : > { %12474 = vst [vmem:[#allocation26_spill] sm:$0xff] %v10513_v35  ;;  %12477 = vst [vmem:[#allocation52_spill] sm:$0xff] %v10517_v61  ;;  %v4165_v19 = vmul.f32 %v12460_v57, %v10509_v42  ;;  %v4166_v39 = vmul.f32 %v12461_v11, %v10509_v42  ;;  %v10535_v30 = vmul.f32 %v5127_v56, %v4085_v53  ;;  %v12491_v53 = vld [vmem:[#allocation28_spill] sm:$0xff]  ;;  %v10584_v7 = vld [vmem:[#allocation7 + $0xb8] sm:$0xff] }
 0x385   : > { %12480 = vst [vmem:[#allocation35_spill] sm:$0xff] %v10521_v1  ;;  %12483 = vst [vmem:[#allocation53_spill] sm:$0xff] %v10525_v13  ;;  %v10537_v24 = vmul.f32 %v5128_v4, %v4086_v47  ;;  %v10539_v0 = vmul.f32 %v5129_v48, %v4087_v60  ;;  %v10541_v37 = vmul.f32 %v5130_v3, %v4088_v41  ;;  %v10557_v60 = vld [vmem:[#allocation7 + $0x88] sm:$0xff]  ;;  %v10561_v56 = vld [vmem:[#allocation7 + $0x90] sm:$0xff] }
 0x386   : > { %12484 = vst [vmem:[#allocation39_spill] sm:$0xff] %v10535_v30  ;;  %v4167_v58 = vadd.f32 %v4163_v36, %v4159_v21  ;;  %v4168_v54 = vadd.f32 %v4164_v33, %v4160_v6  ;;  %v4169_v9 = vadd.f32 %v4165_v19, %v4161_v2  ;;  %v4170_v43 = vadd.f32 %v4166_v39, %v4162_v20  ;;  %v10565_v48 = vld [vmem:[#allocation7 + $0x98] sm:$0xff]  ;;  %v10570_v21 = vld [vmem:[%s5752_s13 + $0x34] ss:$0 sm:$0xff]  ;;  %v10580_v59 = vld [vmem:[#allocation7 + $0xb0] sm:$0xff] }
 0x387   : > { %12485 = vst [vmem:[#allocation50_spill] sm:$0xff] %v10537_v24  ;;  %12486 = vst [vmem:[#allocation41_spill] sm:$0xff] %v10539_v0  ;;  %v4171_v10 = vmul.f32 %v12462_v63, %v10142_v29  ;;  %v4172_v44 = vmul.f32 %v12488_v52, %v10142_v29  ;;  %v4173_v40 = vmul.f32 %v12489_v28, %v10142_v29  ;;  %v10612_v13 = vld [vmem:[#allocation7 + $0xf0] sm:$0xff]  ;;  %v10616_v1 = vld [vmem:[#allocation7 + $0xf8] sm:$0xff] }
 0x388   : > { %12487 = vst [vmem:[#allocation54_spill] sm:$0xff] %v10541_v37  ;;  %12490 = vst [vmem:[#allocation46_spill] sm:$0xff] %v10549_v27  ;;  %v4174_v38 = vmul.f32 %v10549_v27, %v10142_v29  ;;  %v4179_v47 = vmul.f32 %v10553_v15, %v12491_v53  ;;  %v4180_v41 = vmul.f32 %v10557_v60, %v12491_v53  ;;  %v10627_v24 = vld [vmem:[#allocation7 + $0x108] sm:$0xff]  ;;  %v10631_v30 = vld [vmem:[#allocation7 + $0x110] sm:$0xff] }
 0x389   : > { %v4181_v4 = vmul.f32 %v10561_v56, %v12491_v53  ;;  %12492 = vst [vmem:[#allocation45_spill] sm:$0xff] %v10565_v48  ;;  %v4182_v3 = vmul.f32 %v10565_v48, %v12491_v53  ;;  %v4175_v6 = vadd.f32 %v4171_v10, %v4167_v58  ;;  %v4176_v2 = vadd.f32 %v4172_v44, %v4168_v54  ;;  %v10588_v54 = vld [vmem:[#allocation7 + $0xc0] sm:$0xff]  ;;  %v10596_v44 = vld [vmem:[#allocation7 + $0xd0] sm:$0xff] }
 0x38a   : > { %v4177_v20 = vadd.f32 %v4173_v40, %v4169_v9  ;;  %v4178_v51 = vadd.f32 %v4174_v38, %v4170_v43  ;;  %v4187_v12 = vmul.f32 %v10572_v49, %v10570_v21  ;;  %v4188_v34 = vmul.f32 %v10576_v62, %v10570_v21  ;;  %v10592_v43 = vld [vmem:[#allocation7 + $0xc8] sm:$0xff]  ;;  %12493 = vst [vmem:[#allocation44_spill] sm:$0xff] %v10596_v44  ;;  %v10600_v38 = vld [vmem:[#allocation7 + $0xd8] sm:$0xff] }
 0x38b   : > { %v4189_v31 = vmul.f32 %v10580_v59, %v10570_v21  ;;  %v4190_v36 = vmul.f32 %v10584_v7, %v10570_v21  ;;  %v4183_v33 = vadd.f32 %v4179_v47, %v4175_v6  ;;  %v4184_v19 = vadd.f32 %v4180_v41, %v4176_v2  ;;  %v10604_v2 = vld [vmem:[#allocation7 + $0xe0] sm:$0xff]  ;;  %12494 = vst [vmem:[#allocation56_spill] sm:$0xff] %v10612_v13 }
 0x38c   : > { %v4185_v39 = vadd.f32 %v4181_v4, %v4177_v20  ;;  %v4186_v58 = vadd.f32 %v4182_v3, %v4178_v51  ;;  %v4195_v9 = vmul.f32 %v10588_v54, %v10169_v18  ;;  %v4196_v10 = vmul.f32 %v10592_v43, %v10169_v18  ;;  %v10608_v51 = vld [vmem:[#allocation7 + $0xe8] sm:$0xff]  ;;  %12495 = vst [vmem:[#allocation33_spill] sm:$0xff] %v10616_v1 }
 0x38d   : > { %v4197_v40 = vmul.f32 %v10596_v44, %v10169_v18  ;;  %v4198_v47 = vmul.f32 %v10600_v38, %v10169_v18  ;;  %v4191_v41 = vadd.f32 %v4187_v12, %v4183_v33  ;;  %v4192_v4 = vadd.f32 %v4188_v34, %v4184_v19  ;;  %v10621_v34 = vld [vmem:[%s5752_s13 + $0x50] ss:$0 sm:$0xff] }
 0x38e   : > { %v4193_v3 = vadd.f32 %v4189_v31, %v4185_v39  ;;  %v4194_v6 = vadd.f32 %v4190_v36, %v4186_v58  ;;  %v4203_v20 = vmul.f32 %v10604_v2, %v12465_v26  ;;  %v4204_v37 = vmul.f32 %v10608_v51, %v12465_v26  ;;  %12496 = vst [vmem:[#allocation36_spill] sm:$0xff] %v10621_v34  ;;  %v10623_v39 = vld [vmem:[#allocation7 + $0x100] sm:$0xff] }
 0x38f   : > { %v4205_v0 = vmul.f32 %v10612_v13, %v12465_v26  ;;  %v4206_v12 = vmul.f32 %v10616_v1, %v12465_v26  ;;  %v4199_v31 = vadd.f32 %v4195_v9, %v4191_v41  ;;  %v4200_v36 = vadd.f32 %v4196_v10, %v4192_v4  ;;  %v10635_v9 = vld [vmem:[#allocation7 + $0x118] sm:$0xff] }
 0x390   : > { %v4201_v33 = vadd.f32 %v4197_v40, %v4193_v3  ;;  %v4202_v19 = vadd.f32 %v4198_v47, %v4194_v6  ;;  %v4211_v58 = vmul.f32 %v10623_v39, %v10621_v34  ;;  %v4212_v61 = vmul.f32 %v10627_v24, %v10621_v34  ;;  %v10640_v3 = vld [vmem:[%s5752_s13 + $0x19] ss:$0 sm:$0xff] }
 0x391   : > { %v4213_v35 = vmul.f32 %v10631_v30, %v10621_v34  ;;  %v4214_v10 = vmul.f32 %v10635_v9, %v10621_v34  ;;  %v4207_v40 = vadd.f32 %v4203_v20, %v4199_v31  ;;  %v4208_v47 = vadd.f32 %v4204_v37, %v4200_v36  ;;  %12497 = vst [vmem:[#allocation30_spill] sm:$0xff] %v10640_v3 }
 0x392   : > { %v4209_v41 = vadd.f32 %v4205_v0, %v4201_v33  ;;  %v4210_v4 = vadd.f32 %v4206_v12, %v4202_v19  ;;  %v4219_v6 = vmul.f32 %v10268_v8, %v12470_v22  ;;  %v4220_v32 = vmul.f32 %v10272_v45, %v12470_v22 }
 0x393   : > { %v4221_v23 = vmul.f32 %v10276_v5, %v12470_v22  ;;  %v4222_v18 = vmul.f32 %v10280_v16, %v12470_v22  ;;  %v10650_v29 = vadd.f32 %v4211_v58, %v4207_v40  ;;  %v10652_v20 = vadd.f32 %v4212_v61, %v4208_v47 }
 0x394   : > { %v10654_v0 = vadd.f32 %v4213_v35, %v4209_v41  ;;  %v10656_v37 = vadd.f32 %v4214_v10, %v4210_v4  ;;  %v4223_v12 = vmul.f32 %v10292_v50, %v10509_v42  ;;  %v4224_v31 = vmul.f32 %v10296_v14, %v10509_v42 }
 0x395   : > { %v4225_v36 = vmul.f32 %v10300_v17, %v10509_v42  ;;  %v4226_v22 = vmul.f32 %v10304_v25, %v10509_v42  ;;  %v4231_v61 = vmul.f32 %v12458_v46, %v10640_v3  ;;  %v4232_v35 = vmul.f32 %v12459_v55, %v10640_v3 }
 0x396   : > { %v4233_v33 = vmul.f32 %v12460_v57, %v10640_v3  ;;  %v4234_v19 = vmul.f32 %v12461_v11, %v10640_v3  ;;  %v4227_v58 = vadd.f32 %v4223_v12, %v4219_v6  ;;  %v4228_v10 = vadd.f32 %v4224_v31, %v4220_v32  ;;  %v10691_v31 = vld [vmem:[%s5752_s13 + $0x35] ss:$0 sm:$0xff] }
 0x397   : > { %v4229_v40 = vadd.f32 %v4225_v36, %v4221_v23  ;;  %v4230_v47 = vadd.f32 %v4226_v22, %v4222_v18  ;;  %v4239_v41 = vmul.f32 %v12462_v63, %v12491_v53  ;;  %v4240_v4 = vmul.f32 %v12488_v52, %v12491_v53  ;;  %12498 = vst [vmem:[#allocation27_spill] sm:$0xff] %v10691_v31 }
 0x398   : > { %v4241_v42 = vmul.f32 %v12489_v28, %v12491_v53  ;;  %v4242_v57 = vmul.f32 %v10549_v27, %v12491_v53  ;;  %v4235_v55 = vadd.f32 %v4231_v61, %v4227_v58  ;;  %v4236_v46 = vadd.f32 %v4232_v35, %v4228_v10 }
 0x399   : > { %v4237_v3 = vadd.f32 %v4233_v33, %v4229_v40  ;;  %v4238_v6 = vadd.f32 %v4234_v19, %v4230_v47  ;;  %v4247_v23 = vmul.f32 %v10553_v15, %v10570_v21  ;;  %v4248_v18 = vmul.f32 %v10557_v60, %v10570_v21 }
 0x39a   : > { %v4249_v32 = vmul.f32 %v10561_v56, %v10570_v21  ;;  %v4250_v12 = vmul.f32 %v10565_v48, %v10570_v21  ;;  %v4243_v36 = vadd.f32 %v4239_v41, %v4235_v55  ;;  %v4244_v22 = vadd.f32 %v4240_v4, %v4236_v46 }
 0x39b   : > { %v4245_v61 = vadd.f32 %v4241_v42, %v4237_v3  ;;  %v4246_v35 = vadd.f32 %v4242_v57, %v4238_v6  ;;  %v4255_v33 = vmul.f32 %v10572_v49, %v10691_v31  ;;  %v4256_v19 = vmul.f32 %v10576_v62, %v10691_v31 }
 0x39c   : > { %v4257_v58 = vmul.f32 %v10580_v59, %v10691_v31  ;;  %v4258_v10 = vmul.f32 %v10584_v7, %v10691_v31  ;;  %v4251_v40 = vadd.f32 %v4247_v23, %v4243_v36  ;;  %v4252_v47 = vadd.f32 %v4248_v18, %v4244_v22  ;;  %v10718_v22 = vld [vmem:[%s5752_s13 + $0x51] ss:$0 sm:$0xff] }
 0x39d   : > { %v4253_v48 = vadd.f32 %v4249_v32, %v4245_v61  ;;  %v4254_v55 = vadd.f32 %v4250_v12, %v4246_v35  ;;  %v4263_v46 = vmul.f32 %v10588_v54, %v12465_v26  ;;  %v4264_v57 = vmul.f32 %v10592_v43, %v12465_v26  ;;  %12499 = vst [vmem:[#allocation23_spill] sm:$0xff] %v10718_v22 }
 0x39e   : > { %v4265_v42 = vmul.f32 %v10596_v44, %v12465_v26  ;;  %v4266_v3 = vmul.f32 %v10600_v38, %v12465_v26  ;;  %v4259_v41 = vadd.f32 %v4255_v33, %v4251_v40  ;;  %v4260_v4 = vadd.f32 %v4256_v19, %v4252_v47 }
 0x39f   : > { %v4261_v6 = vadd.f32 %v4257_v58, %v4253_v48  ;;  %v4262_v23 = vadd.f32 %v4258_v10, %v4254_v55  ;;  %v4271_v18 = vmul.f32 %v10604_v2, %v10621_v34  ;;  %v4272_v32 = vmul.f32 %v10608_v51, %v10621_v34 }
 0x3a0   : > { %v4273_v12 = vmul.f32 %v10612_v13, %v10621_v34  ;;  %v4274_v36 = vmul.f32 %v10616_v1, %v10621_v34  ;;  %v4267_v61 = vadd.f32 %v4263_v46, %v4259_v41  ;;  %v4268_v35 = vadd.f32 %v4264_v57, %v4260_v4  ;;  %v12500_v46 = vld [vmem:[#allocation51_spill] sm:$0xff] }
 0x3a1   : > { %v4269_v33 = vadd.f32 %v4265_v42, %v4261_v6  ;;  %v4270_v19 = vadd.f32 %v4266_v3, %v4262_v23  ;;  %v4279_v48 = vmul.f32 %v10623_v39, %v10718_v22  ;;  %v4280_v58 = vmul.f32 %v10627_v24, %v10718_v22 }
 0x3a2   : > { %v4281_v10 = vmul.f32 %v10631_v30, %v10718_v22  ;;  %v4282_v40 = vmul.f32 %v10635_v9, %v10718_v22  ;;  %v4275_v47 = vadd.f32 %v4271_v18, %v4267_v61  ;;  %v4276_v55 = vadd.f32 %v4272_v32, %v4268_v35  ;;  %v12504_v35 = vld [vmem:[#allocation43_spill] sm:$0xff] }
 0x3a3   : > { %v4277_v31 = vadd.f32 %v4273_v12, %v4269_v33  ;;  %v4278_v1 = vadd.f32 %v4274_v36, %v4270_v19  ;;  %v4291_v57 = vmul.f32 %v10268_v8, %v12500_v46  ;;  %v4292_v42 = vmul.f32 %v10272_v45, %v12500_v46 }
 0x3a4   : > { %v4293_v3 = vmul.f32 %v10276_v5, %v12500_v46  ;;  %v4294_v41 = vmul.f32 %v10280_v16, %v12500_v46  ;;  %v10736_v4 = vadd.f32 %v4279_v48, %v4275_v47  ;;  %v10738_v6 = vadd.f32 %v4280_v58, %v4276_v55  ;;  %v12503_v55 = vld [vmem:[#allocation19_spill] sm:$0xff] }
 0x3a5   : > { %v10740_v23 = vadd.f32 %v4281_v10, %v4277_v31  ;;  %v10742_v18 = vadd.f32 %v4282_v40, %v4278_v1  ;;  %v4295_v32 = vmul.f32 %v10292_v50, %v12491_v53  ;;  %v4296_v12 = vmul.f32 %v10296_v14, %v12491_v53  ;;  %v12502_v40 = vld [vmem:[#allocation38_spill] sm:$0xff]  ;;  %v12505_v1 = vld [vmem:[#allocation55_spill] sm:$0xff] }
 0x3a6   : > { %v4297_v36 = vmul.f32 %v10300_v17, %v12491_v53  ;;  %v4298_v61 = vmul.f32 %v10304_v25, %v12491_v53  ;;  %v4303_v47 = vmul.f32 %v12502_v40, %v10570_v21  ;;  %v4304_v46 = vmul.f32 %v12503_v55, %v10570_v21 }
 0x3a7   : > { %12501 = vst [vmem:[#allocation24_spill] sm:$0xff] %v10740_v23  ;;  %v4299_v19 = vadd.f32 %v4295_v32, %v4291_v57  ;;  %v4300_v48 = vadd.f32 %v4296_v12, %v4292_v42  ;;  %v4305_v22 = vmul.f32 %v12504_v35, %v10570_v21  ;;  %v4306_v31 = vmul.f32 %v12461_v11, %v10570_v21 }
 0x3a8   : > { %v4301_v58 = vadd.f32 %v4297_v36, %v4293_v3  ;;  %v4302_v10 = vadd.f32 %v4298_v61, %v4294_v41  ;;  %v4311_v23 = vmul.f32 %v12462_v63, %v12505_v1  ;;  %v4312_v57 = vmul.f32 %v12488_v52, %v12505_v1  ;;  %v12506_v52 = vld [vmem:[#allocation45_spill] sm:$0xff] }
 0x3a9   : > { %v4313_v42 = vmul.f32 %v12489_v28, %v12505_v1  ;;  %v4314_v3 = vmul.f32 %v10549_v27, %v12505_v1  ;;  %v4307_v41 = vadd.f32 %v4303_v47, %v4299_v19  ;;  %v4308_v32 = vadd.f32 %v4304_v46, %v4300_v48  ;;  %v12507_v46 = vld [vmem:[#allocation22_spill] sm:$0xff] }
 0x3aa   : > { %v4309_v12 = vadd.f32 %v4305_v22, %v4301_v58  ;;  %v4310_v36 = vadd.f32 %v4306_v31, %v4302_v10  ;;  %v4319_v61 = vmul.f32 %v10553_v15, %v12465_v26  ;;  %v4320_v33 = vmul.f32 %v10557_v60, %v12465_v26 }
 0x3ab   : > { %v4321_v63 = vmul.f32 %v10561_v56, %v12465_v26  ;;  %v4322_v11 = vmul.f32 %v12506_v52, %v12465_v26  ;;  %v4315_v28 = vadd.f32 %v4311_v23, %v4307_v41  ;;  %v4316_v35 = vadd.f32 %v4312_v57, %v4308_v32 }
 0x3ac   : > { %v4317_v55 = vadd.f32 %v4313_v42, %v4309_v12  ;;  %v4318_v1 = vadd.f32 %v4314_v3, %v4310_v36  ;;  %v4327_v22 = vmul.f32 %v10572_v49, %v10621_v34  ;;  %v4328_v31 = vmul.f32 %v10576_v62, %v10621_v34 }
 0x3ad   : > { %v4329_v19 = vmul.f32 %v10580_v59, %v10621_v34  ;;  %v4330_v48 = vmul.f32 %v10584_v7, %v10621_v34  ;;  %v4323_v58 = vadd.f32 %v4319_v61, %v4315_v28  ;;  %v4324_v10 = vadd.f32 %v4320_v33, %v4316_v35  ;;  %v12508_v61 = vld [vmem:[#allocation49_spill] sm:$0xff] }
 0x3ae   : > { %v4325_v47 = vadd.f32 %v4321_v63, %v4317_v55  ;;  %v4326_v23 = vadd.f32 %v4322_v11, %v4318_v1  ;;  %v4335_v57 = vmul.f32 %v10588_v54, %v12507_v46  ;;  %v4336_v42 = vmul.f32 %v10592_v43, %v12507_v46  ;;  %v12509_v33 = vld [vmem:[#allocation33_spill] sm:$0xff]  ;;  %v10809_v1 = vld [vmem:[%s5752_s13 + $0x6c] ss:$0 sm:$0xff] }
 0x3af   : > { %v4337_v3 = vmul.f32 %v10596_v44, %v12507_v46  ;;  %v4338_v41 = vmul.f32 %v10600_v38, %v12507_v46  ;;  %v4331_v32 = vadd.f32 %v4327_v22, %v4323_v58  ;;  %v4332_v12 = vadd.f32 %v4328_v31, %v4324_v10  ;;  %12510 = vst [vmem:[#allocation42_spill] sm:$0xff] %v10809_v1 }
 0x3b0   : > { %v4333_v36 = vadd.f32 %v4329_v19, %v4325_v47  ;;  %v4334_v28 = vadd.f32 %v4330_v48, %v4326_v23  ;;  %v4343_v63 = vmul.f32 %v10604_v2, %v12508_v61  ;;  %v4344_v11 = vmul.f32 %v10608_v51, %v12508_v61 }
 0x3b1   : > { %v4345_v35 = vmul.f32 %v10612_v13, %v12508_v61  ;;  %v4346_v55 = vmul.f32 %v12509_v33, %v12508_v61  ;;  %v4339_v44 = vadd.f32 %v4335_v57, %v4331_v32  ;;  %v4340_v46 = vadd.f32 %v4336_v42, %v4332_v12 }
 0x3b2   : > { %v4341_v22 = vadd.f32 %v4337_v3, %v4333_v36  ;;  %v4342_v31 = vadd.f32 %v4338_v41, %v4334_v28  ;;  %v4351_v19 = vmul.f32 %v10623_v39, %v10809_v1  ;;  %v4352_v48 = vmul.f32 %v10627_v24, %v10809_v1 }
 0x3b3   : > { %v4353_v58 = vmul.f32 %v10631_v30, %v10809_v1  ;;  %v4354_v10 = vmul.f32 %v10635_v9, %v10809_v1  ;;  %v4347_v47 = vadd.f32 %v4343_v63, %v4339_v44  ;;  %v4348_v23 = vadd.f32 %v4344_v11, %v4340_v46  ;;  %v12513_v46 = vld [vmem:[#allocation24_spill] sm:$0xff] }
 0x3b4   : > { %v4349_v33 = vadd.f32 %v4345_v35, %v4341_v22  ;;  %v4350_v13 = vadd.f32 %v4346_v55, %v4342_v31  ;;  %v4363_v57 = vmul.f32 %v10268_v8, %v12491_v53  ;;  %v4364_v42 = vmul.f32 %v10272_v45, %v12491_v53 }
 0x3b5   : > { %v4365_v3 = vmul.f32 %v10276_v5, %v12491_v53  ;;  %v4366_v41 = vmul.f32 %v10280_v16, %v12491_v53  ;;  %v4355_v32 = vadd.f32 %v4351_v19, %v4347_v47  ;;  %v4356_v12 = vadd.f32 %v4352_v48, %v4348_v23  ;;  %v12516_v47 = vld [vmem:[#allocation27_spill] sm:$0xff] }
 0x3b6   : > { %v4357_v36 = vadd.f32 %v4353_v58, %v4349_v33  ;;  %v4358_v28 = vadd.f32 %v4354_v10, %v4350_v13  ;;  %v4367_v44 = vmul.f32 %v10292_v50, %v10570_v21  ;;  %v4368_v63 = vmul.f32 %v10296_v14, %v10570_v21 }
 0x3b7   : > { %v4369_v11 = vmul.f32 %v10300_v17, %v10570_v21  ;;  %v4370_v35 = vmul.f32 %v10304_v25, %v10570_v21  ;;  %v12511_v55 = vmax.f32 %v10650_v29, %v10736_v4  ;;  %v12512_v13 = vmax.f32 %v10652_v20, %v10738_v6  ;;  %v12517_v20 = vld [vmem:[#allocation19_spill] sm:$0xff] }
 0x3b8   : > { %v12514_v22 = vmax.f32 %v10654_v0, %v12513_v46  ;;  %v12515_v19 = vmax.f32 %v10656_v37, %v10742_v18  ;;  %v4371_v58 = vadd.f32 %v4367_v44, %v4363_v57  ;;  %v4372_v10 = vadd.f32 %v4368_v63, %v4364_v42  ;;  %v12520_v37 = vld [vmem:[#allocation20_spill] sm:$0xff] }
 0x3b9   : > { %v10838_v53 = vmax.f32 %v12511_v55, %v4355_v32  ;;  %v10843_v33 = vmax.f32 %v12512_v13, %v4356_v12  ;;  %v4373_v29 = vadd.f32 %v4369_v11, %v4365_v3  ;;  %v4374_v4 = vadd.f32 %v4370_v35, %v4366_v41  ;;  %v12518_v32 = vld [vmem:[#allocation43_spill] sm:$0xff]  ;;  %v12519_v12 = vld [vmem:[#allocation37_spill] sm:$0xff]  ;;  %v12521_v57 = vld [vmem:[#allocation32_spill] sm:$0xff] }
 0x3ba   : > { %v10848_v31 = vmax.f32 %v12514_v22, %v4357_v36  ;;  %v10853_v48 = vmax.f32 %v12515_v19, %v4358_v28  ;;  %v4375_v23 = vmul.f32 %v12502_v40, %v12516_v47  ;;  %v4376_v6 = vmul.f32 %v12517_v20, %v12516_v47  ;;  %v12522_v3 = vld [vmem:[#allocation25_spill] sm:$0xff] }
 0x3bb   : > { %v4377_v0 = vmul.f32 %v12518_v32, %v12516_v47  ;;  %v4378_v36 = vmul.f32 %v12519_v12, %v12516_v47  ;;  %v4383_v18 = vmul.f32 %v12520_v37, %v12465_v26  ;;  %v4384_v42 = vmul.f32 %v12521_v57, %v12465_v26 }
 0x3bc   : > { %v4385_v41 = vmul.f32 %v12522_v3, %v12465_v26  ;;  %v4386_v28 = vmul.f32 %v10549_v27, %v12465_v26  ;;  %v4379_v44 = vadd.f32 %v4375_v23, %v4371_v58  ;;  %v4380_v63 = vadd.f32 %v4376_v6, %v4372_v10  ;;  %v12523_v58 = vld [vmem:[#allocation23_spill] sm:$0xff] }
 0x3bd   : > { %v4381_v11 = vadd.f32 %v4377_v0, %v4373_v29  ;;  %v4382_v35 = vadd.f32 %v4378_v36, %v4374_v4  ;;  %v4391_v55 = vmul.f32 %v10553_v15, %v10621_v34  ;;  %v4392_v13 = vmul.f32 %v10557_v60, %v10621_v34 }
 0x3be   : > { %v4393_v46 = vmul.f32 %v10561_v56, %v10621_v34  ;;  %v4394_v22 = vmul.f32 %v12506_v52, %v10621_v34  ;;  %v4387_v19 = vadd.f32 %v4383_v18, %v4379_v44  ;;  %v4388_v47 = vadd.f32 %v4384_v42, %v4380_v63 }
 0x3bf   : > { %v4389_v3 = vadd.f32 %v4385_v41, %v4381_v11  ;;  %v4390_v26 = vadd.f32 %v4386_v28, %v4382_v35  ;;  %v4399_v10 = vmul.f32 %v10572_v49, %v12523_v58  ;;  %v4400_v29 = vmul.f32 %v10576_v62, %v12523_v58  ;;  %v12524_v28 = vld [vmem:[#allocation44_spill] sm:$0xff] }
 0x3c0   : > { %v4401_v4 = vmul.f32 %v10580_v59, %v12523_v58  ;;  %v4402_v23 = vmul.f32 %v10584_v7, %v12523_v58  ;;  %v4395_v6 = vadd.f32 %v4391_v55, %v4387_v19  ;;  %v4396_v0 = vadd.f32 %v4392_v13, %v4388_v47  ;;  %v12525_v13 = vld [vmem:[#allocation56_spill] sm:$0xff] }
 0x3c1   : > { %v4397_v36 = vadd.f32 %v4393_v46, %v4389_v3  ;;  %v4398_v18 = vadd.f32 %v4394_v22, %v4390_v26  ;;  %v4407_v42 = vmul.f32 %v10588_v54, %v12508_v61  ;;  %v4408_v41 = vmul.f32 %v10592_v43, %v12508_v61  ;;  %v12526_v22 = vld [vmem:[#allocation33_spill] sm:$0xff]  ;;  %v10904_v26 = vld [vmem:[%s5752_s13 + $0x6d] ss:$0 sm:$0xff] }
 0x3c2   : > { %v4409_v44 = vmul.f32 %v12524_v28, %v12508_v61  ;;  %v4410_v63 = vmul.f32 %v10600_v38, %v12508_v61  ;;  %v4403_v11 = vadd.f32 %v4399_v10, %v4395_v6  ;;  %v4404_v35 = vadd.f32 %v4400_v29, %v4396_v0  ;;  %12527 = vst [vmem:[#allocation40_spill] sm:$0xff] %v10904_v26 }
 0x3c3   : > { %v4405_v58 = vadd.f32 %v4401_v4, %v4397_v36  ;;  %v4406_v55 = vadd.f32 %v4402_v23, %v4398_v18  ;;  %v4415_v47 = vmul.f32 %v10604_v2, %v10809_v1  ;;  %v4416_v3 = vmul.f32 %v10608_v51, %v10809_v1 }
 0x3c4   : > { %v4417_v46 = vmul.f32 %v12525_v13, %v10809_v1  ;;  %v4418_v19 = vmul.f32 %v12526_v22, %v10809_v1  ;;  %v4411_v28 = vadd.f32 %v4407_v42, %v4403_v11  ;;  %v4412_v61 = vadd.f32 %v4408_v41, %v4404_v35  ;;  %v12528_v42 = vld [vmem:[#allocation29_spill] sm:$0xff] }
 0x3c5   : > { %v4413_v10 = vadd.f32 %v4409_v44, %v4405_v58  ;;  %v4414_v29 = vadd.f32 %v4410_v63, %v4406_v55  ;;  %v4423_v4 = vmul.f32 %v10623_v39, %v10904_v26  ;;  %v4424_v23 = vmul.f32 %v10627_v24, %v10904_v26 }
 0x3c6   : > { %v4425_v6 = vmul.f32 %v10631_v30, %v10904_v26  ;;  %v4426_v0 = vmul.f32 %v10635_v9, %v10904_v26  ;;  %v4419_v36 = vadd.f32 %v4415_v47, %v4411_v28  ;;  %v4420_v18 = vadd.f32 %v4416_v3, %v4412_v61  ;;  %v12529_v47 = vld [vmem:[#allocation30_spill] sm:$0xff] }
 0x3c7   : > { %v4421_v1 = vadd.f32 %v4417_v46, %v4413_v10  ;;  %v4422_v22 = vadd.f32 %v4418_v19, %v4414_v29  ;;  %v4497_v58 = vmul.f32 %v10268_v8, %v12528_v42  ;;  %v4498_v41 = vmul.f32 %v10272_v45, %v12528_v42  ;;  %v5139_v19 = vld [vmem:[%s6629_s15 + $0x160] sm:$0xff]  ;;  %v5141_v61 = vld [vmem:[%s6629_s15 + $0x170] sm:$0xff]  ;;  %v5142_v10 = vld [vmem:[%s6629_s15 + $0x178] sm:$0xff] }
 0x3c8   : > { %v4499_v44 = vmul.f32 %v10276_v5, %v12528_v42  ;;  %v4500_v63 = vmul.f32 %v10280_v16, %v12528_v42  ;;  %v4427_v28 = vadd.f32 %v4423_v4, %v4419_v36  ;;  %v4428_v11 = vadd.f32 %v4424_v23, %v4420_v18  ;;  %v12539_v42 = vld [vmem:[#allocation53_spill] sm:$0xff] }
 0x3c9   : > { %v4429_v35 = vadd.f32 %v4425_v6, %v4421_v1  ;;  %v4430_v55 = vadd.f32 %v4426_v0, %v4422_v22  ;;  %v4501_v8 = vmul.f32 %v10292_v50, %v12529_v47  ;;  %v4502_v45 = vmul.f32 %v10296_v14, %v12529_v47  ;;  %v5140_v50 = vld [vmem:[%s6629_s15 + $0x168] sm:$0xff] }
 0x3ca   : > { %v4503_v3 = vmul.f32 %v10300_v17, %v12529_v47  ;;  %v4504_v5 = vmul.f32 %v10304_v25, %v12529_v47  ;;  %v4431_v16 = vmax.f32 %v10838_v53, %v4427_v28  ;;  %v4432_v46 = vmax.f32 %v10843_v33, %v4428_v11  ;;  %v10939_v17 = vld [vmem:[%s5752_s13 + $0x1a] ss:$0 sm:$0xff]  ;;  %v12530_v6 = vld [vmem:[#allocation26_spill] sm:$0xff]  ;;  %v12533_v53 = vld [vmem:[#allocation52_spill] sm:$0xff] }
 0x3cb   : > { %v4433_v1 = vmax.f32 %v10848_v31, %v4429_v35  ;;  %v4434_v22 = vmax.f32 %v10853_v48, %v4430_v55  ;;  %v4505_v29 = vadd.f32 %v4501_v8, %v4497_v58  ;;  %v4506_v14 = vadd.f32 %v4502_v45, %v4498_v41  ;;  %v12531_v25 = vld [vmem:[#allocation39_spill] sm:$0xff]  ;;  %v12534_v33 = vld [vmem:[#allocation50_spill] sm:$0xff]  ;;  %v12537_v48 = vld [vmem:[#allocation41_spill] sm:$0xff] }
 0x3cc   : > { %v4507_v4 = vadd.f32 %v4503_v3, %v4499_v44  ;;  %v4508_v23 = vadd.f32 %v4504_v5, %v4500_v63  ;;  %v10943_v0 = vadd.f32 %v12531_v25, %v12530_v6  ;;  %v10947_v36 = vadd.f32 %v12534_v33, %v12533_v53  ;;  %v12536_v31 = vld [vmem:[#allocation35_spill] sm:$0xff]  ;;  %v12540_v28 = vld [vmem:[#allocation54_spill] sm:$0xff] }
 0x3cd   : > { %v10951_v18 = vadd.f32 %v12537_v48, %v12536_v31  ;;  %v10955_v58 = vadd.f32 %v12540_v28, %v12539_v42  ;;  %v4509_v41 = vmul.f32 %v12502_v40, %v10939_v17  ;;  %v4510_v44 = vmul.f32 %v12517_v20, %v10939_v17 }
 0x3ce   : > { %12532 = vst [vmem:[#allocation47_spill] sm:$0xff] %v10943_v0  ;;  %12535 = vst [vmem:[#allocation21_spill] sm:$0xff] %v10947_v36  ;;  %v4511_v63 = vmul.f32 %v12518_v32, %v10939_v17  ;;  %v4512_v11 = vmul.f32 %v12519_v12, %v10939_v17  ;;  %v10965_v35 = vmul.f32 %v5139_v19, %v4431_v16  ;;  %v12546_v12 = vld [vmem:[#allocation25_spill] sm:$0xff]  ;;  %v11080_v36 = vld [vmem:[#allocation7 + $0x60] sm:$0xff] }
 0x3cf   : > { %12538 = vst [vmem:[#allocation48_spill] sm:$0xff] %v10951_v18  ;;  %12541 = vst [vmem:[#allocation34_spill] sm:$0xff] %v10955_v58  ;;  %v10967_v55 = vmul.f32 %v5140_v50, %v4432_v46  ;;  %v10969_v8 = vmul.f32 %v5141_v61, %v4433_v1  ;;  %v10971_v45 = vmul.f32 %v5142_v10, %v4434_v22  ;;  %v12547_v1 = vld [vmem:[#allocation27_spill] sm:$0xff] }
 0x3d0   : > { %12542 = vst [vmem:[#allocation31_spill] sm:$0xff] %v10965_v35  ;;  %v4513_v3 = vadd.f32 %v4509_v41, %v4505_v29  ;;  %v4514_v40 = vadd.f32 %v4510_v44, %v4506_v14  ;;  %v4515_v5 = vadd.f32 %v4511_v63, %v4507_v4  ;;  %v4516_v6 = vadd.f32 %v4512_v11, %v4508_v23  ;;  %v10990_v61 = vld [vmem:[%s5752_s13 + $0x36] ss:$0 sm:$0xff]  ;;  %v12548_v44 = vld [vmem:[#allocation44_spill] sm:$0xff] }
 0x3d1   : > { %12543 = vst [vmem:[#allocation28_spill] sm:$0xff] %v10967_v55  ;;  %12544 = vst [vmem:[#allocation51_spill] sm:$0xff] %v10969_v8  ;;  %v4517_v20 = vmul.f32 %v12520_v37, %v10570_v21  ;;  %v4518_v32 = vmul.f32 %v12521_v57, %v10570_v21  ;;  %v4519_v16 = vmul.f32 %v12546_v12, %v10570_v21  ;;  %v11084_v0 = vld [vmem:[#allocation7 + $0x68] sm:$0xff] }
 0x3d2   : > { %12545 = vst [vmem:[#allocation38_spill] sm:$0xff] %v10971_v45  ;;  %v4520_v46 = vmul.f32 %v10549_v27, %v10570_v21  ;;  %v4525_v22 = vmul.f32 %v10553_v15, %v12547_v1  ;;  %v4526_v19 = vmul.f32 %v10557_v60, %v12547_v1  ;;  %v4527_v50 = vmul.f32 %v10561_v56, %v12547_v1  ;;  %v11077_v45 = vld [vmem:[#allocation7 + $0x58] sm:$0xff] }
 0x3d3   : > { %v4528_v37 = vmul.f32 %v12506_v52, %v12547_v1  ;;  %v4521_v57 = vadd.f32 %v4517_v20, %v4513_v3  ;;  %v4522_v10 = vadd.f32 %v4518_v32, %v4514_v40  ;;  %v4523_v29 = vadd.f32 %v4519_v16, %v4515_v5  ;;  %v12549_v20 = vld [vmem:[#allocation23_spill] sm:$0xff]  ;;  %12553 = vst [vmem:[#allocation49_spill] sm:$0xff] %v11077_v45 }
 0x3d4   : > { %v4524_v14 = vadd.f32 %v4520_v46, %v4516_v6  ;;  %v4533_v4 = vmul.f32 %v10572_v49, %v10990_v61  ;;  %v4534_v23 = vmul.f32 %v10576_v62, %v10990_v61  ;;  %v4535_v25 = vmul.f32 %v10580_v59, %v10990_v61  ;;  %v12550_v46 = vld [vmem:[#allocation33_spill] sm:$0xff]  ;;  %12554 = vst [vmem:[#allocation24_spill] sm:$0xff] %v11080_v36 }
 0x3d5   : > { %v4536_v53 = vmul.f32 %v10584_v7, %v10990_v61  ;;  %v4529_v33 = vadd.f32 %v4525_v22, %v4521_v57  ;;  %v4530_v31 = vadd.f32 %v4526_v19, %v4522_v10  ;;  %v4531_v48 = vadd.f32 %v4527_v50, %v4523_v29  ;;  %v11017_v19 = vld [vmem:[%s5752_s13 + $0x52] ss:$0 sm:$0xff]  ;;  %12555 = vst [vmem:[#allocation19_spill] sm:$0xff] %v11084_v0 }
 0x3d6   : > { %v4532_v42 = vadd.f32 %v4528_v37, %v4524_v14  ;;  %v4541_v28 = vmul.f32 %v10588_v54, %v10621_v34  ;;  %v4542_v41 = vmul.f32 %v10592_v43, %v10621_v34  ;;  %v4543_v63 = vmul.f32 %v12548_v44, %v10621_v34 }
 0x3d7   : > { %v4544_v11 = vmul.f32 %v10600_v38, %v10621_v34  ;;  %v4537_v3 = vadd.f32 %v4533_v4, %v4529_v33  ;;  %v4538_v40 = vadd.f32 %v4534_v23, %v4530_v31  ;;  %v4539_v5 = vadd.f32 %v4535_v25, %v4531_v48  ;;  %v5144_v48 = vld [vmem:[%s5752_s13 + $0x1b] ss:$0 sm:$0xff]  ;;  %v11088_v34 = vld [vmem:[#allocation7 + $0x70] sm:$0xff] }
 0x3d8   : > { %v4540_v6 = vadd.f32 %v4536_v53, %v4532_v42  ;;  %v4549_v32 = vmul.f32 %v10604_v2, %v12549_v20  ;;  %v4550_v12 = vmul.f32 %v10608_v51, %v12549_v20  ;;  %v4551_v16 = vmul.f32 %v12525_v13, %v12549_v20  ;;  %v11028_v42 = vld [vmem:[#allocation7] sm:$0xff]  ;;  %12556 = vst [vmem:[#allocation43_spill] sm:$0xff] %v11088_v34 }
 0x3d9   : > { %v4552_v22 = vmul.f32 %v12550_v46, %v12549_v20  ;;  %v4545_v50 = vadd.f32 %v4541_v28, %v4537_v3  ;;  %v4546_v37 = vadd.f32 %v4542_v41, %v4538_v40  ;;  %v4547_v57 = vadd.f32 %v4543_v63, %v4539_v5  ;;  %v11032_v41 = vld [vmem:[#allocation7 + $0x8] sm:$0xff]  ;;  %v11040_v40 = vld [vmem:[#allocation7 + $0x18] sm:$0xff] }
 0x3da   : > { %v4548_v10 = vadd.f32 %v4544_v11, %v4540_v6  ;;  %v4557_v29 = vmul.f32 %v10623_v39, %v11017_v19  ;;  %v4558_v14 = vmul.f32 %v10627_v24, %v11017_v19  ;;  %v4559_v4 = vmul.f32 %v10631_v30, %v11017_v19  ;;  %v11036_v11 = vld [vmem:[#allocation7 + $0x10] sm:$0xff] }
 0x3db   : > { %v4560_v23 = vmul.f32 %v10635_v9, %v11017_v19  ;;  %v4553_v25 = vadd.f32 %v4549_v32, %v4545_v50  ;;  %v4554_v53 = vadd.f32 %v4550_v12, %v4546_v37  ;;  %v4555_v33 = vadd.f32 %v4551_v16, %v4547_v57  ;;  %v11056_v37 = vld [vmem:[#allocation7 + $0x28] sm:$0xff] }
 0x3dc   : > { %v4556_v31 = vadd.f32 %v4552_v22, %v4548_v10  ;;  %v4565_v28 = vmul.f32 %v11028_v42, %v12529_v47  ;;  %v4566_v63 = vmul.f32 %v11032_v41, %v12529_v47  ;;  %v4567_v3 = vmul.f32 %v11036_v11, %v12529_v47  ;;  %v11052_v22 = vld [vmem:[#allocation7 + $0x20] sm:$0xff]  ;;  %v11060_v10 = vld [vmem:[#allocation7 + $0x30] sm:$0xff] }
 0x3dd   : > { %v4568_v5 = vmul.f32 %v11040_v40, %v12529_v47  ;;  %v11044_v6 = vadd.f32 %v4557_v29, %v4553_v25  ;;  %v11046_v32 = vadd.f32 %v4558_v14, %v4554_v53  ;;  %v11048_v12 = vadd.f32 %v4559_v4, %v4555_v33  ;;  %v11064_v29 = vld [vmem:[#allocation7 + $0x38] sm:$0xff]  ;;  %v11068_v4 = vld [vmem:[#allocation7 + $0x40] sm:$0xff]  ;;  %v11071_v25 = vld [vmem:[#allocation7 + $0x48] sm:$0xff] }
 0x3de   : > { %v11050_v16 = vadd.f32 %v4560_v23, %v4556_v31  ;;  %v4569_v50 = vmul.f32 %v11052_v22, %v10939_v17  ;;  %v4570_v57 = vmul.f32 %v11056_v37, %v10939_v17  ;;  %v4571_v47 = vmul.f32 %v11060_v10, %v10939_v17  ;;  %12551 = vst [vmem:[#allocation55_spill] sm:$0xff] %v11071_v25  ;;  %v11074_v33 = vld [vmem:[#allocation7 + $0x50] sm:$0xff] }
 0x3df   : > { %v4572_v14 = vmul.f32 %v11064_v29, %v10939_v17  ;;  %v4577_v23 = vmul.f32 %v11068_v4, %v5144_v48  ;;  %v4578_v53 = vmul.f32 %v11071_v25, %v5144_v48  ;;  %12552 = vst [vmem:[#allocation22_spill] sm:$0xff] %v11074_v33  ;;  %v4579_v31 = vmul.f32 %v11074_v33, %v5144_v48 }
 0x3e0   : > { %v4580_v58 = vmul.f32 %v11077_v45, %v5144_v48  ;;  %v4573_v8 = vadd.f32 %v4569_v50, %v4565_v28  ;;  %v4574_v18 = vadd.f32 %v4570_v57, %v4566_v63  ;;  %v4575_v55 = vadd.f32 %v4571_v47, %v4567_v3 }
 0x3e1   : > { %v4576_v17 = vadd.f32 %v4572_v14, %v4568_v5  ;;  %v4585_v35 = vmul.f32 %v11080_v36, %v12547_v1  ;;  %v4586_v26 = vmul.f32 %v11084_v0, %v12547_v1  ;;  %v4587_v48 = vmul.f32 %v11088_v34, %v12547_v1  ;;  %v11103_v34 = vld [vmem:[%s5752_s13 + $0x37] ss:$0 sm:$0xff] }
 0x3e2   : > { %v4588_v28 = vmul.f32 %v10549_v27, %v12547_v1  ;;  %v4581_v63 = vadd.f32 %v4577_v23, %v4573_v8  ;;  %v4582_v3 = vadd.f32 %v4578_v53, %v4574_v18  ;;  %v4583_v5 = vadd.f32 %v4579_v31, %v4575_v55  ;;  %12557 = vst [vmem:[#allocation37_spill] sm:$0xff] %v11103_v34 }
 0x3e3   : > { %v4584_v50 = vadd.f32 %v4580_v58, %v4576_v17  ;;  %v4593_v57 = vmul.f32 %v10553_v15, %v10990_v61  ;;  %v4594_v47 = vmul.f32 %v10557_v60, %v10990_v61  ;;  %v4595_v14 = vmul.f32 %v10561_v56, %v10990_v61 }
 0x3e4   : > { %v4596_v0 = vmul.f32 %v12506_v52, %v10990_v61  ;;  %v4589_v36 = vadd.f32 %v4585_v35, %v4581_v63  ;;  %v4590_v27 = vadd.f32 %v4586_v26, %v4582_v3  ;;  %v4591_v8 = vadd.f32 %v4587_v48, %v4583_v5 }
 0x3e5   : > { %v4592_v18 = vadd.f32 %v4588_v28, %v4584_v50  ;;  %v4601_v58 = vmul.f32 %v10572_v49, %v11103_v34  ;;  %v4602_v55 = vmul.f32 %v10576_v62, %v11103_v34  ;;  %v4603_v23 = vmul.f32 %v10580_v59, %v11103_v34 }
 0x3e6   : > { %v4604_v53 = vmul.f32 %v10584_v7, %v11103_v34  ;;  %v4597_v31 = vadd.f32 %v4593_v57, %v4589_v36  ;;  %v4598_v17 = vadd.f32 %v4594_v47, %v4590_v27  ;;  %v4599_v52 = vadd.f32 %v4595_v14, %v4591_v8  ;;  %v11130_v14 = vld [vmem:[%s5752_s13 + $0x53] ss:$0 sm:$0xff] }
 0x3e7   : > { %v4600_v35 = vadd.f32 %v4596_v0, %v4592_v18  ;;  %v4609_v26 = vmul.f32 %v10588_v54, %v12549_v20  ;;  %v4610_v48 = vmul.f32 %v10592_v43, %v12549_v20  ;;  %v4611_v28 = vmul.f32 %v12548_v44, %v12549_v20  ;;  %12558 = vst [vmem:[#allocation20_spill] sm:$0xff] %v11130_v14 }
 0x3e8   : > { %v4612_v63 = vmul.f32 %v10600_v38, %v12549_v20  ;;  %v4605_v3 = vadd.f32 %v4601_v58, %v4597_v31  ;;  %v4606_v5 = vadd.f32 %v4602_v55, %v4598_v17  ;;  %v4607_v50 = vadd.f32 %v4603_v23, %v4599_v52 }
 0x3e9   : > { %v4608_v36 = vadd.f32 %v4604_v53, %v4600_v35  ;;  %v4617_v27 = vmul.f32 %v10604_v2, %v11017_v19  ;;  %v4618_v0 = vmul.f32 %v10608_v51, %v11017_v19  ;;  %v4619_v57 = vmul.f32 %v12525_v13, %v11017_v19 }
 0x3ea   : > { %v4620_v47 = vmul.f32 %v12550_v46, %v11017_v19  ;;  %v4613_v8 = vadd.f32 %v4609_v26, %v4605_v3  ;;  %v4614_v18 = vadd.f32 %v4610_v48, %v4606_v5  ;;  %v4615_v58 = vadd.f32 %v4611_v28, %v4607_v50 }
 0x3eb   : > { %v4616_v55 = vadd.f32 %v4612_v63, %v4608_v36  ;;  %v4625_v52 = vmul.f32 %v10623_v39, %v11130_v14  ;;  %v4626_v23 = vmul.f32 %v10627_v24, %v11130_v14  ;;  %v4627_v53 = vmul.f32 %v10631_v30, %v11130_v14 }
 0x3ec   : > { %v4628_v31 = vmul.f32 %v10635_v9, %v11130_v14  ;;  %v4621_v17 = vadd.f32 %v4617_v27, %v4613_v8  ;;  %v4622_v35 = vadd.f32 %v4618_v0, %v4614_v18  ;;  %v4623_v34 = vadd.f32 %v4619_v57, %v4615_v58 }
 0x3ed   : > { %v4624_v46 = vadd.f32 %v4620_v47, %v4616_v55  ;;  %v4637_v26 = vmul.f32 %v11028_v42, %v10570_v21  ;;  %v4638_v48 = vmul.f32 %v11032_v41, %v10570_v21  ;;  %v4639_v28 = vmul.f32 %v11036_v11, %v10570_v21 }
 0x3ee   : > { %v4640_v63 = vmul.f32 %v11040_v40, %v10570_v21  ;;  %v11148_v3 = vadd.f32 %v4625_v52, %v4621_v17  ;;  %v11150_v5 = vadd.f32 %v4626_v23, %v4622_v35  ;;  %v11152_v50 = vadd.f32 %v4627_v53, %v4623_v34  ;;  %v12559_v35 = vld [vmem:[#allocation36_spill] sm:$0xff] }
 0x3ef   : > { %v11154_v36 = vadd.f32 %v4628_v31, %v4624_v46  ;;  %v4641_v27 = vmul.f32 %v11052_v22, %v12547_v1  ;;  %v4642_v0 = vmul.f32 %v11056_v37, %v12547_v1  ;;  %v4643_v57 = vmul.f32 %v11060_v10, %v12547_v1  ;;  %v12560_v46 = vld [vmem:[#allocation24_spill] sm:$0xff] }
 0x3f0   : > { %v4644_v21 = vmul.f32 %v11064_v29, %v12547_v1  ;;  %v4649_v23 = vmul.f32 %v11068_v4, %v10990_v61  ;;  %v4650_v53 = vmul.f32 %v11071_v25, %v10990_v61  ;;  %v4651_v31 = vmul.f32 %v11074_v33, %v10990_v61 }
 0x3f1   : > { %v4645_v18 = vadd.f32 %v4641_v27, %v4637_v26  ;;  %v4646_v58 = vadd.f32 %v4642_v0, %v4638_v48  ;;  %v4647_v55 = vadd.f32 %v4643_v57, %v4639_v28  ;;  %v4652_v17 = vmul.f32 %v11077_v45, %v10990_v61  ;;  %v12561_v26 = vld [vmem:[#allocation19_spill] sm:$0xff]  ;;  %v12563_v27 = vld [vmem:[#allocation46_spill] sm:$0xff] }
 0x3f2   : > { %v4648_v52 = vadd.f32 %v4644_v21, %v4640_v63  ;;  %v4657_v34 = vmul.f32 %v12560_v46, %v12559_v35  ;;  %v4658_v48 = vmul.f32 %v12561_v26, %v12559_v35  ;;  %v12562_v28 = vld [vmem:[#allocation43_spill] sm:$0xff]  ;;  %v4660_v0 = vmul.f32 %v12563_v27, %v12559_v35  ;;  %v12564_v26 = vld [vmem:[#allocation45_spill] sm:$0xff] }
 0x3f3   : > { %v4659_v63 = vmul.f32 %v12562_v28, %v12559_v35  ;;  %v4653_v57 = vadd.f32 %v4649_v23, %v4645_v18  ;;  %v4654_v21 = vadd.f32 %v4650_v53, %v4646_v58  ;;  %v4655_v8 = vadd.f32 %v4651_v31, %v4647_v55  ;;  %v12565_v53 = vld [vmem:[#allocation42_spill] sm:$0xff] }
 0x3f4   : > { %v4656_v47 = vadd.f32 %v4652_v17, %v4648_v52  ;;  %v4665_v14 = vmul.f32 %v10553_v15, %v12549_v20  ;;  %v4666_v45 = vmul.f32 %v10557_v60, %v12549_v20  ;;  %v4667_v46 = vmul.f32 %v10561_v56, %v12549_v20 }
 0x3f5   : > { %v4668_v33 = vmul.f32 %v12564_v26, %v12549_v20  ;;  %v4661_v28 = vadd.f32 %v4657_v34, %v4653_v57  ;;  %v4662_v25 = vadd.f32 %v4658_v48, %v4654_v21  ;;  %v4663_v35 = vadd.f32 %v4659_v63, %v4655_v8 }
 0x3f6   : > { %v4664_v18 = vadd.f32 %v4660_v0, %v4656_v47  ;;  %v4673_v58 = vmul.f32 %v10572_v49, %v11017_v19  ;;  %v4674_v15 = vmul.f32 %v10576_v62, %v11017_v19  ;;  %v4675_v60 = vmul.f32 %v10580_v59, %v11017_v19  ;;  %v11213_v59 = vld [vmem:[%s5752_s13 + $0x6e] ss:$0 sm:$0xff] }
 0x3f7   : > { %v4676_v56 = vmul.f32 %v10584_v7, %v11017_v19  ;;  %v4669_v55 = vadd.f32 %v4665_v14, %v4661_v28  ;;  %v4670_v52 = vadd.f32 %v4666_v45, %v4662_v25  ;;  %v4671_v23 = vadd.f32 %v4667_v46, %v4663_v35  ;;  %v12566_v25 = vld [vmem:[#allocation40_spill] sm:$0xff] }
 0x3f8   : > { %v4672_v34 = vadd.f32 %v4668_v33, %v4664_v18  ;;  %v4681_v8 = vmul.f32 %v10588_v54, %v12565_v53  ;;  %v4682_v47 = vmul.f32 %v10592_v43, %v12565_v53  ;;  %v4683_v49 = vmul.f32 %v12548_v44, %v12565_v53  ;;  %v12567_v44 = vld [vmem:[#allocation33_spill] sm:$0xff] }
 0x3f9   : > { %v4684_v62 = vmul.f32 %v10600_v38, %v12565_v53  ;;  %v4677_v31 = vadd.f32 %v4673_v58, %v4669_v55  ;;  %v4678_v7 = vadd.f32 %v4674_v15, %v4670_v52  ;;  %v4679_v14 = vadd.f32 %v4675_v60, %v4671_v23  ;;  %v12572_v52 = vld [vmem:[#allocation37_spill] sm:$0xff] }
 0x3fa   : > { %v4680_v45 = vadd.f32 %v4676_v56, %v4672_v34  ;;  %v4689_v33 = vmul.f32 %v10604_v2, %v12566_v25  ;;  %v4690_v54 = vmul.f32 %v10608_v51, %v12566_v25  ;;  %v4691_v43 = vmul.f32 %v12525_v13, %v12566_v25  ;;  %v12574_v34 = vld [vmem:[#allocation22_spill] sm:$0xff] }
 0x3fb   : > { %v4692_v46 = vmul.f32 %v12567_v44, %v12566_v25  ;;  %v4685_v17 = vadd.f32 %v4681_v8, %v4677_v31  ;;  %v4686_v38 = vadd.f32 %v4682_v47, %v4678_v7  ;;  %v4687_v26 = vadd.f32 %v4683_v49, %v4679_v14  ;;  %v12577_v8 = vld [vmem:[#allocation19_spill] sm:$0xff]  ;;  %v5436_v31 = vld [vmem:[#allocation7 + $0x78] sm:$0xff] }
 0x3fc   : > { %v4688_v48 = vadd.f32 %v4684_v62, %v4680_v45  ;;  %v4697_v28 = vmul.f32 %v10623_v39, %v11213_v59  ;;  %v4698_v63 = vmul.f32 %v10627_v24, %v11213_v59  ;;  %v4699_v2 = vmul.f32 %v10631_v30, %v11213_v59  ;;  %v12578_v49 = vld [vmem:[#allocation43_spill] sm:$0xff] }
 0x3fd   : > { %v4700_v51 = vmul.f32 %v10635_v9, %v11213_v59  ;;  %v4693_v13 = vadd.f32 %v4689_v33, %v4685_v17  ;;  %v4694_v27 = vadd.f32 %v4690_v54, %v4686_v38  ;;  %v4695_v0 = vadd.f32 %v4691_v43, %v4687_v26  ;;  %v5437_v54 = vld [vmem:[#allocation7 + $0x80] sm:$0xff]  ;;  %v5438_v44 = vld [vmem:[#allocation7 + $0x88] sm:$0xff]  ;;  %v5439_v17 = vld [vmem:[#allocation7 + $0x90] sm:$0xff] }
 0x3fe   : > { %v4696_v57 = vadd.f32 %v4692_v46, %v4688_v48  ;;  %v4709_v21 = vmul.f32 %v11028_v42, %v12547_v1  ;;  %v4710_v35 = vmul.f32 %v11032_v41, %v12547_v1  ;;  %v4711_v39 = vmul.f32 %v11036_v11, %v12547_v1  ;;  %v5440_v26 = vld [vmem:[#allocation7 + $0x98] sm:$0xff] }
 0x3ff   : > { %v4712_v24 = vmul.f32 %v11040_v40, %v12547_v1  ;;  %v4701_v30 = vadd.f32 %v4697_v28, %v4693_v13  ;;  %v4702_v18 = vadd.f32 %v4698_v63, %v4694_v27  ;;  %v4703_v58 = vadd.f32 %v4699_v2, %v4695_v0  ;;  %v12579_v13 = vld [vmem:[#allocation20_spill] sm:$0xff] }
 0x400   : > { %v4704_v9 = vadd.f32 %v4700_v51, %v4696_v57  ;;  %v4713_v15 = vmul.f32 %v11052_v22, %v10990_v61  ;;  %v4714_v60 = vmul.f32 %v11056_v37, %v10990_v61  ;;  %v4715_v42 = vmul.f32 %v11060_v10, %v10990_v61  ;;  %v5441_v51 = vld [vmem:[#allocation7 + $0xa0] sm:$0xff]  ;;  %v5442_v0 = vld [vmem:[#allocation7 + $0xa8] sm:$0xff] }
 0x401   : > { %v4716_v41 = vmul.f32 %v11064_v29, %v10990_v61  ;;  %v12568_v11 = vmax.f32 %v11044_v6, %v11148_v3  ;;  %v12569_v40 = vmax.f32 %v11046_v32, %v11150_v5  ;;  %v12570_v22 = vmax.f32 %v11048_v12, %v11152_v50  ;;  %v12573_v32 = vld [vmem:[#allocation55_spill] sm:$0xff]  ;;  %v12575_v50 = vld [vmem:[#allocation49_spill] sm:$0xff] }
 0x402   : > { %v12571_v10 = vmax.f32 %v11050_v16, %v11154_v36  ;;  %v4717_v61 = vadd.f32 %v4713_v15, %v4709_v21  ;;  %v4718_v29 = vadd.f32 %v4714_v60, %v4710_v35  ;;  %v4719_v6 = vadd.f32 %v4715_v42, %v4711_v39  ;;  %v12576_v16 = vld [vmem:[#allocation24_spill] sm:$0xff]  ;;  %v5444_v39 = vld [vmem:[#allocation7 + $0xb8] sm:$0xff] }
 0x403   : > { %v11250_v1 = vmax.f32 %v12568_v11, %v4701_v30  ;;  %v11255_v56 = vmax.f32 %v12569_v40, %v4702_v18  ;;  %v11260_v37 = vmax.f32 %v12570_v22, %v4703_v58  ;;  %v4720_v3 = vadd.f32 %v4716_v41, %v4712_v24  ;;  %v5443_v21 = vld [vmem:[#allocation7 + $0xb0] sm:$0xff]  ;;  %v5446_v60 = vld [vmem:[#allocation7 + $0xc8] sm:$0xff]  ;;  %v5448_v40 = vld [vmem:[#allocation7 + $0xd8] sm:$0xff] }
 0x404   : > { %v11265_v55 = vmax.f32 %v12571_v10, %v4704_v9  ;;  %v4721_v23 = vmul.f32 %v11068_v4, %v12572_v52  ;;  %v4722_v5 = vmul.f32 %v12573_v32, %v12572_v52  ;;  %v4723_v12 = vmul.f32 %v12574_v34, %v12572_v52  ;;  %v5445_v9 = vld [vmem:[#allocation7 + $0xc0] sm:$0xff]  ;;  %v5447_v41 = vld [vmem:[#allocation7 + $0xd0] sm:$0xff]  ;;  %v5150_v10 = vld [vmem:[%s5752_s13 + $0x6f] ss:$0 sm:$0xff] }
 0x405   : > { %v4724_v53 = vmul.f32 %v12575_v50, %v12572_v52  ;;  %v4729_v36 = vmul.f32 %v12576_v16, %v12549_v20  ;;  %v4730_v47 = vmul.f32 %v12577_v8, %v12549_v20  ;;  %v4731_v62 = vmul.f32 %v12578_v49, %v12549_v20  ;;  %v5449_v52 = vld [vmem:[#allocation7 + $0xe0] sm:$0xff]  ;;  %v5450_v32 = vld [vmem:[#allocation7 + $0xe8] sm:$0xff]  ;;  %v5451_v34 = vld [vmem:[#allocation7 + $0xf0] sm:$0xff] }
 0x406   : > { %v4732_v4 = vmul.f32 %v5436_v31, %v12549_v20  ;;  %v4725_v7 = vadd.f32 %v4721_v23, %v4717_v61  ;;  %v4726_v14 = vadd.f32 %v4722_v5, %v4718_v29  ;;  %v4727_v45 = vadd.f32 %v4723_v12, %v4719_v6  ;;  %v5452_v50 = vld [vmem:[#allocation7 + $0xf8] sm:$0xff] }
 0x407   : > { %v4728_v33 = vadd.f32 %v4724_v53, %v4720_v3  ;;  %v4737_v43 = vmul.f32 %v5437_v54, %v11017_v19  ;;  %v4738_v46 = vmul.f32 %v5438_v44, %v11017_v19  ;;  %v4739_v38 = vmul.f32 %v5439_v17, %v11017_v19 }
 0x408   : > { %v4740_v48 = vmul.f32 %v5440_v26, %v11017_v19  ;;  %v4733_v28 = vadd.f32 %v4729_v36, %v4725_v7  ;;  %v4734_v63 = vadd.f32 %v4730_v47, %v4726_v14  ;;  %v4735_v2 = vadd.f32 %v4731_v62, %v4727_v45  ;;  %v5453_v47 = vld [vmem:[#allocation7 + $0x100] sm:$0xff]  ;;  %v5454_v62 = vld [vmem:[#allocation7 + $0x108] sm:$0xff]  ;;  %v5456_v14 = vld [vmem:[#allocation7 + $0x118] sm:$0xff] }
 0x409   : > { %v4736_v20 = vadd.f32 %v4732_v4, %v4728_v33  ;;  %v4745_v27 = vmul.f32 %v5441_v51, %v12579_v13  ;;  %v4746_v57 = vmul.f32 %v5442_v0, %v12579_v13  ;;  %v4747_v35 = vmul.f32 %v5443_v21, %v12579_v13  ;;  %v5455_v4 = vld [vmem:[#allocation7 + $0x110] sm:$0xff]  ;;  %v12587_v21 = vld [vmem:[#allocation38_spill] sm:$0xff] }
 0x40a   : > { %v4748_v24 = vmul.f32 %v5444_v39, %v12579_v13  ;;  %v4741_v30 = vadd.f32 %v4737_v43, %v4733_v28  ;;  %v4742_v18 = vadd.f32 %v4738_v46, %v4734_v63  ;;  %v4743_v19 = vadd.f32 %v4739_v38, %v4735_v2  ;;  %v5151_v26 = vld [vmem:[%s6629_s15 + $0x180] sm:$0xff]  ;;  %v12581_v28 = vld [vmem:[#allocation31_spill] sm:$0xff]  ;;  %v5152_v39 = vld [vmem:[%s6629_s15 + $0x188] sm:$0xff] }
 0x40b   : > { %v4744_v58 = vadd.f32 %v4740_v48, %v4736_v20  ;;  %v4753_v15 = vmul.f32 %v5445_v9, %v12566_v25  ;;  %v4754_v42 = vmul.f32 %v5446_v60, %v12566_v25  ;;  %v4755_v11 = vmul.f32 %v5447_v41, %v12566_v25  ;;  %v12580_v48 = vld [vmem:[#allocation47_spill] sm:$0xff]  ;;  %v12582_v2 = vld [vmem:[#allocation21_spill] sm:$0xff]  ;;  %v12583_v20 = vld [vmem:[#allocation28_spill] sm:$0xff] }
 0x40c   : > { %v4756_v22 = vmul.f32 %v5448_v40, %v12566_v25  ;;  %v4749_v61 = vadd.f32 %v4745_v27, %v4741_v30  ;;  %v4750_v29 = vadd.f32 %v4746_v57, %v4742_v18  ;;  %v4751_v6 = vadd.f32 %v4747_v35, %v4743_v19  ;;  %v12584_v13 = vld [vmem:[#allocation48_spill] sm:$0xff]  ;;  %v12585_v27 = vld [vmem:[#allocation51_spill] sm:$0xff]  ;;  %v12586_v57 = vld [vmem:[#allocation34_spill] sm:$0xff] }
 0x40d   : > { %v4752_v3 = vadd.f32 %v4748_v24, %v4744_v58  ;;  %v4761_v23 = vmul.f32 %v5449_v52, %v11213_v59  ;;  %v4762_v5 = vmul.f32 %v5450_v32, %v11213_v59  ;;  %v4763_v12 = vmul.f32 %v5451_v34, %v11213_v59  ;;  %v5153_v24 = vld [vmem:[%s6629_s15 + $0x190] sm:$0xff]  ;;  %v5154_v30 = vld [vmem:[%s6629_s15 + $0x198] sm:$0xff] }
 0x40e   : > { %v4764_v53 = vmul.f32 %v5452_v50, %v11213_v59  ;;  %v4757_v16 = vadd.f32 %v4753_v15, %v4749_v61  ;;  %v4758_v36 = vadd.f32 %v4754_v42, %v4750_v29  ;;  %v4759_v25 = vadd.f32 %v4755_v11, %v4751_v6  ;;  %v12588_v61 = vld [vmem:[#allocation18_spill] sm:$0xff]  ;;  %v12589_v6 = vld [vmem:[#allocation17_spill] sm:$0xff] }
 0x40f   : > { %v4760_v8 = vadd.f32 %v4756_v22, %v4752_v3  ;;  %v4769_v49 = vmul.f32 %v5453_v47, %v5150_v10  ;;  %v4770_v31 = vmul.f32 %v5454_v62, %v5150_v10  ;;  %v4771_v7 = vmul.f32 %v5455_v4, %v5150_v10  ;;  %v12590_v3 = vld [vmem:[#allocation16_spill] sm:$0xff] }
 0x410   : > { %v4772_v45 = vmul.f32 %v5456_v14, %v5150_v10  ;;  %v4765_v33 = vadd.f32 %v4761_v23, %v4757_v16  ;;  %v4766_v54 = vadd.f32 %v4762_v5, %v4758_v36  ;;  %v4767_v43 = vadd.f32 %v4763_v12, %v4759_v25  ;;  %v4808_v16 = vld [vmem:[#allocation5] sm:$0x1] (%p73_p4) }
 0x411   : > { %v4768_v59 = vadd.f32 %v4764_v53, %v4760_v8  ;;  %v4445_v63 = vadd.f32 %v12581_v28, %v12580_v48  ;;  %v4446_v51 = vadd.f32 %v12583_v20, %v12582_v2  ;;  %v4447_v0 = vadd.f32 %v12585_v27, %v12584_v13 }
 0x412   : > { %v4773_v44 = vadd.f32 %v4769_v49, %v4765_v33  ;;  %v4774_v46 = vadd.f32 %v4770_v31, %v4766_v54  ;;  %v4775_v17 = vadd.f32 %v4771_v7, %v4767_v43  ;;  %v4448_v35 = vadd.f32 %v12587_v21, %v12586_v57 }
 0x413   : > { %v4776_v38 = vadd.f32 %v4772_v45, %v4768_v59 }
 0x414   : > { %v4777_v18 = vmax.f32 %v11250_v1, %v4773_v44  ;;  %v4778_v19 = vmax.f32 %v11255_v56, %v4774_v46  ;;  %v4779_v58 = vmax.f32 %v11260_v37, %v4775_v17  ;;  %v12591_v1 = vld [vmem:[#allocation15_spill] sm:$0xff] }
 0x415   : > { %v4780_v9 = vmax.f32 %v11265_v55, %v4776_v38 }
 0x416   : > { %v4787_v15 = vmul.f32 %v5151_v26, %v4777_v18  ;;  %v4788_v60 = vmul.f32 %v5152_v39, %v4778_v19  ;;  %v4789_v42 = vmul.f32 %v5153_v24, %v4779_v58 }
 0x417   : > { %v4790_v41 = vmul.f32 %v5154_v30, %v4780_v9  ;;  %75 = sbr.rel (!%p73_p4) target bundleno = 77 (0x4d), region = 84 }
 0x418   : > { %v4791_v11 = vadd.f32 %v4787_v15, %v4445_v63  ;;  %v4792_v40 = vadd.f32 %v4788_v60, %v4446_v51  ;;  %v4793_v22 = vadd.f32 %v4789_v42, %v4447_v0 }
 0x419   : > { %v4794_v10 = vadd.f32 %v4790_v41, %v4448_v35 }
 0x41a   : > { %v4795_v29 = vadd.f32 %v12588_v61, %v4791_v11   ;;  %v4796_v52 = vadd.f32 %v12589_v6, %v4792_v40   ;;  %v4797_v23 = vadd.f32 %v12590_v3, %v4793_v22  }
 0x41b   : > { %v4798_v56 = vadd.f32 %v12591_v1, %v4794_v10  }
 0x41c   : > { %v12593_v1 = vmov %v4797_v23  ;;  %v12594_v2 = vmov %v4796_v52  ;;  %v12595_v3 = vmov %v4795_v29  ;;  %v4799_v37 = vadd.f32 (%p73_p4), %v4796_v52, %v4795_v29 }
 0x41d   : > { %v12592_v0 = vmov %v4798_v56 }
 0x41e   :  { %v4800_v55 = vadd.f32 %v4799_v37, %v4797_v23 }
 0x420   :  { %v4801_v32 = vadd.f32 %v4800_v55, %v4798_v56 }
 0x422   :  { %v4802_v5 = vrot.slane %v4801_v32, 4 }
 0x424   :  { %v4803_v34 = vadd.f32 %v4802_v5, %v4801_v32 }
 0x426   :  { %v4804_v12 = vrot.slane %v4803_v34, 2 }
 0x428   :  { %v4805_v50 = vadd.f32 %v4804_v12, %v4803_v34 }
 0x42a   :  { %v4806_v53 = vrot.slane %v4805_v50, 1 }
 0x42c   :  { %v4807_v36 = vadd.f32 %v4806_v53, %v4805_v50 }
 0x42e   :  { %v4809_v25 = vadd.f32 %v4808_v16, %v4807_v36 }
 0x430   :  { %v4810_v8 = vsub.f32 0.0, %v4809_v25 }
 0x432   :  { %v4811_v47 = vmul.f32 1.442695, %v4810_v8 }
 0x434   :  { %5457 = vpow2.f32 %v4811_v47 }
 0x43e   :  { %v5458_v49 = vpop.eup %5457 }
 0x43f   :  { %v4813_v62 = vadd.f32 1.0, %v5458_v49 }
 0x441   :  { %5459 = vrcp.f32 %v4813_v62 }
 0x44b   :  { %v5460_v31 = vpop.eup %5459 }
 0x44c   :  { %4816 = vst [vmem:[#allocation10] sm:$0x1] %v5460_v31 }
 0x44d   :  { %5560 = shalt.err (!%p5557_p9)
}
 0x44e   :  { %s5561_s23 = scalar_lea.hbm %s11346_s4, 16 }
 0x44f   :  { %p5562_p10 = scmp.ne.s32.totalorder %s11346_s4, %s5561_s23  ;;  %p5565_p11 = scmp.lt.u32.totalorder %s5561_s23, %s11346_s4 }
 0x451   :  { %p5567_p12 = pnand %p5565_p11, %p5562_p10 }
 0x453   :  { %5570 = shalt.err (!%p5567_p12)
}
 0x454   :  { %4826 = dma.vmem_to_hbm [thread:$0]  %s4824_s17, 16, %s11346_s4, [#allocation4]  }
 0x455   :  { %5597 = dma.done.wait [#allocation4], 16  }
 0x456   :  { %5598 = vsyncadd [#allocation4], 4294967280 }
 0x457   :  { %4830 = vsyncpa [#allocation3], 1 }
 0x458   :  { %4831 = vsyncpa [#allocation6], 1 }
 0x459   :  { %4832 = vsyncpa [#allocation9], 1 }
 0x45a   :  { %4833 = vsyncpa [#allocation4], 1 }

</bundles_post_ra>
